<compile_context>
chip_gen: v7x
topology: tpu7x:2x2x1
jax: 0.10.0
libtpu: 0.0.40
codegen_flags: <defaults>
</compile_context>

<pallas_src>
import functools
import math

import jax
import jax.numpy as jnp
from jax.experimental import pallas as pl
from jax.experimental.pallas import tpu as pltpu

_COMPUTE_DTYPE = jnp.bfloat16
_BN_EPS = 1e-5


# ------------------------------ kernel helpers ------------------------------ #
def _conv3x3_s1(p_ref, w_ref, b_ref, wp, h, *, relu):
    """Stride-1 3x3 conv on a flattened zero-bordered padded image in VMEM.

    p_ref: ((h+2)*wp, Cin) flattened padded input, wp = w + 2 (row-major).
    w_ref: (9, Cin, Cout)  taps (kh*3 + kw), BN scale folded, bf16.
    b_ref: (1, Cout)       folded BN bias, f32.
    Returns (l, Cout) f32 where row i of the valid output starts at flat i*wp
    (positions j >= w within a row are filler and never consumed).
    """
    w = wp - 2
    l = (h - 1) * wp + w
    cout = w_ref.shape[-1]
    acc = jnp.zeros((l, cout), jnp.float32)
    for t in range(9):
        kh, kw = divmod(t, 3)
        shift = kh * wp + kw
        acc = acc + jnp.dot(p_ref[shift:shift + l, :], w_ref[t],
                            preferred_element_type=jnp.float32)
    y = acc + b_ref[...]
    return jnp.maximum(y, 0.0) if relu else y


def _scatter_rows_to_padded(y, src_starts, in_w, out_w, p_ref, wp):
    """Scatter activation rows into the next layer's zero-bordered padded scratch.

    y:          (l, C) f32 flat conv output of the producing layer.
    src_starts: python list of flat start offsets (one per destination row).
    in_w:       valid width of each source row; if in_w == 2*out_w the even
                columns are selected (stride-2 downsample), else in_w == out_w.
    p_ref:      ((h_out+2)*wp, C) scratch, wp = out_w + 2.
    Only the interior + halo border are written - no full-scratch clear.
    """
    c = y.shape[-1]
    cdt = p_ref.dtype
    yb = y.astype(cdt)
    h_out = len(src_starts)

    # Halo border: top pad row (+ left pad of first content row) and bottom row.
    p_ref[0:wp + 1, :] = jnp.zeros((wp + 1, c), cdt)
    p_ref[(h_out + 1) * wp:(h_out + 2) * wp, :] = jnp.zeros((wp, c), cdt)
    zpad = jnp.zeros((2, c), cdt)

    downsample = in_w != out_w
    sel = None
    if downsample and out_w >= 8:
        # Constant 0/1 even-column selector, applied on the (idle) MXU.
        rr = jax.lax.broadcasted_iota(jnp.int32, (out_w, in_w), 0)
        cc = jax.lax.broadcasted_iota(jnp.int32, (out_w, in_w), 1)
        sel = jnp.where(cc == 2 * rr, 1.0, 0.0).astype(cdt)

    for r, src in enumerate(src_starts):
        dst = (r + 1) * wp + 1
        if not downsample:
            p_ref[dst:dst + out_w, :] = yb[src:src + out_w, :]
        elif sel is not None:
            row = jnp.dot(sel, yb[src:src + in_w, :],
                          preferred_element_type=jnp.float32)
            p_ref[dst:dst + out_w, :] = row.astype(cdt)
        else:                      # tiny rows: unrolled even-column copies
            for s in range(out_w):
                p_ref[dst + s:dst + s + 1, :] = yb[src + 2 * s:src + 2 * s + 1, :]
        # right pad of this row + left pad of the next padded row.
        p_ref[dst + out_w:dst + out_w + 2, :] = zpad


# ------------------------------ fused kernel -------------------------------- #
def _stem_fused_kernel(x_ref,
                       w1_ref, b1_ref, w2_ref, b2_ref, w3_ref, b3_ref,
                       w4_ref, b4_ref, w5_ref, b5_ref,
                       o_ref,
                       p2_ref, p3_ref, p4_ref, p5_ref, *, img):
    """Whole 5-layer stem for one image; all intermediates stay in VMEM."""
    s1, s2, s3, s4 = img // 2, img // 4, img // 8, img // 16

    # ---- layer 1: stride-2 conv via 4-tap space-to-depth (s2d built in XLA) ----
    b1s = s1 + 1                       # s2d block-row stride
    l1 = (s1 - 1) * b1s + s1
    c1 = w1_ref.shape[-1]
    acc1 = jnp.zeros((l1, c1), jnp.float32)
    for t, shift in enumerate((0, 1, b1s, b1s + 1)):
        acc1 = acc1 + jnp.dot(x_ref[0, shift:shift + l1, :], w1_ref[t],
                              preferred_element_type=jnp.float32)
    y1 = jnp.maximum(acc1 + b1_ref[...], 0.0)
    _scatter_rows_to_padded(y1, [r * b1s for r in range(s1)], s1, s1,
                            p2_ref, s1 + 2)

    # ---- layer 2 (stride 2) ----
    y2 = _conv3x3_s1(p2_ref, w2_ref, b2_ref, s1 + 2, s1, relu=True)
    _scatter_rows_to_padded(y2, [2 * r * (s1 + 2) for r in range(s2)], s1, s2,
                            p3_ref, s2 + 2)

    # ---- layer 3 (stride 2) ----
    y3 = _conv3x3_s1(p3_ref, w3_ref, b3_ref, s2 + 2, s2, relu=True)
    _scatter_rows_to_padded(y3, [2 * r * (s2 + 2) for r in range(s3)], s2, s3,
                            p4_ref, s3 + 2)

    # ---- layer 4 (stride 2) ----
    y4 = _conv3x3_s1(p4_ref, w4_ref, b4_ref, s3 + 2, s3, relu=True)
    _scatter_rows_to_padded(y4, [2 * r * (s3 + 2) for r in range(s4)], s3, s4,
                            p5_ref, s4 + 2)

    # ---- layer 5 (stride 1, no ReLU) -> dense output (no filler columns) ----
    y5 = _conv3x3_s1(p5_ref, w5_ref, b5_ref, s4 + 2, s4, relu=False)
    for i in range(s4):
        o_ref[0, i * s4:(i + 1) * s4, :] = (
            y5[i * (s4 + 2): i * (s4 + 2) + s4, :].astype(o_ref.dtype))


# ------------------------------- JAX glue ------------------------------------ #
def _pad_space_to_depth(x):
    """(N, H, W, C) -> flattened space-to-depth of the 1-padded input.

    Returns (N, A*B, 4*C) with A = H/2+1, B = W/2+1, flat row = a*B + b, and
    channel block g = 2*(row parity) + (col parity).  A 1x relayout in XLA.
    """
    n, h, w, c = x.shape
    assert h % 2 == 0 and w % 2 == 0, "stride-2 stem layers need even H, W"
    a, b = h // 2 + 1, w // 2 + 1
    xp = jnp.pad(x, ((0, 0), (1, 1), (1, 1), (0, 0)))
    xs = xp.reshape(n, a, 2, b, 2, c).transpose(0, 1, 3, 2, 4, 5)
    return xs.reshape(n, a * b, 4 * c), b


def _fold_bn(w, b, gamma, beta, mean, var):
    scale = gamma * jax.lax.rsqrt(var + _BN_EPS)
    return w * scale[:, None, None, None], scale * (b - mean) + beta


def _prep_stride2_params(layer_params):
    """Layer-1 weights: 4 space-to-depth tap groups, BN folded."""
    w, b, gamma, beta, mean, var = layer_params        # w: (Cout, Cin, 3, 3)
    wf, bias = _fold_bn(w, b, gamma, beta, mean, var)
    wk = jnp.transpose(wf, (2, 3, 1, 0))               # (kh, kw, Cin, Cout)
    cin, cout = wk.shape[2], wk.shape[3]
    z = jnp.zeros((cin, cout), wk.dtype)
    tap = lambda kh, kw: wk[kh, kw]
    grouped = jnp.stack([
        jnp.concatenate([tap(0, 0), tap(0, 1), tap(1, 0), tap(1, 1)], axis=0),
        jnp.concatenate([tap(0, 2), z,         tap(1, 2), z],         axis=0),
        jnp.concatenate([tap(2, 0), tap(2, 1), z,         z],         axis=0),
        jnp.concatenate([tap(2, 2), z,         z,         z],         axis=0),
    ])
    return grouped.astype(_COMPUTE_DTYPE), bias.reshape(1, cout).astype(jnp.float32)


def _prep_stride1_params(layer_params):
    """Layers 2-5 weights: (9, Cin, Cout) tap form, BN folded."""
    w, b, gamma, beta, mean, var = layer_params
    wf, bias = _fold_bn(w, b, gamma, beta, mean, var)
    cout, cin = w.shape[0], w.shape[1]
    wk = jnp.transpose(wf, (2, 3, 1, 0)).reshape(9, cin, cout)
    return wk.astype(_COMPUTE_DTYPE), bias.reshape(1, cout).astype(jnp.float32)


def _roundup(v, m):
    return -(-int(v) // m) * m


def _padded_bytes(shape, dtype):
    lead = 1
    for d in shape[:-2]:
        lead *= int(d)
    return (lead * _roundup(shape[-2], 8) * _roundup(shape[-1], 128)
            * jnp.dtype(dtype).itemsize)


def stem_forward(x_nchw, params):
    """Matches Stem.forward (eval-mode BN): NCHW in, NCHW out (float32)."""
    n, cin, h, w = x_nchw.shape
    assert h == w and h % 16 == 0 and h >= 16, "img_size must be a multiple of 16"
    s1, s2, s3, s4 = h // 2, h // 4, h // 8, h // 16
    c1, c2, c3, c4, c5 = [p[0].shape[0] for p in params]

    x = jnp.transpose(x_nchw, (0, 2, 3, 1)).astype(_COMPUTE_DTYPE)   # NCHW -> NHWC
    xs2, _ = _pad_space_to_depth(x)                    # (n, (s1+1)^2, 4*cin)

    prepped = ([_prep_stride2_params(params[0])]
               + [_prep_stride1_params(p) for p in params[1:]])
    weight_args = []
    for wg, bg in prepped:
        weight_args += [wg, bg]

    scratch_shapes = [((s1 + 2) * (s1 + 2), c1), ((s2 + 2) * (s2 + 2), c2),
                      ((s3 + 2) * (s3 + 2), c3), ((s4 + 2) * (s4 + 2), c4)]

    # Honest VMEM budget: pipelined operand blocks + scratches + f32 intermediates.
    operand_bytes = sum(_padded_bytes(s, d) for s, d in
                        [((1,) + xs2.shape[1:], xs2.dtype)]
                        + [(a.shape, a.dtype) for a in weight_args]
                        + [((1, s4 * s4, c5), jnp.float32)])
    scratch_bytes = sum(_padded_bytes(s, _COMPUTE_DTYPE) for s in scratch_shapes)
    value_bytes = sum(_padded_bytes(s, jnp.float32) for s in
                      [((s1 - 1) * (s1 + 1) + s1, c1),
                       ((s1 - 1) * (s1 + 2) + s1, c2),
                       ((s2 - 1) * (s2 + 2) + s2, c3),
                       ((s3 - 1) * (s3 + 2) + s3, c4),
                       ((s4 - 1) * (s4 + 2) + s4, c5)])
    vmem_limit = int(min(32 * 1024 * 1024,
                         max(12 * 1024 * 1024,
                             2 * operand_bytes + scratch_bytes + 3 * value_bytes
                             + 4 * 1024 * 1024)))

    in_specs = [pl.BlockSpec((1,) + xs2.shape[1:], lambda i: (i, 0, 0))]
    for a in weight_args:
        if a.ndim == 3:
            in_specs.append(pl.BlockSpec(a.shape, lambda i: (0, 0, 0)))
        else:
            in_specs.append(pl.BlockSpec(a.shape, lambda i: (0, 0)))

    kernel = functools.partial(_stem_fused_kernel, img=h)
    o = pl.pallas_call(
        kernel,
        out_shape=jax.ShapeDtypeStruct((n, s4 * s4, c5), jnp.float32),
        grid=(n,),
        in_specs=in_specs,
        out_specs=pl.BlockSpec((1, s4 * s4, c5), lambda i: (i, 0, 0)),
        scratch_shapes=[pltpu.VMEM(s, _COMPUTE_DTYPE) for s in scratch_shapes],
        compiler_params=pltpu.CompilerParams(
            dimension_semantics=("parallel",),     # batch sharded over cores
            vmem_limit_bytes=vmem_limit),
    )(xs2, *weight_args)

    y = o.reshape(n, s4, s4, c5)
    return jnp.transpose(y, (0, 3, 1, 2))              # NHWC -> NCHW, f32


# ------------------------- pure-JAX f32 reference ---------------------------- #
def stem_reference(x_nchw, params):
    x = x_nchw
    strides = (2, 2, 2, 2, 1)
    for i, ((w, b, gamma, beta, mean, var), s) in enumerate(zip(params, strides)):
        x = jax.lax.conv_general_dilated(
            x, w, window_strides=(s, s), padding=((1, 1), (1, 1)),
            dimension_numbers=("NCHW", "OIHW", "NCHW"))
        x = x + b[None, :, None, None]
        scale = gamma * jax.lax.rsqrt(var + _BN_EPS)
        x = (scale[None, :, None, None] * (x - mean[None, :, None, None])
             + beta[None, :, None, None])
        if i < 4:
            x = jnp.maximum(x, 0.0)
    return x


# --------------------------- deterministic init ------------------------------ #
def _init_layer(key, cin, cout):
    k1, k2, k3, k4, k5, k6 = jax.random.split(key, 6)
    fan_in = cin * 9
    bound = 1.0 / math.sqrt(fan_in)
    w = jax.random.uniform(k1, (cout, cin, 3, 3), jnp.float32, -bound, bound)
    b = jax.random.uniform(k2, (cout,), jnp.float32, -bound, bound)
    gamma = 1.0 + 0.1 * jax.random.normal(k3, (cout,), jnp.float32)
    beta = 0.1 * jax.random.normal(k4, (cout,), jnp.float32)
    mean = 0.1 * jax.random.normal(k5, (cout,), jnp.float32)
    var = 1.0 + 0.1 * jax.random.uniform(k6, (cout,), jnp.float32)
    return (w, b, gamma, beta, mean, var)


def init_stem_params(key, in_dim, out_dim):
    chans = [in_dim, out_dim // 8, out_dim // 4, out_dim // 2, out_dim, out_dim]
    keys = jax.random.split(key, 5)
    return [_init_layer(keys[i], chans[i], chans[i + 1]) for i in range(5)]


# ---------------------------------- main -------------------------------------- #
if __name__ == "__main__":
    key = jax.random.PRNGKey(0)
    k_x, k_p = jax.random.split(key)

    # small shapes consistent with the module: batch=2, in_dim=3,
    # img_size=32, out_dim=64  (output spatial = 32/16 = 2)
    batch, in_dim, img_size, out_dim = 2, 3, 32, 64
    x = jax.random.normal(k_x, (batch, in_dim, img_size, img_size), jnp.float32)
    params = init_stem_params(k_p, in_dim, out_dim)

    y = jax.block_until_ready(jax.jit(stem_forward)(x, params))
    assert y.shape == (batch, out_dim, img_size // 16, img_size // 16), y.shape
    assert bool(jnp.all(jnp.isfinite(y)))

    # bf16-tolerance check against a pure-JAX f32 reference of the module.
    y_ref = jax.block_until_ready(jax.jit(stem_reference)(x, params))
    max_err = float(jnp.max(jnp.abs(y - y_ref)))
    assert max_err < 7.5e-2, f"max |err| = {max_err}"

    print("KERNEL_OK")
</pallas_src>

<mosaic_0001>
module attributes {stable_mosaic.version = 11 : i64} {
  func.func @_stem_fused_kernel(%arg0: i32, %arg1: memref<1x289x12xbf16, #tpu.memory_space<vmem>>, %arg2: memref<4x12x8xbf16, #tpu.memory_space<vmem>>, %arg3: memref<1x8xf32, #tpu.memory_space<vmem>>, %arg4: memref<9x8x16xbf16, #tpu.memory_space<vmem>>, %arg5: memref<1x16xf32, #tpu.memory_space<vmem>>, %arg6: memref<9x16x32xbf16, #tpu.memory_space<vmem>>, %arg7: memref<1x32xf32, #tpu.memory_space<vmem>>, %arg8: memref<9x32x64xbf16, #tpu.memory_space<vmem>>, %arg9: memref<1x64xf32, #tpu.memory_space<vmem>>, %arg10: memref<9x64x64xbf16, #tpu.memory_space<vmem>>, %arg11: memref<1x64xf32, #tpu.memory_space<vmem>>, %arg12: memref<1x4x64xf32, #tpu.memory_space<vmem>>, %arg13: memref<324x8xbf16, #tpu.memory_space<vmem>>, %arg14: memref<100x16xbf16, #tpu.memory_space<vmem>>, %arg15: memref<36x32xbf16, #tpu.memory_space<vmem>>, %arg16: memref<16x64xbf16, #tpu.memory_space<vmem>>) attributes {dimension_semantics = [#tpu.dimension_semantics<parallel>], iteration_bounds = array<i64: 2>, scalar_prefetch = 0 : i64, scratch_operands = 4 : i64, tpu.core_type = #tpu.core_type<tc>, window_params = [{transform_indices = @transform_0, window_bounds = array<i64: 1, 289, 12>}, {pipeline_mode = #tpu.pipeline_mode<synchronous>, transform_indices = @transform_1, window_bounds = array<i64: 4, 12, 8>}, {pipeline_mode = #tpu.pipeline_mode<synchronous>, transform_indices = @transform_2, window_bounds = array<i64: 1, 8>}, {pipeline_mode = #tpu.pipeline_mode<synchronous>, transform_indices = @transform_3, window_bounds = array<i64: 9, 8, 16>}, {pipeline_mode = #tpu.pipeline_mode<synchronous>, transform_indices = @transform_4, window_bounds = array<i64: 1, 16>}, {pipeline_mode = #tpu.pipeline_mode<synchronous>, transform_indices = @transform_5, window_bounds = array<i64: 9, 16, 32>}, {pipeline_mode = #tpu.pipeline_mode<synchronous>, transform_indices = @transform_6, window_bounds = array<i64: 1, 32>}, {pipeline_mode = #tpu.pipeline_mode<synchronous>, transform_indices = @transform_7, window_bounds = array<i64: 9, 32, 64>}, {pipeline_mode = #tpu.pipeline_mode<synchronous>, transform_indices = @transform_8, window_bounds = array<i64: 1, 64>}, {pipeline_mode = #tpu.pipeline_mode<synchronous>, transform_indices = @transform_9, window_bounds = array<i64: 9, 64, 64>}, {pipeline_mode = #tpu.pipeline_mode<synchronous>, transform_indices = @transform_10, window_bounds = array<i64: 1, 64>}, {transform_indices = @transform_11, window_bounds = array<i64: 1, 4, 64>}]} {
    %cst = arith.constant 0.000000e+00 : f32
    %0 = vector.broadcast %cst : f32 to vector<271x8xf32>
    %c0 = arith.constant 0 : index
    %c0_0 = arith.constant 0 : index
    %c0_1 = arith.constant 0 : index
    %1 = vector.load %arg1[%c0, %c0_0, %c0_1] : memref<1x289x12xbf16, #tpu.memory_space<vmem>>, vector<1x271x12xbf16>
    %2 = vector.shape_cast %1 : vector<1x271x12xbf16> to vector<271x12xbf16>
    %c0_2 = arith.constant 0 : index
    %c0_3 = arith.constant 0 : index
    %c0_4 = arith.constant 0 : index
    %3 = vector.load %arg2[%c0_2, %c0_3, %c0_4] : memref<4x12x8xbf16, #tpu.memory_space<vmem>>, vector<1x12x8xbf16>
    %4 = vector.shape_cast %3 : vector<1x12x8xbf16> to vector<12x8xbf16>
    %cst_5 = arith.constant dense<0.000000e+00> : vector<271x8xf32>
    %5 = tpu.matmul %2, %4, %cst_5 {dimension_numbers = #tpu.dot_dimension_numbers<[1], [0], [0], [1], [0, 0, 1, 1], [], []>} : vector<271x12xbf16>, vector<12x8xbf16>, vector<271x8xf32> -> vector<271x8xf32>
    %6 = arith.addf %0, %5 : vector<271x8xf32>
    %c0_6 = arith.constant 0 : index
    %c1 = arith.constant 1 : index
    %c0_7 = arith.constant 0 : index
    %7 = vector.load %arg1[%c0_6, %c1, %c0_7] : memref<1x289x12xbf16, #tpu.memory_space<vmem>>, vector<1x271x12xbf16>
    %8 = vector.shape_cast %7 : vector<1x271x12xbf16> to vector<271x12xbf16>
    %c1_8 = arith.constant 1 : index
    %c0_9 = arith.constant 0 : index
    %c0_10 = arith.constant 0 : index
    %9 = vector.load %arg2[%c1_8, %c0_9, %c0_10] : memref<4x12x8xbf16, #tpu.memory_space<vmem>>, vector<1x12x8xbf16>
    %10 = vector.shape_cast %9 : vector<1x12x8xbf16> to vector<12x8xbf16>
    %cst_11 = arith.constant dense<0.000000e+00> : vector<271x8xf32>
    %11 = tpu.matmul %8, %10, %cst_11 {dimension_numbers = #tpu.dot_dimension_numbers<[1], [0], [0], [1], [0, 0, 1, 1], [], []>} : vector<271x12xbf16>, vector<12x8xbf16>, vector<271x8xf32> -> vector<271x8xf32>
    %12 = arith.addf %6, %11 : vector<271x8xf32>
    %c0_12 = arith.constant 0 : index
    %c17 = arith.constant 17 : index
    %c0_13 = arith.constant 0 : index
    %13 = vector.load %arg1[%c0_12, %c17, %c0_13] : memref<1x289x12xbf16, #tpu.memory_space<vmem>>, vector<1x271x12xbf16>
    %14 = vector.shape_cast %13 : vector<1x271x12xbf16> to vector<271x12xbf16>
    %c2 = arith.constant 2 : index
    %c0_14 = arith.constant 0 : index
    %c0_15 = arith.constant 0 : index
    %15 = vector.load %arg2[%c2, %c0_14, %c0_15] : memref<4x12x8xbf16, #tpu.memory_space<vmem>>, vector<1x12x8xbf16>
    %16 = vector.shape_cast %15 : vector<1x12x8xbf16> to vector<12x8xbf16>
    %cst_16 = arith.constant dense<0.000000e+00> : vector<271x8xf32>
    %17 = tpu.matmul %14, %16, %cst_16 {dimension_numbers = #tpu.dot_dimension_numbers<[1], [0], [0], [1], [0, 0, 1, 1], [], []>} : vector<271x12xbf16>, vector<12x8xbf16>, vector<271x8xf32> -> vector<271x8xf32>
    %18 = arith.addf %12, %17 : vector<271x8xf32>
    %c0_17 = arith.constant 0 : index
    %c18 = arith.constant 18 : index
    %c0_18 = arith.constant 0 : index
    %19 = vector.load %arg1[%c0_17, %c18, %c0_18] : memref<1x289x12xbf16, #tpu.memory_space<vmem>>, vector<1x271x12xbf16>
    %20 = vector.shape_cast %19 : vector<1x271x12xbf16> to vector<271x12xbf16>
    %c3 = arith.constant 3 : index
    %c0_19 = arith.constant 0 : index
    %c0_20 = arith.constant 0 : index
    %21 = vector.load %arg2[%c3, %c0_19, %c0_20] : memref<4x12x8xbf16, #tpu.memory_space<vmem>>, vector<1x12x8xbf16>
    %22 = vector.shape_cast %21 : vector<1x12x8xbf16> to vector<12x8xbf16>
    %cst_21 = arith.constant dense<0.000000e+00> : vector<271x8xf32>
    %23 = tpu.matmul %20, %22, %cst_21 {dimension_numbers = #tpu.dot_dimension_numbers<[1], [0], [0], [1], [0, 0, 1, 1], [], []>} : vector<271x12xbf16>, vector<12x8xbf16>, vector<271x8xf32> -> vector<271x8xf32>
    %24 = arith.addf %18, %23 : vector<271x8xf32>
    %c0_22 = arith.constant 0 : index
    %c0_23 = arith.constant 0 : index
    %25 = vector.load %arg3[%c0_22, %c0_23] : memref<1x8xf32, #tpu.memory_space<vmem>>, vector<1x8xf32>
    %26 = vector.broadcast %25 : vector<1x8xf32> to vector<271x8xf32>
    %27 = arith.addf %24, %26 : vector<271x8xf32>
    %cst_24 = arith.constant 0.000000e+00 : f32
    %28 = vector.broadcast %cst_24 : f32 to vector<271x8xf32>
    %29 = arith.maximumf %27, %28 : vector<271x8xf32>
    %30 = arith.truncf %29 : vector<271x8xf32> to vector<271x8xbf16>
    %cst_25 = arith.constant 0.000000e+00 : bf16
    %31 = vector.broadcast %cst_25 : bf16 to vector<19x8xbf16>
    %c0_26 = arith.constant 0 : index
    %c0_27 = arith.constant 0 : index
    %32 = vector.load %arg13[%c0_26, %c0_27] : memref<324x8xbf16, #tpu.memory_space<vmem>>, vector<19x8xbf16>
    tpu.vector_store %arg13[%c0_26, %c0_27], %31 {strides = array<i32>} : memref<324x8xbf16, #tpu.memory_space<vmem>>, vector<19x8xbf16>,
    %cst_28 = arith.constant 0.000000e+00 : bf16
    %33 = vector.broadcast %cst_28 : bf16 to vector<18x8xbf16>
    %c306 = arith.constant 306 : index
    %c0_29 = arith.constant 0 : index
    %34 = vector.load %arg13[%c306, %c0_29] : memref<324x8xbf16, #tpu.memory_space<vmem>>, vector<18x8xbf16>
    tpu.vector_store %arg13[%c306, %c0_29], %33 {strides = array<i32>} : memref<324x8xbf16, #tpu.memory_space<vmem>>, vector<18x8xbf16>,
    %cst_30 = arith.constant 0.000000e+00 : bf16
    %35 = vector.broadcast %cst_30 : bf16 to vector<2x8xbf16>
    %36 = vector.extract_strided_slice %30 {offsets = [0, 0], sizes = [16, 8], strides = [1, 1]} : vector<271x8xbf16> to vector<16x8xbf16>
    %c19 = arith.constant 19 : index
    %c0_31 = arith.constant 0 : index
    %37 = vector.load %arg13[%c19, %c0_31] : memref<324x8xbf16, #tpu.memory_space<vmem>>, vector<16x8xbf16>
    tpu.vector_store %arg13[%c19, %c0_31], %36 {strides = array<i32>} : memref<324x8xbf16, #tpu.memory_space<vmem>>, vector<16x8xbf16>,
    %c35 = arith.constant 35 : index
    %c0_32 = arith.constant 0 : index
    %38 = vector.load %arg13[%c35, %c0_32] : memref<324x8xbf16, #tpu.memory_space<vmem>>, vector<2x8xbf16>
    tpu.vector_store %arg13[%c35, %c0_32], %35 {strides = array<i32>} : memref<324x8xbf16, #tpu.memory_space<vmem>>, vector<2x8xbf16>,
    %39 = vector.extract_strided_slice %30 {offsets = [17, 0], sizes = [16, 8], strides = [1, 1]} : vector<271x8xbf16> to vector<16x8xbf16>
    %c37 = arith.constant 37 : index
    %c0_33 = arith.constant 0 : index
    %40 = vector.load %arg13[%c37, %c0_33] : memref<324x8xbf16, #tpu.memory_space<vmem>>, vector<16x8xbf16>
    tpu.vector_store %arg13[%c37, %c0_33], %39 {strides = array<i32>} : memref<324x8xbf16, #tpu.memory_space<vmem>>, vector<16x8xbf16>,
    %c53 = arith.constant 53 : index
    %c0_34 = arith.constant 0 : index
    %41 = vector.load %arg13[%c53, %c0_34] : memref<324x8xbf16, #tpu.memory_space<vmem>>, vector<2x8xbf16>
    tpu.vector_store %arg13[%c53, %c0_34], %35 {strides = array<i32>} : memref<324x8xbf16, #tpu.memory_space<vmem>>, vector<2x8xbf16>,
    %42 = vector.extract_strided_slice %30 {offsets = [34, 0], sizes = [16, 8], strides = [1, 1]} : vector<271x8xbf16> to vector<16x8xbf16>
    %c55 = arith.constant 55 : index
    %c0_35 = arith.constant 0 : index
    %43 = vector.load %arg13[%c55, %c0_35] : memref<324x8xbf16, #tpu.memory_space<vmem>>, vector<16x8xbf16>
    tpu.vector_store %arg13[%c55, %c0_35], %42 {strides = array<i32>} : memref<324x8xbf16, #tpu.memory_space<vmem>>, vector<16x8xbf16>,
    %c71 = arith.constant 71 : index
    %c0_36 = arith.constant 0 : index
    %44 = vector.load %arg13[%c71, %c0_36] : memref<324x8xbf16, #tpu.memory_space<vmem>>, vector<2x8xbf16>
    tpu.vector_store %arg13[%c71, %c0_36], %35 {strides = array<i32>} : memref<324x8xbf16, #tpu.memory_space<vmem>>, vector<2x8xbf16>,
    %45 = vector.extract_strided_slice %30 {offsets = [51, 0], sizes = [16, 8], strides = [1, 1]} : vector<271x8xbf16> to vector<16x8xbf16>
    %c73 = arith.constant 73 : index
    %c0_37 = arith.constant 0 : index
    %46 = vector.load %arg13[%c73, %c0_37] : memref<324x8xbf16, #tpu.memory_space<vmem>>, vector<16x8xbf16>
    tpu.vector_store %arg13[%c73, %c0_37], %45 {strides = array<i32>} : memref<324x8xbf16, #tpu.memory_space<vmem>>, vector<16x8xbf16>,
    %c89 = arith.constant 89 : index
    %c0_38 = arith.constant 0 : index
    %47 = vector.load %arg13[%c89, %c0_38] : memref<324x8xbf16, #tpu.memory_space<vmem>>, vector<2x8xbf16>
    tpu.vector_store %arg13[%c89, %c0_38], %35 {strides = array<i32>} : memref<324x8xbf16, #tpu.memory_space<vmem>>, vector<2x8xbf16>,
    %48 = vector.extract_strided_slice %30 {offsets = [68, 0], sizes = [16, 8], strides = [1, 1]} : vector<271x8xbf16> to vector<16x8xbf16>
    %c91 = arith.constant 91 : index
    %c0_39 = arith.constant 0 : index
    %49 = vector.load %arg13[%c91, %c0_39] : memref<324x8xbf16, #tpu.memory_space<vmem>>, vector<16x8xbf16>
    tpu.vector_store %arg13[%c91, %c0_39], %48 {strides = array<i32>} : memref<324x8xbf16, #tpu.memory_space<vmem>>, vector<16x8xbf16>,
    %c107 = arith.constant 107 : index
    %c0_40 = arith.constant 0 : index
    %50 = vector.load %arg13[%c107, %c0_40] : memref<324x8xbf16, #tpu.memory_space<vmem>>, vector<2x8xbf16>
    tpu.vector_store %arg13[%c107, %c0_40], %35 {strides = array<i32>} : memref<324x8xbf16, #tpu.memory_space<vmem>>, vector<2x8xbf16>,
    %51 = vector.extract_strided_slice %30 {offsets = [85, 0], sizes = [16, 8], strides = [1, 1]} : vector<271x8xbf16> to vector<16x8xbf16>
    %c109 = arith.constant 109 : index
    %c0_41 = arith.constant 0 : index
    %52 = vector.load %arg13[%c109, %c0_41] : memref<324x8xbf16, #tpu.memory_space<vmem>>, vector<16x8xbf16>
    tpu.vector_store %arg13[%c109, %c0_41], %51 {strides = array<i32>} : memref<324x8xbf16, #tpu.memory_space<vmem>>, vector<16x8xbf16>,
    %c125 = arith.constant 125 : index
    %c0_42 = arith.constant 0 : index
    %53 = vector.load %arg13[%c125, %c0_42] : memref<324x8xbf16, #tpu.memory_space<vmem>>, vector<2x8xbf16>
    tpu.vector_store %arg13[%c125, %c0_42], %35 {strides = array<i32>} : memref<324x8xbf16, #tpu.memory_space<vmem>>, vector<2x8xbf16>,
    %54 = vector.extract_strided_slice %30 {offsets = [102, 0], sizes = [16, 8], strides = [1, 1]} : vector<271x8xbf16> to vector<16x8xbf16>
    %c127 = arith.constant 127 : index
    %c0_43 = arith.constant 0 : index
    %55 = vector.load %arg13[%c127, %c0_43] : memref<324x8xbf16, #tpu.memory_space<vmem>>, vector<16x8xbf16>
    tpu.vector_store %arg13[%c127, %c0_43], %54 {strides = array<i32>} : memref<324x8xbf16, #tpu.memory_space<vmem>>, vector<16x8xbf16>,
    %c143 = arith.constant 143 : index
    %c0_44 = arith.constant 0 : index
    %56 = vector.load %arg13[%c143, %c0_44] : memref<324x8xbf16, #tpu.memory_space<vmem>>, vector<2x8xbf16>
    tpu.vector_store %arg13[%c143, %c0_44], %35 {strides = array<i32>} : memref<324x8xbf16, #tpu.memory_space<vmem>>, vector<2x8xbf16>,
    %57 = vector.extract_strided_slice %30 {offsets = [119, 0], sizes = [16, 8], strides = [1, 1]} : vector<271x8xbf16> to vector<16x8xbf16>
    %c145 = arith.constant 145 : index
    %c0_45 = arith.constant 0 : index
    %58 = vector.load %arg13[%c145, %c0_45] : memref<324x8xbf16, #tpu.memory_space<vmem>>, vector<16x8xbf16>
    tpu.vector_store %arg13[%c145, %c0_45], %57 {strides = array<i32>} : memref<324x8xbf16, #tpu.memory_space<vmem>>, vector<16x8xbf16>,
    %c161 = arith.constant 161 : index
    %c0_46 = arith.constant 0 : index
    %59 = vector.load %arg13[%c161, %c0_46] : memref<324x8xbf16, #tpu.memory_space<vmem>>, vector<2x8xbf16>
    tpu.vector_store %arg13[%c161, %c0_46], %35 {strides = array<i32>} : memref<324x8xbf16, #tpu.memory_space<vmem>>, vector<2x8xbf16>,
    %60 = vector.extract_strided_slice %30 {offsets = [136, 0], sizes = [16, 8], strides = [1, 1]} : vector<271x8xbf16> to vector<16x8xbf16>
    %c163 = arith.constant 163 : index
    %c0_47 = arith.constant 0 : index
    %61 = vector.load %arg13[%c163, %c0_47] : memref<324x8xbf16, #tpu.memory_space<vmem>>, vector<16x8xbf16>
    tpu.vector_store %arg13[%c163, %c0_47], %60 {strides = array<i32>} : memref<324x8xbf16, #tpu.memory_space<vmem>>, vector<16x8xbf16>,
    %c179 = arith.constant 179 : index
    %c0_48 = arith.constant 0 : index
    %62 = vector.load %arg13[%c179, %c0_48] : memref<324x8xbf16, #tpu.memory_space<vmem>>, vector<2x8xbf16>
    tpu.vector_store %arg13[%c179, %c0_48], %35 {strides = array<i32>} : memref<324x8xbf16, #tpu.memory_space<vmem>>, vector<2x8xbf16>,
    %63 = vector.extract_strided_slice %30 {offsets = [153, 0], sizes = [16, 8], strides = [1, 1]} : vector<271x8xbf16> to vector<16x8xbf16>
    %c181 = arith.constant 181 : index
    %c0_49 = arith.constant 0 : index
    %64 = vector.load %arg13[%c181, %c0_49] : memref<324x8xbf16, #tpu.memory_space<vmem>>, vector<16x8xbf16>
    tpu.vector_store %arg13[%c181, %c0_49], %63 {strides = array<i32>} : memref<324x8xbf16, #tpu.memory_space<vmem>>, vector<16x8xbf16>,
    %c197 = arith.constant 197 : index
    %c0_50 = arith.constant 0 : index
    %65 = vector.load %arg13[%c197, %c0_50] : memref<324x8xbf16, #tpu.memory_space<vmem>>, vector<2x8xbf16>
    tpu.vector_store %arg13[%c197, %c0_50], %35 {strides = array<i32>} : memref<324x8xbf16, #tpu.memory_space<vmem>>, vector<2x8xbf16>,
    %66 = vector.extract_strided_slice %30 {offsets = [170, 0], sizes = [16, 8], strides = [1, 1]} : vector<271x8xbf16> to vector<16x8xbf16>
    %c199 = arith.constant 199 : index
    %c0_51 = arith.constant 0 : index
    %67 = vector.load %arg13[%c199, %c0_51] : memref<324x8xbf16, #tpu.memory_space<vmem>>, vector<16x8xbf16>
    tpu.vector_store %arg13[%c199, %c0_51], %66 {strides = array<i32>} : memref<324x8xbf16, #tpu.memory_space<vmem>>, vector<16x8xbf16>,
    %c215 = arith.constant 215 : index
    %c0_52 = arith.constant 0 : index
    %68 = vector.load %arg13[%c215, %c0_52] : memref<324x8xbf16, #tpu.memory_space<vmem>>, vector<2x8xbf16>
    tpu.vector_store %arg13[%c215, %c0_52], %35 {strides = array<i32>} : memref<324x8xbf16, #tpu.memory_space<vmem>>, vector<2x8xbf16>,
    %69 = vector.extract_strided_slice %30 {offsets = [187, 0], sizes = [16, 8], strides = [1, 1]} : vector<271x8xbf16> to vector<16x8xbf16>
    %c217 = arith.constant 217 : index
    %c0_53 = arith.constant 0 : index
    %70 = vector.load %arg13[%c217, %c0_53] : memref<324x8xbf16, #tpu.memory_space<vmem>>, vector<16x8xbf16>
    tpu.vector_store %arg13[%c217, %c0_53], %69 {strides = array<i32>} : memref<324x8xbf16, #tpu.memory_space<vmem>>, vector<16x8xbf16>,
    %c233 = arith.constant 233 : index
    %c0_54 = arith.constant 0 : index
    %71 = vector.load %arg13[%c233, %c0_54] : memref<324x8xbf16, #tpu.memory_space<vmem>>, vector<2x8xbf16>
    tpu.vector_store %arg13[%c233, %c0_54], %35 {strides = array<i32>} : memref<324x8xbf16, #tpu.memory_space<vmem>>, vector<2x8xbf16>,
    %72 = vector.extract_strided_slice %30 {offsets = [204, 0], sizes = [16, 8], strides = [1, 1]} : vector<271x8xbf16> to vector<16x8xbf16>
    %c235 = arith.constant 235 : index
    %c0_55 = arith.constant 0 : index
    %73 = vector.load %arg13[%c235, %c0_55] : memref<324x8xbf16, #tpu.memory_space<vmem>>, vector<16x8xbf16>
    tpu.vector_store %arg13[%c235, %c0_55], %72 {strides = array<i32>} : memref<324x8xbf16, #tpu.memory_space<vmem>>, vector<16x8xbf16>,
    %c251 = arith.constant 251 : index
    %c0_56 = arith.constant 0 : index
    %74 = vector.load %arg13[%c251, %c0_56] : memref<324x8xbf16, #tpu.memory_space<vmem>>, vector<2x8xbf16>
    tpu.vector_store %arg13[%c251, %c0_56], %35 {strides = array<i32>} : memref<324x8xbf16, #tpu.memory_space<vmem>>, vector<2x8xbf16>,
    %75 = vector.extract_strided_slice %30 {offsets = [221, 0], sizes = [16, 8], strides = [1, 1]} : vector<271x8xbf16> to vector<16x8xbf16>
    %c253 = arith.constant 253 : index
    %c0_57 = arith.constant 0 : index
    %76 = vector.load %arg13[%c253, %c0_57] : memref<324x8xbf16, #tpu.memory_space<vmem>>, vector<16x8xbf16>
    tpu.vector_store %arg13[%c253, %c0_57], %75 {strides = array<i32>} : memref<324x8xbf16, #tpu.memory_space<vmem>>, vector<16x8xbf16>,
    %c269 = arith.constant 269 : index
    %c0_58 = arith.constant 0 : index
    %77 = vector.load %arg13[%c269, %c0_58] : memref<324x8xbf16, #tpu.memory_space<vmem>>, vector<2x8xbf16>
    tpu.vector_store %arg13[%c269, %c0_58], %35 {strides = array<i32>} : memref<324x8xbf16, #tpu.memory_space<vmem>>, vector<2x8xbf16>,
    %78 = vector.extract_strided_slice %30 {offsets = [238, 0], sizes = [16, 8], strides = [1, 1]} : vector<271x8xbf16> to vector<16x8xbf16>
    %c271 = arith.constant 271 : index
    %c0_59 = arith.constant 0 : index
    %79 = vector.load %arg13[%c271, %c0_59] : memref<324x8xbf16, #tpu.memory_space<vmem>>, vector<16x8xbf16>
    tpu.vector_store %arg13[%c271, %c0_59], %78 {strides = array<i32>} : memref<324x8xbf16, #tpu.memory_space<vmem>>, vector<16x8xbf16>,
    %c287 = arith.constant 287 : index
    %c0_60 = arith.constant 0 : index
    %80 = vector.load %arg13[%c287, %c0_60] : memref<324x8xbf16, #tpu.memory_space<vmem>>, vector<2x8xbf16>
    tpu.vector_store %arg13[%c287, %c0_60], %35 {strides = array<i32>} : memref<324x8xbf16, #tpu.memory_space<vmem>>, vector<2x8xbf16>,
    %81 = vector.extract_strided_slice %30 {offsets = [255, 0], sizes = [16, 8], strides = [1, 1]} : vector<271x8xbf16> to vector<16x8xbf16>
    %c289 = arith.constant 289 : index
    %c0_61 = arith.constant 0 : index
    %82 = vector.load %arg13[%c289, %c0_61] : memref<324x8xbf16, #tpu.memory_space<vmem>>, vector<16x8xbf16>
    tpu.vector_store %arg13[%c289, %c0_61], %81 {strides = array<i32>} : memref<324x8xbf16, #tpu.memory_space<vmem>>, vector<16x8xbf16>,
    %c305 = arith.constant 305 : index
    %c0_62 = arith.constant 0 : index
    %83 = vector.load %arg13[%c305, %c0_62] : memref<324x8xbf16, #tpu.memory_space<vmem>>, vector<2x8xbf16>
    tpu.vector_store %arg13[%c305, %c0_62], %35 {strides = array<i32>} : memref<324x8xbf16, #tpu.memory_space<vmem>>, vector<2x8xbf16>,
    %cst_63 = arith.constant 0.000000e+00 : f32
    %84 = vector.broadcast %cst_63 : f32 to vector<286x16xf32>
    %c0_64 = arith.constant 0 : index
    %c0_65 = arith.constant 0 : index
    %85 = vector.load %arg13[%c0_64, %c0_65] : memref<324x8xbf16, #tpu.memory_space<vmem>>, vector<286x8xbf16>
    %c0_66 = arith.constant 0 : index
    %c0_67 = arith.constant 0 : index
    %c0_68 = arith.constant 0 : index
    %86 = vector.load %arg4[%c0_66, %c0_67, %c0_68] : memref<9x8x16xbf16, #tpu.memory_space<vmem>>, vector<1x8x16xbf16>
    %87 = vector.shape_cast %86 : vector<1x8x16xbf16> to vector<8x16xbf16>
    %cst_69 = arith.constant dense<0.000000e+00> : vector<286x16xf32>
    %88 = tpu.matmul %85, %87, %cst_69 {dimension_numbers = #tpu.dot_dimension_numbers<[1], [0], [0], [1], [0, 0, 1, 1], [], []>} : vector<286x8xbf16>, vector<8x16xbf16>, vector<286x16xf32> -> vector<286x16xf32>
    %89 = arith.addf %84, %88 : vector<286x16xf32>
    %c1_70 = arith.constant 1 : index
    %c0_71 = arith.constant 0 : index
    %90 = vector.load %arg13[%c1_70, %c0_71] : memref<324x8xbf16, #tpu.memory_space<vmem>>, vector<286x8xbf16>
    %c1_72 = arith.constant 1 : index
    %c0_73 = arith.constant 0 : index
    %c0_74 = arith.constant 0 : index
    %91 = vector.load %arg4[%c1_72, %c0_73, %c0_74] : memref<9x8x16xbf16, #tpu.memory_space<vmem>>, vector<1x8x16xbf16>
    %92 = vector.shape_cast %91 : vector<1x8x16xbf16> to vector<8x16xbf16>
    %cst_75 = arith.constant dense<0.000000e+00> : vector<286x16xf32>
    %93 = tpu.matmul %90, %92, %cst_75 {dimension_numbers = #tpu.dot_dimension_numbers<[1], [0], [0], [1], [0, 0, 1, 1], [], []>} : vector<286x8xbf16>, vector<8x16xbf16>, vector<286x16xf32> -> vector<286x16xf32>
    %94 = arith.addf %89, %93 : vector<286x16xf32>
    %c2_76 = arith.constant 2 : index
    %c0_77 = arith.constant 0 : index
    %95 = vector.load %arg13[%c2_76, %c0_77] : memref<324x8xbf16, #tpu.memory_space<vmem>>, vector<286x8xbf16>
    %c2_78 = arith.constant 2 : index
    %c0_79 = arith.constant 0 : index
    %c0_80 = arith.constant 0 : index
    %96 = vector.load %arg4[%c2_78, %c0_79, %c0_80] : memref<9x8x16xbf16, #tpu.memory_space<vmem>>, vector<1x8x16xbf16>
    %97 = vector.shape_cast %96 : vector<1x8x16xbf16> to vector<8x16xbf16>
    %cst_81 = arith.constant dense<0.000000e+00> : vector<286x16xf32>
    %98 = tpu.matmul %95, %97, %cst_81 {dimension_numbers = #tpu.dot_dimension_numbers<[1], [0], [0], [1], [0, 0, 1, 1], [], []>} : vector<286x8xbf16>, vector<8x16xbf16>, vector<286x16xf32> -> vector<286x16xf32>
    %99 = arith.addf %94, %98 : vector<286x16xf32>
    %c18_82 = arith.constant 18 : index
    %c0_83 = arith.constant 0 : index
    %100 = vector.load %arg13[%c18_82, %c0_83] : memref<324x8xbf16, #tpu.memory_space<vmem>>, vector<286x8xbf16>
    %c3_84 = arith.constant 3 : index
    %c0_85 = arith.constant 0 : index
    %c0_86 = arith.constant 0 : index
    %101 = vector.load %arg4[%c3_84, %c0_85, %c0_86] : memref<9x8x16xbf16, #tpu.memory_space<vmem>>, vector<1x8x16xbf16>
    %102 = vector.shape_cast %101 : vector<1x8x16xbf16> to vector<8x16xbf16>
    %cst_87 = arith.constant dense<0.000000e+00> : vector<286x16xf32>
    %103 = tpu.matmul %100, %102, %cst_87 {dimension_numbers = #tpu.dot_dimension_numbers<[1], [0], [0], [1], [0, 0, 1, 1], [], []>} : vector<286x8xbf16>, vector<8x16xbf16>, vector<286x16xf32> -> vector<286x16xf32>
    %104 = arith.addf %99, %103 : vector<286x16xf32>
    %c19_88 = arith.constant 19 : index
    %c0_89 = arith.constant 0 : index
    %105 = vector.load %arg13[%c19_88, %c0_89] : memref<324x8xbf16, #tpu.memory_space<vmem>>, vector<286x8xbf16>
    %c4 = arith.constant 4 : index
    %c0_90 = arith.constant 0 : index
    %c0_91 = arith.constant 0 : index
    %106 = vector.load %arg4[%c4, %c0_90, %c0_91] : memref<9x8x16xbf16, #tpu.memory_space<vmem>>, vector<1x8x16xbf16>
    %107 = vector.shape_cast %106 : vector<1x8x16xbf16> to vector<8x16xbf16>
    %cst_92 = arith.constant dense<0.000000e+00> : vector<286x16xf32>
    %108 = tpu.matmul %105, %107, %cst_92 {dimension_numbers = #tpu.dot_dimension_numbers<[1], [0], [0], [1], [0, 0, 1, 1], [], []>} : vector<286x8xbf16>, vector<8x16xbf16>, vector<286x16xf32> -> vector<286x16xf32>
    %109 = arith.addf %104, %108 : vector<286x16xf32>
    %c20 = arith.constant 20 : index
    %c0_93 = arith.constant 0 : index
    %110 = vector.load %arg13[%c20, %c0_93] : memref<324x8xbf16, #tpu.memory_space<vmem>>, vector<286x8xbf16>
    %c5 = arith.constant 5 : index
    %c0_94 = arith.constant 0 : index
    %c0_95 = arith.constant 0 : index
    %111 = vector.load %arg4[%c5, %c0_94, %c0_95] : memref<9x8x16xbf16, #tpu.memory_space<vmem>>, vector<1x8x16xbf16>
    %112 = vector.shape_cast %111 : vector<1x8x16xbf16> to vector<8x16xbf16>
    %cst_96 = arith.constant dense<0.000000e+00> : vector<286x16xf32>
    %113 = tpu.matmul %110, %112, %cst_96 {dimension_numbers = #tpu.dot_dimension_numbers<[1], [0], [0], [1], [0, 0, 1, 1], [], []>} : vector<286x8xbf16>, vector<8x16xbf16>, vector<286x16xf32> -> vector<286x16xf32>
    %114 = arith.addf %109, %113 : vector<286x16xf32>
    %c36 = arith.constant 36 : index
    %c0_97 = arith.constant 0 : index
    %115 = vector.load %arg13[%c36, %c0_97] : memref<324x8xbf16, #tpu.memory_space<vmem>>, vector<286x8xbf16>
    %c6 = arith.constant 6 : index
    %c0_98 = arith.constant 0 : index
    %c0_99 = arith.constant 0 : index
    %116 = vector.load %arg4[%c6, %c0_98, %c0_99] : memref<9x8x16xbf16, #tpu.memory_space<vmem>>, vector<1x8x16xbf16>
    %117 = vector.shape_cast %116 : vector<1x8x16xbf16> to vector<8x16xbf16>
    %cst_100 = arith.constant dense<0.000000e+00> : vector<286x16xf32>
    %118 = tpu.matmul %115, %117, %cst_100 {dimension_numbers = #tpu.dot_dimension_numbers<[1], [0], [0], [1], [0, 0, 1, 1], [], []>} : vector<286x8xbf16>, vector<8x16xbf16>, vector<286x16xf32> -> vector<286x16xf32>
    %119 = arith.addf %114, %118 : vector<286x16xf32>
    %c37_101 = arith.constant 37 : index
    %c0_102 = arith.constant 0 : index
    %120 = vector.load %arg13[%c37_101, %c0_102] : memref<324x8xbf16, #tpu.memory_space<vmem>>, vector<286x8xbf16>
    %c7 = arith.constant 7 : index
    %c0_103 = arith.constant 0 : index
    %c0_104 = arith.constant 0 : index
    %121 = vector.load %arg4[%c7, %c0_103, %c0_104] : memref<9x8x16xbf16, #tpu.memory_space<vmem>>, vector<1x8x16xbf16>
    %122 = vector.shape_cast %121 : vector<1x8x16xbf16> to vector<8x16xbf16>
    %cst_105 = arith.constant dense<0.000000e+00> : vector<286x16xf32>
    %123 = tpu.matmul %120, %122, %cst_105 {dimension_numbers = #tpu.dot_dimension_numbers<[1], [0], [0], [1], [0, 0, 1, 1], [], []>} : vector<286x8xbf16>, vector<8x16xbf16>, vector<286x16xf32> -> vector<286x16xf32>
    %124 = arith.addf %119, %123 : vector<286x16xf32>
    %c38 = arith.constant 38 : index
    %c0_106 = arith.constant 0 : index
    %125 = vector.load %arg13[%c38, %c0_106] : memref<324x8xbf16, #tpu.memory_space<vmem>>, vector<286x8xbf16>
    %c8 = arith.constant 8 : index
    %c0_107 = arith.constant 0 : index
    %c0_108 = arith.constant 0 : index
    %126 = vector.load %arg4[%c8, %c0_107, %c0_108] : memref<9x8x16xbf16, #tpu.memory_space<vmem>>, vector<1x8x16xbf16>
    %127 = vector.shape_cast %126 : vector<1x8x16xbf16> to vector<8x16xbf16>
    %cst_109 = arith.constant dense<0.000000e+00> : vector<286x16xf32>
    %128 = tpu.matmul %125, %127, %cst_109 {dimension_numbers = #tpu.dot_dimension_numbers<[1], [0], [0], [1], [0, 0, 1, 1], [], []>} : vector<286x8xbf16>, vector<8x16xbf16>, vector<286x16xf32> -> vector<286x16xf32>
    %129 = arith.addf %124, %128 : vector<286x16xf32>
    %c0_110 = arith.constant 0 : index
    %c0_111 = arith.constant 0 : index
    %130 = vector.load %arg5[%c0_110, %c0_111] : memref<1x16xf32, #tpu.memory_space<vmem>>, vector<1x16xf32>
    %131 = vector.broadcast %130 : vector<1x16xf32> to vector<286x16xf32>
    %132 = arith.addf %129, %131 : vector<286x16xf32>
    %cst_112 = arith.constant 0.000000e+00 : f32
    %133 = vector.broadcast %cst_112 : f32 to vector<286x16xf32>
    %134 = arith.maximumf %132, %133 : vector<286x16xf32>
    %135 = arith.truncf %134 : vector<286x16xf32> to vector<286x16xbf16>
    %cst_113 = arith.constant 0.000000e+00 : bf16
    %136 = vector.broadcast %cst_113 : bf16 to vector<11x16xbf16>
    %c0_114 = arith.constant 0 : index
    %c0_115 = arith.constant 0 : index
    %137 = vector.load %arg14[%c0_114, %c0_115] : memref<100x16xbf16, #tpu.memory_space<vmem>>, vector<11x16xbf16>
    tpu.vector_store %arg14[%c0_114, %c0_115], %136 {strides = array<i32>} : memref<100x16xbf16, #tpu.memory_space<vmem>>, vector<11x16xbf16>,
    %cst_116 = arith.constant 0.000000e+00 : bf16
    %138 = vector.broadcast %cst_116 : bf16 to vector<10x16xbf16>
    %c90 = arith.constant 90 : index
    %c0_117 = arith.constant 0 : index
    %139 = vector.load %arg14[%c90, %c0_117] : memref<100x16xbf16, #tpu.memory_space<vmem>>, vector<10x16xbf16>
    tpu.vector_store %arg14[%c90, %c0_117], %138 {strides = array<i32>} : memref<100x16xbf16, #tpu.memory_space<vmem>>, vector<10x16xbf16>,
    %cst_118 = arith.constant 0.000000e+00 : bf16
    %140 = vector.broadcast %cst_118 : bf16 to vector<2x16xbf16>
    %141 = tpu.iota {dimensions = array<i32: 0>} : vector<8x16xi32>
    %142 = tpu.iota {dimensions = array<i32: 1>} : vector<8x16xi32>
    %c2_i32 = arith.constant 2 : i32
    %143 = vector.broadcast %c2_i32 : i32 to vector<8x16xi32>
    %144 = arith.muli %143, %141 : vector<8x16xi32>
    %145 = arith.cmpi eq, %142, %144 : vector<8x16xi32>
    %cst_119 = arith.constant 1.000000e+00 : f32
    %cst_120 = arith.constant 0.000000e+00 : f32
    %146 = vector.broadcast %cst_119 : f32 to vector<8x16xf32>
    %147 = vector.broadcast %cst_120 : f32 to vector<8x16xf32>
    %148 = arith.select %145, %146, %147 : vector<8x16xi1>, vector<8x16xf32>
    %149 = arith.truncf %148 : vector<8x16xf32> to vector<8x16xbf16>
    %150 = vector.extract_strided_slice %135 {offsets = [0, 0], sizes = [16, 16], strides = [1, 1]} : vector<286x16xbf16> to vector<16x16xbf16>
    %cst_121 = arith.constant dense<0.000000e+00> : vector<8x16xf32>
    %151 = tpu.matmul %149, %150, %cst_121 {dimension_numbers = #tpu.dot_dimension_numbers<[1], [0], [0], [1], [0, 0, 1, 1], [], []>} : vector<8x16xbf16>, vector<16x16xbf16>, vector<8x16xf32> -> vector<8x16xf32>
    %152 = arith.truncf %151 : vector<8x16xf32> to vector<8x16xbf16>
    %c11 = arith.constant 11 : index
    %c0_122 = arith.constant 0 : index
    %153 = vector.load %arg14[%c11, %c0_122] : memref<100x16xbf16, #tpu.memory_space<vmem>>, vector<8x16xbf16>
    tpu.vector_store %arg14[%c11, %c0_122], %152 {strides = array<i32>} : memref<100x16xbf16, #tpu.memory_space<vmem>>, vector<8x16xbf16>,
    %c19_123 = arith.constant 19 : index
    %c0_124 = arith.constant 0 : index
    %154 = vector.load %arg14[%c19_123, %c0_124] : memref<100x16xbf16, #tpu.memory_space<vmem>>, vector<2x16xbf16>
    tpu.vector_store %arg14[%c19_123, %c0_124], %140 {strides = array<i32>} : memref<100x16xbf16, #tpu.memory_space<vmem>>, vector<2x16xbf16>,
    %155 = vector.extract_strided_slice %135 {offsets = [36, 0], sizes = [16, 16], strides = [1, 1]} : vector<286x16xbf16> to vector<16x16xbf16>
    %cst_125 = arith.constant dense<0.000000e+00> : vector<8x16xf32>
    %156 = tpu.matmul %149, %155, %cst_125 {dimension_numbers = #tpu.dot_dimension_numbers<[1], [0], [0], [1], [0, 0, 1, 1], [], []>} : vector<8x16xbf16>, vector<16x16xbf16>, vector<8x16xf32> -> vector<8x16xf32>
    %157 = arith.truncf %156 : vector<8x16xf32> to vector<8x16xbf16>
    %c21 = arith.constant 21 : index
    %c0_126 = arith.constant 0 : index
    %158 = vector.load %arg14[%c21, %c0_126] : memref<100x16xbf16, #tpu.memory_space<vmem>>, vector<8x16xbf16>
    tpu.vector_store %arg14[%c21, %c0_126], %157 {strides = array<i32>} : memref<100x16xbf16, #tpu.memory_space<vmem>>, vector<8x16xbf16>,
    %c29 = arith.constant 29 : index
    %c0_127 = arith.constant 0 : index
    %159 = vector.load %arg14[%c29, %c0_127] : memref<100x16xbf16, #tpu.memory_space<vmem>>, vector<2x16xbf16>
    tpu.vector_store %arg14[%c29, %c0_127], %140 {strides = array<i32>} : memref<100x16xbf16, #tpu.memory_space<vmem>>, vector<2x16xbf16>,
    %160 = vector.extract_strided_slice %135 {offsets = [72, 0], sizes = [16, 16], strides = [1, 1]} : vector<286x16xbf16> to vector<16x16xbf16>
    %cst_128 = arith.constant dense<0.000000e+00> : vector<8x16xf32>
    %161 = tpu.matmul %149, %160, %cst_128 {dimension_numbers = #tpu.dot_dimension_numbers<[1], [0], [0], [1], [0, 0, 1, 1], [], []>} : vector<8x16xbf16>, vector<16x16xbf16>, vector<8x16xf32> -> vector<8x16xf32>
    %162 = arith.truncf %161 : vector<8x16xf32> to vector<8x16xbf16>
    %c31 = arith.constant 31 : index
    %c0_129 = arith.constant 0 : index
    %163 = vector.load %arg14[%c31, %c0_129] : memref<100x16xbf16, #tpu.memory_space<vmem>>, vector<8x16xbf16>
    tpu.vector_store %arg14[%c31, %c0_129], %162 {strides = array<i32>} : memref<100x16xbf16, #tpu.memory_space<vmem>>, vector<8x16xbf16>,
    %c39 = arith.constant 39 : index
    %c0_130 = arith.constant 0 : index
    %164 = vector.load %arg14[%c39, %c0_130] : memref<100x16xbf16, #tpu.memory_space<vmem>>, vector<2x16xbf16>
    tpu.vector_store %arg14[%c39, %c0_130], %140 {strides = array<i32>} : memref<100x16xbf16, #tpu.memory_space<vmem>>, vector<2x16xbf16>,
    %165 = vector.extract_strided_slice %135 {offsets = [108, 0], sizes = [16, 16], strides = [1, 1]} : vector<286x16xbf16> to vector<16x16xbf16>
    %cst_131 = arith.constant dense<0.000000e+00> : vector<8x16xf32>
    %166 = tpu.matmul %149, %165, %cst_131 {dimension_numbers = #tpu.dot_dimension_numbers<[1], [0], [0], [1], [0, 0, 1, 1], [], []>} : vector<8x16xbf16>, vector<16x16xbf16>, vector<8x16xf32> -> vector<8x16xf32>
    %167 = arith.truncf %166 : vector<8x16xf32> to vector<8x16xbf16>
    %c41 = arith.constant 41 : index
    %c0_132 = arith.constant 0 : index
    %168 = vector.load %arg14[%c41, %c0_132] : memref<100x16xbf16, #tpu.memory_space<vmem>>, vector<8x16xbf16>
    tpu.vector_store %arg14[%c41, %c0_132], %167 {strides = array<i32>} : memref<100x16xbf16, #tpu.memory_space<vmem>>, vector<8x16xbf16>,
    %c49 = arith.constant 49 : index
    %c0_133 = arith.constant 0 : index
    %169 = vector.load %arg14[%c49, %c0_133] : memref<100x16xbf16, #tpu.memory_space<vmem>>, vector<2x16xbf16>
    tpu.vector_store %arg14[%c49, %c0_133], %140 {strides = array<i32>} : memref<100x16xbf16, #tpu.memory_space<vmem>>, vector<2x16xbf16>,
    %170 = vector.extract_strided_slice %135 {offsets = [144, 0], sizes = [16, 16], strides = [1, 1]} : vector<286x16xbf16> to vector<16x16xbf16>
    %cst_134 = arith.constant dense<0.000000e+00> : vector<8x16xf32>
    %171 = tpu.matmul %149, %170, %cst_134 {dimension_numbers = #tpu.dot_dimension_numbers<[1], [0], [0], [1], [0, 0, 1, 1], [], []>} : vector<8x16xbf16>, vector<16x16xbf16>, vector<8x16xf32> -> vector<8x16xf32>
    %172 = arith.truncf %171 : vector<8x16xf32> to vector<8x16xbf16>
    %c51 = arith.constant 51 : index
    %c0_135 = arith.constant 0 : index
    %173 = vector.load %arg14[%c51, %c0_135] : memref<100x16xbf16, #tpu.memory_space<vmem>>, vector<8x16xbf16>
    tpu.vector_store %arg14[%c51, %c0_135], %172 {strides = array<i32>} : memref<100x16xbf16, #tpu.memory_space<vmem>>, vector<8x16xbf16>,
    %c59 = arith.constant 59 : index
    %c0_136 = arith.constant 0 : index
    %174 = vector.load %arg14[%c59, %c0_136] : memref<100x16xbf16, #tpu.memory_space<vmem>>, vector<2x16xbf16>
    tpu.vector_store %arg14[%c59, %c0_136], %140 {strides = array<i32>} : memref<100x16xbf16, #tpu.memory_space<vmem>>, vector<2x16xbf16>,
    %175 = vector.extract_strided_slice %135 {offsets = [180, 0], sizes = [16, 16], strides = [1, 1]} : vector<286x16xbf16> to vector<16x16xbf16>
    %cst_137 = arith.constant dense<0.000000e+00> : vector<8x16xf32>
    %176 = tpu.matmul %149, %175, %cst_137 {dimension_numbers = #tpu.dot_dimension_numbers<[1], [0], [0], [1], [0, 0, 1, 1], [], []>} : vector<8x16xbf16>, vector<16x16xbf16>, vector<8x16xf32> -> vector<8x16xf32>
    %177 = arith.truncf %176 : vector<8x16xf32> to vector<8x16xbf16>
    %c61 = arith.constant 61 : index
    %c0_138 = arith.constant 0 : index
    %178 = vector.load %arg14[%c61, %c0_138] : memref<100x16xbf16, #tpu.memory_space<vmem>>, vector<8x16xbf16>
    tpu.vector_store %arg14[%c61, %c0_138], %177 {strides = array<i32>} : memref<100x16xbf16, #tpu.memory_space<vmem>>, vector<8x16xbf16>,
    %c69 = arith.constant 69 : index
    %c0_139 = arith.constant 0 : index
    %179 = vector.load %arg14[%c69, %c0_139] : memref<100x16xbf16, #tpu.memory_space<vmem>>, vector<2x16xbf16>
    tpu.vector_store %arg14[%c69, %c0_139], %140 {strides = array<i32>} : memref<100x16xbf16, #tpu.memory_space<vmem>>, vector<2x16xbf16>,
    %180 = vector.extract_strided_slice %135 {offsets = [216, 0], sizes = [16, 16], strides = [1, 1]} : vector<286x16xbf16> to vector<16x16xbf16>
    %cst_140 = arith.constant dense<0.000000e+00> : vector<8x16xf32>
    %181 = tpu.matmul %149, %180, %cst_140 {dimension_numbers = #tpu.dot_dimension_numbers<[1], [0], [0], [1], [0, 0, 1, 1], [], []>} : vector<8x16xbf16>, vector<16x16xbf16>, vector<8x16xf32> -> vector<8x16xf32>
    %182 = arith.truncf %181 : vector<8x16xf32> to vector<8x16xbf16>
    %c71_141 = arith.constant 71 : index
    %c0_142 = arith.constant 0 : index
    %183 = vector.load %arg14[%c71_141, %c0_142] : memref<100x16xbf16, #tpu.memory_space<vmem>>, vector<8x16xbf16>
    tpu.vector_store %arg14[%c71_141, %c0_142], %182 {strides = array<i32>} : memref<100x16xbf16, #tpu.memory_space<vmem>>, vector<8x16xbf16>,
    %c79 = arith.constant 79 : index
    %c0_143 = arith.constant 0 : index
    %184 = vector.load %arg14[%c79, %c0_143] : memref<100x16xbf16, #tpu.memory_space<vmem>>, vector<2x16xbf16>
    tpu.vector_store %arg14[%c79, %c0_143], %140 {strides = array<i32>} : memref<100x16xbf16, #tpu.memory_space<vmem>>, vector<2x16xbf16>,
    %185 = vector.extract_strided_slice %135 {offsets = [252, 0], sizes = [16, 16], strides = [1, 1]} : vector<286x16xbf16> to vector<16x16xbf16>
    %cst_144 = arith.constant dense<0.000000e+00> : vector<8x16xf32>
    %186 = tpu.matmul %149, %185, %cst_144 {dimension_numbers = #tpu.dot_dimension_numbers<[1], [0], [0], [1], [0, 0, 1, 1], [], []>} : vector<8x16xbf16>, vector<16x16xbf16>, vector<8x16xf32> -> vector<8x16xf32>
    %187 = arith.truncf %186 : vector<8x16xf32> to vector<8x16xbf16>
    %c81 = arith.constant 81 : index
    %c0_145 = arith.constant 0 : index
    %188 = vector.load %arg14[%c81, %c0_145] : memref<100x16xbf16, #tpu.memory_space<vmem>>, vector<8x16xbf16>
    tpu.vector_store %arg14[%c81, %c0_145], %187 {strides = array<i32>} : memref<100x16xbf16, #tpu.memory_space<vmem>>, vector<8x16xbf16>,
    %c89_146 = arith.constant 89 : index
    %c0_147 = arith.constant 0 : index
    %189 = vector.load %arg14[%c89_146, %c0_147] : memref<100x16xbf16, #tpu.memory_space<vmem>>, vector<2x16xbf16>
    tpu.vector_store %arg14[%c89_146, %c0_147], %140 {strides = array<i32>} : memref<100x16xbf16, #tpu.memory_space<vmem>>, vector<2x16xbf16>,
    %cst_148 = arith.constant 0.000000e+00 : f32
    %190 = vector.broadcast %cst_148 : f32 to vector<78x32xf32>
    %c0_149 = arith.constant 0 : index
    %c0_150 = arith.constant 0 : index
    %191 = vector.load %arg14[%c0_149, %c0_150] : memref<100x16xbf16, #tpu.memory_space<vmem>>, vector<78x16xbf16>
    %c0_151 = arith.constant 0 : index
    %c0_152 = arith.constant 0 : index
    %c0_153 = arith.constant 0 : index
    %192 = vector.load %arg6[%c0_151, %c0_152, %c0_153] : memref<9x16x32xbf16, #tpu.memory_space<vmem>>, vector<1x16x32xbf16>
    %193 = vector.shape_cast %192 : vector<1x16x32xbf16> to vector<16x32xbf16>
    %cst_154 = arith.constant dense<0.000000e+00> : vector<78x32xf32>
    %194 = tpu.matmul %191, %193, %cst_154 {dimension_numbers = #tpu.dot_dimension_numbers<[1], [0], [0], [1], [0, 0, 1, 1], [], []>} : vector<78x16xbf16>, vector<16x32xbf16>, vector<78x32xf32> -> vector<78x32xf32>
    %195 = arith.addf %190, %194 : vector<78x32xf32>
    %c1_155 = arith.constant 1 : index
    %c0_156 = arith.constant 0 : index
    %196 = vector.load %arg14[%c1_155, %c0_156] : memref<100x16xbf16, #tpu.memory_space<vmem>>, vector<78x16xbf16>
    %c1_157 = arith.constant 1 : index
    %c0_158 = arith.constant 0 : index
    %c0_159 = arith.constant 0 : index
    %197 = vector.load %arg6[%c1_157, %c0_158, %c0_159] : memref<9x16x32xbf16, #tpu.memory_space<vmem>>, vector<1x16x32xbf16>
    %198 = vector.shape_cast %197 : vector<1x16x32xbf16> to vector<16x32xbf16>
    %cst_160 = arith.constant dense<0.000000e+00> : vector<78x32xf32>
    %199 = tpu.matmul %196, %198, %cst_160 {dimension_numbers = #tpu.dot_dimension_numbers<[1], [0], [0], [1], [0, 0, 1, 1], [], []>} : vector<78x16xbf16>, vector<16x32xbf16>, vector<78x32xf32> -> vector<78x32xf32>
    %200 = arith.addf %195, %199 : vector<78x32xf32>
    %c2_161 = arith.constant 2 : index
    %c0_162 = arith.constant 0 : index
    %201 = vector.load %arg14[%c2_161, %c0_162] : memref<100x16xbf16, #tpu.memory_space<vmem>>, vector<78x16xbf16>
    %c2_163 = arith.constant 2 : index
    %c0_164 = arith.constant 0 : index
    %c0_165 = arith.constant 0 : index
    %202 = vector.load %arg6[%c2_163, %c0_164, %c0_165] : memref<9x16x32xbf16, #tpu.memory_space<vmem>>, vector<1x16x32xbf16>
    %203 = vector.shape_cast %202 : vector<1x16x32xbf16> to vector<16x32xbf16>
    %cst_166 = arith.constant dense<0.000000e+00> : vector<78x32xf32>
    %204 = tpu.matmul %201, %203, %cst_166 {dimension_numbers = #tpu.dot_dimension_numbers<[1], [0], [0], [1], [0, 0, 1, 1], [], []>} : vector<78x16xbf16>, vector<16x32xbf16>, vector<78x32xf32> -> vector<78x32xf32>
    %205 = arith.addf %200, %204 : vector<78x32xf32>
    %c10 = arith.constant 10 : index
    %c0_167 = arith.constant 0 : index
    %206 = vector.load %arg14[%c10, %c0_167] : memref<100x16xbf16, #tpu.memory_space<vmem>>, vector<78x16xbf16>
    %c3_168 = arith.constant 3 : index
    %c0_169 = arith.constant 0 : index
    %c0_170 = arith.constant 0 : index
    %207 = vector.load %arg6[%c3_168, %c0_169, %c0_170] : memref<9x16x32xbf16, #tpu.memory_space<vmem>>, vector<1x16x32xbf16>
    %208 = vector.shape_cast %207 : vector<1x16x32xbf16> to vector<16x32xbf16>
    %cst_171 = arith.constant dense<0.000000e+00> : vector<78x32xf32>
    %209 = tpu.matmul %206, %208, %cst_171 {dimension_numbers = #tpu.dot_dimension_numbers<[1], [0], [0], [1], [0, 0, 1, 1], [], []>} : vector<78x16xbf16>, vector<16x32xbf16>, vector<78x32xf32> -> vector<78x32xf32>
    %210 = arith.addf %205, %209 : vector<78x32xf32>
    %c11_172 = arith.constant 11 : index
    %c0_173 = arith.constant 0 : index
    %211 = vector.load %arg14[%c11_172, %c0_173] : memref<100x16xbf16, #tpu.memory_space<vmem>>, vector<78x16xbf16>
    %c4_174 = arith.constant 4 : index
    %c0_175 = arith.constant 0 : index
    %c0_176 = arith.constant 0 : index
    %212 = vector.load %arg6[%c4_174, %c0_175, %c0_176] : memref<9x16x32xbf16, #tpu.memory_space<vmem>>, vector<1x16x32xbf16>
    %213 = vector.shape_cast %212 : vector<1x16x32xbf16> to vector<16x32xbf16>
    %cst_177 = arith.constant dense<0.000000e+00> : vector<78x32xf32>
    %214 = tpu.matmul %211, %213, %cst_177 {dimension_numbers = #tpu.dot_dimension_numbers<[1], [0], [0], [1], [0, 0, 1, 1], [], []>} : vector<78x16xbf16>, vector<16x32xbf16>, vector<78x32xf32> -> vector<78x32xf32>
    %215 = arith.addf %210, %214 : vector<78x32xf32>
    %c12 = arith.constant 12 : index
    %c0_178 = arith.constant 0 : index
    %216 = vector.load %arg14[%c12, %c0_178] : memref<100x16xbf16, #tpu.memory_space<vmem>>, vector<78x16xbf16>
    %c5_179 = arith.constant 5 : index
    %c0_180 = arith.constant 0 : index
    %c0_181 = arith.constant 0 : index
    %217 = vector.load %arg6[%c5_179, %c0_180, %c0_181] : memref<9x16x32xbf16, #tpu.memory_space<vmem>>, vector<1x16x32xbf16>
    %218 = vector.shape_cast %217 : vector<1x16x32xbf16> to vector<16x32xbf16>
    %cst_182 = arith.constant dense<0.000000e+00> : vector<78x32xf32>
    %219 = tpu.matmul %216, %218, %cst_182 {dimension_numbers = #tpu.dot_dimension_numbers<[1], [0], [0], [1], [0, 0, 1, 1], [], []>} : vector<78x16xbf16>, vector<16x32xbf16>, vector<78x32xf32> -> vector<78x32xf32>
    %220 = arith.addf %215, %219 : vector<78x32xf32>
    %c20_183 = arith.constant 20 : index
    %c0_184 = arith.constant 0 : index
    %221 = vector.load %arg14[%c20_183, %c0_184] : memref<100x16xbf16, #tpu.memory_space<vmem>>, vector<78x16xbf16>
    %c6_185 = arith.constant 6 : index
    %c0_186 = arith.constant 0 : index
    %c0_187 = arith.constant 0 : index
    %222 = vector.load %arg6[%c6_185, %c0_186, %c0_187] : memref<9x16x32xbf16, #tpu.memory_space<vmem>>, vector<1x16x32xbf16>
    %223 = vector.shape_cast %222 : vector<1x16x32xbf16> to vector<16x32xbf16>
    %cst_188 = arith.constant dense<0.000000e+00> : vector<78x32xf32>
    %224 = tpu.matmul %221, %223, %cst_188 {dimension_numbers = #tpu.dot_dimension_numbers<[1], [0], [0], [1], [0, 0, 1, 1], [], []>} : vector<78x16xbf16>, vector<16x32xbf16>, vector<78x32xf32> -> vector<78x32xf32>
    %225 = arith.addf %220, %224 : vector<78x32xf32>
    %c21_189 = arith.constant 21 : index
    %c0_190 = arith.constant 0 : index
    %226 = vector.load %arg14[%c21_189, %c0_190] : memref<100x16xbf16, #tpu.memory_space<vmem>>, vector<78x16xbf16>
    %c7_191 = arith.constant 7 : index
    %c0_192 = arith.constant 0 : index
    %c0_193 = arith.constant 0 : index
    %227 = vector.load %arg6[%c7_191, %c0_192, %c0_193] : memref<9x16x32xbf16, #tpu.memory_space<vmem>>, vector<1x16x32xbf16>
    %228 = vector.shape_cast %227 : vector<1x16x32xbf16> to vector<16x32xbf16>
    %cst_194 = arith.constant dense<0.000000e+00> : vector<78x32xf32>
    %229 = tpu.matmul %226, %228, %cst_194 {dimension_numbers = #tpu.dot_dimension_numbers<[1], [0], [0], [1], [0, 0, 1, 1], [], []>} : vector<78x16xbf16>, vector<16x32xbf16>, vector<78x32xf32> -> vector<78x32xf32>
    %230 = arith.addf %225, %229 : vector<78x32xf32>
    %c22 = arith.constant 22 : index
    %c0_195 = arith.constant 0 : index
    %231 = vector.load %arg14[%c22, %c0_195] : memref<100x16xbf16, #tpu.memory_space<vmem>>, vector<78x16xbf16>
    %c8_196 = arith.constant 8 : index
    %c0_197 = arith.constant 0 : index
    %c0_198 = arith.constant 0 : index
    %232 = vector.load %arg6[%c8_196, %c0_197, %c0_198] : memref<9x16x32xbf16, #tpu.memory_space<vmem>>, vector<1x16x32xbf16>
    %233 = vector.shape_cast %232 : vector<1x16x32xbf16> to vector<16x32xbf16>
    %cst_199 = arith.constant dense<0.000000e+00> : vector<78x32xf32>
    %234 = tpu.matmul %231, %233, %cst_199 {dimension_numbers = #tpu.dot_dimension_numbers<[1], [0], [0], [1], [0, 0, 1, 1], [], []>} : vector<78x16xbf16>, vector<16x32xbf16>, vector<78x32xf32> -> vector<78x32xf32>
    %235 = arith.addf %230, %234 : vector<78x32xf32>
    %c0_200 = arith.constant 0 : index
    %c0_201 = arith.constant 0 : index
    %236 = vector.load %arg7[%c0_200, %c0_201] : memref<1x32xf32, #tpu.memory_space<vmem>>, vector<1x32xf32>
    %237 = vector.broadcast %236 : vector<1x32xf32> to vector<78x32xf32>
    %238 = arith.addf %235, %237 : vector<78x32xf32>
    %cst_202 = arith.constant 0.000000e+00 : f32
    %239 = vector.broadcast %cst_202 : f32 to vector<78x32xf32>
    %240 = arith.maximumf %238, %239 : vector<78x32xf32>
    %241 = arith.truncf %240 : vector<78x32xf32> to vector<78x32xbf16>
    %cst_203 = arith.constant 0.000000e+00 : bf16
    %242 = vector.broadcast %cst_203 : bf16 to vector<7x32xbf16>
    %c0_204 = arith.constant 0 : index
    %c0_205 = arith.constant 0 : index
    %243 = vector.load %arg15[%c0_204, %c0_205] : memref<36x32xbf16, #tpu.memory_space<vmem>>, vector<7x32xbf16>
    tpu.vector_store %arg15[%c0_204, %c0_205], %242 {strides = array<i32>} : memref<36x32xbf16, #tpu.memory_space<vmem>>, vector<7x32xbf16>,
    %cst_206 = arith.constant 0.000000e+00 : bf16
    %244 = vector.broadcast %cst_206 : bf16 to vector<6x32xbf16>
    %c30 = arith.constant 30 : index
    %c0_207 = arith.constant 0 : index
    %245 = vector.load %arg15[%c30, %c0_207] : memref<36x32xbf16, #tpu.memory_space<vmem>>, vector<6x32xbf16>
    tpu.vector_store %arg15[%c30, %c0_207], %244 {strides = array<i32>} : memref<36x32xbf16, #tpu.memory_space<vmem>>, vector<6x32xbf16>,
    %cst_208 = arith.constant 0.000000e+00 : bf16
    %246 = vector.broadcast %cst_208 : bf16 to vector<2x32xbf16>
    %247 = vector.extract_strided_slice %241 {offsets = [0, 0], sizes = [1, 32], strides = [1, 1]} : vector<78x32xbf16> to vector<1x32xbf16>
    %c7_209 = arith.constant 7 : index
    %c0_210 = arith.constant 0 : index
    %248 = vector.load %arg15[%c7_209, %c0_210] : memref<36x32xbf16, #tpu.memory_space<vmem>>, vector<1x32xbf16>
    tpu.vector_store %arg15[%c7_209, %c0_210], %247 {strides = array<i32>} : memref<36x32xbf16, #tpu.memory_space<vmem>>, vector<1x32xbf16>,
    %249 = vector.extract_strided_slice %241 {offsets = [2, 0], sizes = [1, 32], strides = [1, 1]} : vector<78x32xbf16> to vector<1x32xbf16>
    %c8_211 = arith.constant 8 : index
    %c0_212 = arith.constant 0 : index
    %250 = vector.load %arg15[%c8_211, %c0_212] : memref<36x32xbf16, #tpu.memory_space<vmem>>, vector<1x32xbf16>
    tpu.vector_store %arg15[%c8_211, %c0_212], %249 {strides = array<i32>} : memref<36x32xbf16, #tpu.memory_space<vmem>>, vector<1x32xbf16>,
    %251 = vector.extract_strided_slice %241 {offsets = [4, 0], sizes = [1, 32], strides = [1, 1]} : vector<78x32xbf16> to vector<1x32xbf16>
    %c9 = arith.constant 9 : index
    %c0_213 = arith.constant 0 : index
    %252 = vector.load %arg15[%c9, %c0_213] : memref<36x32xbf16, #tpu.memory_space<vmem>>, vector<1x32xbf16>
    tpu.vector_store %arg15[%c9, %c0_213], %251 {strides = array<i32>} : memref<36x32xbf16, #tpu.memory_space<vmem>>, vector<1x32xbf16>,
    %253 = vector.extract_strided_slice %241 {offsets = [6, 0], sizes = [1, 32], strides = [1, 1]} : vector<78x32xbf16> to vector<1x32xbf16>
    %c10_214 = arith.constant 10 : index
    %c0_215 = arith.constant 0 : index
    %254 = vector.load %arg15[%c10_214, %c0_215] : memref<36x32xbf16, #tpu.memory_space<vmem>>, vector<1x32xbf16>
    tpu.vector_store %arg15[%c10_214, %c0_215], %253 {strides = array<i32>} : memref<36x32xbf16, #tpu.memory_space<vmem>>, vector<1x32xbf16>,
    %c11_216 = arith.constant 11 : index
    %c0_217 = arith.constant 0 : index
    %255 = vector.load %arg15[%c11_216, %c0_217] : memref<36x32xbf16, #tpu.memory_space<vmem>>, vector<2x32xbf16>
    tpu.vector_store %arg15[%c11_216, %c0_217], %246 {strides = array<i32>} : memref<36x32xbf16, #tpu.memory_space<vmem>>, vector<2x32xbf16>,
    %256 = vector.extract_strided_slice %241 {offsets = [20, 0], sizes = [1, 32], strides = [1, 1]} : vector<78x32xbf16> to vector<1x32xbf16>
    %c13 = arith.constant 13 : index
    %c0_218 = arith.constant 0 : index
    %257 = vector.load %arg15[%c13, %c0_218] : memref<36x32xbf16, #tpu.memory_space<vmem>>, vector<1x32xbf16>
    tpu.vector_store %arg15[%c13, %c0_218], %256 {strides = array<i32>} : memref<36x32xbf16, #tpu.memory_space<vmem>>, vector<1x32xbf16>,
    %258 = vector.extract_strided_slice %241 {offsets = [22, 0], sizes = [1, 32], strides = [1, 1]} : vector<78x32xbf16> to vector<1x32xbf16>
    %c14 = arith.constant 14 : index
    %c0_219 = arith.constant 0 : index
    %259 = vector.load %arg15[%c14, %c0_219] : memref<36x32xbf16, #tpu.memory_space<vmem>>, vector<1x32xbf16>
    tpu.vector_store %arg15[%c14, %c0_219], %258 {strides = array<i32>} : memref<36x32xbf16, #tpu.memory_space<vmem>>, vector<1x32xbf16>,
    %260 = vector.extract_strided_slice %241 {offsets = [24, 0], sizes = [1, 32], strides = [1, 1]} : vector<78x32xbf16> to vector<1x32xbf16>
    %c15 = arith.constant 15 : index
    %c0_220 = arith.constant 0 : index
    %261 = vector.load %arg15[%c15, %c0_220] : memref<36x32xbf16, #tpu.memory_space<vmem>>, vector<1x32xbf16>
    tpu.vector_store %arg15[%c15, %c0_220], %260 {strides = array<i32>} : memref<36x32xbf16, #tpu.memory_space<vmem>>, vector<1x32xbf16>,
    %262 = vector.extract_strided_slice %241 {offsets = [26, 0], sizes = [1, 32], strides = [1, 1]} : vector<78x32xbf16> to vector<1x32xbf16>
    %c16 = arith.constant 16 : index
    %c0_221 = arith.constant 0 : index
    %263 = vector.load %arg15[%c16, %c0_221] : memref<36x32xbf16, #tpu.memory_space<vmem>>, vector<1x32xbf16>
    tpu.vector_store %arg15[%c16, %c0_221], %262 {strides = array<i32>} : memref<36x32xbf16, #tpu.memory_space<vmem>>, vector<1x32xbf16>,
    %c17_222 = arith.constant 17 : index
    %c0_223 = arith.constant 0 : index
    %264 = vector.load %arg15[%c17_222, %c0_223] : memref<36x32xbf16, #tpu.memory_space<vmem>>, vector<2x32xbf16>
    tpu.vector_store %arg15[%c17_222, %c0_223], %246 {strides = array<i32>} : memref<36x32xbf16, #tpu.memory_space<vmem>>, vector<2x32xbf16>,
    %265 = vector.extract_strided_slice %241 {offsets = [40, 0], sizes = [1, 32], strides = [1, 1]} : vector<78x32xbf16> to vector<1x32xbf16>
    %c19_224 = arith.constant 19 : index
    %c0_225 = arith.constant 0 : index
    %266 = vector.load %arg15[%c19_224, %c0_225] : memref<36x32xbf16, #tpu.memory_space<vmem>>, vector<1x32xbf16>
    tpu.vector_store %arg15[%c19_224, %c0_225], %265 {strides = array<i32>} : memref<36x32xbf16, #tpu.memory_space<vmem>>, vector<1x32xbf16>,
    %267 = vector.extract_strided_slice %241 {offsets = [42, 0], sizes = [1, 32], strides = [1, 1]} : vector<78x32xbf16> to vector<1x32xbf16>
    %c20_226 = arith.constant 20 : index
    %c0_227 = arith.constant 0 : index
    %268 = vector.load %arg15[%c20_226, %c0_227] : memref<36x32xbf16, #tpu.memory_space<vmem>>, vector<1x32xbf16>
    tpu.vector_store %arg15[%c20_226, %c0_227], %267 {strides = array<i32>} : memref<36x32xbf16, #tpu.memory_space<vmem>>, vector<1x32xbf16>,
    %269 = vector.extract_strided_slice %241 {offsets = [44, 0], sizes = [1, 32], strides = [1, 1]} : vector<78x32xbf16> to vector<1x32xbf16>
    %c21_228 = arith.constant 21 : index
    %c0_229 = arith.constant 0 : index
    %270 = vector.load %arg15[%c21_228, %c0_229] : memref<36x32xbf16, #tpu.memory_space<vmem>>, vector<1x32xbf16>
    tpu.vector_store %arg15[%c21_228, %c0_229], %269 {strides = array<i32>} : memref<36x32xbf16, #tpu.memory_space<vmem>>, vector<1x32xbf16>,
    %271 = vector.extract_strided_slice %241 {offsets = [46, 0], sizes = [1, 32], strides = [1, 1]} : vector<78x32xbf16> to vector<1x32xbf16>
    %c22_230 = arith.constant 22 : index
    %c0_231 = arith.constant 0 : index
    %272 = vector.load %arg15[%c22_230, %c0_231] : memref<36x32xbf16, #tpu.memory_space<vmem>>, vector<1x32xbf16>
    tpu.vector_store %arg15[%c22_230, %c0_231], %271 {strides = array<i32>} : memref<36x32xbf16, #tpu.memory_space<vmem>>, vector<1x32xbf16>,
    %c23 = arith.constant 23 : index
    %c0_232 = arith.constant 0 : index
    %273 = vector.load %arg15[%c23, %c0_232] : memref<36x32xbf16, #tpu.memory_space<vmem>>, vector<2x32xbf16>
    tpu.vector_store %arg15[%c23, %c0_232], %246 {strides = array<i32>} : memref<36x32xbf16, #tpu.memory_space<vmem>>, vector<2x32xbf16>,
    %274 = vector.extract_strided_slice %241 {offsets = [60, 0], sizes = [1, 32], strides = [1, 1]} : vector<78x32xbf16> to vector<1x32xbf16>
    %c25 = arith.constant 25 : index
    %c0_233 = arith.constant 0 : index
    %275 = vector.load %arg15[%c25, %c0_233] : memref<36x32xbf16, #tpu.memory_space<vmem>>, vector<1x32xbf16>
    tpu.vector_store %arg15[%c25, %c0_233], %274 {strides = array<i32>} : memref<36x32xbf16, #tpu.memory_space<vmem>>, vector<1x32xbf16>,
    %276 = vector.extract_strided_slice %241 {offsets = [62, 0], sizes = [1, 32], strides = [1, 1]} : vector<78x32xbf16> to vector<1x32xbf16>
    %c26 = arith.constant 26 : index
    %c0_234 = arith.constant 0 : index
    %277 = vector.load %arg15[%c26, %c0_234] : memref<36x32xbf16, #tpu.memory_space<vmem>>, vector<1x32xbf16>
    tpu.vector_store %arg15[%c26, %c0_234], %276 {strides = array<i32>} : memref<36x32xbf16, #tpu.memory_space<vmem>>, vector<1x32xbf16>,
    %278 = vector.extract_strided_slice %241 {offsets = [64, 0], sizes = [1, 32], strides = [1, 1]} : vector<78x32xbf16> to vector<1x32xbf16>
    %c27 = arith.constant 27 : index
    %c0_235 = arith.constant 0 : index
    %279 = vector.load %arg15[%c27, %c0_235] : memref<36x32xbf16, #tpu.memory_space<vmem>>, vector<1x32xbf16>
    tpu.vector_store %arg15[%c27, %c0_235], %278 {strides = array<i32>} : memref<36x32xbf16, #tpu.memory_space<vmem>>, vector<1x32xbf16>,
    %280 = vector.extract_strided_slice %241 {offsets = [66, 0], sizes = [1, 32], strides = [1, 1]} : vector<78x32xbf16> to vector<1x32xbf16>
    %c28 = arith.constant 28 : index
    %c0_236 = arith.constant 0 : index
    %281 = vector.load %arg15[%c28, %c0_236] : memref<36x32xbf16, #tpu.memory_space<vmem>>, vector<1x32xbf16>
    tpu.vector_store %arg15[%c28, %c0_236], %280 {strides = array<i32>} : memref<36x32xbf16, #tpu.memory_space<vmem>>, vector<1x32xbf16>,
    %c29_237 = arith.constant 29 : index
    %c0_238 = arith.constant 0 : index
    %282 = vector.load %arg15[%c29_237, %c0_238] : memref<36x32xbf16, #tpu.memory_space<vmem>>, vector<2x32xbf16>
    tpu.vector_store %arg15[%c29_237, %c0_238], %246 {strides = array<i32>} : memref<36x32xbf16, #tpu.memory_space<vmem>>, vector<2x32xbf16>,
    %cst_239 = arith.constant 0.000000e+00 : f32
    %283 = vector.broadcast %cst_239 : f32 to vector<22x64xf32>
    %c0_240 = arith.constant 0 : index
    %c0_241 = arith.constant 0 : index
    %284 = vector.load %arg15[%c0_240, %c0_241] : memref<36x32xbf16, #tpu.memory_space<vmem>>, vector<22x32xbf16>
    %c0_242 = arith.constant 0 : index
    %c0_243 = arith.constant 0 : index
    %c0_244 = arith.constant 0 : index
    %285 = vector.load %arg8[%c0_242, %c0_243, %c0_244] : memref<9x32x64xbf16, #tpu.memory_space<vmem>>, vector<1x32x64xbf16>
    %286 = vector.shape_cast %285 : vector<1x32x64xbf16> to vector<32x64xbf16>
    %cst_245 = arith.constant dense<0.000000e+00> : vector<22x64xf32>
    %287 = tpu.matmul %284, %286, %cst_245 {dimension_numbers = #tpu.dot_dimension_numbers<[1], [0], [0], [1], [0, 0, 1, 1], [], []>} : vector<22x32xbf16>, vector<32x64xbf16>, vector<22x64xf32> -> vector<22x64xf32>
    %288 = arith.addf %283, %287 : vector<22x64xf32>
    %c1_246 = arith.constant 1 : index
    %c0_247 = arith.constant 0 : index
    %289 = vector.load %arg15[%c1_246, %c0_247] : memref<36x32xbf16, #tpu.memory_space<vmem>>, vector<22x32xbf16>
    %c1_248 = arith.constant 1 : index
    %c0_249 = arith.constant 0 : index
    %c0_250 = arith.constant 0 : index
    %290 = vector.load %arg8[%c1_248, %c0_249, %c0_250] : memref<9x32x64xbf16, #tpu.memory_space<vmem>>, vector<1x32x64xbf16>
    %291 = vector.shape_cast %290 : vector<1x32x64xbf16> to vector<32x64xbf16>
    %cst_251 = arith.constant dense<0.000000e+00> : vector<22x64xf32>
    %292 = tpu.matmul %289, %291, %cst_251 {dimension_numbers = #tpu.dot_dimension_numbers<[1], [0], [0], [1], [0, 0, 1, 1], [], []>} : vector<22x32xbf16>, vector<32x64xbf16>, vector<22x64xf32> -> vector<22x64xf32>
    %293 = arith.addf %288, %292 : vector<22x64xf32>
    %c2_252 = arith.constant 2 : index
    %c0_253 = arith.constant 0 : index
    %294 = vector.load %arg15[%c2_252, %c0_253] : memref<36x32xbf16, #tpu.memory_space<vmem>>, vector<22x32xbf16>
    %c2_254 = arith.constant 2 : index
    %c0_255 = arith.constant 0 : index
    %c0_256 = arith.constant 0 : index
    %295 = vector.load %arg8[%c2_254, %c0_255, %c0_256] : memref<9x32x64xbf16, #tpu.memory_space<vmem>>, vector<1x32x64xbf16>
    %296 = vector.shape_cast %295 : vector<1x32x64xbf16> to vector<32x64xbf16>
    %cst_257 = arith.constant dense<0.000000e+00> : vector<22x64xf32>
    %297 = tpu.matmul %294, %296, %cst_257 {dimension_numbers = #tpu.dot_dimension_numbers<[1], [0], [0], [1], [0, 0, 1, 1], [], []>} : vector<22x32xbf16>, vector<32x64xbf16>, vector<22x64xf32> -> vector<22x64xf32>
    %298 = arith.addf %293, %297 : vector<22x64xf32>
    %c6_258 = arith.constant 6 : index
    %c0_259 = arith.constant 0 : index
    %299 = vector.load %arg15[%c6_258, %c0_259] : memref<36x32xbf16, #tpu.memory_space<vmem>>, vector<22x32xbf16>
    %c3_260 = arith.constant 3 : index
    %c0_261 = arith.constant 0 : index
    %c0_262 = arith.constant 0 : index
    %300 = vector.load %arg8[%c3_260, %c0_261, %c0_262] : memref<9x32x64xbf16, #tpu.memory_space<vmem>>, vector<1x32x64xbf16>
    %301 = vector.shape_cast %300 : vector<1x32x64xbf16> to vector<32x64xbf16>
    %cst_263 = arith.constant dense<0.000000e+00> : vector<22x64xf32>
    %302 = tpu.matmul %299, %301, %cst_263 {dimension_numbers = #tpu.dot_dimension_numbers<[1], [0], [0], [1], [0, 0, 1, 1], [], []>} : vector<22x32xbf16>, vector<32x64xbf16>, vector<22x64xf32> -> vector<22x64xf32>
    %303 = arith.addf %298, %302 : vector<22x64xf32>
    %c7_264 = arith.constant 7 : index
    %c0_265 = arith.constant 0 : index
    %304 = vector.load %arg15[%c7_264, %c0_265] : memref<36x32xbf16, #tpu.memory_space<vmem>>, vector<22x32xbf16>
    %c4_266 = arith.constant 4 : index
    %c0_267 = arith.constant 0 : index
    %c0_268 = arith.constant 0 : index
    %305 = vector.load %arg8[%c4_266, %c0_267, %c0_268] : memref<9x32x64xbf16, #tpu.memory_space<vmem>>, vector<1x32x64xbf16>
    %306 = vector.shape_cast %305 : vector<1x32x64xbf16> to vector<32x64xbf16>
    %cst_269 = arith.constant dense<0.000000e+00> : vector<22x64xf32>
    %307 = tpu.matmul %304, %306, %cst_269 {dimension_numbers = #tpu.dot_dimension_numbers<[1], [0], [0], [1], [0, 0, 1, 1], [], []>} : vector<22x32xbf16>, vector<32x64xbf16>, vector<22x64xf32> -> vector<22x64xf32>
    %308 = arith.addf %303, %307 : vector<22x64xf32>
    %c8_270 = arith.constant 8 : index
    %c0_271 = arith.constant 0 : index
    %309 = vector.load %arg15[%c8_270, %c0_271] : memref<36x32xbf16, #tpu.memory_space<vmem>>, vector<22x32xbf16>
    %c5_272 = arith.constant 5 : index
    %c0_273 = arith.constant 0 : index
    %c0_274 = arith.constant 0 : index
    %310 = vector.load %arg8[%c5_272, %c0_273, %c0_274] : memref<9x32x64xbf16, #tpu.memory_space<vmem>>, vector<1x32x64xbf16>
    %311 = vector.shape_cast %310 : vector<1x32x64xbf16> to vector<32x64xbf16>
    %cst_275 = arith.constant dense<0.000000e+00> : vector<22x64xf32>
    %312 = tpu.matmul %309, %311, %cst_275 {dimension_numbers = #tpu.dot_dimension_numbers<[1], [0], [0], [1], [0, 0, 1, 1], [], []>} : vector<22x32xbf16>, vector<32x64xbf16>, vector<22x64xf32> -> vector<22x64xf32>
    %313 = arith.addf %308, %312 : vector<22x64xf32>
    %c12_276 = arith.constant 12 : index
    %c0_277 = arith.constant 0 : index
    %314 = vector.load %arg15[%c12_276, %c0_277] : memref<36x32xbf16, #tpu.memory_space<vmem>>, vector<22x32xbf16>
    %c6_278 = arith.constant 6 : index
    %c0_279 = arith.constant 0 : index
    %c0_280 = arith.constant 0 : index
    %315 = vector.load %arg8[%c6_278, %c0_279, %c0_280] : memref<9x32x64xbf16, #tpu.memory_space<vmem>>, vector<1x32x64xbf16>
    %316 = vector.shape_cast %315 : vector<1x32x64xbf16> to vector<32x64xbf16>
    %cst_281 = arith.constant dense<0.000000e+00> : vector<22x64xf32>
    %317 = tpu.matmul %314, %316, %cst_281 {dimension_numbers = #tpu.dot_dimension_numbers<[1], [0], [0], [1], [0, 0, 1, 1], [], []>} : vector<22x32xbf16>, vector<32x64xbf16>, vector<22x64xf32> -> vector<22x64xf32>
    %318 = arith.addf %313, %317 : vector<22x64xf32>
    %c13_282 = arith.constant 13 : index
    %c0_283 = arith.constant 0 : index
    %319 = vector.load %arg15[%c13_282, %c0_283] : memref<36x32xbf16, #tpu.memory_space<vmem>>, vector<22x32xbf16>
    %c7_284 = arith.constant 7 : index
    %c0_285 = arith.constant 0 : index
    %c0_286 = arith.constant 0 : index
    %320 = vector.load %arg8[%c7_284, %c0_285, %c0_286] : memref<9x32x64xbf16, #tpu.memory_space<vmem>>, vector<1x32x64xbf16>
    %321 = vector.shape_cast %320 : vector<1x32x64xbf16> to vector<32x64xbf16>
    %cst_287 = arith.constant dense<0.000000e+00> : vector<22x64xf32>
    %322 = tpu.matmul %319, %321, %cst_287 {dimension_numbers = #tpu.dot_dimension_numbers<[1], [0], [0], [1], [0, 0, 1, 1], [], []>} : vector<22x32xbf16>, vector<32x64xbf16>, vector<22x64xf32> -> vector<22x64xf32>
    %323 = arith.addf %318, %322 : vector<22x64xf32>
    %c14_288 = arith.constant 14 : index
    %c0_289 = arith.constant 0 : index
    %324 = vector.load %arg15[%c14_288, %c0_289] : memref<36x32xbf16, #tpu.memory_space<vmem>>, vector<22x32xbf16>
    %c8_290 = arith.constant 8 : index
    %c0_291 = arith.constant 0 : index
    %c0_292 = arith.constant 0 : index
    %325 = vector.load %arg8[%c8_290, %c0_291, %c0_292] : memref<9x32x64xbf16, #tpu.memory_space<vmem>>, vector<1x32x64xbf16>
    %326 = vector.shape_cast %325 : vector<1x32x64xbf16> to vector<32x64xbf16>
    %cst_293 = arith.constant dense<0.000000e+00> : vector<22x64xf32>
    %327 = tpu.matmul %324, %326, %cst_293 {dimension_numbers = #tpu.dot_dimension_numbers<[1], [0], [0], [1], [0, 0, 1, 1], [], []>} : vector<22x32xbf16>, vector<32x64xbf16>, vector<22x64xf32> -> vector<22x64xf32>
    %328 = arith.addf %323, %327 : vector<22x64xf32>
    %c0_294 = arith.constant 0 : index
    %c0_295 = arith.constant 0 : index
    %329 = vector.load %arg9[%c0_294, %c0_295] : memref<1x64xf32, #tpu.memory_space<vmem>>, vector<1x64xf32>
    %330 = vector.broadcast %329 : vector<1x64xf32> to vector<22x64xf32>
    %331 = arith.addf %328, %330 : vector<22x64xf32>
    %cst_296 = arith.constant 0.000000e+00 : f32
    %332 = vector.broadcast %cst_296 : f32 to vector<22x64xf32>
    %333 = arith.maximumf %331, %332 : vector<22x64xf32>
    %334 = arith.truncf %333 : vector<22x64xf32> to vector<22x64xbf16>
    %cst_297 = arith.constant 0.000000e+00 : bf16
    %335 = vector.broadcast %cst_297 : bf16 to vector<5x64xbf16>
    %c0_298 = arith.constant 0 : index
    %c0_299 = arith.constant 0 : index
    %336 = vector.load %arg16[%c0_298, %c0_299] : memref<16x64xbf16, #tpu.memory_space<vmem>>, vector<5x64xbf16>
    tpu.vector_store %arg16[%c0_298, %c0_299], %335 {strides = array<i32>} : memref<16x64xbf16, #tpu.memory_space<vmem>>, vector<5x64xbf16>,
    %cst_300 = arith.constant 0.000000e+00 : bf16
    %337 = vector.broadcast %cst_300 : bf16 to vector<4x64xbf16>
    %c12_301 = arith.constant 12 : index
    %c0_302 = arith.constant 0 : index
    %338 = vector.load %arg16[%c12_301, %c0_302] : memref<16x64xbf16, #tpu.memory_space<vmem>>, vector<4x64xbf16>
    tpu.vector_store %arg16[%c12_301, %c0_302], %337 {strides = array<i32>} : memref<16x64xbf16, #tpu.memory_space<vmem>>, vector<4x64xbf16>,
    %cst_303 = arith.constant 0.000000e+00 : bf16
    %339 = vector.broadcast %cst_303 : bf16 to vector<2x64xbf16>
    %340 = vector.extract_strided_slice %334 {offsets = [0, 0], sizes = [1, 64], strides = [1, 1]} : vector<22x64xbf16> to vector<1x64xbf16>
    %c5_304 = arith.constant 5 : index
    %c0_305 = arith.constant 0 : index
    %341 = vector.load %arg16[%c5_304, %c0_305] : memref<16x64xbf16, #tpu.memory_space<vmem>>, vector<1x64xbf16>
    tpu.vector_store %arg16[%c5_304, %c0_305], %340 {strides = array<i32>} : memref<16x64xbf16, #tpu.memory_space<vmem>>, vector<1x64xbf16>,
    %342 = vector.extract_strided_slice %334 {offsets = [2, 0], sizes = [1, 64], strides = [1, 1]} : vector<22x64xbf16> to vector<1x64xbf16>
    %c6_306 = arith.constant 6 : index
    %c0_307 = arith.constant 0 : index
    %343 = vector.load %arg16[%c6_306, %c0_307] : memref<16x64xbf16, #tpu.memory_space<vmem>>, vector<1x64xbf16>
    tpu.vector_store %arg16[%c6_306, %c0_307], %342 {strides = array<i32>} : memref<16x64xbf16, #tpu.memory_space<vmem>>, vector<1x64xbf16>,
    %c7_308 = arith.constant 7 : index
    %c0_309 = arith.constant 0 : index
    %344 = vector.load %arg16[%c7_308, %c0_309] : memref<16x64xbf16, #tpu.memory_space<vmem>>, vector<2x64xbf16>
    tpu.vector_store %arg16[%c7_308, %c0_309], %339 {strides = array<i32>} : memref<16x64xbf16, #tpu.memory_space<vmem>>, vector<2x64xbf16>,
    %345 = vector.extract_strided_slice %334 {offsets = [12, 0], sizes = [1, 64], strides = [1, 1]} : vector<22x64xbf16> to vector<1x64xbf16>
    %c9_310 = arith.constant 9 : index
    %c0_311 = arith.constant 0 : index
    %346 = vector.load %arg16[%c9_310, %c0_311] : memref<16x64xbf16, #tpu.memory_space<vmem>>, vector<1x64xbf16>
    tpu.vector_store %arg16[%c9_310, %c0_311], %345 {strides = array<i32>} : memref<16x64xbf16, #tpu.memory_space<vmem>>, vector<1x64xbf16>,
    %347 = vector.extract_strided_slice %334 {offsets = [14, 0], sizes = [1, 64], strides = [1, 1]} : vector<22x64xbf16> to vector<1x64xbf16>
    %c10_312 = arith.constant 10 : index
    %c0_313 = arith.constant 0 : index
    %348 = vector.load %arg16[%c10_312, %c0_313] : memref<16x64xbf16, #tpu.memory_space<vmem>>, vector<1x64xbf16>
    tpu.vector_store %arg16[%c10_312, %c0_313], %347 {strides = array<i32>} : memref<16x64xbf16, #tpu.memory_space<vmem>>, vector<1x64xbf16>,
    %c11_314 = arith.constant 11 : index
    %c0_315 = arith.constant 0 : index
    %349 = vector.load %arg16[%c11_314, %c0_315] : memref<16x64xbf16, #tpu.memory_space<vmem>>, vector<2x64xbf16>
    tpu.vector_store %arg16[%c11_314, %c0_315], %339 {strides = array<i32>} : memref<16x64xbf16, #tpu.memory_space<vmem>>, vector<2x64xbf16>,
    %cst_316 = arith.constant 0.000000e+00 : f32
    %350 = vector.broadcast %cst_316 : f32 to vector<6x64xf32>
    %c0_317 = arith.constant 0 : index
    %c0_318 = arith.constant 0 : index
    %351 = vector.load %arg16[%c0_317, %c0_318] : memref<16x64xbf16, #tpu.memory_space<vmem>>, vector<6x64xbf16>
    %c0_319 = arith.constant 0 : index
    %c0_320 = arith.constant 0 : index
    %c0_321 = arith.constant 0 : index
    %352 = vector.load %arg10[%c0_319, %c0_320, %c0_321] : memref<9x64x64xbf16, #tpu.memory_space<vmem>>, vector<1x64x64xbf16>
    %353 = vector.shape_cast %352 : vector<1x64x64xbf16> to vector<64x64xbf16>
    %cst_322 = arith.constant dense<0.000000e+00> : vector<6x64xf32>
    %354 = tpu.matmul %351, %353, %cst_322 {dimension_numbers = #tpu.dot_dimension_numbers<[1], [0], [0], [1], [0, 0, 1, 1], [], []>} : vector<6x64xbf16>, vector<64x64xbf16>, vector<6x64xf32> -> vector<6x64xf32>
    %355 = arith.addf %350, %354 : vector<6x64xf32>
    %c1_323 = arith.constant 1 : index
    %c0_324 = arith.constant 0 : index
    %356 = vector.load %arg16[%c1_323, %c0_324] : memref<16x64xbf16, #tpu.memory_space<vmem>>, vector<6x64xbf16>
    %c1_325 = arith.constant 1 : index
    %c0_326 = arith.constant 0 : index
    %c0_327 = arith.constant 0 : index
    %357 = vector.load %arg10[%c1_325, %c0_326, %c0_327] : memref<9x64x64xbf16, #tpu.memory_space<vmem>>, vector<1x64x64xbf16>
    %358 = vector.shape_cast %357 : vector<1x64x64xbf16> to vector<64x64xbf16>
    %cst_328 = arith.constant dense<0.000000e+00> : vector<6x64xf32>
    %359 = tpu.matmul %356, %358, %cst_328 {dimension_numbers = #tpu.dot_dimension_numbers<[1], [0], [0], [1], [0, 0, 1, 1], [], []>} : vector<6x64xbf16>, vector<64x64xbf16>, vector<6x64xf32> -> vector<6x64xf32>
    %360 = arith.addf %355, %359 : vector<6x64xf32>
    %c2_329 = arith.constant 2 : index
    %c0_330 = arith.constant 0 : index
    %361 = vector.load %arg16[%c2_329, %c0_330] : memref<16x64xbf16, #tpu.memory_space<vmem>>, vector<6x64xbf16>
    %c2_331 = arith.constant 2 : index
    %c0_332 = arith.constant 0 : index
    %c0_333 = arith.constant 0 : index
    %362 = vector.load %arg10[%c2_331, %c0_332, %c0_333] : memref<9x64x64xbf16, #tpu.memory_space<vmem>>, vector<1x64x64xbf16>
    %363 = vector.shape_cast %362 : vector<1x64x64xbf16> to vector<64x64xbf16>
    %cst_334 = arith.constant dense<0.000000e+00> : vector<6x64xf32>
    %364 = tpu.matmul %361, %363, %cst_334 {dimension_numbers = #tpu.dot_dimension_numbers<[1], [0], [0], [1], [0, 0, 1, 1], [], []>} : vector<6x64xbf16>, vector<64x64xbf16>, vector<6x64xf32> -> vector<6x64xf32>
    %365 = arith.addf %360, %364 : vector<6x64xf32>
    %c4_335 = arith.constant 4 : index
    %c0_336 = arith.constant 0 : index
    %366 = vector.load %arg16[%c4_335, %c0_336] : memref<16x64xbf16, #tpu.memory_space<vmem>>, vector<6x64xbf16>
    %c3_337 = arith.constant 3 : index
    %c0_338 = arith.constant 0 : index
    %c0_339 = arith.constant 0 : index
    %367 = vector.load %arg10[%c3_337, %c0_338, %c0_339] : memref<9x64x64xbf16, #tpu.memory_space<vmem>>, vector<1x64x64xbf16>
    %368 = vector.shape_cast %367 : vector<1x64x64xbf16> to vector<64x64xbf16>
    %cst_340 = arith.constant dense<0.000000e+00> : vector<6x64xf32>
    %369 = tpu.matmul %366, %368, %cst_340 {dimension_numbers = #tpu.dot_dimension_numbers<[1], [0], [0], [1], [0, 0, 1, 1], [], []>} : vector<6x64xbf16>, vector<64x64xbf16>, vector<6x64xf32> -> vector<6x64xf32>
    %370 = arith.addf %365, %369 : vector<6x64xf32>
    %c5_341 = arith.constant 5 : index
    %c0_342 = arith.constant 0 : index
    %371 = vector.load %arg16[%c5_341, %c0_342] : memref<16x64xbf16, #tpu.memory_space<vmem>>, vector<6x64xbf16>
    %c4_343 = arith.constant 4 : index
    %c0_344 = arith.constant 0 : index
    %c0_345 = arith.constant 0 : index
    %372 = vector.load %arg10[%c4_343, %c0_344, %c0_345] : memref<9x64x64xbf16, #tpu.memory_space<vmem>>, vector<1x64x64xbf16>
    %373 = vector.shape_cast %372 : vector<1x64x64xbf16> to vector<64x64xbf16>
    %cst_346 = arith.constant dense<0.000000e+00> : vector<6x64xf32>
    %374 = tpu.matmul %371, %373, %cst_346 {dimension_numbers = #tpu.dot_dimension_numbers<[1], [0], [0], [1], [0, 0, 1, 1], [], []>} : vector<6x64xbf16>, vector<64x64xbf16>, vector<6x64xf32> -> vector<6x64xf32>
    %375 = arith.addf %370, %374 : vector<6x64xf32>
    %c6_347 = arith.constant 6 : index
    %c0_348 = arith.constant 0 : index
    %376 = vector.load %arg16[%c6_347, %c0_348] : memref<16x64xbf16, #tpu.memory_space<vmem>>, vector<6x64xbf16>
    %c5_349 = arith.constant 5 : index
    %c0_350 = arith.constant 0 : index
    %c0_351 = arith.constant 0 : index
    %377 = vector.load %arg10[%c5_349, %c0_350, %c0_351] : memref<9x64x64xbf16, #tpu.memory_space<vmem>>, vector<1x64x64xbf16>
    %378 = vector.shape_cast %377 : vector<1x64x64xbf16> to vector<64x64xbf16>
    %cst_352 = arith.constant dense<0.000000e+00> : vector<6x64xf32>
    %379 = tpu.matmul %376, %378, %cst_352 {dimension_numbers = #tpu.dot_dimension_numbers<[1], [0], [0], [1], [0, 0, 1, 1], [], []>} : vector<6x64xbf16>, vector<64x64xbf16>, vector<6x64xf32> -> vector<6x64xf32>
    %380 = arith.addf %375, %379 : vector<6x64xf32>
    %c8_353 = arith.constant 8 : index
    %c0_354 = arith.constant 0 : index
    %381 = vector.load %arg16[%c8_353, %c0_354] : memref<16x64xbf16, #tpu.memory_space<vmem>>, vector<6x64xbf16>
    %c6_355 = arith.constant 6 : index
    %c0_356 = arith.constant 0 : index
    %c0_357 = arith.constant 0 : index
    %382 = vector.load %arg10[%c6_355, %c0_356, %c0_357] : memref<9x64x64xbf16, #tpu.memory_space<vmem>>, vector<1x64x64xbf16>
    %383 = vector.shape_cast %382 : vector<1x64x64xbf16> to vector<64x64xbf16>
    %cst_358 = arith.constant dense<0.000000e+00> : vector<6x64xf32>
    %384 = tpu.matmul %381, %383, %cst_358 {dimension_numbers = #tpu.dot_dimension_numbers<[1], [0], [0], [1], [0, 0, 1, 1], [], []>} : vector<6x64xbf16>, vector<64x64xbf16>, vector<6x64xf32> -> vector<6x64xf32>
    %385 = arith.addf %380, %384 : vector<6x64xf32>
    %c9_359 = arith.constant 9 : index
    %c0_360 = arith.constant 0 : index
    %386 = vector.load %arg16[%c9_359, %c0_360] : memref<16x64xbf16, #tpu.memory_space<vmem>>, vector<6x64xbf16>
    %c7_361 = arith.constant 7 : index
    %c0_362 = arith.constant 0 : index
    %c0_363 = arith.constant 0 : index
    %387 = vector.load %arg10[%c7_361, %c0_362, %c0_363] : memref<9x64x64xbf16, #tpu.memory_space<vmem>>, vector<1x64x64xbf16>
    %388 = vector.shape_cast %387 : vector<1x64x64xbf16> to vector<64x64xbf16>
    %cst_364 = arith.constant dense<0.000000e+00> : vector<6x64xf32>
    %389 = tpu.matmul %386, %388, %cst_364 {dimension_numbers = #tpu.dot_dimension_numbers<[1], [0], [0], [1], [0, 0, 1, 1], [], []>} : vector<6x64xbf16>, vector<64x64xbf16>, vector<6x64xf32> -> vector<6x64xf32>
    %390 = arith.addf %385, %389 : vector<6x64xf32>
    %c10_365 = arith.constant 10 : index
    %c0_366 = arith.constant 0 : index
    %391 = vector.load %arg16[%c10_365, %c0_366] : memref<16x64xbf16, #tpu.memory_space<vmem>>, vector<6x64xbf16>
    %c8_367 = arith.constant 8 : index
    %c0_368 = arith.constant 0 : index
    %c0_369 = arith.constant 0 : index
    %392 = vector.load %arg10[%c8_367, %c0_368, %c0_369] : memref<9x64x64xbf16, #tpu.memory_space<vmem>>, vector<1x64x64xbf16>
    %393 = vector.shape_cast %392 : vector<1x64x64xbf16> to vector<64x64xbf16>
    %cst_370 = arith.constant dense<0.000000e+00> : vector<6x64xf32>
    %394 = tpu.matmul %391, %393, %cst_370 {dimension_numbers = #tpu.dot_dimension_numbers<[1], [0], [0], [1], [0, 0, 1, 1], [], []>} : vector<6x64xbf16>, vector<64x64xbf16>, vector<6x64xf32> -> vector<6x64xf32>
    %395 = arith.addf %390, %394 : vector<6x64xf32>
    %c0_371 = arith.constant 0 : index
    %c0_372 = arith.constant 0 : index
    %396 = vector.load %arg11[%c0_371, %c0_372] : memref<1x64xf32, #tpu.memory_space<vmem>>, vector<1x64xf32>
    %397 = vector.broadcast %396 : vector<1x64xf32> to vector<6x64xf32>
    %398 = arith.addf %395, %397 : vector<6x64xf32>
    %399 = vector.extract_strided_slice %398 {offsets = [0, 0], sizes = [2, 64], strides = [1, 1]} : vector<6x64xf32> to vector<2x64xf32>
    %c0_373 = arith.constant 0 : index
    %c0_374 = arith.constant 0 : index
    %c0_375 = arith.constant 0 : index
    %400 = vector.load %arg12[%c0_373, %c0_374, %c0_375] : memref<1x4x64xf32, #tpu.memory_space<vmem>>, vector<1x2x64xf32>
    %401 = vector.shape_cast %400 : vector<1x2x64xf32> to vector<2x64xf32>
    %402 = vector.shape_cast %399 : vector<2x64xf32> to vector<1x2x64xf32>
    tpu.vector_store %arg12[%c0_373, %c0_374, %c0_375], %402 {strides = array<i32>} : memref<1x4x64xf32, #tpu.memory_space<vmem>>, vector<1x2x64xf32>,
    %403 = vector.extract_strided_slice %398 {offsets = [4, 0], sizes = [2, 64], strides = [1, 1]} : vector<6x64xf32> to vector<2x64xf32>
    %c0_376 = arith.constant 0 : index
    %c2_377 = arith.constant 2 : index
    %c0_378 = arith.constant 0 : index
    %404 = vector.load %arg12[%c0_376, %c2_377, %c0_378] : memref<1x4x64xf32, #tpu.memory_space<vmem>>, vector<1x2x64xf32>
    %405 = vector.shape_cast %404 : vector<1x2x64xf32> to vector<2x64xf32>
    %406 = vector.shape_cast %403 : vector<2x64xf32> to vector<1x2x64xf32>
    tpu.vector_store %arg12[%c0_376, %c2_377, %c0_378], %406 {strides = array<i32>} : memref<1x4x64xf32, #tpu.memory_space<vmem>>, vector<1x2x64xf32>,
    return
  }
  func.func @transform_0(%arg0: i32) -> (i32, i32, i32) {
    %c0_i32 = arith.constant 0 : i32
    %c0_i32_0 = arith.constant 0 : i32
    %c0_i32_1 = arith.constant 0 : i32
    return %arg0, %c0_i32, %c0_i32_0 : i32, i32, i32
  }
  func.func @transform_1(%arg0: i32) -> (i32, i32, i32) {
    %c0_i32 = arith.constant 0 : i32
    %c0_i32_0 = arith.constant 0 : i32
    %c0_i32_1 = arith.constant 0 : i32
    %c0_i32_2 = arith.constant 0 : i32
    return %c0_i32, %c0_i32_0, %c0_i32_1 : i32, i32, i32
  }
  func.func @transform_2(%arg0: i32) -> (i32, i32) {
    %c0_i32 = arith.constant 0 : i32
    %c0_i32_0 = arith.constant 0 : i32
    %c0_i32_1 = arith.constant 0 : i32
    return %c0_i32, %c0_i32_0 : i32, i32
  }
  func.func @transform_3(%arg0: i32) -> (i32, i32, i32) {
    %c0_i32 = arith.constant 0 : i32
    %c0_i32_0 = arith.constant 0 : i32
    %c0_i32_1 = arith.constant 0 : i32
    %c0_i32_2 = arith.constant 0 : i32
    return %c0_i32, %c0_i32_0, %c0_i32_1 : i32, i32, i32
  }
  func.func @transform_4(%arg0: i32) -> (i32, i32) {
    %c0_i32 = arith.constant 0 : i32
    %c0_i32_0 = arith.constant 0 : i32
    %c0_i32_1 = arith.constant 0 : i32
    return %c0_i32, %c0_i32_0 : i32, i32
  }
  func.func @transform_5(%arg0: i32) -> (i32, i32, i32) {
    %c0_i32 = arith.constant 0 : i32
    %c0_i32_0 = arith.constant 0 : i32
    %c0_i32_1 = arith.constant 0 : i32
    %c0_i32_2 = arith.constant 0 : i32
    return %c0_i32, %c0_i32_0, %c0_i32_1 : i32, i32, i32
  }
  func.func @transform_6(%arg0: i32) -> (i32, i32) {
    %c0_i32 = arith.constant 0 : i32
    %c0_i32_0 = arith.constant 0 : i32
    %c0_i32_1 = arith.constant 0 : i32
    return %c0_i32, %c0_i32_0 : i32, i32
  }
  func.func @transform_7(%arg0: i32) -> (i32, i32, i32) {
    %c0_i32 = arith.constant 0 : i32
    %c0_i32_0 = arith.constant 0 : i32
    %c0_i32_1 = arith.constant 0 : i32
    %c0_i32_2 = arith.constant 0 : i32
    return %c0_i32, %c0_i32_0, %c0_i32_1 : i32, i32, i32
  }
  func.func @transform_8(%arg0: i32) -> (i32, i32) {
    %c0_i32 = arith.constant 0 : i32
    %c0_i32_0 = arith.constant 0 : i32
    %c0_i32_1 = arith.constant 0 : i32
    return %c0_i32, %c0_i32_0 : i32, i32
  }
  func.func @transform_9(%arg0: i32) -> (i32, i32, i32) {
    %c0_i32 = arith.constant 0 : i32
    %c0_i32_0 = arith.constant 0 : i32
    %c0_i32_1 = arith.constant 0 : i32
    %c0_i32_2 = arith.constant 0 : i32
    return %c0_i32, %c0_i32_0, %c0_i32_1 : i32, i32, i32
  }
  func.func @transform_10(%arg0: i32) -> (i32, i32) {
    %c0_i32 = arith.constant 0 : i32
    %c0_i32_0 = arith.constant 0 : i32
    %c0_i32_1 = arith.constant 0 : i32
    return %c0_i32, %c0_i32_0 : i32, i32
  }
  func.func @transform_11(%arg0: i32) -> (i32, i32, i32) {
    %c0_i32 = arith.constant 0 : i32
    %c0_i32_0 = arith.constant 0 : i32
    %c0_i32_1 = arith.constant 0 : i32
    return %arg0, %c0_i32, %c0_i32_0 : i32, i32, i32
  }
}

</mosaic_0001>

<bundles_post_ra>
// kernel: stem_forward.1
= control target key start
LH: loop header
LB: loop body
LE: loop exit
PB: predicated region body
PF: predicated region fallthrough
CT: control target
= control target key end

     0   :  { %s15602_s0 = inlined_call_operand.vmem [shape: bf16[2,289,12], index: 0, kind: input, shape index: {}]   ;;  %s15603_s1 = inlined_call_operand.vmem [shape: bf16[4,12,8], index: 1, kind: input, shape index: {}]   ;;  %s15604_s2 = inlined_call_operand.vmem [shape: f32[1,8], index: 2, kind: input, shape index: {}]   ;;  %s15605_s3 = inlined_call_operand.vmem [shape: bf16[9,8,16], index: 3, kind: input, shape index: {}]   ;;  %s15606_s4 = inlined_call_operand.vmem [shape: f32[1,16], index: 4, kind: input, shape index: {}]   ;;  %s15607_s5 = inlined_call_operand.vmem [shape: bf16[9,16,32], index: 5, kind: input, shape index: {}]   ;;  %s15608_s6 = inlined_call_operand.vmem [shape: f32[1,32], index: 6, kind: input, shape index: {}]   ;;  %s15609_s7 = inlined_call_operand.vmem [shape: bf16[9,32,64], index: 7, kind: input, shape index: {}]   ;;  %s15610_s8 = inlined_call_operand.vmem [shape: f32[1,64], index: 8, kind: input, shape index: {}]   ;;  %s15611_s9 = inlined_call_operand.vmem [shape: bf16[9,64,64], index: 9, kind: input, shape index: {}]   ;;  %s15612_s10 = inlined_call_operand.vmem [shape: f32[1,64], index: 10, kind: input, shape index: {}]   ;;  %s15613_s11 = inlined_call_operand.hbm [shape: f32[2,4,64], index: 11, kind: output, shape index: {}]  }
   0x1   :  { %15670 = sst [smem:[#allocation46_spill]] %s15602_s0 }
   0x2   :  { %16 = vsyncpa [#allocation7], 0 }
   0x3   :  { %18 = vsyncpa [#allocation7 + $0x1], 0  ;;  %s12811_s17 = smov 0   ;;  %s12813_s18 = smov 0  }
   0x4   :  { %s12815_s19 = smov 0   ;;  %s12817_s20 = smov 0  }
   0x5 LB: > { %s12832_s21 = sadd.s32 4294967295, %s12745_s20   ;;  %s9965_s22 = sadd.s32 4294967294, %s12745_s20   ;;  %s12745_s20 = sphi %s12817_s20, %s16235_s20   ;;  %s12741_s19 = sphi %s12815_s19, %s16234_s19   ;;  %s12737_s18 = sphi %s12813_s18, %s16233_s18   ;;  %s12733_s17 = sphi %s12811_s17, %s16232_s17  }
   0x6   : > { %s12836_s23 = sadd.s32 1, %s12745_s20   ;;  %s267_s24 = sadd.s32 1, %s12741_s19 }
   0x7   : > { %s264_s25 = ssub.s32 %s12745_s20, %s12836_s23  ;;  %p277_p0 = scmp.ne.s32.totalorder %s12741_s19, %s12737_s18 }
   0x8   : > { %p265_p1 = scmp.eq.s32.totalorder %s264_s25, 0  ;;  %p278_p2 = scmp.eq.s32.totalorder %s12832_s21, 1 }
   0x9   : > { %p283_p3 = scmp.ne.s32.totalorder %s12737_s18, %s12733_s17  ;;  %p284_p4 = scmp.eq.s32.totalorder %s9965_s22, 1 }
   0xa   : > { %s12847_s26 = scalar_select %p265_p1, %s12741_s19, %s267_s24  }
   0xb   : > { %p12849_p5 = por %p278_p2, %p277_p0  ;;  %p12853_p6 = por %p284_p4, %p283_p3 }
   0xc   : > { %p9968_p7 = scmp.ge.s32.totalorder %s12745_s20, 1  ;;  %p340_p8 = scmp.lt.s32.totalorder %s12745_s20, 3 }
   0xe   : > { %p341_p9 = pnand %p9968_p7, %p340_p8 }
  0x10   : > { %344 = sbr.rel (%p341_p9) target bundleno = 2828 (0xb0c), region = 64 }
  0x17   : > { %vm15620_vm0 = vcmask 1045504   ;;  %v15623_v0 = vmov 0.0   ;;  %v12416_v1 = vld [vmem:[%s15603_s1] sm:$0x3f]   ;;  %v12417_v2 = vld [vmem:[%s15603_s1 + $0x8] sm:$0x3f]  }
  0x18   : > { %11226 = vmatprep.subr.bf16.mxu1 %v15623_v0  ;;  %11156 = vmatprep.subr.bf16.mxu0 %v15623_v0  ;;  %p380_p10 = scmp.lt.s32.totalorder %s12832_s21, 1  ;;  %v916_v3 = vsel %vm15620_vm0, %v12416_v1, 0  ;;  %vm15615_vm1 = vmmov 0   ;;  %v705_v4 = vsel %vm15620_vm0, %v12417_v2, 0  ;;  %vm651_vm2 = vcmask 97280   ;;  %s15673_s0 = sld [smem:[#allocation46_spill]] }
  0x19   : > { %11228 = vmatprep.mubr.msk.bf16.mxu1 %vm15615_vm1, %v15623_v0  ;;  %11158 = vmatprep.mubr.msk.bf16.mxu0 %vm15615_vm1, %v15623_v0  ;;  %vm15629_vm3 = vsmask.f32 7424  ;;  %v12435_v29 = vld [vmem:[%s15603_s1 + $0x10] sm:$0x3f]   ;;  %v12436_v30 = vld [vmem:[%s15603_s1 + $0x18] sm:$0x3f]  }
  0x1a   : > { %11227 = vmatpush3.bf16.msra.mxu1 %v916_v3  ;;  %s381_s14 = scalar_select %p380_p10, %s12832_s21, 1  ;;  %11157 = vmatpush3.bf16.msra.mxu0 %v705_v4  ;;  %v1401_v31 = vsel %vm15620_vm0, %v12435_v29, 0  ;;  %v1825_v32 = vsel %vm15620_vm0, %v12436_v30, 0  ;;  %vm15618_vm4 = vcmask 1046528   ;;  %vm15622_vm5 = vcmask 58368  }
  0x1b   : > { %11366 = vmatprep.subr.bf16.mxu1 %v15623_v0  ;;  %11296 = vmatprep.subr.bf16.mxu0 %v15623_v0  ;;  %vm15617_vm6 = vsmask.f32 1280  ;;  %vm2131_vm8 = vcmask 60417   ;;  %vm15627_vm9 = vcmask 60416   ;;  %vm2274_vm10 = vcmask 57344   ;;  %s377_s22 = sand.u32 1, %s12737_s18  }
  0x1c   : > { %s12373_s15 = smul.u32 148, %s381_s14  ;;  %vm13166_vm7 = vmand %vm15622_vm5, %vm15617_vm6  ;;  %vm15621_vm11 = vsmask.f32 256  ;;  %vm15626_vm13 = vcmask 1043456   ;;  %vm15614_vm14 = vsmask.f32 7942 }
  0x1d   : > { %vm13224_vm12 = vmand %vm2274_vm10, %vm15621_vm11  ;;  %vm2141_vm15 = vsmask.f32 5392  ;;  %vm2209_vm0 = vcmask 59392   ;;  %s10711_s30 = sshll.u32 %s12832_s21, 6  ;;  %s9893_s21 = scalar_lea.sflag [#allocation7], %s377_s22 }
  0x1e   : > { %s12880_s24 = scalar_lea.vmem %s15673_s0, %s12373_s15  ;;  %vm13316_vm10 = vmor %vm15617_vm6, %vm2141_vm15  ;;  %vm2190_vm15 = vcmask 1045508   ;;  %vm15625_vm6 = vsmask.f32 2310  ;;  %s15560_s16 = scalar_lea.hbm %s15613_s11, %s10711_s30 }
  0x1f   : > { %v12418_v5 = vld [vmem:[%s12880_s24] sm:$0xff]   ;;  %v12419_v6 = vld [vmem:[%s12880_s24 + $0x8] sm:$0xff]   ;;  %v12420_v10 = vld [vmem:[%s12880_s24 + $0x10] sm:$0xff]   ;;  %s12750_s25 = smov [#allocation6]  }
  0x20   : > { %11229 = vmatmul.mubr.msk.bf16.vlgmr.msra.gmra.mrb[0].mxu1 %vm651_vm2, %v12418_v5  ;;  %v512_v7 = vshrl.u32 %v12418_v5, 16  ;;  %v514_v8 = vshll.u32 %v12418_v5, 16  ;;  %v519_v9 = vshll.u32 %v12419_v6, 16  ;;  %v523_v14 = vshrl.u32 %v12419_v6, 16  ;;  %v12421_v19 = vld [vmem:[%s12880_s24 + $0x18] sm:$0xff]   ;;  %v12422_v25 = vld [vmem:[%s12880_s24 + $0x20] sm:$0xff]  }
  0x21   : > { %11232 = vmatprep.mubr.msk.bf16.mxu1 %vm15615_vm1, %v15623_v0  ;;  %v527_v15 = vshll.u32 %v12420_v10, 16  ;;  %v531_v21 = vshrl.u32 %v12420_v10, 16  ;;  %v535_v22 = vshll.u32 %v12421_v19, 16  ;;  %v539_v27 = vshrl.u32 %v12421_v19, 16  ;;  %v12423_v35 = vld [vmem:[%s12880_s24 + $0x28] sm:$0xff]   ;;  %11367 = vmatpush3.bf16.msra.mxu1 %v1825_v32  ;;  %v12424_v39 = vld [vmem:[%s12880_s24 + $0x30] sm:$0xff]  }
  0x22   : > { %v516_v11 = vrot.slane %v514_v8, 1  ;;  %v521_v12 = vrot.slane %v519_v9, 1  ;;  %v543_v28 = vshll.u32 %v12422_v25, 16  ;;  %11778 = vmatprep.subr.bf16.mxu1 %v15623_v0  ;;  %v547_v37 = vshrl.u32 %v12422_v25, 16  ;;  %v12425_v47 = vld [vmem:[%s12880_s24 + $0x38] sm:$0xff]   ;;  %v12426_v53 = vld [vmem:[%s12880_s24 + $0x40] sm:$0xff]  }
  0x23   : > { %v529_v18 = vrot.slane %v527_v15, 1  ;;  %v537_v24 = vrot.slane %v535_v22, 1  ;;  %v551_v38 = vshll.u32 %v12423_v35, 16  ;;  %v555_v42 = vshrl.u32 %v12423_v35, 16  ;;  %v12427_v59 = vld [vmem:[%s12880_s24 + $0x48] sm:$0xff]   ;;  %v12428_v2 = vld [vmem:[%s12880_s24 + $0x50] sm:$0xff]  }
  0x24   : > { %v517_v13 = vor.u32 %v516_v11, %v512_v7  ;;  %v525_v17 = vor.u32 %v523_v14, %v521_v12  ;;  %v545_v34 = vrot.slane %v543_v28, 1  ;;  %v559_v43 = vshll.u32 %v12424_v39, 16  ;;  %v12429_v8 = vld [vmem:[%s12880_s24 + $0x58] sm:$0xff]   ;;  %v12430_v14 = vld [vmem:[%s12880_s24 + $0x60] sm:$0xff]   ;;  %s12687_s29 = sshll.u32 %s12750_s25, 4  ;;  %s12688_s29 = int_to_ptr.vmem [resolvable:$false] %s12687_s29 }
  0x25   : > { %v533_v23 = vor.u32 %v531_v21, %v529_v18  ;;  %v541_v33 = vor.u32 %v539_v27, %v537_v24  ;;  %v553_v41 = vrot.slane %v551_v38, 1  ;;  %v563_v49 = vshrl.u32 %v12424_v39, 16  ;;  %v12433_v32 = vld [vmem:[%s12880_s24 + $0x78] sm:$0xff]   ;;  %v12434_v38 = vld [vmem:[%s12880_s24 + $0x80] sm:$0xff]   ;;  %s12689_s0 = scalar_lea.vmem %s12688_s29, 128 }
  0x26   : > { %v522_v16 = vsel %vm15629_vm3, %v517_v13, %v521_v12  ;;  %v530_v20 = vsel %vm15629_vm3, %v525_v17, %v529_v18  ;;  %v549_v40 = vor.u32 %v547_v37, %v545_v34  ;;  %v561_v46 = vrot.slane %v559_v43, 1 }
  0x27   : > { %11159 = vmatmul.mubr.msk.bf16.vlgmr.msra.gmra.mrb[0].mxu0 %vm651_vm2, %v522_v16  ;;  %v538_v26 = vsel %vm15629_vm3, %v533_v23, %v537_v24  ;;  %v546_v36 = vsel %vm15629_vm3, %v541_v33, %v545_v34  ;;  %v557_v45 = vor.u32 %v555_v42, %v553_v41  ;;  %v567_v50 = vshll.u32 %v12425_v47, 16 }
  0x28   : > { %11162 = vmatprep.mubr.msk.bf16.mxu0 %vm15615_vm1, %v15623_v0  ;;  %11233 = vmatmul.mubr.msk.bf16.gmra.mrb[4].mxu1 %vm651_vm2, %v12419_v6  ;;  %v554_v44 = vsel %vm15629_vm3, %v549_v40, %v553_v41  ;;  %v565_v51 = vor.u32 %v563_v49, %v561_v46  ;;  %v571_v55 = vshrl.u32 %v12425_v47, 16  ;;  %v575_v56 = vshll.u32 %v12426_v53, 16  ;;  %v12440_v49 = vld [vmem:[%s12880_s24 + $0x10] sm:$0xff]  }
  0x29   : > { %11236 = vmatprep.mubr.msk.bf16.mxu1 %vm15615_vm1, %v15623_v0  ;;  %11297 = vmatpush3.bf16.msra.mxu0 %v1401_v31  ;;  %v562_v48 = vsel %vm15629_vm3, %v557_v45, %v561_v46  ;;  %v569_v52 = vrot.slane %v567_v50, 1  ;;  %v579_v61 = vshrl.u32 %v12426_v53, 16  ;;  %v583_v62 = vshll.u32 %v12427_v59, 16  ;;  %v12439_v45 = vld [vmem:[%s12880_s24 + $0x8] sm:$0xff]  }
  0x2a   : > { %v577_v58 = vrot.slane %v575_v56, 1  ;;  %v587_v4 = vshrl.u32 %v12427_v59, 16  ;;  %v591_v5 = vshll.u32 %v12428_v2, 16  ;;  %v599_v11 = vshll.u32 %v12429_v8, 16  ;;  %v12437_v46 = vld [vmem:[%s12880_s24 + $0x8] sm:$0xfe]  }
  0x2b   : > { %v570_v54 = vsel %vm15629_vm3, %v565_v51, %v569_v52  ;;  %v573_v57 = vor.u32 %v571_v55, %v569_v52  ;;  %v585_v1 = vrot.slane %v583_v62, 1  ;;  %v603_v16 = vshrl.u32 %v12429_v8, 16 }
  0x2c   : > { %v581_v63 = vor.u32 %v579_v61, %v577_v58  ;;  %v593_v7 = vrot.slane %v591_v5, 1  ;;  %v601_v13 = vrot.slane %v599_v11, 1  ;;  %v607_v17 = vshll.u32 %v12430_v14, 16  ;;  %v12442_v61 = vld [vmem:[%s12880_s24 + $0x18] sm:$0xff]  }
  0x2d   : > { %v578_v60 = vsel %vm15629_vm3, %v573_v57, %v577_v58  ;;  %v589_v6 = vor.u32 %v587_v4, %v585_v1  ;;  %v611_v22 = vshrl.u32 %v12430_v14, 16  ;;  %v635_v40 = vshrl.u32 %v12433_v32, 16  ;;  %v12441_v58 = vld [vmem:[%s12880_s24 + $0x18] sm:$0xff]   ;;  %v12443_v4 = vld [vmem:[%s12880_s24 + $0x20] sm:$0xff]  }
  0x2e   : > { %v586_v3 = vsel %vm15629_vm3, %v581_v63, %v585_v1  ;;  %v605_v18 = vor.u32 %v603_v16, %v601_v13  ;;  %v639_v41 = vshll.u32 %v12434_v38, 16  ;;  %v1212_v50 = vshll.u32 %v12439_v45, 16  ;;  %v12446_v16 = vld [vmem:[%s12880_s24 + $0x28] sm:$0xff]  }
  0x2f   : > { %11163 = vmatmul.mubr.msk.bf16.gmra.mrb[4].mxu0 %vm651_vm2, %v530_v20  ;;  %v594_v9 = vsel %vm15629_vm3, %v589_v6, %v593_v7  ;;  %v12431_v20 = vld [vmem:[%s12880_s24 + $0x68] sm:$0xff]   ;;  %v1733_v51 = vrot.slane %v12437_v46, 1  ;;  %v1217_v56 = vshll.u32 %v12440_v49, 16  ;;  %v1736_v62 = vrot.slane %v12441_v58, 1  ;;  %v12455_v58 = vld [vmem:[%s12880_s24 + $0x50] sm:$0xff]  }
  0x30   : > { %11166 = vmatprep.mubr.msk.bf16.mxu0 %vm15615_vm1, %v15623_v0  ;;  %11237 = vmatmul.mubr.msk.bf16.gmra.mrb[8].mxu1 %vm651_vm2, %v12420_v10  ;;  %v595_v10 = vshrl.u32 %v12428_v2, 16  ;;  %v615_v23 = vshll.u32 %v12431_v20, 16  ;;  %v619_v28 = vshrl.u32 %v12431_v20, 16  ;;  %v641_v43 = vrot.slane %v639_v41, 1 }
  0x31   : > { %11240 = vmatprep.mubr.msk.bf16.mxu1 %vm15615_vm1, %v15623_v0  ;;  %v1214_v55 = vrot.slane %v1212_v50, 1  ;;  %v1221_v1 = vshrl.u32 %v12440_v49, 16  ;;  %v12453_v49 = vld [vmem:[%s12880_s24 + $0x48] sm:$0xff]  }
  0x32   : > { %v597_v12 = vor.u32 %v595_v10, %v593_v7  ;;  %v12444_v7 = vld [vmem:[%s12880_s24 + $0x20] sm:$0xff]   ;;  %v1229_v10 = vshrl.u32 %v12442_v61, 16 }
  0x33   : > { %v1233_v11 = vshll.u32 %v12444_v7, 16 }
  0x34   : > { %v602_v15 = vsel %vm15629_vm3, %v597_v12, %v601_v13  ;;  %v12445_v13 = vld [vmem:[%s12880_s24 + $0x28] sm:$0xff]  }
  0x37   : > { %11167 = vmatmul.mubr.msk.bf16.gmra.mrb[8].mxu0 %vm651_vm2, %v538_v26  ;;  %v12432_v26 = vld [vmem:[%s12880_s24 + $0x70] sm:$0xff]  }
  0x38   : > { %11170 = vmatprep.mubr.msk.bf16.mxu0 %vm15615_vm1, %v15623_v0  ;;  %11241 = vmatmul.mubr.msk.bf16.gmra.mrb[12].mxu1 %vm651_vm2, %v12421_v19  ;;  %v609_v19 = vrot.slane %v607_v17, 1  ;;  %v623_v29 = vshll.u32 %v12432_v26, 16  ;;  %v627_v34 = vshrl.u32 %v12432_v26, 16  ;;  %v1740_v17 = vrot.slane %v12445_v13, 1  ;;  %v12459_v13 = vld [vmem:[%s12880_s24 + $0x60] sm:$0xff]  }
  0x39   : > { %11244 = vmatprep.mubr.msk.bf16.mxu1 %vm15615_vm1, %v15623_v0 }
  0x3a   : > { %v610_v21 = vsel %vm15629_vm3, %v605_v18, %v609_v19  ;;  %v613_v24 = vor.u32 %v611_v22, %v609_v19  ;;  %v625_v31 = vrot.slane %v623_v29, 1  ;;  %v1237_v19 = vshrl.u32 %v12444_v7, 16  ;;  %v12447_v22 = vld [vmem:[%s12880_s24 + $0x30] sm:$0xff]   ;;  %v12458_v7 = vld [vmem:[%s12880_s24 + $0x58] sm:$0xff]  }
  0x3f   : > { %11171 = vmatmul.mubr.msk.bf16.gmra.mrb[12].mxu0 %vm651_vm2, %v546_v36  ;;  %v629_v36 = vor.u32 %v627_v34, %v625_v31  ;;  %v12450_v34 = vld [vmem:[%s12880_s24 + $0x38] sm:$0xff]  }
  0x40   : > { %11174 = vmatprep.mubr.msk.bf16.mxu0 %vm15615_vm1, %v15623_v0  ;;  %11245 = vmatmul.mubr.msk.bf16.gmra.mrb[16].mxu1 %vm651_vm2, %v12422_v25  ;;  %v617_v25 = vrot.slane %v615_v23, 1  ;;  %v1261_v46 = vshrl.u32 %v12450_v34, 16 }
  0x41   : > { %11248 = vmatprep.mubr.msk.bf16.mxu1 %vm15615_vm1, %v15623_v0 }
  0x42   : > { %v618_v27 = vsel %vm15629_vm3, %v613_v24, %v617_v25  ;;  %v621_v30 = vor.u32 %v619_v28, %v617_v25  ;;  %v12448_v25 = vld [vmem:[%s12880_s24 + $0x30] sm:$0xff]   ;;  %v1245_v28 = vshrl.u32 %v12446_v16, 16 }
  0x43   : > { %v1249_v29 = vshll.u32 %v12448_v25, 16 }
  0x44   : > { %v626_v33 = vsel %vm15629_vm3, %v621_v30, %v625_v31  ;;  %v12449_v31 = vld [vmem:[%s12880_s24 + $0x38] sm:$0xff]  }
  0x47   : > { %11175 = vmatmul.mubr.msk.bf16.gmra.mrb[16].mxu0 %vm651_vm2, %v554_v44 }
  0x48   : > { %11178 = vmatprep.mubr.msk.bf16.mxu0 %vm15615_vm1, %v15623_v0  ;;  %11249 = vmatmul.mubr.msk.bf16.gmra.mrb[20].mxu1 %vm651_vm2, %v12423_v35  ;;  %v631_v35 = vshll.u32 %v12433_v32, 16 }
  0x49   : > { %11252 = vmatprep.mubr.msk.bf16.mxu1 %vm15615_vm1, %v15623_v0 }
  0x4a   : > { %v633_v37 = vrot.slane %v631_v35, 1  ;;  %v1744_v35 = vrot.slane %v12449_v31, 1 }
  0x4c   : > { %v637_v42 = vor.u32 %v635_v40, %v633_v37  ;;  %v12451_v40 = vld [vmem:[%s12880_s24 + $0x40] sm:$0xff]  }
  0x4e   : > { %v642_v44 = vsel %vm15629_vm3, %v637_v42, %v641_v43 }
  0x4f   : > { %11179 = vmatmul.mubr.msk.bf16.gmra.mrb[20].mxu0 %vm651_vm2, %v562_v48  ;;  %v643_v48 = vshrl.u32 %v12434_v38, 16 }
  0x50   : > { %11182 = vmatprep.mubr.msk.bf16.mxu0 %vm15615_vm1, %v15623_v0  ;;  %11253 = vmatmul.mubr.msk.bf16.gmra.mrb[24].mxu1 %vm651_vm2, %v12424_v39  ;;  %v634_v39 = vsel %vm15629_vm3, %v629_v36, %v633_v37  ;;  %v1253_v37 = vshrl.u32 %v12448_v25, 16  ;;  %v12461_v25 = vld [vmem:[%s12880_s24 + $0x68] sm:$0xff]  }
  0x51   : > { %11256 = vmatprep.mubr.msk.bf16.mxu1 %vm15615_vm1, %v15623_v0 }
  0x57   : > { %11183 = vmatmul.mubr.msk.bf16.gmra.mrb[24].mxu0 %vm651_vm2, %v570_v54  ;;  %v1210_v54 = vshrl.u32 %v12439_v45, 16 }
  0x58   : > { %11186 = vmatprep.mubr.msk.bf16.mxu0 %vm15615_vm1, %v15623_v0  ;;  %11257 = vmatmul.mubr.msk.bf16.gmra.mrb[28].mxu1 %vm651_vm2, %v12425_v47  ;;  %v12438_v47 = vld [vmem:[%s12880_s24 + $0x10] sm:$0xff]  }
  0x59   : > { %11260 = vmatprep.mubr.msk.bf16.mxu1 %vm15615_vm1, %v15623_v0  ;;  %v1734_v52 = vrot.slane %v12438_v47, 1 }
  0x5b   : > { %v1735_v57 = vsel %vm15618_vm4, %v1733_v51, %v1734_v52 }
  0x5f   : > { %11187 = vmatmul.mubr.msk.bf16.gmra.mrb[28].mxu0 %vm651_vm2, %v578_v60  ;;  %v1219_v60 = vrot.slane %v1217_v56, 1 }
  0x60   : > { %11190 = vmatprep.mubr.msk.bf16.mxu0 %vm15615_vm1, %v15623_v0  ;;  %11261 = vmatmul.mubr.msk.bf16.gmra.mrb[32].mxu1 %vm651_vm2, %v12426_v53  ;;  %v645_v53 = vor.u32 %v643_v48, %v641_v43  ;;  %v12452_v43 = vld [vmem:[%s12880_s24 + $0x40] sm:$0xff]  }
  0x61   : > { %11264 = vmatprep.mubr.msk.bf16.mxu1 %vm15615_vm1, %v15623_v0  ;;  %v1223_v5 = vor.u32 %v1221_v1, %v1219_v60  ;;  %v1265_v47 = vshll.u32 %v12452_v43, 16 }
  0x63   : > { %v1267_v51 = vrot.slane %v1265_v47, 1 }
  0x67   : > { %11191 = vmatmul.mubr.msk.bf16.gmra.mrb[32].mxu0 %vm651_vm2, %v586_v3  ;;  %v1737_v3 = vsel %vm15618_vm4, %v1734_v52, %v1736_v62  ;;  %v12454_v52 = vld [vmem:[%s12880_s24 + $0x48] sm:$0xff]  }
  0x68   : > { %11194 = vmatprep.mubr.msk.bf16.mxu0 %vm15615_vm1, %v15623_v0  ;;  %11265 = vmatmul.mubr.msk.bf16.gmra.mrb[36].mxu1 %vm651_vm2, %v12427_v59  ;;  %v1215_v59 = vor.u32 %v1214_v55, %v1210_v54  ;;  %v1269_v55 = vshrl.u32 %v12452_v43, 16  ;;  %v1273_v56 = vshll.u32 %v12454_v52, 16  ;;  %v1277_v1 = vshrl.u32 %v12454_v52, 16  ;;  %v12463_v43 = vld [vmem:[%s12880_s24 + $0x70] sm:$0xff]  }
  0x69   : > { %11268 = vmatprep.mubr.msk.bf16.mxu1 %vm15615_vm1, %v15623_v0 }
  0x6a   : > { %v1220_v63 = vsel %vm15629_vm3, %v1215_v59, %v1219_v60  ;;  %v1271_v59 = vor.u32 %v1269_v55, %v1267_v51  ;;  %v1275_v60 = vrot.slane %v1273_v56, 1 }
  0x6f   : > { %11195 = vmatmul.mubr.msk.bf16.gmra.mrb[36].mxu0 %vm651_vm2, %v594_v9 }
  0x70   : > { %11198 = vmatprep.mubr.msk.bf16.mxu0 %vm15615_vm1, %v15623_v0  ;;  %11269 = vmatmul.mubr.msk.bf16.gmra.mrb[40].mxu1 %vm651_vm2, %v12428_v2  ;;  %v1225_v2 = vshll.u32 %v12442_v61, 16  ;;  %v12456_v61 = vld [vmem:[%s12880_s24 + $0x50] sm:$0xff]  }
  0x71   : > { %11272 = vmatprep.mubr.msk.bf16.mxu1 %vm15615_vm1, %v15623_v0 }
  0x72   : > { %v1227_v6 = vrot.slane %v1225_v2, 1  ;;  %v1281_v2 = vshll.u32 %v12456_v61, 16 }
  0x74   : > { %v1228_v9 = vsel %vm15629_vm3, %v1223_v5, %v1227_v6  ;;  %v1279_v5 = vor.u32 %v1277_v1, %v1275_v60 }
  0x77   : > { %11199 = vmatmul.mubr.msk.bf16.gmra.mrb[40].mxu0 %vm651_vm2, %v602_v15  ;;  %v1235_v15 = vrot.slane %v1233_v11, 1  ;;  %v1289_v11 = vshll.u32 %v12458_v7, 16 }
  0x78   : > { %11202 = vmatprep.mubr.msk.bf16.mxu0 %vm15615_vm1, %v15623_v0  ;;  %11273 = vmatmul.mubr.msk.bf16.gmra.mrb[44].mxu1 %vm651_vm2, %v12429_v8  ;;  %v1738_v8 = vrot.slane %v12443_v4, 1  ;;  %v12457_v4 = vld [vmem:[%s12880_s24 + $0x58] sm:$0xff]  }
  0x79   : > { %11276 = vmatprep.mubr.msk.bf16.mxu1 %vm15615_vm1, %v15623_v0  ;;  %v1239_v23 = vor.u32 %v1237_v19, %v1235_v15 }
  0x7a   : > { %v1739_v12 = vsel %vm15618_vm4, %v1736_v62, %v1738_v8  ;;  %v1750_v62 = vrot.slane %v12455_v58, 1 }
  0x7f   : > { %11203 = vmatmul.mubr.msk.bf16.gmra.mrb[44].mxu0 %vm651_vm2, %v610_v21  ;;  %v1741_v21 = vsel %vm15618_vm4, %v1738_v8, %v1740_v17  ;;  %v1752_v8 = vrot.slane %v12457_v4, 1  ;;  %v12466_v4 = vld [vmem:[%s12880_s24 + $0x78] sm:$0xff]  }
  0x80   : > { %11206 = vmatprep.mubr.msk.bf16.mxu0 %vm15615_vm1, %v15623_v0  ;;  %11277 = vmatmul.mubr.msk.bf16.gmra.mrb[48].mxu1 %vm651_vm2, %v12430_v14  ;;  %v1231_v14 = vor.u32 %v1229_v10, %v1227_v6  ;;  %v1283_v6 = vrot.slane %v1281_v2, 1  ;;  %v1285_v10 = vshrl.u32 %v12456_v61, 16 }
  0x81   : > { %11280 = vmatprep.mubr.msk.bf16.mxu1 %vm15615_vm1, %v15623_v0 }
  0x82   : > { %v1236_v18 = vsel %vm15629_vm3, %v1231_v14, %v1235_v15  ;;  %v1287_v14 = vor.u32 %v1285_v10, %v1283_v6  ;;  %v1291_v15 = vrot.slane %v1289_v11, 1  ;;  %v15637_v10 = vmov 0  }
  0x83   : > { %2132 = vst.msk [vmem:[#allocation2 + $0x98] sm:$0xe] %vm2131_vm8, %v15637_v10 }
  0x84   : > { %v1292_v19 = vsel %vm15629_vm3, %v1287_v14, %v1291_v15  ;;  %2135 = vst.msk [vmem:[#allocation2 + $0xa0] sm:$0x3] %vm15622_vm5, %v15637_v10  ;;  %vm2202_vm5 = vcmask 60418  }
  0x85   : > { %2123 = vst.msk [vmem:[#allocation2] sm:$0xf] %vm15627_vm9, %v15637_v10  ;;  %2124 = vst.msk [vmem:[#allocation2 + $0x4] sm:$0xf] %vm15627_vm9, %v15637_v10 }
  0x86   : > { %2133 = vst.msk [vmem:[#allocation2 + $0x9c] sm:$0xf] %vm15627_vm9, %v15637_v10 }
  0x87   : > { %11207 = vmatmul.mubr.msk.bf16.gmra.mrb[48].mxu0 %vm651_vm2, %v618_v27 }
  0x88   : > { %11210 = vmatprep.mubr.msk.bf16.mxu0 %vm15615_vm1, %v15623_v0  ;;  %11281 = vmatmul.mubr.msk.bf16.gmra.mrb[52].mxu1 %vm651_vm2, %v12431_v20  ;;  %v1241_v20 = vshll.u32 %v12446_v16, 16  ;;  %v12460_v16 = vld [vmem:[%s12880_s24 + $0x60] sm:$0xff]  }
  0x89   : > { %11284 = vmatprep.mubr.msk.bf16.mxu1 %vm15615_vm1, %v15623_v0 }
  0x8a   : > { %v1243_v24 = vrot.slane %v1241_v20, 1 }
  0x8c   : > { %v1244_v27 = vsel %vm15629_vm3, %v1239_v23, %v1243_v24 }
  0x8f   : > { %11211 = vmatmul.mubr.msk.bf16.gmra.mrb[52].mxu0 %vm651_vm2, %v626_v33  ;;  %v1251_v33 = vrot.slane %v1249_v29, 1  ;;  %v12462_v29 = vld [vmem:[%s12880_s24 + $0x68] sm:$0xff]  }
  0x90   : > { %11214 = vmatprep.mubr.msk.bf16.mxu0 %vm15615_vm1, %v15623_v0  ;;  %11285 = vmatmul.mubr.msk.bf16.gmra.mrb[56].mxu1 %vm651_vm2, %v12432_v26  ;;  %v1742_v26 = vrot.slane %v12447_v22, 1  ;;  %v1297_v22 = vshll.u32 %v12460_v16, 16 }
  0x91   : > { %11288 = vmatprep.mubr.msk.bf16.mxu1 %vm15615_vm1, %v15623_v0  ;;  %v1255_v41 = vor.u32 %v1253_v37, %v1251_v33 }
  0x92   : > { %v1743_v30 = vsel %vm15618_vm4, %v1740_v17, %v1742_v26  ;;  %v1754_v17 = vrot.slane %v12459_v13, 1 }
  0x97   : > { %11215 = vmatmul.mubr.msk.bf16.gmra.mrb[56].mxu0 %vm651_vm2, %v634_v39  ;;  %v1745_v39 = vsel %vm15618_vm4, %v1742_v26, %v1744_v35 }
  0x98   : > { %11218 = vmatprep.mubr.msk.bf16.mxu0 %vm15615_vm1, %v15623_v0  ;;  %11289 = vmatmul.mubr.msk.bf16.gmra.mrb[60].mxu1 %vm651_vm2, %v12433_v32  ;;  %v1247_v32 = vor.u32 %v1245_v28, %v1243_v24  ;;  %v1755_v24 = vsel %vm15618_vm4, %v1752_v8, %v1754_v17  ;;  %v1299_v28 = vrot.slane %v1297_v22, 1  ;;  %v12468_v22 = vld [vmem:[%s12880_s24 + $0x80] sm:$0xff]  }
  0x99   : > { %11292 = vmatprep.mubr.msk.bf16.mxu1 %vm15615_vm1, %v15623_v0 }
  0x9a   : > { %v1252_v36 = vsel %vm15629_vm3, %v1247_v32, %v1251_v33 }
  0x9f   : > { %11219 = vmatmul.mubr.msk.bf16.gmra.mrb[60].mxu0 %vm651_vm2, %v642_v44  ;;  %v1746_v44 = vrot.slane %v12451_v40, 1 }
  0xa0   : > { %11222 = vmatprep.mubr.msk.bf16.mxu0 %vm15615_vm1, %v15623_v0  ;;  %11293 = vmatmul.mubr.msk.bf16.gmra.mrb[64].mxu1 %vm651_vm2, %v12434_v38  ;;  %v1257_v38 = vshll.u32 %v12450_v34, 16 }
  0xa1   : > { %11368 = vmatprep.mubr.msk.bf16.mxu1 %vm15615_vm1, %v15623_v0  ;;  %v1747_v48 = vsel %vm15618_vm4, %v1744_v35, %v1746_v44 }
  0xa2   : > { %v1259_v42 = vrot.slane %v1257_v38, 1  ;;  %v1301_v38 = vshrl.u32 %v12460_v16, 16 }
  0xa4   : > { %v1260_v45 = vsel %vm15629_vm3, %v1255_v41, %v1259_v42  ;;  %v1263_v50 = vor.u32 %v1261_v46, %v1259_v42  ;;  %v1303_v46 = vor.u32 %v1301_v38, %v1299_v28 }
  0xa6   : > { %v1268_v54 = vsel %vm15629_vm3, %v1263_v50, %v1267_v51 }
  0xa7   : > { %11223 = vmatmul.mubr.msk.bf16.gmra.mrb[64].mxu0 %vm651_vm2, %v645_v53  ;;  %v1748_v53 = vrot.slane %v12453_v49, 1  ;;  %v1758_v49 = vrot.slane %v12463_v43, 1 }
  0xa8   : > { %11298 = vmatprep.mubr.msk.bf16.mxu0 %vm15615_vm1, %v15623_v0  ;;  %11369 = vmatmul.mubr.msk.bf16.vlgmr.msra.gmra.mrb[68].mxu1 %vm651_vm2, %v1735_v57 }
  0xa9   : > { %11372 = vmatprep.mubr.msk.bf16.mxu1 %vm15615_vm1, %v15623_v0  ;;  %v1749_v57 = vsel %vm15618_vm4, %v1746_v44, %v1748_v53 }
  0xaf   : > { %11299 = vmatmul.mubr.msk.bf16.vlgmr.msra.gmra.mrb[68].mxu0 %vm651_vm2, %v1220_v63  ;;  %v1276_v63 = vsel %vm15629_vm3, %v1271_v59, %v1275_v60 }
  0xb0   : > { %11302 = vmatprep.mubr.msk.bf16.mxu0 %vm15615_vm1, %v15623_v0  ;;  %11373 = vmatmul.mubr.msk.bf16.gmra.mrb[72].mxu1 %vm651_vm2, %v1737_v3  ;;  %v1751_v3 = vsel %vm15618_vm4, %v1748_v53, %v1750_v62 }
  0xb1   : > { %11376 = vmatprep.mubr.msk.bf16.mxu1 %vm15615_vm1, %v15623_v0 }
  0xb7   : > { %11303 = vmatmul.mubr.msk.bf16.gmra.mrb[72].mxu0 %vm651_vm2, %v1228_v9  ;;  %v1284_v9 = vsel %vm15629_vm3, %v1279_v5, %v1283_v6 }
  0xb8   : > { %11306 = vmatprep.mubr.msk.bf16.mxu0 %vm15615_vm1, %v15623_v0  ;;  %11377 = vmatmul.mubr.msk.bf16.gmra.mrb[76].mxu1 %vm651_vm2, %v1739_v12  ;;  %v1753_v12 = vsel %vm15618_vm4, %v1750_v62, %v1752_v8  ;;  %v12465_v62 = vld [vmem:[%s12880_s24 + $0x78] sm:$0xff]  }
  0xb9   : > { %11380 = vmatprep.mubr.msk.bf16.mxu1 %vm15615_vm1, %v15623_v0  ;;  %v1760_v5 = vrot.slane %v12465_v62, 1 }
  0xbf   : > { %11307 = vmatmul.mubr.msk.bf16.gmra.mrb[76].mxu0 %vm651_vm2, %v1236_v18 }
  0xc0   : > { %11310 = vmatprep.mubr.msk.bf16.mxu0 %vm15615_vm1, %v15623_v0  ;;  %11381 = vmatmul.mubr.msk.bf16.gmra.mrb[80].mxu1 %vm651_vm2, %v1741_v21  ;;  %v1293_v21 = vshrl.u32 %v12458_v7, 16  ;;  %v2128_v7 = vld [vmem:[#allocation2 + $0x8] sm:$0x3] }
  0xc1   : > { %11384 = vmatprep.mubr.msk.bf16.mxu1 %vm15615_vm1, %v15623_v0 }
  0xc7   : > { %11311 = vmatmul.mubr.msk.bf16.gmra.mrb[80].mxu0 %vm651_vm2, %v1244_v27  ;;  %v1295_v27 = vor.u32 %v1293_v21, %v1291_v15  ;;  %v1761_v21 = vsel %vm15618_vm4, %v1758_v49, %v1760_v5 }
  0xc8   : > { %11314 = vmatprep.mubr.msk.bf16.mxu0 %vm15615_vm1, %v15623_v0  ;;  %11385 = vmatmul.mubr.msk.bf16.gmra.mrb[84].mxu1 %vm651_vm2, %v1743_v30  ;;  %v1756_v30 = vrot.slane %v12461_v25, 1 }
  0xc9   : > { %11388 = vmatprep.mubr.msk.bf16.mxu1 %vm15615_vm1, %v15623_v0 }
  0xca   : > { %v1757_v42 = vsel %vm15618_vm4, %v1754_v17, %v1756_v30  ;;  %v1759_v61 = vsel %vm15618_vm4, %v1756_v30, %v1758_v49 }
  0xcf   : > { %11315 = vmatmul.mubr.msk.bf16.gmra.mrb[84].mxu0 %vm651_vm2, %v1252_v36  ;;  %v1300_v36 = vsel %vm15629_vm3, %v1295_v27, %v1299_v28  ;;  %v12467_v27 = vld [vmem:[%s12880_s24 + $0x80] sm:$0xff]   ;;  %v1762_v28 = vrot.slane %v12468_v22, 1 }
  0xd0   : > { %11318 = vmatprep.mubr.msk.bf16.mxu0 %vm15615_vm1, %v15623_v0  ;;  %11389 = vmatmul.mubr.msk.bf16.gmra.mrb[88].mxu1 %vm651_vm2, %v1745_v39  ;;  %v1305_v39 = vshll.u32 %v12462_v29, 16  ;;  %v1329_v38 = vshll.u32 %v12467_v27, 16 }
  0xd1   : > { %11392 = vmatprep.mubr.msk.bf16.mxu1 %vm15615_vm1, %v15623_v0 }
  0xd2   : > { %v1307_v47 = vrot.slane %v1305_v39, 1 }
  0xd4   : > { %v1308_v55 = vsel %vm15629_vm3, %v1303_v46, %v1307_v47 }
  0xd7   : > { %11319 = vmatmul.mubr.msk.bf16.gmra.mrb[88].mxu0 %vm651_vm2, %v1260_v45 }
  0xd8   : > { %11322 = vmatprep.mubr.msk.bf16.mxu0 %vm15615_vm1, %v15623_v0  ;;  %11393 = vmatmul.mubr.msk.bf16.gmra.mrb[92].mxu1 %vm651_vm2, %v1747_v48  ;;  %v12464_v48 = vld [vmem:[%s12880_s24 + $0x70] sm:$0xff]  }
  0xd9   : > { %11396 = vmatprep.mubr.msk.bf16.mxu1 %vm15615_vm1, %v15623_v0  ;;  %v1313_v58 = vshll.u32 %v12464_v48, 16  ;;  %v1317_v17 = vshrl.u32 %v12464_v48, 16  ;;  %v12469_v48 = vld [vmem:[%s12880_s24 + $0x88] sm:$0xff]  }
  0xdf   : > { %11323 = vmatmul.mubr.msk.bf16.gmra.mrb[92].mxu0 %vm651_vm2, %v1268_v54 }
  0xe0   : > { %11326 = vmatprep.mubr.msk.bf16.mxu0 %vm15615_vm1, %v15623_v0  ;;  %11397 = vmatmul.mubr.msk.bf16.gmra.mrb[96].mxu1 %vm651_vm2, %v1749_v57  ;;  %v1309_v57 = vshrl.u32 %v12462_v29, 16 }
  0xe1   : > { %11400 = vmatprep.mubr.msk.bf16.mxu1 %vm15615_vm1, %v15623_v0 }
  0xe2   : > { %v1311_v2 = vor.u32 %v1309_v57, %v1307_v47  ;;  %v1331_v47 = vrot.slane %v1329_v38, 1 }
  0xe7   : > { %11327 = vmatmul.mubr.msk.bf16.gmra.mrb[96].mxu0 %vm651_vm2, %v1276_v63 }
  0xe8   : > { %11330 = vmatprep.mubr.msk.bf16.mxu0 %vm15615_vm1, %v15623_v0  ;;  %11401 = vmatmul.mubr.msk.bf16.gmra.mrb[100].mxu1 %vm651_vm2, %v1751_v3  ;;  %v1315_v3 = vrot.slane %v1313_v58, 1  ;;  %v1333_v58 = vshrl.u32 %v12467_v27, 16 }
  0xe9   : > { %11404 = vmatprep.mubr.msk.bf16.mxu1 %vm15615_vm1, %v15623_v0 }
  0xea   : > { %v1316_v15 = vsel %vm15629_vm3, %v1311_v2, %v1315_v3  ;;  %v1319_v25 = vor.u32 %v1317_v17, %v1315_v3 }
  0xef   : > { %11331 = vmatmul.mubr.msk.bf16.gmra.mrb[100].mxu0 %vm651_vm2, %v1284_v9  ;;  %v2129_v9 = vsel %vm13166_vm7, 0, %v2128_v7 }
  0xf0   : > { %11334 = vmatprep.mubr.msk.bf16.mxu0 %vm15615_vm1, %v15623_v0  ;;  %11405 = vmatmul.mubr.msk.bf16.gmra.mrb[104].mxu1 %vm651_vm2, %v1753_v12  ;;  %2130 = vst [vmem:[#allocation2 + $0x8] sm:$0x3] %v2129_v9  ;;  %v2277_v9 = vld [vmem:[#allocation2 + $0x24] sm:$0x1] }
  0xf1   : > { %11408 = vmatprep.mubr.msk.bf16.mxu1 %vm15615_vm1, %v15623_v0 }
  0xf3   : > { %v952_v18 = vpop.f32.mrb[0].mxu1 }
  0xf4   : > { %v11230_v20 = vpop.f32.mrb[1].mxu1 }
  0xf5   : > { %v955_v23 = vpop.f32.mrb[2].mxu1 }
  0xf6   : > { %v11231_v26 = vpop.f32.mrb[3].mxu1 }
  0xf7   : > { %11335 = vmatmul.mubr.msk.bf16.gmra.mrb[104].mxu0 %vm651_vm2, %v1292_v19 }
  0xf8   : > { %11338 = vmatprep.mubr.msk.bf16.mxu0 %vm15615_vm1, %v15623_v0  ;;  %11409 = vmatmul.mubr.msk.bf16.gmra.mrb[108].mxu1 %vm651_vm2, %v1755_v24 }
  0xf9   : > { %11412 = vmatprep.mubr.msk.bf16.mxu1 %vm15615_vm1, %v15623_v0 }
  0xfa   : > { %v741_v31 = vpop.f32.mrb[0].mxu0 }
  0xfb   : > { %v11160_v32 = vpop.f32.mrb[1].mxu0  ;;  %v960_v33 = vpop.f32.mrb[4].mxu1  ;;  %v13136_v34 = vadd.f32 %v952_v18, %v741_v31  ;;  %v1321_v18 = vshll.u32 %v12466_v4, 16 }
  0xfc   : > { %v744_v35 = vpop.f32.mrb[2].mxu0  ;;  %v11234_v37 = vpop.f32.mrb[5].mxu1 }
  0xfd   : > { %v11161_v40 = vpop.f32.mrb[3].mxu0  ;;  %v963_v41 = vpop.f32.mrb[6].mxu1  ;;  %v13141_v44 = vadd.f32 %v955_v23, %v744_v35  ;;  %v1323_v26 = vrot.slane %v1321_v18, 1  ;;  %v1325_v37 = vshrl.u32 %v12466_v4, 16  ;;  %v1335_v4 = vor.u32 %v1333_v58, %v1331_v47 }
  0xfe   : > { %v11235_v45 = vpop.f32.mrb[7].mxu1 }
  0xff   : > { %11339 = vmatmul.mubr.msk.bf16.gmra.mrb[108].mxu0 %vm651_vm2, %v1300_v36  ;;  %v1324_v35 = vsel %vm15629_vm3, %v1319_v25, %v1323_v26  ;;  %v1327_v46 = vor.u32 %v1325_v37, %v1323_v26  ;;  %v1341_v26 = vshrl.u32 %v12469_v48, 16 }
 0x100   : > { %11342 = vmatprep.mubr.msk.bf16.mxu0 %vm15615_vm1, %v15623_v0  ;;  %11413 = vmatmul.mubr.msk.bf16.gmra.mrb[112].mxu1 %vm651_vm2, %v1757_v42  ;;  %v12470_v42 = vld [vmem:[%s12880_s24 + $0x88] sm:$0xff]  }
 0x101   : > { %11416 = vmatprep.mubr.msk.bf16.mxu1 %vm15615_vm1, %v15623_v0  ;;  %v1764_v49 = vrot.slane %v12470_v42, 1 }
 0x102   : > { %v749_v50 = vpop.f32.mrb[4].mxu0 }
 0x103   : > { %v11164_v51 = vpop.f32.mrb[5].mxu0  ;;  %v968_v52 = vpop.f32.mrb[8].mxu1  ;;  %v13150_v53 = vadd.f32 %v960_v33, %v749_v50  ;;  %v1765_v62 = vsel %vm15618_vm4, %v1762_v28, %v1764_v49 }
 0x104   : > { %v752_v54 = vpop.f32.mrb[6].mxu0  ;;  %v11238_v56 = vpop.f32.mrb[9].mxu1 }
 0x105   : > { %v11165_v59 = vpop.f32.mrb[7].mxu0  ;;  %v971_v60 = vpop.f32.mrb[10].mxu1  ;;  %v13155_v63 = vadd.f32 %v963_v41, %v752_v54  ;;  %v1763_v41 = vsel %vm15618_vm4, %v1760_v5, %v1762_v28  ;;  %v1332_v56 = vsel %vm15629_vm3, %v1327_v46, %v1331_v47 }
 0x106   : > { %v11239_v1 = vpop.f32.mrb[11].mxu1  ;;  %v1337_v59 = vshll.u32 %v12469_v48, 16 }
 0x107   : > { %11343 = vmatmul.mubr.msk.bf16.gmra.mrb[112].mxu0 %vm651_vm2, %v1308_v55  ;;  %v12471_v1 = vld [vmem:[%s12880_s24 + $0x90] ss:$0 sps:$4 sm:$0x11]   ;;  %s9969_s24 = sshll.u32 %s377_s22, 2 }
 0x108   : > { %11346 = vmatprep.mubr.msk.bf16.mxu0 %vm15615_vm1, %v15623_v0  ;;  %11417 = vmatmul.mubr.msk.bf16.gmra.mrb[116].mxu1 %vm651_vm2, %v1759_v61  ;;  %v1339_v5 = vrot.slane %v1337_v59, 1  ;;  %v1766_v7 = vrot.slane %v12471_v1, 1  ;;  %s379_s12 = scalar_lea.vmem [#allocation6], %s9969_s24 }
 0x109   : > { %11420 = vmatprep.mubr.msk.bf16.mxu1 %vm15615_vm1, %v15623_v0  ;;  %s9906_s13 = sshll.u32 %s379_s12, 4  ;;  %s15562_s13 = int_to_ptr.vmem [resolvable:$true] %s9906_s13 }
 0x10a   : > { %v757_v8 = vpop.f32.mrb[8].mxu0  ;;  %v1340_v17 = vsel %vm15629_vm3, %v1335_v4, %v1339_v5  ;;  %v1767_v22 = vsel %vm15618_vm4, %v1764_v49, %v1766_v7  ;;  %vm15628_vm4 = vsmask.f32 2304  ;;  %s12683_s24 = scalar_lea.vmem %s15562_s13, 64  ;;  %p12690_p0 = scmp.lt.s32.totalorder %s15562_s13, %s12688_s29 }
 0x10b   : > { %v11168_v11 = vpop.f32.mrb[9].mxu0  ;;  %v976_v12 = vpop.f32.mrb[12].mxu1  ;;  %v13176_v13 = vadd.f32 %v968_v52, %v757_v8  ;;  %p12684_p11 = scmp.ne.s32.totalorder %s15562_s13, %s12683_s24  ;;  %p12691_p1 = scmp.lt.s32.totalorder %s12689_s0, %s12683_s24 }
 0x10c   : > { %v760_v14 = vpop.f32.mrb[10].mxu0  ;;  %v11242_v16 = vpop.f32.mrb[13].mxu1 }
 0x10d   : > { %v11169_v19 = vpop.f32.mrb[11].mxu0  ;;  %v979_v20 = vpop.f32.mrb[14].mxu1  ;;  %v13181_v23 = vadd.f32 %v971_v60, %v760_v14  ;;  %p12685_p12 = pnand %p12684_p11, %p12849_p5  ;;  %p12692_p2 = por %p12691_p1, %p12690_p0 }
 0x10e   : > { %v11243_v24 = vpop.f32.mrb[15].mxu1  ;;  %v2278_v19 = vsel %vm13224_vm12, 0, %v2277_v9  ;;  %v2424_v9 = vld [vmem:[#allocation2 + $0x48] sm:$0x1] }
 0x10f   : > { %11347 = vmatmul.mubr.msk.bf16.gmra.mrb[116].mxu0 %vm651_vm2, %v1316_v15  ;;  %2279 = vst [vmem:[#allocation2 + $0x24] sm:$0x1] %v2278_v19  ;;  %p12686_p13 = pneg %p12685_p12 }
 0x110   : > { %11350 = vmatprep.mubr.msk.bf16.mxu0 %vm15615_vm1, %v15623_v0  ;;  %11421 = vmatmul.mubr.msk.bf16.gmra.mrb[120].mxu1 %vm651_vm2, %v1761_v21 }
 0x111   : > { %11424 = vmatprep.mubr.msk.bf16.mxu1 %vm15615_vm1, %v15623_v0  ;;  %p12693_p3 = pnand %p12692_p2, %p12686_p13 }
 0x112   : > { %v765_v29 = vpop.f32.mrb[12].mxu0 }
 0x113   : > { %v11172_v30 = vpop.f32.mrb[13].mxu0  ;;  %v984_v31 = vpop.f32.mrb[16].mxu1  ;;  %v13196_v32 = vadd.f32 %v976_v12, %v765_v29  ;;  %v1343_v29 = vor.u32 %v1341_v26, %v1339_v5 }
 0x114   : > { %v768_v33 = vpop.f32.mrb[14].mxu0  ;;  %v11246_v36 = vpop.f32.mrb[17].mxu1 }
 0x115   : > { %v11173_v39 = vpop.f32.mrb[15].mxu0  ;;  %v987_v40 = vpop.f32.mrb[18].mxu1  ;;  %v13201_v43 = vadd.f32 %v979_v20, %v768_v33 }
 0x116   : > { %v11247_v45 = vpop.f32.mrb[19].mxu1 }
 0x117   : > { %11351 = vmatmul.mubr.msk.bf16.gmra.mrb[120].mxu0 %vm651_vm2, %v1324_v35 }
 0x118   : > { %11354 = vmatprep.mubr.msk.bf16.mxu0 %vm15615_vm1, %v15623_v0  ;;  %11425 = vmatmul.mubr.msk.bf16.gmra.mrb[124].mxu1 %vm651_vm2, %v1763_v41 }
 0x119   : > { %11428 = vmatprep.mubr.msk.bf16.mxu1 %vm15615_vm1, %v15623_v0 }
 0x11a   : > { %v773_v50 = vpop.f32.mrb[16].mxu0 }
 0x11b   : > { %v11176_v51 = vpop.f32.mrb[17].mxu0  ;;  %v992_v52 = vpop.f32.mrb[20].mxu1  ;;  %v13210_v54 = vadd.f32 %v984_v31, %v773_v50 }
 0x11c   : > { %v776_v55 = vpop.f32.mrb[18].mxu0  ;;  %v11250_v57 = vpop.f32.mrb[21].mxu1 }
 0x11d   : > { %v11177_v60 = vpop.f32.mrb[19].mxu0  ;;  %v995_v61 = vpop.f32.mrb[22].mxu1  ;;  %v13215_v2 = vadd.f32 %v987_v40, %v776_v55 }
 0x11e   : > { %v11251_v3 = vpop.f32.mrb[23].mxu1 }
 0x11f   : > { %11355 = vmatmul.mubr.msk.bf16.gmra.mrb[124].mxu0 %vm651_vm2, %v1332_v56 }
 0x120   : > { %11358 = vmatprep.mubr.msk.bf16.mxu0 %vm15615_vm1, %v15623_v0  ;;  %11429 = vmatmul.mubr.msk.bf16.gmra.mrb[128].mxu1 %vm651_vm2, %v1765_v62 }
 0x121   : > { %11432 = vmatprep.mubr.msk.bf16.mxu1 %vm15615_vm1, %v15623_v0 }
 0x122   : > { %v781_v8 = vpop.f32.mrb[20].mxu0 }
 0x123   : > { %v11180_v11 = vpop.f32.mrb[21].mxu0  ;;  %v1000_v12 = vpop.f32.mrb[24].mxu1  ;;  %v13228_v15 = vadd.f32 %v992_v52, %v781_v8  ;;  %v10142_v52 = vld [vmem:[%s15605_s3 + $0x4] sm:$0xf] }
 0x124   : > { %v784_v16 = vpop.f32.mrb[22].mxu0  ;;  %v11254_v18 = vpop.f32.mrb[25].mxu1  ;;  %12364 = vmatprep.subr.msk.bf16.mxu0 %vm15626_vm13, %v10142_v52  ;;  %v3061_v55 = vsel %vm15626_vm13, %v10142_v52, 0 }
 0x125   : > { %v11181_v20 = vpop.f32.mrb[23].mxu0  ;;  %v1003_v21 = vpop.f32.mrb[26].mxu1  ;;  %v13234_v24 = vadd.f32 %v995_v61, %v784_v16  ;;  %11437 = vmatpush3.bf16.msra.mxu0 %v3061_v55 }
 0x126   : > { %v11255_v25 = vpop.f32.mrb[27].mxu1 }
 0x127   : > { %11359 = vmatmul.mubr.msk.bf16.gmra.mrb[128].mxu0 %vm651_vm2, %v1340_v17  ;;  %v2425_v17 = vsel %vm13224_vm12, 0, %v2424_v9 }
 0x128   : > { %11362 = vmatprep.mubr.msk.bf16.mxu0 %vm15615_vm1, %v15623_v0  ;;  %11433 = vmatmul.mubr.msk.bf16.gmra.mrb[132].mxu1 %vm651_vm2, %v1767_v22  ;;  %2426 = vst [vmem:[#allocation2 + $0x48] sm:$0x1] %v2425_v17 }
 0x129   : > { %11780 = vmatprep.mubr.msk.bf16.mxu1 %vm15615_vm1, %v15623_v0  ;;  %vm2175_vm1 = vcmask 59393  }
 0x12a   : > { %v789_v27 = vpop.f32.mrb[24].mxu0  ;;  %vm13355_vm11 = vmand %vm2175_vm1, %vm15625_vm6  ;;  %vm15631_vm6 = vcmask 64512  }
 0x12b   : > { %v11184_v28 = vpop.f32.mrb[25].mxu0  ;;  %v1008_v30 = vpop.f32.mrb[28].mxu1  ;;  %v13242_v31 = vadd.f32 %v1000_v12, %v789_v27  ;;  %vm13368_vm1 = vmand %vm2209_vm0, %vm15628_vm4  ;;  %vm15700_vm0 = vcmask 60416  }
 0x12c   : > { %v792_v33 = vpop.f32.mrb[26].mxu0  ;;  %v11258_v35 = vpop.f32.mrb[29].mxu1 }
 0x12d   : > { %v11185_v36 = vpop.f32.mrb[27].mxu0  ;;  %v1011_v37 = vpop.f32.mrb[30].mxu1  ;;  %v13244_v38 = vadd.f32 %v1003_v21, %v792_v33 }
 0x12e   : > { %v11259_v39 = vpop.f32.mrb[31].mxu1 }
 0x12f   : > { %11363 = vmatmul.mubr.msk.bf16.gmra.mrb[132].mxu0 %vm651_vm2, %v1343_v29  ;;  %vm13309_vm2 = vmand %vm2131_vm8, %vm15614_vm14  ;;  %vm15619_vm8 = vcmask 1041408  }
 0x130   : > { %vm13340_vm14 = vmor %vm15619_vm8, %vm2190_vm15  ;;  %vm2225_vm15 = vsmask.f32 6416  ;;  %vm15630_vm8 = vsmask.f32 7946 }
 0x131   : > { %vm13382_vm13 = vmor %vm15628_vm4, %vm2225_vm15  ;;  %vm15701_vm4 = vcmask 1046532  }
 0x132   : > { %v797_v40 = vpop.f32.mrb[28].mxu0  ;;  %vm13398_vm15 = vmand %vm2202_vm5, %vm15630_vm8  ;;  %vm15641_vm8 = vsmask.f32 3328 }
 0x133   : > { %v11188_v41 = vpop.f32.mrb[29].mxu0  ;;  %v1016_v42 = vpop.f32.mrb[32].mxu1  ;;  %v13247_v45 = vadd.f32 %v1008_v30, %v797_v40 }
 0x134   : > { %v800_v46 = vpop.f32.mrb[30].mxu0  ;;  %v11262_v47 = vpop.f32.mrb[33].mxu1 }
 0x135   : > { %v11189_v48 = vpop.f32.mrb[31].mxu0  ;;  %v1019_v49 = vpop.f32.mrb[34].mxu1  ;;  %v13249_v50 = vadd.f32 %v1011_v37, %v800_v46 }
 0x136   : > { %v11263_v51 = vpop.f32.mrb[35].mxu1 }
 0x13a   : > { %v805_v56 = vpop.f32.mrb[32].mxu0 }
 0x13b   : > { %v11192_v57 = vpop.f32.mrb[33].mxu0  ;;  %v1024_v58 = vpop.f32.mrb[36].mxu1  ;;  %v13256_v59 = vadd.f32 %v1016_v42, %v805_v56 }
 0x13c   : > { %v808_v60 = vpop.f32.mrb[34].mxu0  ;;  %v11266_v61 = vpop.f32.mrb[37].mxu1 }
 0x13d   : > { %v11193_v62 = vpop.f32.mrb[35].mxu0  ;;  %v1027_v1 = vpop.f32.mrb[38].mxu1  ;;  %v13258_v3 = vadd.f32 %v1019_v49, %v808_v60 }
 0x13e   : > { %v11267_v4 = vpop.f32.mrb[39].mxu1 }
 0x142   : > { %v813_v5 = vpop.f32.mrb[36].mxu0 }
 0x143   : > { %v11196_v7 = vpop.f32.mrb[37].mxu0  ;;  %v1032_v8 = vpop.f32.mrb[40].mxu1  ;;  %v13260_v11 = vadd.f32 %v1024_v58, %v813_v5 }
 0x144   : > { %v816_v12 = vpop.f32.mrb[38].mxu0  ;;  %v11270_v16 = vpop.f32.mrb[41].mxu1 }
 0x145   : > { %v11197_v18 = vpop.f32.mrb[39].mxu0  ;;  %v1035_v19 = vpop.f32.mrb[42].mxu1  ;;  %v13264_v20 = vadd.f32 %v1027_v1, %v816_v12 }
 0x146   : > { %v11271_v21 = vpop.f32.mrb[43].mxu1 }
 0x14a   : > { %v821_v22 = vpop.f32.mrb[40].mxu0 }
 0x14b   : > { %v11200_v25 = vpop.f32.mrb[41].mxu0  ;;  %v1040_v26 = vpop.f32.mrb[44].mxu1  ;;  %v13266_v27 = vadd.f32 %v1032_v8, %v821_v22 }
 0x14c   : > { %v824_v28 = vpop.f32.mrb[42].mxu0  ;;  %v11274_v29 = vpop.f32.mrb[45].mxu1 }
 0x14d   : > { %v11201_v30 = vpop.f32.mrb[43].mxu0  ;;  %v1043_v33 = vpop.f32.mrb[46].mxu1  ;;  %v13268_v35 = vadd.f32 %v1035_v19, %v824_v28 }
 0x14e   : > { %v11275_v36 = vpop.f32.mrb[47].mxu1 }
 0x152   : > { %v829_v37 = vpop.f32.mrb[44].mxu0 }
 0x153   : > { %v13270_v39 = vadd.f32 %v1040_v26, %v829_v37  ;;  %v11204_v40 = vpop.f32.mrb[45].mxu0  ;;  %v1048_v41 = vpop.f32.mrb[48].mxu1 }
 0x154   : > { %v832_v42 = vpop.f32.mrb[46].mxu0  ;;  %v11278_v46 = vpop.f32.mrb[49].mxu1 }
 0x155   : > { %v13272_v47 = vadd.f32 %v1043_v33, %v832_v42  ;;  %v11205_v48 = vpop.f32.mrb[47].mxu0  ;;  %v1051_v49 = vpop.f32.mrb[50].mxu1 }
 0x156   : > { %v11279_v51 = vpop.f32.mrb[51].mxu1 }
 0x15a   : > { %v837_v52 = vpop.f32.mrb[48].mxu0 }
 0x15b   : > { %v13274_v55 = vadd.f32 %v1048_v41, %v837_v52  ;;  %v11208_v56 = vpop.f32.mrb[49].mxu0  ;;  %v1056_v57 = vpop.f32.mrb[52].mxu1  ;;  %v2566_v41 = vld [vmem:[#allocation2 + $0x6c] sm:$0x1] }
 0x15c   : > { %v840_v58 = vpop.f32.mrb[50].mxu0  ;;  %v11282_v60 = vpop.f32.mrb[53].mxu1  ;;  %v2567_v42 = vsel %vm13224_vm12, 0, %v2566_v41 }
 0x15d   : > { %v13276_v61 = vadd.f32 %v1051_v49, %v840_v58  ;;  %v11209_v62 = vpop.f32.mrb[51].mxu0  ;;  %v1059_v1 = vpop.f32.mrb[54].mxu1  ;;  %2568 = vst [vmem:[#allocation2 + $0x6c] sm:$0x1] %v2567_v42 }
 0x15e   : > { %v11283_v4 = vpop.f32.mrb[55].mxu1 }
 0x162   : > { %v845_v5 = vpop.f32.mrb[52].mxu0 }
 0x163   : > { %v13278_v7 = vadd.f32 %v1056_v57, %v845_v5  ;;  %v11212_v8 = vpop.f32.mrb[53].mxu0  ;;  %v1064_v9 = vpop.f32.mrb[56].mxu1 }
 0x164   : > { %v848_v12 = vpop.f32.mrb[54].mxu0  ;;  %v11286_v16 = vpop.f32.mrb[57].mxu1 }
 0x165   : > { %v13280_v17 = vadd.f32 %v1059_v1, %v848_v12  ;;  %v11213_v18 = vpop.f32.mrb[55].mxu0  ;;  %v1067_v19 = vpop.f32.mrb[58].mxu1 }
 0x166   : > { %v11287_v21 = vpop.f32.mrb[59].mxu1 }
 0x16a   : > { %v853_v22 = vpop.f32.mrb[56].mxu0 }
 0x16b   : > { %v13282_v25 = vadd.f32 %v1064_v9, %v853_v22  ;;  %v11216_v26 = vpop.f32.mrb[57].mxu0  ;;  %v1072_v28 = vpop.f32.mrb[60].mxu1 }
 0x16c   : > { %v856_v29 = vpop.f32.mrb[58].mxu0  ;;  %v11290_v30 = vpop.f32.mrb[61].mxu1 }
 0x16d   : > { %v13284_v33 = vadd.f32 %v1067_v19, %v856_v29  ;;  %v11217_v36 = vpop.f32.mrb[59].mxu0  ;;  %v1075_v37 = vpop.f32.mrb[62].mxu1  ;;  %v13300_v30 = vld [vmem:[%s15604_s2] ss:$0 sm:$0xff] }
 0x16e   : > { %v11291_v40 = vpop.f32.mrb[63].mxu1 }
 0x172   : > { %v861_v46 = vpop.f32.mrb[60].mxu0 }
 0x173   : > { %v13288_v48 = vadd.f32 %v1072_v28, %v861_v46  ;;  %v11220_v49 = vpop.f32.mrb[61].mxu0  ;;  %v1080_v51 = vpop.f32.mrb[64].mxu1 }
 0x174   : > { %v864_v52 = vpop.f32.mrb[62].mxu0  ;;  %v11294_v56 = vpop.f32.mrb[65].mxu1 }
 0x175   : > { %15678 = vst [vmem:[#allocation9_spill] sm:$0xff] %v13288_v48  ;;  %v13290_v57 = vadd.f32 %v1075_v37, %v864_v52  ;;  %v11221_v58 = vpop.f32.mrb[63].mxu0  ;;  %v1083_v60 = vpop.f32.mrb[66].mxu1 }
 0x176   : > { %v11295_v62 = vpop.f32.mrb[67].mxu1 }
 0x177   : > { %15679 = vst [vmem:[#allocation10_spill] sm:$0xff] %v13290_v57 }
 0x17a   : > { %v869_v1 = vpop.f32.mrb[64].mxu0 }
 0x17b   : > { %v13292_v4 = vadd.f32 %v1080_v51, %v869_v1  ;;  %v11224_v5 = vpop.f32.mrb[65].mxu0  ;;  %v1861_v8 = vpop.f32.mrb[68].mxu1 }
 0x17c   : > { %v872_v9 = vpop.f32.mrb[66].mxu0  ;;  %v11370_v12 = vpop.f32.mrb[69].mxu1 }
 0x17d   : > { %15680 = vst [vmem:[#allocation11_spill] sm:$0xff] %v13292_v4  ;;  %v13294_v16 = vadd.f32 %v1083_v60, %v872_v9  ;;  %v11225_v18 = vpop.f32.mrb[67].mxu0  ;;  %v1864_v19 = vpop.f32.mrb[70].mxu1 }
 0x17e   : > { %v11371_v21 = vpop.f32.mrb[71].mxu1 }
 0x17f   : > { %15681 = vst [vmem:[#allocation12_spill] sm:$0xff] %v13294_v16 }
 0x182   : > { %v1437_v22 = vpop.f32.mrb[68].mxu0 }
 0x183   : > { %v1572_v26 = vadd.f32 %v1437_v22, %v13136_v34  ;;  %v11300_v28 = vpop.f32.mrb[69].mxu0  ;;  %v1869_v29 = vpop.f32.mrb[72].mxu1 }
 0x184   : > { %v1440_v36 = vpop.f32.mrb[70].mxu0  ;;  %v11374_v37 = vpop.f32.mrb[73].mxu1 }
 0x185   : > { %v1996_v40 = vadd.f32 %v1861_v8, %v1572_v26  ;;  %v1573_v41 = vadd.f32 %v1440_v36, %v13141_v44  ;;  %v11301_v42 = vpop.f32.mrb[71].mxu0  ;;  %v1872_v46 = vpop.f32.mrb[74].mxu1  ;;  %v2731_v37 = vld [vmem:[#allocation2] sm:$0xf] }
 0x186   : > { %v11375_v49 = vpop.f32.mrb[75].mxu1 }
 0x187   : > { %v2037_v51 = vadd.f32 %v13300_v30, %v1996_v40  ;;  %v1997_v52 = vadd.f32 %v1864_v19, %v1573_v41  ;;  %v2732_v49 = vld [vmem:[#allocation2 + $0x4] sm:$0xf] }
 0x189   : > { %v2071_v56 = vmax.f32 %v2037_v51, 0.0  ;;  %v2038_v34 = vadd.f32 %v13300_v30, %v1997_v52  ;;  %v2168_v52 = vld [vmem:[#allocation2 + $0x8] sm:$0xe] }
 0x18a   : > { %v1445_v58 = vpop.f32.mrb[72].mxu0 }
 0x18b   : > { %v10714_v60 = vpack.c.bf16 %v2071_v56, %v2071_v56  ;;  %v2072_v62 = vmax.f32 %v2038_v34, 0.0  ;;  %v1574_v1 = vadd.f32 %v1445_v58, %v13150_v53  ;;  %v11304_v5 = vpop.f32.mrb[73].mxu0  ;;  %v1877_v9 = vpop.f32.mrb[76].mxu1 }
 0x18c   : > { %v1448_v8 = vpop.f32.mrb[74].mxu0  ;;  %v11378_v12 = vpop.f32.mrb[77].mxu1 }
 0x18d   : > { %v2144_v44 = vshrl.u32 %v10714_v60, 16  ;;  %v2147_v18 = vshll.u32 %v10714_v60, 16  ;;  %v10715_v21 = vpack.c.bf16 %v2072_v62, %v2072_v62  ;;  %v1998_v22 = vadd.f32 %v1869_v29, %v1574_v1  ;;  %v11305_v26 = vpop.f32.mrb[75].mxu0  ;;  %v1880_v28 = vpop.f32.mrb[78].mxu1  ;;  %v2172_v62 = vld [vmem:[#allocation2 + $0x10] sm:$0x3] }
 0x18e   : > { %v1575_v19 = vadd.f32 %v1448_v8, %v13155_v63  ;;  %v11379_v36 = vpop.f32.mrb[79].mxu1  ;;  %v15684_v60 = vmov 0  ;;  %v13321_v12 = vcombine.low %v2731_v37, %v2732_v49 }
 0x18f   : > { %v2146_v40 = vrot.slane %v2144_v44, 6  ;;  %v2149_v41 = vrot.slane %v2147_v18, 7  ;;  %v2153_v42 = vshrl.u32 %v10715_v21, 16  ;;  %v2156_v53 = vshll.u32 %v10715_v21, 16 }
 0x190   : > { %v2039_v29 = vadd.f32 %v13300_v30, %v1998_v22  ;;  %v1999_v56 = vadd.f32 %v1872_v46, %v1575_v19  ;;  %v15685_v60 = vsel %vm13316_vm10, 4294967295, %v15684_v60  ;;  %15686 = vst [vmem:[#allocation13_spill] sm:$0xff] %v13321_v12  ;;  %v2702_v19 = vld [vmem:[#allocation2 + $0x90] sm:$0x1] }
 0x191   : > { %v2150_v34 = vor.u32 %v2149_v41, %v2146_v40  ;;  %v2155_v58 = vrot.slane %v2153_v42, 6  ;;  %v2158_v63 = vrot.slane %v2156_v53, 7  ;;  %v2703_v37 = vsel %vm13224_vm12, 0, %v2702_v19 }
 0x192   : > { %v2073_v1 = vmax.f32 %v2039_v29, 0.0  ;;  %v2040_v5 = vadd.f32 %v13300_v30, %v1999_v56  ;;  %v1453_v8 = vpop.f32.mrb[76].mxu0  ;;  %2704 = vst [vmem:[#allocation2 + $0x90] sm:$0x1] %v2703_v37  ;;  %v2862_v19 = vshrl.u32 %v13321_v12, 16 }
 0x193   : > { %v2151_v44 = vrot.slane %v2150_v34, 4  ;;  %v2169_v46 = vsel %vm13309_vm2, %v2150_v34, %v2168_v52  ;;  %v2159_v18 = vor.u32 %v2158_v63, %v2155_v58  ;;  %v1576_v21 = vadd.f32 %v1453_v8, %v13176_v13  ;;  %v11308_v22 = vpop.f32.mrb[77].mxu0  ;;  %v1885_v26 = vpop.f32.mrb[80].mxu1 }
 0x194   : > { %2170 = vst [vmem:[#allocation2 + $0x8] sm:$0xe] %v2169_v46  ;;  %v13326_v36 = vpack.c.bf16 %v2073_v1, %v2073_v1  ;;  %v2074_v40 = vmax.f32 %v2040_v5, 0.0  ;;  %v1456_v41 = vpop.f32.mrb[78].mxu0  ;;  %v11382_v42 = vpop.f32.mrb[81].mxu1  ;;  %v2864_v1 = vshll.u32 %v13321_v12, 16 }
 0x195   : > { %v2160_v53 = vsel %vm13316_vm10, %v2151_v44, %v2159_v18  ;;  %v2161_v49 = vrot.slane %v2159_v18, 4  ;;  %v2000_v52 = vadd.f32 %v1877_v9, %v1576_v21  ;;  %v1577_v13 = vadd.f32 %v1456_v41, %v13181_v23  ;;  %v11309_v29 = vpop.f32.mrb[79].mxu0  ;;  %v1888_v56 = vpop.f32.mrb[82].mxu1 }
 0x196   : > { %2171 = vst.msk [vmem:[#allocation2 + $0xc] sm:$0xf] %vm15627_vm9, %v2160_v53  ;;  %v2192_v34 = vrot.slane %v13326_v36, 6  ;;  %v10717_v58 = vpack.c.bf16 %v2074_v40, %v2074_v40  ;;  %v11383_v63 = vpop.f32.mrb[83].mxu1  ;;  %v15687_v9 = vmov 0  ;;  %v2866_v40 = vrot.slane %v2864_v1, 1 }
 0x197   : > { %v2173_v5 = vsel %vm13166_vm7, %v2161_v49, %v2172_v62  ;;  %v15688_v9 = vsel %vm13340_vm14, 4294967295, %v15687_v9  ;;  %v2041_v23 = vadd.f32 %v13300_v30, %v2000_v52  ;;  %v2001_v8 = vadd.f32 %v1880_v28, %v1577_v13 }
 0x198   : > { %2174 = vst [vmem:[#allocation2 + $0x10] sm:$0x3] %v2173_v5  ;;  %v2193_v44 = vrot.slane %v2192_v34, 4  ;;  %v2194_v46 = vrot.slane %v10717_v58, 6 }
 0x199   : > { %v2075_v18 = vmax.f32 %v2041_v23, 0.0  ;;  %v2042_v21 = vadd.f32 %v13300_v30, %v2001_v8 }
 0x19a   : > { %v2195_v62 = vsel %vm13340_vm14, %v2193_v44, %v2194_v46  ;;  %v1461_v22 = vpop.f32.mrb[80].mxu0  ;;  %v2196_v49 = vrot.slane %v2194_v46, 4 }
 0x19b   : > { %2208 = vst.msk [vmem:[#allocation2 + $0x14] sm:$0xf] %vm15627_vm9, %v2195_v62  ;;  %v10718_v28 = vpack.c.bf16 %v2075_v18, %v2075_v18  ;;  %v2076_v41 = vmax.f32 %v2042_v21, 0.0  ;;  %v1578_v42 = vadd.f32 %v1461_v22, %v13196_v32  ;;  %v11312_v37 = vpop.f32.mrb[81].mxu0  ;;  %v1893_v53 = vpop.f32.mrb[84].mxu1  ;;  %v2867_v62 = vor.u32 %v2866_v40, %v2862_v19 }
 0x19c   : > { %v1464_v52 = vpop.f32.mrb[82].mxu0  ;;  %v11386_v13 = vpop.f32.mrb[85].mxu1  ;;  %v2212_v32 = vld [vmem:[#allocation2 + $0x18] sm:$0x7]  ;;  %vm15697_vm9 = vsmask.f32 3338 }
 0x19d   : > { %v2197_v58 = vrot.slane %v10718_v28, 6  ;;  %v2228_v63 = vshll.u32 %v10718_v28, 16  ;;  %v2231_v1 = vshrl.u32 %v10718_v28, 16  ;;  %v10719_v5 = vpack.c.bf16 %v2076_v41, %v2076_v41  ;;  %v11313_v23 = vpop.f32.mrb[83].mxu0  ;;  %v1896_v8 = vpop.f32.mrb[86].mxu1  ;;  %v13359_v44 = vld [vmem:[#allocation2 + $0x8] sm:$0xff]  }
 0x19e   : > { %v2002_v46 = vadd.f32 %v1885_v26, %v1578_v42  ;;  %v1579_v18 = vadd.f32 %v1464_v52, %v13201_v43  ;;  %v11387_v21 = vpop.f32.mrb[87].mxu1  ;;  %v2869_v52 = vshll.u32 %v13359_v44, 16 }
 0x19f   : > { %v2178_v22 = vld [vmem:[#allocation2 + $0x10] sm:$0x6]  ;;  %v2198_v37 = vsel %vm13340_vm14, %v2196_v49, %v2197_v58  ;;  %v13364_v13 = vrot.slane %v2228_v63, 6  ;;  %v2233_v0 = vrot.slane %v2231_v1, 5  ;;  %v2237_v28 = vshrl.u32 %v10719_v5, 16 }
 0x1a0   : > { %v2179_v26 = vsel %vm13355_vm11, 0, %v2178_v22  ;;  %v2240_v43 = vshll.u32 %v10719_v5, 16  ;;  %v2043_v19 = vadd.f32 %v13300_v30, %v2002_v46  ;;  %v2003_v40 = vadd.f32 %v1888_v56, %v1579_v18 }
 0x1a1   : > { %2180 = vst [vmem:[#allocation2 + $0x10] sm:$0x6] %v2179_v26  ;;  %v2234_v42 = vor.u32 %v2233_v0, %v13364_v13  ;;  %v2239_v49 = vrot.slane %v2237_v28, 5  ;;  %v2213_v21 = vsel %vm13368_vm1, %v2198_v37, %v2212_v32  ;;  %v15693_v56 = vmov 0 }
 0x1a2   : > { %v2242_v58 = vrot.slane %v2240_v43, 6  ;;  %v2077_v63 = vmax.f32 %v2043_v19, 0.0  ;;  %v2044_v1 = vadd.f32 %v13300_v30, %v2003_v40  ;;  %v1469_v23 = vpop.f32.mrb[84].mxu0  ;;  %v15694_v56 = vsel %vm13382_vm13, 4294967295, %v15693_v56  ;;  %2214 = vst [vmem:[#allocation2 + $0x18] sm:$0x7] %v2213_v21 }
 0x1a3   : > { %v2235_v5 = vrot.slane %v2234_v42, 4  ;;  %v1580_v0 = vadd.f32 %v1469_v23, %v13210_v54  ;;  %v11316_v46 = vpop.f32.mrb[85].mxu0  ;;  %v13387_v18 = vrot.slane %v2869_v52, 1  ;;  %v13389_v22 = vpop.f32.mrb[88].mxu1  ;;  %v15695_v52 = vmov 0 }
 0x1a4   : > { %v2243_v28 = vor.u32 %v2242_v58, %v2239_v49  ;;  %v10720_v26 = vpack.c.bf16 %v2077_v63, %v2077_v63  ;;  %v2078_v43 = vmax.f32 %v2044_v1, 0.0  ;;  %v1472_v32 = vpop.f32.mrb[86].mxu0  ;;  %v11390_v37 = vpop.f32.mrb[89].mxu1  ;;  %v15696_v52 = vsel %vm13398_vm15, 4294967295, %v15695_v52 }
 0x1a5   : > { %v2004_v19 = vadd.f32 %v1893_v53, %v1580_v0  ;;  %v1581_v40 = vadd.f32 %v1472_v32, %v13215_v2  ;;  %v11317_v42 = vpop.f32.mrb[87].mxu0  ;;  %v2872_v54 = vsel %vm15629_vm3, %v2867_v62, %v13387_v18  ;;  %v13394_v23 = vpop.f32.mrb[90].mxu1  ;;  %vm13407_vm3 = vmand %vm2202_vm5, %vm15697_vm9  ;;  %v15703_v37 = vmov 0 }
 0x1a6   : > { %v2244_v49 = vsel %vm13382_vm13, %v2235_v5, %v2243_v28  ;;  %v2247_v58 = vshrl.u32 %v10720_v26, 16  ;;  %v2250_v63 = vshll.u32 %v10720_v26, 16  ;;  %11438 = vmatprep.mubr.msk.bf16.mxu0 %vm15631_vm6, %v2872_v54  ;;  %v11391_v2 = vpop.f32.mrb[91].mxu1  ;;  %v10721_v62 = vpack.c.bf16 %v2078_v43, %v2078_v43  ;;  %v2268_v54 = vld [vmem:[#allocation2 + $0x20] sm:$0xf]  ;;  %vm15706_vm9 = vmmov %vm15700_vm0 }
 0x1a7   : > { %2264 = vst.msk [vmem:[#allocation2 + $0x1c] sm:$0xf] %vm15700_vm0, %v2244_v49  ;;  %v2045_v1 = vadd.f32 %v13300_v30, %v2004_v19  ;;  %v2005_v21 = vadd.f32 %v1896_v8, %v1581_v40  ;;  %v10111_v32 = vrot.slane %v10720_v26, 9  ;;  %vm15702_vm6 = vcmask 1042432   ;;  %v2301_v26 = vld [vmem:[#allocation2 + $0x24] sm:$0xf] }
 0x1a8   : > { %v2205_v5 = vld [vmem:[#allocation2 + $0x10] sm:$0xc]  ;;  %v2249_v0 = vrot.slane %v2247_v58, 5  ;;  %v2252_v46 = vrot.slane %v2250_v63, 6  ;;  %vm13415_vm14 = vmor %vm15702_vm6, %vm15701_vm4  ;;  %v2290_v43 = vrot.slane %v10721_v62, 5  ;;  %v2245_v49 = vrot.slane %v2243_v28, 4 }
 0x1a9   : > { %v15704_v37 = vsel %vm13415_vm14, 4294967295, %v15703_v37  ;;  %v2206_v42 = vsel %vm13398_vm15, %v2192_v34, %v2205_v5  ;;  %vm15705_vm5 = vsmask.f32 7938  ;;  %v2079_v19 = vmax.f32 %v2045_v1, 0.0  ;;  %vm15709_vm6 = vmmov %vm15706_vm9  ;;  %v2217_v63 = vld [vmem:[#allocation2 + $0x18] sm:$0xc] }
 0x1aa   : > { %vm13425_vm0 = vmand %vm15706_vm9, %vm15705_vm5  ;;  %v2046_v40 = vadd.f32 %v13300_v30, %v2005_v21  ;;  %2207 = vst [vmem:[#allocation2 + $0x10] sm:$0xc] %v2206_v42  ;;  %v2253_v58 = vor.u32 %v2252_v46, %v2249_v0  ;;  %vm15640_vm4 = vsmask.f32 7950  ;;  %vm2318_vm15 = vsmask.f32 7440 }
 0x1ab   : > { %vm13432_vm10 = vmand %vm15709_vm6, %vm15641_vm8  ;;  %v1477_v34 = vpop.f32.mrb[88].mxu0  ;;  %v2291_v2 = vsel %vm13415_vm14, %v10111_v32, %v2290_v43  ;;  %v2292_v62 = vrot.slane %v2290_v43, 4  ;;  %v10722_v1 = vpack.c.bf16 %v2079_v19, %v2079_v19  ;;  %v1909_v28 = vpop.f32.mrb[92].mxu1  ;;  %v2305_v42 = vld [vmem:[#allocation2 + $0x2c] sm:$0x1]  ;;  %v2218_v16 = vsel %vm13407_vm3, 0, %v2217_v63 }
 0x1ac   : > { %v2080_v21 = vmax.f32 %v2046_v40, 0.0  ;;  %v11320_v5 = vpop.f32.mrb[89].mxu0  ;;  %v2254_v0 = vsel %vm13382_vm13, %v2245_v49, %v2253_v58  ;;  %v2302_v46 = vsel %vm13425_vm0, %v2291_v2, %v2301_v26  ;;  %v1582_v10 = vadd.f32 %v1477_v34, %v13228_v15  ;;  %v11394_v32 = vpop.f32.mrb[93].mxu1  ;;  %2219 = vst [vmem:[#allocation2 + $0x18] sm:$0xc] %v2218_v16 }
 0x1ad   : > { %v1480_v12 = vpop.f32.mrb[90].mxu0  ;;  %v2269_v43 = vsel %vm13432_vm10, %v2254_v0, %v2268_v54  ;;  %2303 = vst [vmem:[#allocation2 + $0x24] sm:$0xf] %v2302_v46  ;;  %v2293_v19 = vrot.slane %v10722_v1, 5  ;;  %v2321_v40 = vshrl.u32 %v10722_v1, 16  ;;  %v2324_v5 = vshll.u32 %v10722_v1, 16 }
 0x1ae   : > { %v11321_v4 = vpop.f32.mrb[91].mxu0  ;;  %v1912_v49 = vpop.f32.mrb[94].mxu1  ;;  %vm2258_vm9 = vcmask 60419   ;;  %2270 = vst [vmem:[#allocation2 + $0x20] sm:$0xf] %v2269_v43  ;;  %v10723_v26 = vpack.c.bf16 %v2080_v21, %v2080_v21  ;;  %v2006_v15 = vadd.f32 %v13389_v22, %v1582_v10  ;;  %v1583_v58 = vadd.f32 %v1480_v12, %v13234_v24 }
 0x1af   : > { %v11395_v34 = vpop.f32.mrb[95].mxu1  ;;  %v2767_v63 = vld [vmem:[%s15605_s3] sm:$0xf]  ;;  %v2294_v54 = vsel %vm13415_vm14, %v2292_v62, %v2293_v19  ;;  %v2295_v2 = vrot.slane %v2293_v19, 4  ;;  %v2323_v1 = vrot.slane %v2321_v40, 4  ;;  %v2326_v4 = vrot.slane %v2324_v5, 5 }
 0x1b0   : > { %vm15712_vm6 = vcmask 1043456   ;;  %vm15713_vm5 = vcmask 60416   ;;  %v2330_v16 = vshll.u32 %v10723_v26, 16  ;;  %v2334_v21 = vshrl.u32 %v10723_v26, 16 }
 0x1b1   : > { %12365 = vmatprep.subr.msk.bf16.mxu0 %vm15712_vm6, %v2767_v63  ;;  %2304 = vst.msk [vmem:[#allocation2 + $0x28] sm:$0xf] %vm15713_vm5, %v2294_v54  ;;  %v2047_v10 = vadd.f32 %v13300_v30, %v2006_v15  ;;  %v2007_v24 = vadd.f32 %v13394_v23, %v1583_v58  ;;  %v2306_v12 = vsel %vm13224_vm12, %v2295_v2, %v2305_v42  ;;  %v2873_v0 = vshrl.u32 %v13359_v44, 16  ;;  %v13461_v62 = vld [vmem:[#allocation2 + $0x10] sm:$0xff]   ;;  %vm13465_vm6 = vmor %vm15641_vm8, %vm2318_vm15 }
 0x1b2   : > { %v2327_v22 = vor.u32 %v2326_v4, %v2323_v1  ;;  %2307 = vst [vmem:[#allocation2 + $0x2c] sm:$0x1] %v2306_v12  ;;  %v15714_v46 = vmov 0  ;;  %v13469_v32 = vrot.slane %v2330_v16, 5  ;;  %v2336_v43 = vrot.slane %v2334_v21, 4  ;;  %v1485_v40 = vpop.f32.mrb[92].mxu0  ;;  %vm13483_vm5 = vmand %vm2258_vm9, %vm15640_vm4 }
 0x1b3   : > { %v15715_v46 = vsel %vm13465_vm6, 4294967295, %v15714_v46  ;;  %v2081_v19 = vmax.f32 %v2047_v10, 0.0  ;;  %v2048_v23 = vadd.f32 %v13300_v30, %v2007_v24  ;;  %v2875_v44 = vor.u32 %v2873_v0, %v13387_v18  ;;  %v11324_v26 = vpop.f32.mrb[93].mxu0  ;;  %v1917_v15 = vpop.f32.mrb[96].mxu1  ;;  %v2261_v16 = vld [vmem:[#allocation2 + $0x18] sm:$0x8] }
 0x1b4   : > { %15716 = vst [vmem:[#allocation14_spill] sm:$0xff] %v15715_v46  ;;  %v13472_v42 = vrot.slane %v2327_v22, 4  ;;  %v1584_v5 = vadd.f32 %v1485_v40, %v13242_v31  ;;  %v2877_v58 = vshll.u32 %v13461_v62, 16  ;;  %v2337_v34 = vor.u32 %v2336_v43, %v13469_v32  ;;  %v1488_v1 = vpop.f32.mrb[94].mxu0  ;;  %v11398_v4 = vpop.f32.mrb[97].mxu1 }
 0x1b5   : > { %v13478_v54 = vpack.c.bf16 %v2081_v19, %v2081_v19  ;;  %v2082_v2 = vmax.f32 %v2048_v23, 0.0  ;;  %vm15717_vm15 = vcmask 1043456   ;;  %v2271_v31 = vld [vmem:[#allocation2 + $0x20] sm:$0x8]  ;;  %v1585_v12 = vadd.f32 %v1488_v1, %v13244_v38  ;;  %v11325_v22 = vpop.f32.mrb[95].mxu0  ;;  %v1920_v43 = vpop.f32.mrb[98].mxu1 }
 0x1b6   : > { %v3273_v21 = vsel %vm15717_vm15, %v2767_v63, 0  ;;  %v2333_v10 = vsel %vm13465_vm6, %v13472_v42, %v13469_v32  ;;  %v2008_v24 = vadd.f32 %v1909_v28, %v1584_v5  ;;  %v13492_v0 = vrot.slane %v2877_v58, 1  ;;  %v11399_v5 = vpop.f32.mrb[99].mxu1 }
 0x1b7   : > { %v2272_v63 = vsel %vm13483_vm5, 0, %v2271_v31  ;;  %vm15720_vm9 = vsmask.f32 1282  ;;  %vm15721_vm15 = vcmask 58368   ;;  %v2338_v23 = vrot.slane %v2337_v34, 4 }
 0x1b8   : > { %vm13498_vm4 = vmand %vm15721_vm15, %vm15720_vm9  ;;  %v2340_v40 = vshll.u32 %v13478_v54, 16  ;;  %v2344_v28 = vshrl.u32 %v13478_v54, 16  ;;  %2273 = vst [vmem:[#allocation2 + $0x20] sm:$0x8] %v2272_v63  ;;  %v10725_v38 = vpack.c.bf16 %v2082_v2, %v2082_v2  ;;  %v2049_v26 = vadd.f32 %v13300_v30, %v2008_v24 }
 0x1b9   : > { %v2009_v58 = vadd.f32 %v1912_v49, %v1585_v12  ;;  %vm15724_vm8 = vsmask.f32 7424  ;;  %vm15725_vm9 = vcmask 64512   ;;  %v2262_v34 = vsel %vm13483_vm5, %v13364_v13, %v2261_v16  ;;  %v2310_v22 = vld [vmem:[#allocation2 + $0x2c] sm:$0x3] }
 0x1ba   : > { %v2880_v1 = vsel %vm15724_vm8, %v2875_v44, %v13492_v0  ;;  %v2342_v4 = vrot.slane %v2340_v40, 5  ;;  %v2346_v31 = vrot.slane %v2344_v28, 4  ;;  %vm15726_vm15 = vcmask 60416   ;;  %2263 = vst [vmem:[#allocation2 + $0x18] sm:$0x8] %v2262_v34  ;;  %v1493_v63 = vpop.f32.mrb[96].mxu0 }
 0x1bb   : > { %11439 = vmatmul.mubr.msk.bf16.vlgmr.msra.gmra.mrb[136].mxu0 %vm15725_vm9, %v2880_v1  ;;  %2373 = vst.msk [vmem:[#allocation2 + $0x38] sm:$0xf] %vm15726_vm15, %v10725_v38  ;;  %v2083_v5 = vmax.f32 %v2049_v26, 0.0  ;;  %v2050_v2 = vadd.f32 %v13300_v30, %v2009_v58  ;;  %v2311_v49 = vsel %vm13498_vm4, 0, %v2310_v22  ;;  %v2374_v12 = vld [vmem:[#allocation2 + $0x3c] sm:$0x7]  ;;  %vm15727_vm8 = vmmov %vm15726_vm15  ;;  %v1586_v28 = vadd.f32 %v1493_v63, %v13247_v45 }
 0x1bc   : > { %11475 = vmatpush3.bf16.msra.mxu0 %v3273_v21  ;;  %v2343_v44 = vsel %vm13465_vm6, %v2338_v23, %v2342_v4  ;;  %v2347_v24 = vor.u32 %v2346_v31, %v2342_v4  ;;  %2312 = vst [vmem:[#allocation2 + $0x2c] sm:$0x3] %v2311_v49  ;;  %v2356_v13 = vld [vmem:[#allocation2 + $0x34] sm:$0x3]  ;;  %v11328_v38 = vpop.f32.mrb[97].mxu0  ;;  %v1925_v21 = vpop.f32.mrb[100].mxu1 }
 0x1bd   : > { %2355 = vst.msk [vmem:[#allocation2 + $0x30] sm:$0xf] %vm15727_vm8, %v2343_v44  ;;  %v13518_v16 = vpack.c.bf16 %v2083_v5, %v2083_v5  ;;  %v2084_v40 = vmax.f32 %v2050_v2, 0.0  ;;  %v1496_v58 = vpop.f32.mrb[98].mxu0  ;;  %v11402_v1 = vpop.f32.mrb[101].mxu1  ;;  %v2010_v5 = vadd.f32 %v1917_v15, %v1586_v28  ;;  %vm2432_vm15 = vcmask 1040384  }
 0x1be   : > { %v2348_v26 = vrot.slane %v2347_v24, 4  ;;  %v11329_v31 = vpop.f32.mrb[99].mxu0  ;;  %v13524_v34 = vpop.f32.mrb[102].mxu1  ;;  %v1587_v45 = vadd.f32 %v1496_v58, %v13249_v50  ;;  %vm2385_vm9 = vsmask.f32 4368  ;;  %vm2433_vm8 = vcmask 1044484  }
 0x1bf   : > { %v2375_v23 = vsel %vm13368_vm1, %v13518_v16, %v2374_v12  ;;  %v10727_v4 = vpack.c.bf16 %v2084_v40, %v2084_v40  ;;  %v11403_v2 = vpop.f32.mrb[103].mxu1  ;;  %v13529_v49 = vld [vmem:[#allocation2 + $0x20] sm:$0xff]   ;;  %v2390_v44 = vshrl.u32 %v13518_v16, 16  ;;  %v2051_v12 = vadd.f32 %v13300_v30, %v2010_v5 }
 0x1c0   : > { %v2357_v22 = vsel %vm13166_vm7, %v2348_v26, %v2356_v13  ;;  %2376 = vst [vmem:[#allocation2 + $0x3c] sm:$0x7] %v2375_v23  ;;  %v2011_v63 = vadd.f32 %v1920_v43, %v1587_v45  ;;  %v2881_v13 = vshrl.u32 %v13461_v62, 16  ;;  %vm15728_vm14 = vsmask.f32 256 }
 0x1c1   : > { %2358 = vst [vmem:[#allocation2 + $0x34] sm:$0x3] %v2357_v22  ;;  %v2395_v24 = vshrl.u32 %v10727_v4, 16  ;;  %v12475_v40 = vld [vmem:[#allocation2 + $0x18] sm:$0xff]   ;;  %v2398_v15 = vshll.u32 %v10727_v4, 16  ;;  %vm13537_vm13 = vmor %vm15728_vm14, %vm2385_vm9  ;;  %v2085_v26 = vmax.f32 %v2051_v12, 0.0 }
 0x1c2   : > { %v2052_v58 = vadd.f32 %v13300_v30, %v2011_v63  ;;  %v1501_v1 = vpop.f32.mrb[100].mxu0  ;;  %v2885_v23 = vshll.u32 %v12475_v40, 16  ;;  %v2893_v43 = vshll.u32 %v13529_v49, 16  ;;  %v10118_v4 = vrot.slane %v2390_v44, 11 }
 0x1c3   : > { %v13534_v38 = vrot.slane %v2395_v24, 7  ;;  %v2352_v50 = vld [vmem:[#allocation2 + $0x2c] sm:$0xe]  ;;  %v1588_v22 = vadd.f32 %v1501_v1, %v13256_v59  ;;  %v11332_v5 = vpop.f32.mrb[101].mxu0  ;;  %v1933_v45 = vpop.f32.mrb[104].mxu1  ;;  %v10728_v2 = vpack.c.bf16 %v2085_v26, %v2085_v26  ;;  %v2883_v12 = vor.u32 %v2881_v13, %v13492_v0 }
 0x1c4   : > { %v2353_v62 = vsel %vm13309_vm2, %v2333_v10, %v2352_v50  ;;  %v2086_v24 = vmax.f32 %v2052_v58, 0.0  ;;  %v2887_v63 = vrot.slane %v2885_v23, 1  ;;  %v1504_v57 = vpop.f32.mrb[102].mxu0  ;;  %v11406_v48 = vpop.f32.mrb[105].mxu1  ;;  %vm15731_vm14 = vcmask 60416  }
 0x1c5   : > { %v2400_v31 = vor.u32 %v2398_v15, %v13534_v38  ;;  %2354 = vst [vmem:[#allocation2 + $0x2c] sm:$0xe] %v2353_v62  ;;  %v2012_v42 = vadd.f32 %v1925_v21, %v1588_v22  ;;  %v1589_v10 = vadd.f32 %v1504_v57, %v13258_v3  ;;  %v11333_v44 = vpop.f32.mrb[103].mxu0  ;;  %v2889_v15 = vshrl.u32 %v12475_v40, 16  ;;  %v13556_v59 = vpop.f32.mrb[106].mxu1 }
 0x1c6   : > { %v2404_v0 = vshrl.u32 %v10728_v2, 16  ;;  %v2407_v13 = vshll.u32 %v10728_v2, 16  ;;  %v13561_v48 = vrot.slane %v2893_v43, 1  ;;  %v10729_v21 = vpack.c.bf16 %v2086_v24, %v2086_v24  ;;  %v2446_v3 = vld [vmem:[#allocation2 + $0x48] sm:$0xf]  ;;  %v11407_v1 = vpop.f32.mrb[107].mxu1 }
 0x1c7   : > { %v2377_v46 = vld [vmem:[#allocation2 + $0x3c] sm:$0xc]  ;;  %v2401_v32 = vsel %vm13537_vm13, %v10118_v4, %v2400_v31  ;;  %v2053_v57 = vadd.f32 %v13300_v30, %v2012_v42  ;;  %vm15732_vm9 = vsmask.f32 7424  ;;  %v15733_v62 = vmov 0 }
 0x1c8   : > { %v2359_v50 = vld [vmem:[#allocation2 + $0x34] sm:$0x6]  ;;  %v2378_v26 = vsel %vm13407_vm3, 0, %v2377_v46  ;;  %2417 = vst.msk [vmem:[#allocation2 + $0x40] sm:$0xf] %vm15731_vm14, %v2401_v32  ;;  %v2888_v40 = vsel %vm15732_vm9, %v2883_v12, %v2887_v63  ;;  %v2406_v23 = vrot.slane %v2404_v0, 7  ;;  %vm13569_vm14 = vmor %vm2432_vm15, %vm2433_vm8  ;;  %v2013_v43 = vadd.f32 %v13524_v34, %v1589_v10 }
 0x1c9   : > { %v2360_v58 = vsel %vm13355_vm11, 0, %v2359_v50  ;;  %2379 = vst [vmem:[#allocation2 + $0x3c] sm:$0xc] %v2378_v26  ;;  %v10121_v46 = vrot.slane %v10728_v2, 11  ;;  %v15734_v62 = vsel %vm13569_vm14, 4294967295, %v15733_v62  ;;  %vm15735_vm6 = vcmask 64512  }
 0x1ca   : > { %2361 = vst [vmem:[#allocation2 + $0x34] sm:$0x6] %v2360_v58  ;;  %11442 = vmatprep.mubr.msk.bf16.mxu0 %vm15735_vm6, %v2888_v40  ;;  %v2891_v4 = vor.u32 %v2889_v15, %v2887_v63  ;;  %v2437_v31 = vrot.slane %v10729_v21, 7  ;;  %v2087_v22 = vmax.f32 %v2053_v57, 0.0  ;;  %v2402_v5 = vrot.slane %v13534_v38, 4  ;;  %v1509_v42 = vpop.f32.mrb[104].mxu0 }
 0x1cb   : > { %v2409_v24 = vor.u32 %v2407_v13, %v2406_v23  ;;  %v2418_v12 = vld [vmem:[#allocation2 + $0x44] sm:$0xf]  ;;  %v2054_v32 = vadd.f32 %v13300_v30, %v2013_v43  ;;  %v2388_v44 = vshll.u32 %v13518_v16, 16  ;;  %v1590_v34 = vadd.f32 %v1509_v42, %v13260_v11  ;;  %v11336_v63 = vpop.f32.mrb[105].mxu0  ;;  %v1941_v38 = vpop.f32.mrb[108].mxu1 }
 0x1cc   : > { %v2896_v2 = vsel %vm15732_vm9, %v2891_v4, %v13561_v48  ;;  %v2438_v50 = vsel %vm13569_vm14, %v10121_v46, %v2437_v31  ;;  %v10730_v26 = vpack.c.bf16 %v2087_v22, %v2087_v22  ;;  %v13584_v10 = vld [vmem:[#allocation2 + $0x28] sm:$0xff]   ;;  %v2439_v0 = vrot.slane %v2437_v31, 4  ;;  %v2450_v16 = vld [vmem:[#allocation2 + $0x50] sm:$0x1]  ;;  %v1512_v21 = vpop.f32.mrb[106].mxu0  ;;  %v11410_v57 = vpop.f32.mrb[109].mxu1 }
 0x1cd   : > { %11443 = vmatmul.mubr.msk.bf16.gmra.mrb[140].mxu0 %vm15735_vm6, %v2896_v2  ;;  %v2410_v15 = vsel %vm13537_vm13, %v2402_v5, %v2409_v24  ;;  %v2447_v13 = vsel %vm13425_vm0, %v2438_v50, %v2446_v3  ;;  %v2088_v58 = vmax.f32 %v2054_v32, 0.0  ;;  %v2014_v1 = vadd.f32 %v1933_v45, %v1590_v34  ;;  %v11337_v46 = vpop.f32.mrb[107].mxu0  ;;  %v1944_v43 = vpop.f32.mrb[110].mxu1 }
 0x1ce   : > { %v2419_v40 = vsel %vm13432_vm10, %v2410_v15, %v2418_v12  ;;  %2448 = vst [vmem:[#allocation2 + $0x48] sm:$0xf] %v2447_v13  ;;  %v2440_v11 = vrot.slane %v10730_v26, 7  ;;  %v1591_v23 = vadd.f32 %v1512_v21, %v13264_v20  ;;  %v2897_v22 = vshrl.u32 %v13529_v49, 16  ;;  %v11411_v5 = vpop.f32.mrb[111].mxu1 }
 0x1cf   : > { %2420 = vst [vmem:[#allocation2 + $0x44] sm:$0xf] %v2419_v40  ;;  %v10731_v31 = vpack.c.bf16 %v2088_v58, %v2088_v58  ;;  %v2901_v3 = vshll.u32 %v13584_v10, 16  ;;  %v2055_v20 = vadd.f32 %v13300_v30, %v2014_v1  ;;  %vm15736_vm15 = vnez %v15696_v52 }
 0x1d0   : > { %v2414_v4 = vld [vmem:[#allocation2 + $0x3c] sm:$0x8]  ;;  %v2441_v12 = vsel %vm13569_vm14, %v2439_v0, %v2440_v11  ;;  %v2442_v45 = vrot.slane %v2440_v11, 4  ;;  %vm15737_vm8 = vcmask 60416   ;;  %v2015_v50 = vadd.f32 %v13556_v59, %v1591_v23 }
 0x1d1   : > { %v2370_v24 = vld [vmem:[#allocation2 + $0x34] sm:$0xc]  ;;  %v2415_v32 = vsel %vm13483_vm5, %v2388_v44, %v2414_v4  ;;  %2449 = vst.msk [vmem:[#allocation2 + $0x4c] sm:$0xf] %vm15737_vm8, %v2441_v12  ;;  %v2462_v49 = vshrl.u32 %v10731_v31, 16  ;;  %v2465_v42 = vshll.u32 %v10731_v31, 16  ;;  %v2899_v34 = vor.u32 %v2897_v22, %v13561_v48 }
 0x1d2   : > { %v2371_v2 = vsel %vm15736_vm15, %v13478_v54, %v2370_v24  ;;  %2416 = vst [vmem:[#allocation2 + $0x3c] sm:$0x8] %v2415_v32  ;;  %v2451_v44 = vsel %vm13224_vm12, %v2442_v45, %v2450_v16  ;;  %v2089_v26 = vmax.f32 %v2055_v20, 0.0  ;;  %v2903_v63 = vrot.slane %v2901_v3, 1  ;;  %v1517_v13 = vpop.f32.mrb[108].mxu0 }
 0x1d3   : > { %2372 = vst [vmem:[#allocation2 + $0x34] sm:$0xc] %v2371_v2  ;;  %2452 = vst [vmem:[#allocation2 + $0x50] sm:$0x1] %v2451_v44  ;;  %v2464_v15 = vrot.slane %v2462_v49, 6  ;;  %v2467_v0 = vrot.slane %v2465_v42, 7  ;;  %v2056_v54 = vadd.f32 %v13300_v30, %v2015_v50  ;;  %v1592_v21 = vadd.f32 %v1517_v13, %v13266_v27 }
 0x1d4   : > { %v10732_v58 = vpack.c.bf16 %v2089_v26, %v2089_v26  ;;  %v11340_v57 = vpop.f32.mrb[109].mxu0  ;;  %v2904_v59 = vsel %vm15732_vm9, %v2899_v34, %v2903_v63  ;;  %v1949_v40 = vpop.f32.mrb[112].mxu1  ;;  %v2905_v45 = vshrl.u32 %v13584_v10, 16  ;;  %vm15738_vm8 = vnez %v15685_v60 }
 0x1d5   : > { %v13611_v11 = vor.u32 %v2467_v0, %v2464_v15  ;;  %v2090_v16 = vmax.f32 %v2056_v54, 0.0  ;;  %11446 = vmatprep.mubr.msk.bf16.mxu0 %vm15735_vm6, %v2904_v59  ;;  %v1520_v48 = vpop.f32.mrb[110].mxu0  ;;  %v11414_v1 = vpop.f32.mrb[113].mxu1  ;;  %v2016_v31 = vadd.f32 %v1941_v38, %v1592_v21  ;;  %vm15739_vm9 = vcmask 60416  }
 0x1d6   : > { %v2421_v23 = vld [vmem:[#allocation2 + $0x44] sm:$0x8]  ;;  %v2471_v46 = vshrl.u32 %v10732_v58, 16  ;;  %v2474_v4 = vshll.u32 %v10732_v58, 16  ;;  %v1593_v22 = vadd.f32 %v1520_v48, %v13268_v35  ;;  %v11341_v3 = vpop.f32.mrb[111].mxu0  ;;  %v1952_v5 = vpop.f32.mrb[114].mxu1  ;;  %v2907_v26 = vor.u32 %v2905_v45, %v2903_v63 }
 0x1d7   : > { %v2422_v27 = vsel %vm13483_vm5, 0, %v2421_v23  ;;  %v2469_v24 = vrot.slane %v13611_v11, 4  ;;  %v13618_v32 = vpack.c.bf16 %v2090_v16, %v2090_v16  ;;  %v11415_v12 = vpop.f32.mrb[115].mxu1  ;;  %v2057_v49 = vadd.f32 %v13300_v30, %v2016_v31  ;;  %v2487_v35 = vld [vmem:[#allocation2 + $0x58] sm:$0x3] }
 0x1d8   : > { %2423 = vst [vmem:[#allocation2 + $0x44] sm:$0x8] %v2422_v27  ;;  %v2473_v20 = vrot.slane %v2471_v46, 6  ;;  %v2476_v2 = vrot.slane %v2474_v4, 7  ;;  %v2017_v38 = vadd.f32 %v1944_v43, %v1593_v22  ;;  %vm15740_vm6 = vsmask.f32 7424 }
 0x1d9   : > { %v12479_v42 = vld [vmem:[#allocation2 + $0x38] sm:$0xff]   ;;  %v2500_v50 = vrot.slane %v13618_v32, 6  ;;  %v2091_v0 = vmax.f32 %v2057_v49, 0.0  ;;  %vm15743_vm14 = vcmask 60416   ;;  %v2589_v32 = vld [vmem:[#allocation2 + $0x74] sm:$0x1] }
 0x1da   : > { %v13623_v44 = vld [vmem:[#allocation2 + $0x30] sm:$0xff]   ;;  %v2477_v15 = vor.u32 %v2476_v2, %v2473_v20  ;;  %v2058_v54 = vadd.f32 %v13300_v30, %v2017_v38  ;;  %v2917_v13 = vshll.u32 %v12479_v42, 16  ;;  %v1525_v43 = vpop.f32.mrb[112].mxu0  ;;  %v2921_v3 = vshrl.u32 %v12479_v42, 16 }
 0x1db   : > { %v2453_v34 = vld [vmem:[#allocation2 + $0x50] sm:$0x3]  ;;  %v2501_v58 = vrot.slane %v2500_v50, 4  ;;  %v2909_v21 = vshll.u32 %v13623_v44, 16  ;;  %v2913_v57 = vshrl.u32 %v13623_v44, 16  ;;  %v10734_v16 = vpack.c.bf16 %v2091_v0, %v2091_v0  ;;  %v11344_v30 = vpop.f32.mrb[113].mxu0 }
 0x1dc   : > { %v2454_v10 = vsel %vm13498_vm4, 0, %v2453_v34  ;;  %v2478_v63 = vsel %vm15738_vm8, %v2469_v24, %v2477_v15  ;;  %v2479_v59 = vrot.slane %v2477_v15, 4  ;;  %v2092_v48 = vmax.f32 %v2058_v54, 0.0  ;;  %v1957_v1 = vpop.f32.mrb[116].mxu1  ;;  %v1528_v46 = vpop.f32.mrb[114].mxu0 }
 0x1dd   : > { %2455 = vst [vmem:[#allocation2 + $0x50] sm:$0x3] %v2454_v10  ;;  %2486 = vst.msk [vmem:[#allocation2 + $0x54] sm:$0xf] %vm15739_vm9, %v2478_v63  ;;  %v1594_v23 = vadd.f32 %v1525_v43, %v13270_v39  ;;  %v2911_v4 = vrot.slane %v2909_v21, 1  ;;  %v2919_v31 = vrot.slane %v2917_v13, 1  ;;  %v1595_v45 = vadd.f32 %v1528_v46, %v13272_v47 }
 0x1de   : > { %v11418_v22 = vpop.f32.mrb[117].mxu1  ;;  %v2488_v27 = vsel %vm13166_vm7, %v2479_v59, %v2487_v35  ;;  %v2502_v12 = vrot.slane %v10734_v16, 6  ;;  %v10735_v60 = vpack.c.bf16 %v2092_v48, %v2092_v48  ;;  %v2514_v24 = vld [vmem:[#allocation2 + $0x60] sm:$0x7]  ;;  %v11345_v20 = vpop.f32.mrb[115].mxu0  ;;  %vm15741_vm8 = vnez %v15688_v9  ;;  %v13653_v43 = vld [vmem:[#allocation2 + $0x48] sm:$0xff]  }
 0x1df   : > { %v1960_v2 = vpop.f32.mrb[118].mxu1  ;;  %2489 = vst [vmem:[#allocation2 + $0x58] sm:$0x3] %v2488_v27  ;;  %v2018_v49 = vadd.f32 %v1949_v40, %v1594_v23  ;;  %v2912_v38 = vsel %vm15740_vm6, %v2907_v26, %v2911_v4  ;;  %v2915_v39 = vor.u32 %v2913_v57, %v2911_v4  ;;  %v13640_v15 = vld [vmem:[#allocation2 + $0x40] sm:$0xff]   ;;  %vm15742_vm9 = vcmask 64512  }
 0x1e0   : > { %v11419_v34 = vpop.f32.mrb[119].mxu1  ;;  %v2503_v42 = vsel %vm15741_vm8, %v2501_v58, %v2502_v12  ;;  %v2504_v0 = vrot.slane %v2502_v12, 4  ;;  %v2505_v35 = vrot.slane %v10735_v60, 6  ;;  %v2526_v54 = vshll.u32 %v10735_v60, 16  ;;  %11447 = vmatmul.mubr.msk.bf16.gmra.mrb[144].mxu0 %vm15742_vm9, %v2912_v38  ;;  %v13649_v40 = vld [vmem:[%s15604_s2] ss:$0 sm:$0xff] }
 0x1e1   : > { %2513 = vst.msk [vmem:[#allocation2 + $0x5c] sm:$0xf] %vm15743_vm14, %v2503_v42  ;;  %v2529_v47 = vshrl.u32 %v10735_v60, 16  ;;  %v2059_v26 = vadd.f32 %v13649_v40, %v2018_v49  ;;  %v2019_v13 = vadd.f32 %v1952_v5, %v1595_v45  ;;  %v2920_v10 = vsel %vm15740_vm6, %v2915_v39, %v2919_v31  ;;  %vm15744_vm14 = vmmov %vm15740_vm6 }
 0x1e2   : > { %v2506_v58 = vsel %vm15741_vm8, %v2504_v0, %v2505_v35  ;;  %v13657_v21 = vrot.slane %v2526_v54, 6  ;;  %11450 = vmatprep.mubr.msk.bf16.mxu0 %vm15742_vm9, %v2920_v10  ;;  %v2923_v57 = vor.u32 %v2921_v3, %v2919_v31  ;;  %v2925_v63 = vshll.u32 %v13640_v15, 16  ;;  %v1533_v23 = vpop.f32.mrb[116].mxu0  ;;  %vm15745_vm8 = vmmov %vm15742_vm9 }
 0x1e3   : > { %v2515_v16 = vsel %vm13368_vm1, %v2506_v58, %v2514_v24  ;;  %v2531_v48 = vrot.slane %v2529_v47, 5  ;;  %v2093_v5 = vmax.f32 %v2059_v26, 0.0  ;;  %v2060_v30 = vadd.f32 %v13649_v40, %v2019_v13  ;;  %v11348_v4 = vpop.f32.mrb[117].mxu0  ;;  %v13669_v3 = vpop.f32.mrb[120].mxu1  ;;  %vm15746_vm9 = vmmov %vm15745_vm8 }
 0x1e4   : > { %v2483_v59 = vld [vmem:[#allocation2 + $0x50] sm:$0xe]  ;;  %2516 = vst [vmem:[#allocation2 + $0x60] sm:$0x7] %v2515_v16  ;;  %v1596_v46 = vadd.f32 %v1533_v23, %v13274_v55  ;;  %v2927_v31 = vrot.slane %v2925_v63, 1  ;;  %v2929_v22 = vshrl.u32 %v13640_v15, 16 }
 0x1e5   : > { %v2484_v9 = vsel %vm13309_vm2, %v13611_v11, %v2483_v59  ;;  %v10736_v27 = vpack.c.bf16 %v2093_v5, %v2093_v5  ;;  %v2094_v12 = vmax.f32 %v2060_v30, 0.0  ;;  %v1536_v60 = vpop.f32.mrb[118].mxu0  ;;  %v2933_v24 = vshll.u32 %v13653_v43, 16  ;;  %v11422_v45 = vpop.f32.mrb[121].mxu1 }
 0x1e6   : > { %2485 = vst [vmem:[#allocation2 + $0x50] sm:$0xe] %v2484_v9  ;;  %v2490_v20 = vld [vmem:[#allocation2 + $0x58] sm:$0x6]  ;;  %v2532_v49 = vor.u32 %v2531_v48, %v13657_v21  ;;  %v2020_v11 = vadd.f32 %v1957_v1, %v1596_v46  ;;  %v1597_v38 = vadd.f32 %v1536_v60, %v13276_v61  ;;  %v11349_v55 = vpop.f32.mrb[119].mxu0  ;;  %v2928_v39 = vsel %vm15744_vm14, %v2923_v57, %v2927_v31  ;;  %v13675_v34 = vpop.f32.mrb[122].mxu1 }
 0x1e7   : > { %v2491_v42 = vsel %vm13355_vm11, 0, %v2490_v20  ;;  %v2535_v0 = vshrl.u32 %v10736_v27, 16  ;;  %v2538_v35 = vshll.u32 %v10736_v27, 16  ;;  %v2931_v54 = vor.u32 %v2929_v22, %v2927_v31  ;;  %v11423_v47 = vpop.f32.mrb[123].mxu1  ;;  %v2560_v22 = vld [vmem:[#allocation2 + $0x68] sm:$0xf] }
 0x1e8   : > { %2492 = vst [vmem:[#allocation2 + $0x58] sm:$0x6] %v2491_v42  ;;  %v10737_v26 = vpack.c.bf16 %v2094_v12, %v2094_v12  ;;  %v2061_v13 = vadd.f32 %v13649_v40, %v2020_v11  ;;  %v2021_v10 = vadd.f32 %v1960_v2, %v1597_v38  ;;  %11451 = vmatmul.mubr.msk.bf16.gmra.mrb[148].mxu0 %vm15745_vm8, %v2928_v39  ;;  %v2935_v58 = vrot.slane %v2933_v24, 1  ;;  %v2585_v12 = vld [vmem:[#allocation2 + $0x6c] sm:$0xf] }
 0x1e9   : > { %v2537_v61 = vrot.slane %v2535_v0, 5  ;;  %v2540_v1 = vrot.slane %v2538_v35, 6  ;;  %v2533_v57 = vrot.slane %v2532_v49, 4  ;;  %vm15747_vm14 = vnez %v15694_v56 }
 0x1ea   : > { %v2545_v63 = vshrl.u32 %v10737_v26, 16  ;;  %v2548_v59 = vshll.u32 %v10737_v26, 16  ;;  %v2095_v16 = vmax.f32 %v2061_v13, 0.0  ;;  %v10131_v30 = vrot.slane %v10737_v26, 9  ;;  %v1541_v46 = vpop.f32.mrb[120].mxu0 }
 0x1eb   : > { %v2517_v48 = vld [vmem:[#allocation2 + $0x60] sm:$0xc]  ;;  %v2541_v5 = vor.u32 %v2540_v1, %v2537_v61  ;;  %v2062_v23 = vadd.f32 %v13649_v40, %v2021_v10  ;;  %v2936_v9 = vsel %vm15740_vm6, %v2931_v54, %v2935_v58  ;;  %v11352_v60 = vpop.f32.mrb[121].mxu0  ;;  %v1973_v24 = vpop.f32.mrb[124].mxu1  ;;  %v1598_v38 = vadd.f32 %v1541_v46, %v13278_v7 }
 0x1ec   : > { %v2518_v2 = vsel %vm13407_vm3, 0, %v2517_v48  ;;  %v2547_v4 = vrot.slane %v2545_v63, 5  ;;  %v2550_v31 = vrot.slane %v2548_v59, 6  ;;  %v10738_v27 = vpack.c.bf16 %v2095_v16, %v2095_v16  ;;  %11454 = vmatprep.mubr.msk.bf16.mxu0 %vm15746_vm9, %v2936_v9  ;;  %v1544_v55 = vpop.f32.mrb[122].mxu0  ;;  %v11426_v39 = vpop.f32.mrb[125].mxu1 }
 0x1ed   : > { %v13686_v45 = vld [vmem:[#allocation2 + $0x50] sm:$0xff]   ;;  %2519 = vst [vmem:[#allocation2 + $0x60] sm:$0xc] %v2518_v2  ;;  %v2542_v20 = vsel %vm15747_vm14, %v2533_v57, %v2541_v5  ;;  %v2543_v49 = vrot.slane %v2541_v5, 4  ;;  %v2096_v11 = vmax.f32 %v2062_v23, 0.0  ;;  %vm15748_vm8 = vcmask 60416  }
 0x1ee   : > { %2559 = vst.msk [vmem:[#allocation2 + $0x64] sm:$0xf] %vm15748_vm8, %v2542_v20  ;;  %v2551_v42 = vor.u32 %v2550_v31, %v2547_v4  ;;  %v2576_v0 = vrot.slane %v10738_v27, 5  ;;  %v1599_v35 = vadd.f32 %v1544_v55, %v13280_v17  ;;  %v11353_v54 = vpop.f32.mrb[123].mxu0  ;;  %v2941_v47 = vshll.u32 %v13686_v45, 16  ;;  %v1976_v26 = vpop.f32.mrb[126].mxu1  ;;  %vm15750_vm9 = vmmov %vm15748_vm8 }
 0x1ef   : > { %v2510_v13 = vld [vmem:[#allocation2 + $0x58] sm:$0xc]  ;;  %v10739_v10 = vpack.c.bf16 %v2096_v11, %v2096_v11  ;;  %v2022_v61 = vadd.f32 %v13669_v3, %v1598_v38  ;;  %v2937_v1 = vshrl.u32 %v13653_v43, 16  ;;  %v11427_v57 = vpop.f32.mrb[127].mxu1  ;;  %vm15749_vm6 = vnez %v15704_v37 }
 0x1f0   : > { %v2511_v7 = vsel %vm15736_vm15, %v2500_v50, %v2510_v13  ;;  %v2552_v63 = vsel %vm15747_vm14, %v2543_v49, %v2551_v42  ;;  %v2577_v17 = vsel %vm15749_vm6, %v10131_v30, %v2576_v0  ;;  %v2578_v59 = vrot.slane %v2576_v0, 4 }
 0x1f1   : > { %2512 = vst [vmem:[#allocation2 + $0x58] sm:$0xc] %v2511_v7  ;;  %v2561_v16 = vsel %vm13432_vm10, %v2552_v63, %v2560_v22  ;;  %v2586_v3 = vsel %vm13425_vm0, %v2577_v17, %v2585_v12  ;;  %v2579_v48 = vrot.slane %v10739_v10, 5  ;;  %v2601_v5 = vshrl.u32 %v10739_v10, 16 }
 0x1f2   : > { %2562 = vst [vmem:[#allocation2 + $0x68] sm:$0xf] %v2561_v16  ;;  %2587 = vst [vmem:[#allocation2 + $0x6c] sm:$0xf] %v2586_v3  ;;  %v2604_v50 = vshll.u32 %v10739_v10, 16  ;;  %v2063_v56 = vadd.f32 %v13649_v40, %v2022_v61  ;;  %v2023_v23 = vadd.f32 %v13675_v34, %v1599_v35  ;;  %v2943_v9 = vrot.slane %v2941_v47, 1 }
 0x1f3   : > { %v2580_v30 = vsel %vm15749_vm6, %v2578_v59, %v2579_v48  ;;  %v2581_v46 = vrot.slane %v2579_v48, 4  ;;  %v2603_v2 = vrot.slane %v2601_v5, 4  ;;  %v1549_v4 = vpop.f32.mrb[124].mxu0  ;;  %v2939_v31 = vor.u32 %v2937_v1, %v2935_v58  ;;  %v1981_v11 = vpop.f32.mrb[128].mxu1  ;;  %v13727_v10 = vld [vmem:[%s15605_s3 + $0x8] sm:$0xf] }
 0x1f4   : > { %v2556_v22 = vld [vmem:[#allocation2 + $0x60] sm:$0x8]  ;;  %2588 = vst.msk [vmem:[#allocation2 + $0x70] sm:$0xf] %vm15750_vm9, %v2580_v30  ;;  %v2606_v27 = vrot.slane %v2604_v50, 5  ;;  %v2097_v12 = vmax.f32 %v2063_v56, 0.0  ;;  %v2064_v60 = vadd.f32 %v13649_v40, %v2023_v23  ;;  %v1600_v20 = vadd.f32 %v1549_v4, %v13282_v25 }
 0x1f5   : > { %v11356_v49 = vpop.f32.mrb[125].mxu0  ;;  %v2557_v37 = vsel %vm13483_vm5, %v13657_v21, %v2556_v22  ;;  %v2590_v34 = vsel %vm13224_vm12, %v2581_v46, %v2589_v32  ;;  %vm15751_vm14 = vsmask.f32 7424  ;;  %v11430_v55 = vpop.f32.mrb[129].mxu1  ;;  %vm15752_vm8 = vcmask 64512  }
 0x1f6   : > { %v2944_v58 = vsel %vm15751_vm14, %v2939_v31, %v2943_v9  ;;  %v1552_v38 = vpop.f32.mrb[126].mxu0  ;;  %2558 = vst [vmem:[#allocation2 + $0x60] sm:$0x8] %v2557_v37  ;;  %2591 = vst [vmem:[#allocation2 + $0x74] sm:$0x1] %v2590_v34  ;;  %v2607_v39 = vor.u32 %v2606_v27, %v2603_v2  ;;  %v10740_v42 = vpack.c.bf16 %v2097_v12, %v2097_v12  ;;  %v2098_v0 = vmax.f32 %v2064_v60, 0.0 }
 0x1f7   : > { %v2024_v35 = vadd.f32 %v1973_v24, %v1600_v20  ;;  %11455 = vmatmul.mubr.msk.bf16.gmra.mrb[152].mxu0 %vm15752_vm8, %v2944_v58  ;;  %v11357_v25 = vpop.f32.mrb[127].mxu0  ;;  %v1984_v54 = vpop.f32.mrb[130].mxu1  ;;  %v1601_v47 = vadd.f32 %v1552_v38, %v13284_v33  ;;  %v2945_v13 = vshrl.u32 %v13686_v45, 16  ;;  %vm15753_vm6 = vcmask 1043456   ;;  %v2654_v4 = vld [vmem:[#allocation2 + $0x84] sm:$0x7] }
 0x1f8   : > { %v11431_v21 = vpop.f32.mrb[131].mxu1  ;;  %v2610_v61 = vshll.u32 %v10740_v42, 16  ;;  %v2614_v1 = vshrl.u32 %v10740_v42, 16  ;;  %v13729_v57 = vpack.c.bf16 %v2098_v0, %v2098_v0  ;;  %v13731_v7 = vld [vmem:[#allocation2 + $0x58] sm:$0xff]   ;;  %12366 = vmatprep.subr.msk.bf16.mxu0 %vm15753_vm6, %v13727_v10  ;;  %v13735_v63 = vrot.slane %v2607_v39, 4  ;;  %v15757_v39 = vld [vmem:[#allocation10_spill] sm:$0xff] }
 0x1f9   : > { %v2563_v24 = vld [vmem:[#allocation2 + $0x68] sm:$0x8]  ;;  %v2065_v33 = vadd.f32 %v13649_v40, %v2024_v35  ;;  %v2025_v17 = vadd.f32 %v1976_v26, %v1601_v47  ;;  %v2947_v59 = vor.u32 %v2945_v13, %v2943_v9  ;;  %v2949_v30 = vshll.u32 %v13731_v7, 16  ;;  %v15756_v31 = vld [vmem:[#allocation9_spill] sm:$0xff] }
 0x1fa   : > { %v2564_v16 = vsel %vm13483_vm5, 0, %v2563_v24  ;;  %v13740_v3 = vrot.slane %v2610_v61, 5  ;;  %v2616_v48 = vrot.slane %v2614_v1, 4  ;;  %v2620_v5 = vshll.u32 %v13729_v57, 16  ;;  %v1557_v23 = vpop.f32.mrb[128].mxu0  ;;  %v15754_v26 = vld [vmem:[#allocation14_spill] sm:$0xff] }
 0x1fb   : > { %2565 = vst [vmem:[#allocation2 + $0x68] sm:$0x8] %v2564_v16  ;;  %v2624_v32 = vshrl.u32 %v13729_v57, 16  ;;  %v2099_v50 = vmax.f32 %v2065_v33, 0.0  ;;  %v2066_v56 = vadd.f32 %v13649_v40, %v2025_v17  ;;  %vm15755_vm9 = vnez %v15754_v26  ;;  %v11360_v27 = vpop.f32.mrb[129].mxu0  ;;  %v1989_v12 = vpop.f32.mrb[132].mxu1 }
 0x1fc   : > { %v2613_v9 = vsel %vm15755_vm9, %v13735_v63, %v13740_v3  ;;  %v2617_v46 = vor.u32 %v2616_v48, %v13740_v3  ;;  %v2622_v2 = vrot.slane %v2620_v5, 5  ;;  %v1602_v22 = vadd.f32 %v1557_v23, %v15756_v31  ;;  %v1560_v34 = vpop.f32.mrb[130].mxu0  ;;  %v2636_v21 = vld [vmem:[#allocation2 + $0x7c] sm:$0x3]  ;;  %v11434_v24 = vpop.f32.mrb[133].mxu1 }
 0x1fd   : > { %v2592_v60 = vld [vmem:[#allocation2 + $0x74] sm:$0x3]  ;;  %v2626_v20 = vrot.slane %v2624_v32, 4  ;;  %v10742_v49 = vpack.c.bf16 %v2099_v50, %v2099_v50  ;;  %v2100_v37 = vmax.f32 %v2066_v56, 0.0  ;;  %v2951_v58 = vrot.slane %v2949_v30, 1  ;;  %v11361_v35 = vpop.f32.mrb[131].mxu0 }
 0x1fe   : > { %v2593_v38 = vsel %vm13498_vm4, 0, %v2592_v60  ;;  %v2618_v55 = vrot.slane %v2617_v46, 4  ;;  %v1603_v42 = vadd.f32 %v1560_v34, %v15757_v39  ;;  %v2026_v0 = vadd.f32 %v1981_v11, %v1602_v22  ;;  %v13755_v25 = vld [vmem:[#allocation2 + $0x60] sm:$0xff]   ;;  %v1992_v16 = vpop.f32.mrb[134].mxu1 }
 0x1ff   : > { %2594 = vst [vmem:[#allocation2 + $0x74] sm:$0x3] %v2593_v38  ;;  %v2627_v47 = vor.u32 %v2626_v20, %v2622_v2  ;;  %vm15758_vm14 = vcmask 60416   ;;  %v13758_v13 = vpack.c.bf16 %v2100_v37, %v2100_v37  ;;  %vm15759_vm8 = vsmask.f32 7424  ;;  %v11435_v48 = vpop.f32.mrb[135].mxu1 }
 0x200   : > { %2653 = vst.msk [vmem:[#allocation2 + $0x80] sm:$0xf] %vm15758_vm14, %v10742_v49  ;;  %v2952_v61 = vsel %vm15759_vm8, %v2947_v59, %v2951_v58  ;;  %v2953_v1 = vshrl.u32 %v13731_v7, 16  ;;  %v2623_v63 = vsel %vm15755_vm9, %v2618_v55, %v2622_v2  ;;  %v2067_v11 = vadd.f32 %v13649_v40, %v2026_v0 }
 0x201   : > { %v2027_v33 = vadd.f32 %v1984_v54, %v1603_v42  ;;  %vm15760_vm6 = vcmask 64512   ;;  %v2957_v17 = vshll.u32 %v13755_v25, 16  ;;  %v2628_v3 = vrot.slane %v2627_v47, 4  ;;  %2635 = vst.msk [vmem:[#allocation2 + $0x78] sm:$0xf] %vm15758_vm14, %v2623_v63 }
 0x202   : > { %11458 = vmatprep.mubr.msk.bf16.mxu0 %vm15760_vm6, %v2952_v61  ;;  %v2655_v59 = vsel %vm13368_vm1, %v13758_v13, %v2654_v4  ;;  %v2101_v5 = vmax.f32 %v2067_v11, 0.0  ;;  %v2955_v50 = vor.u32 %v2953_v1, %v2951_v58  ;;  %v13772_v54 = vld [vmem:[#allocation2 + $0x68] sm:$0xff]   ;;  %v2668_v30 = vshrl.u32 %v13758_v13, 16  ;;  %v1565_v26 = vpop.f32.mrb[132].mxu0  ;;  %vm15762_vm1 = vmmov %vm15759_vm8  ;;  %v15764_v58 = vld [vmem:[#allocation12_spill] sm:$0xff] }
 0x203   : > { %2656 = vst [vmem:[#allocation2 + $0x84] sm:$0x7] %v2655_v59  ;;  %v2068_v32 = vadd.f32 %v13649_v40, %v2027_v33  ;;  %v2959_v56 = vrot.slane %v2957_v17, 1  ;;  %v2637_v23 = vsel %vm13166_vm7, %v2628_v3, %v2636_v21  ;;  %v2961_v46 = vshrl.u32 %v13755_v25, 16  ;;  %v15761_v4 = vld [vmem:[#allocation11_spill] sm:$0xff]  ;;  %v11364_v22 = vpop.f32.mrb[133].mxu0  ;;  %vm15763_vm9 = vmmov %vm15760_vm6 }
 0x204   : > { %2638 = vst [vmem:[#allocation2 + $0x7c] sm:$0x3] %v2637_v23  ;;  %v10744_v41 = vpack.c.bf16 %v2101_v5, %v2101_v5  ;;  %v1604_v31 = vadd.f32 %v1565_v26, %v15761_v4  ;;  %v1568_v60 = vpop.f32.mrb[134].mxu0  ;;  %v2965_v6 = vshll.u32 %v13772_v54, 16  ;;  %v10138_v35 = vrot.slane %v2668_v30, 11  ;;  %vm15765_vm7 = vmmov %vm15762_vm1 }
 0x205   : > { %v2102_v2 = vmax.f32 %v2068_v32, 0.0  ;;  %v2960_v27 = vsel %vm15762_vm1, %v2955_v50, %v2959_v56  ;;  %v2963_v20 = vor.u32 %v2961_v46, %v2959_v56  ;;  %v1605_v38 = vadd.f32 %v1568_v60, %v15764_v58  ;;  %v11365_v0 = vpop.f32.mrb[135].mxu0  ;;  %v2721_v56 = vld [vmem:[#allocation2 + $0x90] sm:$0xf]  ;;  %vm15776_vm8 = vmmov %vm15762_vm1 }
 0x206   : > { %11459 = vmatmul.mubr.msk.bf16.gmra.mrb[156].mxu0 %vm15763_vm9, %v2960_v27  ;;  %v2632_v49 = vld [vmem:[#allocation2 + $0x74] sm:$0xe]  ;;  %v2673_v37 = vshrl.u32 %v10744_v41, 16  ;;  %v2028_v39 = vadd.f32 %v1989_v12, %v1604_v31  ;;  %v2967_v42 = vrot.slane %v2965_v6, 1  ;;  %v2676_v21 = vshll.u32 %v10744_v41, 16 }
 0x207   : > { %v10745_v34 = vpack.c.bf16 %v2102_v2, %v2102_v2  ;;  %v2633_v55 = vsel %vm13309_vm2, %v2613_v9, %v2632_v49  ;;  %v2029_v63 = vadd.f32 %v1992_v16, %v1605_v38  ;;  %v2696_v12 = vld [vmem:[#allocation2 + $0x8c] sm:$0xf]  ;;  %vm15766_vm2 = vmmov %vm15760_vm6  ;;  %v2666_v2 = vshll.u32 %v13758_v13, 16 }
 0x208   : > { %2634 = vst [vmem:[#allocation2 + $0x74] sm:$0xe] %v2633_v55  ;;  %v2675_v47 = vrot.slane %v2673_v37, 7  ;;  %v2069_v24 = vadd.f32 %v13649_v40, %v2028_v39  ;;  %v2968_v11 = vsel %vm15765_vm7, %v2963_v20, %v2967_v42  ;;  %v2969_v4 = vshrl.u32 %v13772_v54, 16  ;;  %v2725_v20 = vld [vmem:[#allocation2 + $0x98] sm:$0x1] }
 0x209   : > { %v2682_v61 = vshrl.u32 %v10745_v34, 16  ;;  %v2685_v9 = vshll.u32 %v10745_v34, 16  ;;  %11462 = vmatprep.mubr.msk.bf16.mxu0 %vm15766_vm2, %v2968_v11  ;;  %v2070_v48 = vadd.f32 %v13649_v40, %v2029_v63  ;;  %v10141_v26 = vrot.slane %v10745_v34, 11 }
 0x20a   : > { %v2657_v1 = vld [vmem:[#allocation2 + $0x84] sm:$0xc]  ;;  %v2678_v17 = vor.u32 %v2676_v21, %v2675_v47  ;;  %v2103_v59 = vmax.f32 %v2069_v24, 0.0  ;;  %v2680_v32 = vrot.slane %v2675_v47, 4  ;;  %v2971_v6 = vor.u32 %v2969_v4, %v2967_v42 }
 0x20b   : > { %v2658_v33 = vsel %vm13407_vm3, 0, %v2657_v1  ;;  %v2684_v51 = vrot.slane %v2682_v61, 7  ;;  %v2639_v3 = vld [vmem:[#allocation2 + $0x7c] sm:$0x6]  ;;  %vm15767_vm3 = vmmov %vm15758_vm14  ;;  %v2104_v23 = vmax.f32 %v2070_v48, 0.0  ;;  %vm15781_vm9 = vcmask 1043456  }
 0x20c   : > { %2659 = vst [vmem:[#allocation2 + $0x84] sm:$0xc] %v2658_v33  ;;  %v2640_v5 = vsel %vm13355_vm11, 0, %v2639_v3  ;;  %v2679_v16 = vsel %vm13537_vm13, %v10138_v35, %v2678_v17  ;;  %v10746_v50 = vpack.c.bf16 %v2103_v59, %v2103_v59  ;;  %vm15768_vm11 = vnez %v15734_v62 }
 0x20d   : > { %v2687_v53 = vor.u32 %v2685_v9, %v2684_v51  ;;  %2641 = vst [vmem:[#allocation2 + $0x7c] sm:$0x6] %v2640_v5  ;;  %2695 = vst.msk [vmem:[#allocation2 + $0x88] sm:$0xf] %vm15767_vm3, %v2679_v16  ;;  %v10747_v46 = vpack.c.bf16 %v2104_v23, %v2104_v23  ;;  %v15779_v16 = vld [vmem:[#allocation13_spill] sm:$0xff] }
 0x20e   : > { %v2712_v29 = vrot.slane %v10746_v50, 7  ;;  %v13856_v50 = vld [vmem:[#allocation2 + $0x10] sm:$0xff]   ;;  %v13862_v23 = vld [vmem:[#allocation2 + $0x20] sm:$0xff]  }
 0x20f   : > { %v2688_v30 = vsel %vm13537_vm13, %v2680_v32, %v2687_v53  ;;  %v13800_v41 = vld [vmem:[#allocation2 + $0x70] sm:$0xff]   ;;  %v2715_v27 = vrot.slane %v10747_v46, 7  ;;  %vm15769_vm13 = vmmov %vm15767_vm3  ;;  %v3540_v32 = vsel %vm15781_vm9, %v13727_v10, 0  ;;  %v13852_v53 = vld [vmem:[#allocation2 + $0x8] sm:$0xff]   ;;  %vm15787_vm3 = vcmask 1045504  }
 0x210   : > { %v2697_v40 = vsel %vm13432_vm10, %v2688_v30, %v2696_v12  ;;  %v2713_v31 = vsel %vm15768_vm11, %v10141_v26, %v2712_v29  ;;  %v2714_v22 = vrot.slane %v2712_v29, 4  ;;  %v2973_v28 = vshll.u32 %v13800_v41, 16  ;;  %vm15770_vm10 = vmmov %vm15762_vm1  ;;  %v13864_v30 = vld [vmem:[#allocation2 + $0x28] sm:$0xff]   ;;  %v13866_v26 = vld [vmem:[#allocation2 + $0x30] sm:$0xff]  }
 0x211   : > { %2698 = vst [vmem:[#allocation2 + $0x8c] sm:$0xf] %v2697_v40  ;;  %v2722_v36 = vsel %vm13425_vm0, %v2713_v31, %v2721_v56  ;;  %v2717_v37 = vrot.slane %v2715_v27, 4  ;;  %vm15771_vm0 = vmmov %vm15766_vm2  ;;  %v13860_v56 = vld [vmem:[#allocation2 + $0x18] sm:$0xff]   ;;  %v13870_v40 = vld [vmem:[#allocation2 + $0x40] sm:$0xff]   ;;  %v4721_v31 = vrot.slane %v13862_v23, 2 }
 0x212   : > { %2723 = vst [vmem:[#allocation2 + $0x90] sm:$0xf] %v2722_v36  ;;  %v2716_v13 = vsel %vm15768_vm11, %v2714_v22, %v2715_v27  ;;  %v2975_v34 = vrot.slane %v2973_v28, 1  ;;  %vm15777_vm6 = vmmov %vm15771_vm0  ;;  %v13868_v10 = vld [vmem:[#allocation2 + $0x38] sm:$0xff]   ;;  %v13872_v29 = vld [vmem:[#allocation2 + $0x48] sm:$0xff]   ;;  %v15652_v4 = vrot.slane %v13860_v56, 2 }
 0x213   : > { %v2692_v60 = vld [vmem:[#allocation2 + $0x84] sm:$0x8]  ;;  %2724 = vst.msk [vmem:[#allocation2 + $0x94] sm:$0xf] %vm15769_vm13, %v2716_v13  ;;  %v2726_v38 = vsel %vm13224_vm12, %v2717_v37, %v2725_v20  ;;  %vm15772_vm12 = vmmov %vm15762_vm1  ;;  %v13874_v46 = vld [vmem:[#allocation2 + $0x50] sm:$0xff]   ;;  %v4723_v22 = vrot.slane %v13864_v30, 2 }
 0x214   : > { %v2693_v49 = vsel %vm13483_vm5, %v2666_v2, %v2692_v60  ;;  %v2650_v58 = vld [vmem:[#allocation2 + $0x7c] sm:$0xc]  ;;  %v2976_v55 = vsel %vm15770_vm10, %v2971_v6, %v2975_v34  ;;  %2727 = vst [vmem:[#allocation2 + $0x98] sm:$0x1] %v2726_v38  ;;  %v13832_v61 = vld [vmem:[#allocation2 + $0x88] sm:$0xf]  ;;  %vm15778_vm14 = vmmov %vm15771_vm0  ;;  %v13896_v13 = vsel %vm15787_vm3, %v15652_v4, %v4721_v31 }
 0x215   : > { %2694 = vst [vmem:[#allocation2 + $0x84] sm:$0x8] %v2693_v49  ;;  %v2651_v8 = vsel %vm15736_vm15, %v13729_v57, %v2650_v58  ;;  %11463 = vmatmul.mubr.msk.bf16.gmra.mrb[160].mxu0 %vm15771_vm0, %v2976_v55  ;;  %v2977_v57 = vshrl.u32 %v13800_v41, 16  ;;  %vm15775_vm15 = vmmov %vm15771_vm0  ;;  %v13876_v2 = vld [vmem:[#allocation2 + $0x58] sm:$0xff]   ;;  %v13881_v27 = vld [vmem:[#allocation2 + $0x60] sm:$0xff]   ;;  %v4725_v36 = vrot.slane %v13866_v26, 2 }
 0x216   : > { %2652 = vst [vmem:[#allocation2 + $0x7c] sm:$0xc] %v2651_v8  ;;  %vm15782_vm7 = vmmov %vm15771_vm0  ;;  %v13883_v28 = vld [vmem:[#allocation2 + $0x68] sm:$0xff]   ;;  %v13885_v60 = vld [vmem:[#allocation2 + $0x70] sm:$0xff]   ;;  %v4727_v20 = vrot.slane %v13868_v10, 2  ;;  %v4731_v58 = vrot.slane %v13872_v29, 2 }
 0x217   : > { %v2979_v21 = vor.u32 %v2977_v57, %v2975_v34  ;;  %vm15783_vm2 = vmmov %vm15771_vm0  ;;  %15784 = vst [vmem:[#allocation14_spill] sm:$0xff] %v13885_v60  ;;  %v4729_v34 = vrot.slane %v13870_v40, 2  ;;  %v13903_v8 = vld [vmem:[#allocation2 + $0x18] sm:$0xff]  }
 0x218   : > { %v2699_v62 = vld [vmem:[#allocation2 + $0x8c] sm:$0x8]  ;;  %15788 = vst [vmem:[#allocation11_spill] sm:$0xff] %v13896_v13  ;;  %vm15789_vm11 = vmmov %vm15787_vm3 }
 0x219   : > { %v2700_v39 = vsel %vm13483_vm5, 0, %v2699_v62  ;;  %vm15774_vm5 = vmmov %vm15762_vm1  ;;  %v13899_v37 = vsel %vm15789_vm11, %v4721_v31, %v4723_v22 }
 0x21a   : > { %2701 = vst [vmem:[#allocation2 + $0x8c] sm:$0x8] %v2700_v39  ;;  %vm15780_vm1 = vmmov %vm15771_vm0 }
 0x21b   : > { %v2728_v0 = vld [vmem:[#allocation2 + $0x98] sm:$0x3]  ;;  %15790 = vst [vmem:[#allocation12_spill] sm:$0xff] %v13899_v37  ;;  %vm15791_vm13 = vmmov %vm15771_vm0 }
 0x21c   : > { %v13823_v42 = vld [vmem:[#allocation2 + $0x80] sm:$0xff]   ;;  %v2729_v14 = vsel %vm13498_vm4, 0, %v2728_v0  ;;  %vm15773_vm4 = vmmov %vm15771_vm0  ;;  %v14017_v37 = vld [vmem:[#allocation2 + $0x58] sm:$0xff]  }
 0x21d   : > { %v13825_v35 = vld [vmem:[#allocation2 + $0x78] sm:$0xff]   ;;  %v2989_v52 = vshll.u32 %v13823_v42, 16  ;;  %2730 = vst [vmem:[#allocation2 + $0x98] sm:$0x3] %v2729_v14  ;;  %v2993_v17 = vshrl.u32 %v13823_v42, 16  ;;  %v13891_v49 = vld [vmem:[#allocation2 + $0x80] sm:$0xff]   ;;  %vm15794_vm10 = vmmov %vm15787_vm3 }
 0x21e   : > { %v2981_v47 = vshll.u32 %v13825_v35, 16  ;;  %v2985_v24 = vshrl.u32 %v13825_v35, 16  ;;  %v13889_v6 = vld [vmem:[#allocation2 + $0x78] sm:$0xff]   ;;  %15786 = vst [vmem:[#allocation10_spill] sm:$0xff] %v13891_v49  ;;  %v13912_v62 = vsel %vm15794_vm10, %v4723_v22, %v4725_v36  ;;  %vm15796_vm0 = vmmov %vm15787_vm3  ;;  %v13917_v0 = vld [vmem:[#allocation2 + $0x20] sm:$0xff]  }
 0x21f   : > { %v2991_v63 = vrot.slane %v2989_v52, 1  ;;  %15785 = vst [vmem:[#allocation9_spill] sm:$0xff] %v13889_v6  ;;  %15795 = vst [vmem:[#allocation16_spill] sm:$0xff] %v13912_v62  ;;  %v13915_v39 = vsel %vm15796_vm0, %v4725_v36, %v4727_v20  ;;  %v13924_v52 = vld [vmem:[%s15605_s3 + $0xc] sm:$0xf]  ;;  %v13926_v14 = vld [vmem:[#allocation2 + $0x90] sm:$0xff]  }
 0x220   : > { %v2983_v1 = vrot.slane %v2981_v47, 1  ;;  %15797 = vst [vmem:[#allocation17_spill] sm:$0xff] %v13915_v39  ;;  %15799 = vst [vmem:[#allocation18_spill] sm:$0xff] %v13926_v14 }
 0x221   : > { %v2768_v18 = vld [vmem:[#allocation2 + $0x8c] sm:$0xf]  ;;  %v2995_v12 = vor.u32 %v2993_v17, %v2991_v63  ;;  %v4743_v17 = vrot.slane %v13889_v6, 2  ;;  %vm15819_vm3 = vmmov %vm15796_vm0 }
 0x222   : > { %v13836_v11 = vcombine.low %v13832_v61, %v2768_v18  ;;  %v2984_v33 = vsel %vm15772_vm12, %v2979_v21, %v2983_v1  ;;  %v2987_v19 = vor.u32 %v2985_v24, %v2983_v1  ;;  %v13907_v38 = vld [vmem:[#allocation2 + $0x88] sm:$0xff]   ;;  %vm15798_vm12 = vmmov %vm15780_vm1  ;;  %v4733_v21 = vrot.slane %v13874_v46, 2 }
 0x223   : > { %11466 = vmatprep.mubr.msk.bf16.mxu0 %vm15773_vm4, %v2984_v33  ;;  %15792 = vst [vmem:[#allocation13_spill] sm:$0xff] %v13907_v38  ;;  %vm15800_vm4 = vmmov %vm15796_vm0  ;;  %v4735_v18 = vrot.slane %v13876_v2, 2  ;;  %v4737_v1 = vrot.slane %v13881_v27, 2  ;;  %v4739_v24 = vrot.slane %v13883_v28, 2 }
 0x224   : > { %v2997_v51 = vshll.u32 %v13836_v11, 16  ;;  %v2992_v9 = vsel %vm15774_vm5, %v2987_v19, %v2991_v63  ;;  %v3001_v48 = vshrl.u32 %v13836_v11, 16  ;;  %v13909_v55 = vld [vmem:[#allocation2 + $0x98] ss:$0 sps:$4 sm:$0x11]   ;;  %v13929_v57 = vsel %vm15800_vm4, %v4727_v20, %v4729_v34  ;;  %vm15802_vm5 = vmmov %vm15796_vm0  ;;  %v13976_v20 = vld [vmem:[#allocation2 + $0x28] sm:$0xff]  }
 0x225   : > { %11467 = vmatmul.mubr.msk.bf16.gmra.mrb[164].mxu0 %vm15775_vm15, %v2992_v9  ;;  %15793 = vst [vmem:[#allocation15_spill] sm:$0xff] %v13909_v55  ;;  %15801 = vst [vmem:[#allocation19_spill] sm:$0xff] %v13929_v57  ;;  %v13932_v47 = vsel %vm15802_vm5, %v4729_v34, %v4731_v58  ;;  %v4741_v63 = vrot.slane %v13885_v60, 2  ;;  %v5007_v34 = vld [vmem:[#allocation2 + $0x10] sm:$0xc] }
 0x226   : > { %v2999_v3 = vrot.slane %v2997_v51, 1  ;;  %15803 = vst [vmem:[#allocation20_spill] sm:$0xff] %v13932_v47  ;;  %vm15804_vm15 = vmmov %vm15781_vm9  ;;  %v4745_v51 = vrot.slane %v13891_v49, 2  ;;  %vm15666_vm4 = vsmask.f32 5376  ;;  %v14012_v47 = vld [vmem:[#allocation2 + $0x48] sm:$0xff]  }
 0x227   : > { %vm15813_vm9 = vmmov %vm15796_vm0  ;;  %v14014_v57 = vld [vmem:[#allocation2 + $0x50] sm:$0xff]   ;;  %v3444_v60 = vld [vmem:[#allocation2] sm:$0xe] }
 0x228   : > { %v3000_v59 = vsel %vm15776_vm8, %v2995_v12, %v2999_v3  ;;  %v3003_v5 = vor.u32 %v3001_v48, %v2999_v3  ;;  %vm15805_vm8 = vmmov %vm15796_vm0  ;;  %v13956_v3 = vsel %vm15813_vm9, %v4739_v24, %v4741_v63 }
 0x229   : > { %11470 = vmatprep.mubr.msk.bf16.mxu0 %vm15777_vm6, %v3000_v59  ;;  %v13942_v33 = vsel %vm15805_vm8, %v4731_v58, %v4733_v21  ;;  %vm15807_vm6 = vmmov %vm15796_vm0  ;;  %15814 = vst [vmem:[#allocation25_spill] sm:$0xff] %v13956_v3  ;;  %v4747_v59 = vrot.slane %v13907_v38, 2  ;;  %v5008_v58 = vld [vmem:[#allocation2 + $0x14] sm:$0xf] }
 0x22a   : > { %15806 = vst [vmem:[#allocation21_spill] sm:$0xff] %v13942_v33  ;;  %v13945_v19 = vsel %vm15807_vm6, %v4733_v21, %v4735_v18  ;;  %vm15821_vm11 = vmmov %vm15796_vm0  ;;  %v13982_v21 = vcombine.low %v5007_v34, %v5008_v58 }
 0x22b   : > { %15808 = vst [vmem:[#allocation22_spill] sm:$0xff] %v13945_v19  ;;  %v13968_v31 = vsel %vm15819_vm3, %v4745_v51, %v4747_v59  ;;  %vm15825_vm10 = vmmov %vm15798_vm12 }
 0x22c   : > { %15820 = vst [vmem:[#allocation28_spill] sm:$0xff] %v13968_v31  ;;  %15827 = vst [vmem:[#allocation31_spill] sm:$0xff] %v13982_v21 }
 0x22d   : > { %11471 = vmatmul.mubr.msk.bf16.gmra.mrb[168].mxu0 %vm15778_vm14, %v3003_v5  ;;  %vm15809_vm14 = vmmov %vm15796_vm0 }
 0x22e   : > { %11476 = vmatprep.mubr.msk.bf16.mxu0 %vm15780_vm1, %v15779_v16  ;;  %v13950_v9 = vsel %vm15809_vm14, %v4735_v18, %v4737_v1  ;;  %vm15811_vm1 = vmmov %vm15796_vm0  ;;  %v4749_v16 = vrot.slane %v13926_v14, 2  ;;  %v13984_v18 = vld [vmem:[#allocation2 + $0x18] sm:$0xff]  }
 0x22f   : > { %15810 = vst [vmem:[#allocation23_spill] sm:$0xff] %v13950_v9  ;;  %v13953_v12 = vsel %vm15811_vm1, %v4737_v1, %v4739_v24  ;;  %v13986_v1 = vld [vmem:[#allocation2 + $0x20] sm:$0xff]   ;;  %v13988_v24 = vld [vmem:[#allocation2 + $0x28] sm:$0xff]   ;;  %v5449_v34 = vshll.u32 %v13984_v18, 16  ;;  %v14081_v14 = vld [vmem:[#allocation2 + $0x98] sm:$0xff]  }
 0x230   : > { %15812 = vst [vmem:[#allocation24_spill] sm:$0xff] %v13953_v12  ;;  %v13971_v22 = vsel %vm15821_vm11, %v4747_v59, %v4749_v16  ;;  %v5446_v59 = vshrl.u32 %v13984_v18, 16  ;;  %v5455_v58 = vshrl.u32 %v13986_v1, 16  ;;  %v5458_v4 = vshll.u32 %v13986_v1, 16 }
 0x231   : > { %15822 = vst [vmem:[#allocation29_spill] sm:$0xff] %v13971_v22 }
 0x232   : > { %v5448_v31 = vrot.slane %v5446_v59, 2  ;;  %v5457_v3 = vrot.slane %v5455_v58, 2 }
 0x235   : > { %11477 = vmatmul.mubr.msk.bf16.vlgmr.msra.gmra.mrb[172].mxu0 %vm15782_vm7, %v13852_v53  ;;  %vm15815_vm7 = vmmov %vm15796_vm0 }
 0x236   : > { %11480 = vmatprep.mubr.msk.bf16.mxu0 %vm15783_vm2, %v13856_v50  ;;  %11513 = vmatpush3.bf16.msra.mxu0 %v3540_v32  ;;  %v13960_v48 = vsel %vm15815_vm7, %v4741_v63, %v4743_v17  ;;  %vm15817_vm2 = vmmov %vm15796_vm0  ;;  %v4751_v32 = vrot.slane %v13909_v55, 2  ;;  %v13990_v63 = vld [vmem:[#allocation2 + $0x30] sm:$0xff]   ;;  %v5521_v55 = vshll.u32 %v14017_v37, 16  ;;  %vm15668_vm7 = vcmask 1044480  }
 0x237   : > { %12367 = vmatprep.subr.msk.bf16.mxu0 %vm15804_vm15, %v13924_v52  ;;  %15816 = vst [vmem:[#allocation26_spill] sm:$0xff] %v13960_v48  ;;  %v13963_v5 = vsel %vm15817_vm2, %v4743_v17, %v4745_v51  ;;  %v5438_v17 = vshrl.u32 %v13982_v21, 16  ;;  %v13993_v51 = vld [vmem:[#allocation2 + $0x38] sm:$0xff]   ;;  %v5451_v48 = vrot.slane %v5449_v34, 3  ;;  %v5473_v12 = vshrl.u32 %v13990_v63, 16 }
 0x238   : > { %15818 = vst [vmem:[#allocation27_spill] sm:$0xff] %v13963_v5  ;;  %v5467_v5 = vshll.u32 %v13988_v24, 16  ;;  %v5476_v33 = vshll.u32 %v13990_v63, 16 }
 0x239   : > { %v5475_v39 = vrot.slane %v5473_v12, 2 }
 0x23a   : > { %v5469_v19 = vrot.slane %v5467_v5, 3 }
 0x23d   : > { %11481 = vmatmul.mubr.msk.bf16.gmra.mrb[140].mxu0 %vm15791_vm13, %v13903_v8  ;;  %vm15823_vm13 = vmmov %vm15796_vm0 }
 0x23e   : > { %11484 = vmatprep.mubr.msk.bf16.mxu0 %vm15798_vm12, %v13917_v0  ;;  %v13974_v36 = vsel %vm15823_vm13, %v4749_v16, %v4751_v32  ;;  %vm15826_vm0 = vmmov %vm15825_vm10  ;;  %v14001_v16 = vld [vmem:[#allocation2 + $0x38] sm:$0xff]   ;;  %v5440_v32 = vrot.slane %v5438_v17, 2  ;;  %vm15853_vm13 = vcmask 1046528  }
 0x23f   : > { %15824 = vst [vmem:[#allocation30_spill] sm:$0xff] %v13974_v36  ;;  %vm15828_vm12 = vmmov %vm15826_vm0  ;;  %v14006_v36 = vld [vmem:[#allocation2 + $0x40] sm:$0xff]   ;;  %v5482_v62 = vshrl.u32 %v14001_v16, 16  ;;  %v5485_v58 = vshll.u32 %v14001_v16, 16 }
 0x240   : > { %vm15829_vm5 = vmmov %vm15826_vm0 }
 0x241   : > { %vm15832_vm15 = vmmov %vm15826_vm0 }
 0x242   : > { %vm15834_vm8 = vmmov %vm15826_vm0 }
 0x243   : > { %vm15839_vm6 = vmmov %vm15826_vm0 }
 0x244   : > { %vm15841_vm14 = vmmov %vm15826_vm0 }
 0x245   : > { %11485 = vmatmul.mubr.msk.bf16.gmra.mrb[144].mxu0 %vm15825_vm10, %v13976_v20  ;;  %vm15845_vm1 = vmmov %vm15826_vm0 }
 0x246   : > { %11488 = vmatprep.mubr.msk.bf16.mxu0 %vm15826_vm0, %v13623_v44  ;;  %v5441_v44 = vshll.u32 %v13982_v21, 16  ;;  %v5464_v21 = vshrl.u32 %v13988_v24, 16  ;;  %vm15847_vm9 = vmmov %vm15826_vm0 }
 0x247   : > { %vm15848_vm2 = vmmov %vm15826_vm0 }
 0x248   : > { %v5443_v22 = vrot.slane %v5441_v44, 3  ;;  %v5466_v9 = vrot.slane %v5464_v21, 2  ;;  %v5452_v44 = vor.u32 %v5451_v48, %v5448_v31  ;;  %v14035_v48 = vld [vmem:[#allocation2 + $0x60] sm:$0xff]   ;;  %vm15849_vm3 = vmmov %vm15826_vm0 }
 0x249   : > { %vm15852_vm11 = vmmov %vm15826_vm0 }
 0x24a   : > { %v5444_v17 = vor.u32 %v5443_v22, %v5440_v32  ;;  %v5470_v34 = vor.u32 %v5469_v19, %v5466_v9  ;;  %v5491_v22 = vshrl.u32 %v14006_v36, 16  ;;  %v5484_v32 = vrot.slane %v5482_v62, 2  ;;  %vm15854_vm10 = vmmov %vm15826_vm0 }
 0x24b   : > { %v5487_v19 = vrot.slane %v5485_v58, 3  ;;  %v5503_v62 = vshll.u32 %v14012_v47, 16  ;;  %vm15855_vm0 = vcmask 1043456  }
 0x24c   : > { %v14022_v5 = vsel %vm15666_vm4, %v5444_v17, %v5452_v44  ;;  %v5493_v9 = vrot.slane %v5491_v22, 2  ;;  %v5509_v17 = vshrl.u32 %v14014_v57, 16 }
 0x24d   : > { %11489 = vmatmul.mubr.msk.bf16.gmra.mrb[148].mxu0 %vm15828_vm12, %v13993_v51  ;;  %15830 = vst [vmem:[#allocation32_spill] sm:$0xff] %v14022_v5  ;;  %vm15856_vm12 = vmmov %vm15853_vm13 }
 0x24e   : > { %11492 = vmatprep.mubr.msk.bf16.mxu0 %vm15829_vm5, %v13640_v15  ;;  %v5460_v15 = vrot.slane %v5458_v4, 3  ;;  %v5478_v4 = vrot.slane %v5476_v33, 3  ;;  %vm15857_vm5 = vmmov %vm15845_vm1 }
 0x250   : > { %v5461_v59 = vor.u32 %v5460_v15, %v5457_v3  ;;  %v5494_v3 = vshll.u32 %v14006_v36, 16  ;;  %v5479_v33 = vor.u32 %v5478_v4, %v5475_v39  ;;  %v5500_v15 = vshrl.u32 %v14012_v47, 16 }
 0x251   : > { %v5488_v39 = vor.u32 %v5487_v19, %v5484_v32  ;;  %v5518_v4 = vshrl.u32 %v14017_v37, 16 }
 0x252   : > { %v14025_v21 = vsel %vm15666_vm4, %v5452_v44, %v5461_v59  ;;  %v14031_v12 = vsel %vm15666_vm4, %v5461_v59, %v5470_v34  ;;  %v5496_v31 = vrot.slane %v5494_v3, 3  ;;  %v14040_v44 = vld [vmem:[#allocation2 + $0x68] sm:$0xff]   ;;  %v5512_v59 = vshll.u32 %v14014_v57, 16 }
 0x253   : > { %15831 = vst [vmem:[#allocation33_spill] sm:$0xff] %v14025_v21  ;;  %15833 = vst [vmem:[#allocation34_spill] sm:$0xff] %v14031_v12  ;;  %v5502_v22 = vrot.slane %v5500_v15, 2  ;;  %v5505_v3 = vrot.slane %v5503_v62, 3  ;;  %v5511_v12 = vrot.slane %v5509_v17, 2  ;;  %v14050_v21 = vsel %vm15666_vm4, %v5479_v33, %v5488_v39 }
 0x254   : > { %v5497_v58 = vor.u32 %v5496_v31, %v5493_v9  ;;  %15836 = vst [vmem:[#allocation36_spill] sm:$0xff] %v14050_v21  ;;  %v5514_v5 = vrot.slane %v5512_v59, 3  ;;  %v5520_v13 = vrot.slane %v5518_v4, 2  ;;  %v5530_v9 = vshll.u32 %v14035_v48, 16  ;;  %v14060_v31 = vld [vmem:[#allocation2 + $0x80] sm:$0xff]  }
 0x255   : > { %11493 = vmatmul.mubr.msk.bf16.gmra.mrb[176].mxu0 %vm15832_vm15, %v13653_v43  ;;  %v14043_v43 = vsel %vm15666_vm4, %v5470_v34, %v5479_v33  ;;  %v14053_v34 = vld [vmem:[#allocation2 + $0x78] sm:$0xff]   ;;  %v5506_v19 = vor.u32 %v5505_v3, %v5502_v22  ;;  %v5523_v62 = vrot.slane %v5521_v55, 3  ;;  %v5536_v33 = vshrl.u32 %v14040_v44, 16  ;;  %v14070_v22 = vld [vmem:[#allocation2 + $0x88] sm:$0xff]   ;;  %vm15858_vm15 = vmmov %vm15856_vm12 }
 0x256   : > { %11496 = vmatprep.mubr.msk.bf16.mxu0 %vm15834_vm8, %v13686_v45  ;;  %15835 = vst [vmem:[#allocation35_spill] sm:$0xff] %v14043_v43  ;;  %v14047_v45 = vld [vmem:[#allocation2 + $0x70] sm:$0xff]   ;;  %v14056_v32 = vsel %vm15666_vm4, %v5488_v39, %v5497_v58  ;;  %v5527_v43 = vshrl.u32 %v14035_v48, 16  ;;  %v5515_v15 = vor.u32 %v5514_v5, %v5511_v12  ;;  %v5539_v17 = vshll.u32 %v14040_v44, 16  ;;  %vm15859_vm8 = vmmov %vm15845_vm1 }
 0x257   : > { %15837 = vst [vmem:[#allocation37_spill] sm:$0xff] %v14056_v32  ;;  %v14065_v59 = vsel %vm15666_vm4, %v5497_v58, %v5506_v19  ;;  %v5532_v21 = vrot.slane %v5530_v9, 3  ;;  %v5545_v39 = vshrl.u32 %v14047_v45, 16  ;;  %v5524_v55 = vor.u32 %v5523_v62, %v5520_v13  ;;  %v14077_v58 = vld [vmem:[#allocation2 + $0x90] sm:$0xff]  }
 0x258   : > { %15838 = vst [vmem:[#allocation38_spill] sm:$0xff] %v14065_v59  ;;  %v5529_v4 = vrot.slane %v5527_v43, 2  ;;  %v14073_v3 = vsel %vm15666_vm4, %v5506_v19, %v5515_v15  ;;  %v5538_v5 = vrot.slane %v5536_v33, 2  ;;  %v5541_v12 = vrot.slane %v5539_v17, 3 }
 0x259   : > { %15840 = vst [vmem:[#allocation39_spill] sm:$0xff] %v14073_v3  ;;  %v5547_v9 = vrot.slane %v5545_v39, 2  ;;  %v5548_v59 = vshll.u32 %v14047_v45, 16  ;;  %v5554_v32 = vshrl.u32 %v14053_v34, 16  ;;  %v14084_v38 = vsel %vm15666_vm4, %v5515_v15, %v5524_v55 }
 0x25a   : > { %v5533_v43 = vor.u32 %v5532_v21, %v5529_v4  ;;  %15842 = vst [vmem:[#allocation40_spill] sm:$0xff] %v14084_v38  ;;  %v5542_v19 = vor.u32 %v5541_v12, %v5538_v5  ;;  %v5557_v13 = vshll.u32 %v14053_v34, 16  ;;  %v5563_v62 = vshrl.u32 %v14060_v31, 16 }
 0x25b   : > { %v5550_v17 = vrot.slane %v5548_v59, 3  ;;  %v5556_v21 = vrot.slane %v5554_v32, 2  ;;  %v5566_v4 = vshll.u32 %v14060_v31, 16  ;;  %v5572_v15 = vshrl.u32 %v14070_v22, 16 }
 0x25c   : > { %v14089_v33 = vsel %vm15666_vm4, %v5524_v55, %v5533_v43  ;;  %v14093_v39 = vsel %vm15666_vm4, %v5533_v43, %v5542_v19  ;;  %v5559_v3 = vrot.slane %v5557_v13, 3  ;;  %v5565_v49 = vrot.slane %v5563_v62, 2 }
 0x25d   : > { %11497 = vmatmul.mubr.msk.bf16.gmra.mrb[180].mxu0 %vm15839_vm6, %v13731_v7  ;;  %15843 = vst [vmem:[#allocation41_spill] sm:$0xff] %v14089_v33  ;;  %15844 = vst [vmem:[#allocation42_spill] sm:$0xff] %v14093_v39  ;;  %v5551_v38 = vor.u32 %v5550_v17, %v5547_v9  ;;  %v5568_v5 = vrot.slane %v5566_v4, 3  ;;  %v5575_v12 = vshll.u32 %v14070_v22, 16  ;;  %v5581_v6 = vshrl.u32 %v14077_v58, 16 }
 0x25e   : > { %11500 = vmatprep.mubr.msk.bf16.mxu0 %vm15841_vm14, %v13755_v25  ;;  %v5560_v55 = vor.u32 %v5559_v3, %v5556_v21  ;;  %v5574_v33 = vrot.slane %v5572_v15, 2  ;;  %v5584_v32 = vshll.u32 %v14077_v58, 16  ;;  %v5590_v59 = vshrl.u32 %v14081_v14, 16  ;;  %v12660_v21 = vld [vmem:[#allocation2 + $0x4] sm:$0xf]  ;;  %vm15860_vm6 = vmmov %vm15856_vm12 }
 0x25f   : > { %v14101_v43 = vsel %vm15666_vm4, %v5542_v19, %v5551_v38  ;;  %v5569_v13 = vor.u32 %v5568_v5, %v5565_v49  ;;  %v5577_v62 = vrot.slane %v5575_v12, 3  ;;  %v5583_v39 = vrot.slane %v5581_v6, 2  ;;  %vm15861_vm14 = vmmov %vm15845_vm1 }
 0x260   : > { %v14106_v9 = vsel %vm15666_vm4, %v5551_v38, %v5560_v55  ;;  %v5586_v17 = vrot.slane %v5584_v32, 3  ;;  %v5592_v4 = vrot.slane %v5590_v59, 2  ;;  %v5593_v3 = vshll.u32 %v14081_v14, 16 }
 0x261   : > { %15846 = vst [vmem:[#allocation43_spill] sm:$0xff] %v14106_v9  ;;  %v10199_v15 = vcombine.low %v3444_v60, %v12660_v21  ;;  %v14112_v19 = vsel %vm15666_vm4, %v5560_v55, %v5569_v13  ;;  %v5578_v49 = vor.u32 %v5577_v62, %v5574_v33  ;;  %v15665_v38 = vrot.slane %v13984_v18, 3 }
 0x262   : > { %v5587_v6 = vor.u32 %v5586_v17, %v5583_v39  ;;  %v5595_v5 = vrot.slane %v5593_v3, 3  ;;  %v5871_v9 = vrot.slane %v13986_v1, 3  ;;  %v5873_v60 = vrot.slane %v13988_v24, 3 }
 0x263   : > { %v14115_v12 = vsel %vm15666_vm4, %v5569_v13, %v5578_v49  ;;  %v3450_v21 = vrot.slane %v10199_v15, 1  ;;  %v5875_v33 = vrot.slane %v13990_v63, 3  ;;  %v5877_v39 = vrot.slane %v14001_v16, 3 }
 0x264   : > { %v14119_v32 = vsel %vm15666_vm4, %v5578_v49, %v5587_v6  ;;  %v14121_v59 = vor.u32 %v5595_v5, %v5592_v4  ;;  %v14134_v13 = vsel %vm15668_vm7, %v15665_v38, %v5871_v9  ;;  %v14137_v62 = vsel %vm15668_vm7, %v5871_v9, %v5873_v60  ;;  %v14150_v4 = vld [vmem:[#allocation2 + $0xa0] ss:$0 sps:$4 sm:$0x33]  }
 0x265   : > { %11501 = vmatmul.mubr.msk.bf16.gmra.mrb[160].mxu0 %vm15845_vm1, %v13772_v54  ;;  %v5879_v1 = vrot.slane %v14006_v36, 3  ;;  %v3451_v24 = vrot.slane %v13852_v53, 1  ;;  %v14142_v63 = vsel %vm15668_vm7, %v5873_v60, %v5875_v33  ;;  %v14145_v16 = vsel %vm15668_vm7, %v5875_v33, %v5877_v39  ;;  %v2766_v60 = vld [vmem:[#allocation2 + $0x8c] sm:$0x7]  ;;  %vm15862_vm1 = vmmov %vm15860_vm6 }
 0x266   : > { %11504 = vmatprep.mubr.msk.bf16.mxu0 %vm15847_vm9, %v13800_v41  ;;  %v14129_v55 = vsel %vm15666_vm4, %v5587_v6, %v14121_v59  ;;  %v5881_v17 = vrot.slane %v14012_v47, 3  ;;  %v5883_v36 = vrot.slane %v14014_v57, 3  ;;  %v5885_v53 = vrot.slane %v14017_v37, 3  ;;  %vm15863_vm9 = vmmov %vm15848_vm2 }
 0x267   : > { %v14153_v9 = vsel %vm15668_vm7, %v5877_v39, %v5879_v1  ;;  %v5887_v3 = vrot.slane %v14035_v48, 3  ;;  %v5889_v47 = vrot.slane %v14040_v44, 3  ;;  %v5891_v49 = vrot.slane %v14047_v45, 3 }
 0x268   : > { %v14161_v15 = vsel %vm15668_vm7, %v5879_v1, %v5881_v17  ;;  %v5893_v6 = vrot.slane %v14053_v34, 3  ;;  %v14167_v5 = vsel %vm15668_vm7, %v5881_v17, %v5883_v36  ;;  %v14170_v57 = vsel %vm15668_vm7, %v5883_v36, %v5885_v53 }
 0x269   : > { %v14173_v37 = vsel %vm15668_vm7, %v5885_v53, %v5887_v3  ;;  %v5895_v48 = vrot.slane %v14060_v31, 3  ;;  %v14177_v33 = vsel %vm15668_vm7, %v5887_v3, %v5889_v47  ;;  %v14180_v44 = vsel %vm15668_vm7, %v5889_v47, %v5891_v49 }
 0x26a   : > { %v14183_v45 = vsel %vm15668_vm7, %v5891_v49, %v5893_v6  ;;  %v5897_v34 = vrot.slane %v14070_v22, 3  ;;  %v5899_v1 = vrot.slane %v14077_v58, 3  ;;  %v5901_v17 = vrot.slane %v14081_v14, 3 }
 0x26b   : > { %v14187_v39 = vsel %vm15668_vm7, %v5893_v6, %v5895_v48  ;;  %v5903_v31 = vrot.slane %v14150_v4, 3  ;;  %v10179_v53 = vcombine.low %v13832_v61, %v2766_v60  ;;  %v3452_v14 = vsel %vm15853_vm13, %v3450_v21, %v3451_v24  ;;  %vm15867_vm13 = vmmov %vm15862_vm1 }
 0x26c   : > { %v14193_v36 = vsel %vm15668_vm7, %v5895_v48, %v5897_v34  ;;  %v14197_v3 = vsel %vm15668_vm7, %v5897_v34, %v5899_v1  ;;  %v14200_v47 = vsel %vm15668_vm7, %v5899_v1, %v5901_v17  ;;  %v3453_v58 = vrot.slane %v13856_v50, 1  ;;  %v10255_v1 = vld [vmem:[%s15605_s3 + $0x10] sm:$0xf] }
 0x26d   : > { %11505 = vmatmul.mubr.msk.bf16.gmra.mrb[164].mxu0 %vm15848_vm2, %v13825_v35  ;;  %15850 = vst [vmem:[#allocation44_spill] sm:$0xff] %v14200_v47  ;;  %v14203_v22 = vsel %vm15668_vm7, %v5901_v17, %v5903_v31  ;;  %v3455_v49 = vrot.slane %v13903_v8, 1  ;;  %v3957_v61 = vsel %vm15855_vm0, %v13924_v52, 0  ;;  %v3457_v21 = vrot.slane %v13917_v0, 1  ;;  %v12661_v52 = vld [vmem:[#allocation2 + $0x30] sm:$0xff]   ;;  %vm15864_vm2 = vmmov %vm15855_vm0 }
 0x26e   : > { %11508 = vmatprep.mubr.msk.bf16.mxu0 %vm15849_vm3, %v13823_v42  ;;  %15851 = vst [vmem:[#allocation45_spill] sm:$0xff] %v14203_v22  ;;  %v3454_v6 = vsel %vm15856_vm12, %v3451_v24, %v3453_v58  ;;  %v3459_v60 = vrot.slane %v13976_v20, 1  ;;  %v3461_v24 = vrot.slane %v12661_v52, 1  ;;  %v3463_v34 = vrot.slane %v13993_v51, 1  ;;  %vm15865_vm3 = vmmov %vm15862_vm1  ;;  %v12662_v51 = vld [vmem:[#allocation2 + $0x40] sm:$0xff]  }
 0x26f   : > { %v3456_v48 = vsel %vm15858_vm15, %v3453_v58, %v3455_v49  ;;  %v3458_v50 = vsel %vm15860_vm6, %v3455_v49, %v3457_v21  ;;  %v3465_v58 = vrot.slane %v12662_v51, 1  ;;  %v12663_v49 = vld [vmem:[#allocation2 + $0x48] sm:$0xff]   ;;  %vm15869_vm0 = vmmov %vm15862_vm1  ;;  %v3483_v51 = vrot.slane %v13836_v11, 1 }
 0x270   : > { %v3460_v8 = vsel %vm15862_vm1, %v3457_v21, %v3459_v60  ;;  %v3462_v0 = vsel %vm15865_vm3, %v3459_v60, %v3461_v24  ;;  %v3464_v31 = vsel %vm15867_vm13, %v3461_v24, %v3463_v34  ;;  %vm15870_vm12 = vmmov %vm15857_vm5  ;;  %v12664_v21 = vld [vmem:[#allocation2 + $0x50] sm:$0xff]   ;;  %v3473_v24 = vrot.slane %v13755_v25, 1 }
 0x271   : > { %vm15872_vm15 = vmmov %vm15859_vm8  ;;  %v3469_v60 = vrot.slane %v12664_v21, 1  ;;  %v4325_v22 = vshrl.u32 %v13864_v30, 16 }
 0x272   : > { %vm15874_vm6 = vmmov %vm15863_vm9 }
 0x273   : > { %vm15876_vm1 = vmmov %vm15874_vm6 }
 0x274   : > { %vm15879_vm3 = vmmov %vm15869_vm0 }
 0x275   : > { %11509 = vmatmul.mubr.msk.bf16.gmra.mrb[184].mxu0 %vm15852_vm11, %v10179_v53  ;;  %vm15866_vm11 = vmmov %vm15857_vm5 }
 0x276   : > { %11514 = vmatprep.mubr.msk.bf16.mxu0 %vm15854_vm10, %v3452_v14  ;;  %vm15868_vm10 = vmmov %vm15857_vm5 }
 0x277   : > { %vm15881_vm13 = vmmov %vm15869_vm0 }
 0x27d   : > { %11515 = vmatmul.mubr.msk.bf16.vlgmr.msra.gmra.mrb[188].mxu0 %vm15857_vm5, %v3454_v6  ;;  %v3466_v6 = vsel %vm15869_vm0, %v3463_v34, %v3465_v58  ;;  %vm15871_vm5 = vmmov %vm15869_vm0  ;;  %v3475_v34 = vrot.slane %v13772_v54, 1  ;;  %v3481_v54 = vrot.slane %v13823_v42, 1  ;;  %v12494_v42 = vld [vmem:[#allocation2 + $0x20] sm:$0xff]  }
 0x27e   : > { %11518 = vmatprep.mubr.msk.bf16.mxu0 %vm15859_vm8, %v3456_v48  ;;  %11551 = vmatpush3.bf16.msra.mxu0 %v3957_v61  ;;  %v3467_v61 = vrot.slane %v12663_v49, 1  ;;  %vm15873_vm8 = vmmov %vm15869_vm0  ;;  %v12492_v49 = vld [vmem:[#allocation2 + $0x10] sm:$0xff]  }
 0x27f   : > { %12368 = vmatprep.subr.msk.bf16.mxu0 %vm15864_vm2, %v10255_v1  ;;  %vm15878_vm2 = vmmov %vm15876_vm1 }
 0x280   : > { %v3468_v48 = vsel %vm15871_vm5, %v3465_v58, %v3467_v61  ;;  %vm15884_vm5 = vmmov %vm15869_vm0 }
 0x285   : > { %11519 = vmatmul.mubr.msk.bf16.gmra.mrb[140].mxu0 %vm15861_vm14, %v3458_v50  ;;  %v3471_v50 = vrot.slane %v13731_v7, 1  ;;  %vm15875_vm14 = vmmov %vm15869_vm0  ;;  %v3477_v7 = vrot.slane %v13800_v41, 1 }
 0x286   : > { %11522 = vmatprep.mubr.msk.bf16.mxu0 %vm15863_vm9, %v3460_v8  ;;  %v3470_v8 = vsel %vm15873_vm8, %v3467_v61, %v3469_v60  ;;  %vm15877_vm9 = vmmov %vm15869_vm0  ;;  %v3868_v61 = vrot.slane %v12492_v49, 1 }
 0x287   : > { %v3472_v52 = vsel %vm15875_vm14, %v3469_v60, %v3471_v50  ;;  %vm15886_vm8 = vmmov %vm15869_vm0  ;;  %v3872_v60 = vrot.slane %v12494_v42, 1 }
 0x288   : > { %v3484_v41 = vsel %vm15886_vm8, %v3481_v54, %v3483_v51  ;;  %vm15888_vm14 = vmmov %vm15876_vm1 }
 0x28d   : > { %11523 = vmatmul.mubr.msk.bf16.gmra.mrb[144].mxu0 %vm15866_vm11, %v3462_v0  ;;  %v3476_v0 = vsel %vm15879_vm3, %v3473_v24, %v3475_v34  ;;  %vm15880_vm11 = vmmov %vm15876_vm1 }
 0x28e   : > { %v11440_v17 = vpop.f32.mrb[136].mxu0  ;;  %11526 = vmatprep.mubr.msk.bf16.mxu0 %vm15868_vm10, %v3464_v31  ;;  %v3479_v31 = vrot.slane %v13825_v35, 1  ;;  %vm15882_vm10 = vmmov %vm15876_vm1  ;;  %v12491_v35 = vld [vmem:[#allocation2 + $0x8] sm:$0xfe]  }
 0x28f   : > { %v14228_v20 = vpop.f32.mrb[137].mxu0  ;;  %v3474_v17 = vsel %vm15877_vm9, %v3471_v50, %v3473_v24  ;;  %vm15890_vm9 = vmmov %vm15878_vm2 }
 0x290   : > { %v11441_v53 = vpop.f32.mrb[138].mxu0  ;;  %v3480_v25 = vsel %vm15869_vm0, %v3477_v7, %v3479_v31  ;;  %v3482_v58 = vsel %vm15884_vm5, %v3479_v31, %v3481_v54  ;;  %vm15892_vm3 = vmmov %vm15869_vm0  ;;  %v12497_v54 = vld [vmem:[#allocation2 + $0x38] sm:$0xff]  }
 0x291   : > { %v14233_v14 = vpop.f32.mrb[139].mxu0  ;;  %v3478_v53 = vsel %vm15881_vm13, %v3475_v34, %v3477_v7  ;;  %vm15894_vm13 = vmmov %vm15869_vm0  ;;  %v12496_v34 = vld [vmem:[#allocation2 + $0x30] sm:$0xff]  }
 0x292   : > { %v3876_v31 = vrot.slane %v12496_v34, 1  ;;  %vm15897_vm5 = vmmov %vm15869_vm0  ;;  %v12501_v34 = vld [vmem:[#allocation2 + $0x58] sm:$0xff]  }
 0x295   : > { %11527 = vmatmul.mubr.msk.bf16.gmra.mrb[148].mxu0 %vm15870_vm12, %v3466_v6  ;;  %vm15883_vm12 = vmmov %vm15876_vm1  ;;  %v3867_v6 = vrot.slane %v12491_v35, 1  ;;  %v14281_v35 = vld [vmem:[%s15605_s3 + $0x14] sm:$0xf] }
 0x296   : > { %11530 = vmatprep.mubr.msk.bf16.mxu0 %vm15872_vm15, %v3468_v48  ;;  %vm15885_vm15 = vmmov %vm15876_vm1  ;;  %v12493_v48 = vld [vmem:[#allocation2 + $0x18] sm:$0xff]  }
 0x297   : > { %v3870_v11 = vrot.slane %v12493_v48, 1  ;;  %v12500_v48 = vld [vmem:[#allocation2 + $0x50] sm:$0xff]  }
 0x299   : > { %v3873_v24 = vsel %vm15894_vm13, %v3870_v11, %v3872_v60 }
 0x29d   : > { %11531 = vmatmul.mubr.msk.bf16.gmra.mrb[192].mxu0 %vm15874_vm6, %v3470_v8  ;;  %vm15887_vm6 = vmmov %vm15876_vm1  ;;  %v3871_v8 = vsel %vm15892_vm3, %v3868_v61, %v3870_v11 }
 0x29e   : > { %11534 = vmatprep.mubr.msk.bf16.mxu0 %vm15876_vm1, %v3472_v52  ;;  %vm15889_vm1 = vmmov %vm15869_vm0  ;;  %v12495_v52 = vld [vmem:[#allocation2 + $0x28] sm:$0xff]  }
 0x29f   : > { %v3869_v21 = vsel %vm15889_vm1, %v3867_v6, %v3868_v61  ;;  %vm15902_vm1 = vmmov %vm15869_vm0 }
 0x2a0   : > { %vm15904_vm3 = vmmov %vm15890_vm9 }
 0x2a1   : > { %vm15906_vm13 = vmmov %vm15904_vm3 }
 0x2a5   : > { %11535 = vmatmul.mubr.msk.bf16.gmra.mrb[196].mxu0 %vm15878_vm2, %v3474_v17  ;;  %vm15891_vm2 = vcmask 1043456  }
 0x2a6   : > { %11538 = vmatprep.mubr.msk.bf16.mxu0 %vm15880_vm11, %v3476_v0  ;;  %v4510_v50 = vsel %vm15891_vm2, %v10255_v1, 0  ;;  %vm15893_vm11 = vmmov %vm15887_vm6  ;;  %v3874_v0 = vrot.slane %v12495_v52, 1 }
 0x2a7   : > { %vm15899_vm8 = vmmov %vm15891_vm2 }
 0x2a8   : > { %v3875_v1 = vsel %vm15869_vm0, %v3872_v60, %v3874_v0  ;;  %vm15903_vm2 = vmmov %vm15869_vm0 }
 0x2ad   : > { %11539 = vmatmul.mubr.msk.bf16.gmra.mrb[160].mxu0 %vm15882_vm10, %v3478_v53  ;;  %vm15895_vm10 = vmmov %vm15887_vm6 }
 0x2ae   : > { %11542 = vmatprep.mubr.msk.bf16.mxu0 %vm15883_vm12, %v3480_v25  ;;  %vm15896_vm12 = vmmov %vm15887_vm6 }
 0x2b5   : > { %11543 = vmatmul.mubr.msk.bf16.gmra.mrb[164].mxu0 %vm15885_vm15, %v3482_v58  ;;  %v12498_v58 = vld [vmem:[#allocation2 + $0x40] sm:$0xff]   ;;  %vm15898_vm15 = vmmov %vm15887_vm6 }
 0x2b6   : > { %11546 = vmatprep.mubr.msk.bf16.mxu0 %vm15887_vm6, %v3484_v41  ;;  %v3878_v41 = vrot.slane %v12497_v54, 1  ;;  %v3880_v49 = vrot.slane %v12498_v58, 1  ;;  %vm15900_vm6 = vmmov %vm15869_vm0  ;;  %v12503_v54 = vld [vmem:[#allocation2 + $0x68] sm:$0xff]   ;;  %v12504_v58 = vld [vmem:[#allocation2 + $0x70] sm:$0xff]  }
 0x2b8   : > { %v3879_v61 = vsel %vm15900_vm6, %v3876_v31, %v3878_v41  ;;  %v3881_v6 = vsel %vm15902_vm1, %v3878_v41, %v3880_v49  ;;  %v3890_v41 = vrot.slane %v12503_v54, 1  ;;  %vm15913_vm6 = vmmov %vm15902_vm1 }
 0x2bd   : > { %11547 = vmatmul.mubr.msk.bf16.gmra.mrb[200].mxu0 %vm15888_vm14, %v3483_v51  ;;  %v3877_v51 = vsel %vm15897_vm5, %v3874_v0, %v3876_v31  ;;  %vm15901_vm14 = vmmov %vm15890_vm9  ;;  %v3886_v31 = vrot.slane %v12501_v34, 1 }
 0x2be   : > { %11552 = vmatprep.mubr.msk.bf16.mxu0 %vm15890_vm9, %v3869_v21  ;;  %v12499_v21 = vld [vmem:[#allocation2 + $0x48] sm:$0xff]  }
 0x2bf   : > { %v3882_v52 = vrot.slane %v12499_v21, 1  ;;  %v12506_v21 = vld [vmem:[#allocation2 + $0x80] sm:$0xff]  }
 0x2c5   : > { %11553 = vmatmul.mubr.msk.bf16.vlgmr.msra.gmra.mrb[204].mxu0 %vm15893_vm11, %v3871_v8  ;;  %vm15905_vm11 = vmmov %vm15869_vm0 }
 0x2c6   : > { %11556 = vmatprep.mubr.msk.bf16.mxu0 %vm15895_vm10, %v3873_v24  ;;  %11589 = vmatpush3.bf16.msra.mxu0 %v4510_v50  ;;  %v3884_v50 = vrot.slane %v12500_v48, 1  ;;  %v3883_v24 = vsel %vm15903_vm2, %v3880_v49, %v3882_v52  ;;  %vm15907_vm10 = vmmov %vm15869_vm0  ;;  %v3892_v49 = vrot.slane %v12504_v58, 1 }
 0x2c7   : > { %12369 = vmatprep.subr.msk.bf16.mxu0 %vm15899_vm8, %v14281_v35  ;;  %vm15908_vm0 = vmmov %vm15904_vm3 }
 0x2c8   : > { %v3885_v0 = vsel %vm15905_vm11, %v3882_v52, %v3884_v50  ;;  %vm15910_vm5 = vmmov %vm15908_vm0  ;;  %v3893_v48 = vsel %vm15913_vm6, %v3890_v41, %v3892_v49  ;;  %v12507_v52 = vld [vmem:[#allocation2 + $0x88] sm:$0xff]  }
 0x2c9   : > { %vm15912_vm8 = vmmov %vm15908_vm0 }
 0x2ca   : > { %v14270_v17 = vpop.f32.mrb[152].mxu0  ;;  %vm15916_vm2 = vmmov %vm15902_vm1 }
 0x2cb   : > { %v3159_v7 = vpop.f32.mrb[153].mxu0  ;;  %vm15918_vm11 = vmmov %vm15902_vm1 }
 0x2cc   : > { %v14272_v53 = vpop.f32.mrb[154].mxu0  ;;  %v12502_v7 = vld [vmem:[#allocation2 + $0x60] sm:$0xff]   ;;  %vm15924_vm6 = vmmov %vm15908_vm0 }
 0x2cd   : > { %v3161_v25 = vpop.f32.mrb[155].mxu0  ;;  %11557 = vmatmul.mubr.msk.bf16.gmra.mrb[140].mxu0 %vm15896_vm12, %v3875_v1  ;;  %v3887_v1 = vsel %vm15907_vm10, %v3884_v50, %v3886_v31  ;;  %vm15909_vm12 = vmmov %vm15902_vm1  ;;  %v3896_v50 = vrot.slane %v12506_v21, 1 }
 0x2ce   : > { %11560 = vmatprep.mubr.msk.bf16.mxu0 %vm15898_vm15, %v3877_v51  ;;  %v3888_v25 = vrot.slane %v12502_v7, 1  ;;  %vm15911_vm15 = vmmov %vm15902_vm1  ;;  %v4156_v7 = vld [vmem:[#allocation2 + $0x8] sm:$0xe] }
 0x2cf   : > { %vm15920_vm10 = vmmov %vm15902_vm1 }
 0x2d0   : > { %v3889_v51 = vsel %vm15909_vm12, %v3886_v31, %v3888_v25  ;;  %v12508_v31 = vld [vmem:[#allocation2 + $0x90] sm:$0xff]   ;;  %vm15667_vm12 = vsmask.f32 6400 }
 0x2d1   : > { %v3900_v58 = vrot.slane %v12508_v31, 1 }
 0x2d5   : > { %11561 = vmatmul.mubr.msk.bf16.gmra.mrb[144].mxu0 %vm15901_vm14, %v3879_v61  ;;  %v3891_v61 = vsel %vm15911_vm15, %v3888_v25, %v3890_v41  ;;  %vm15914_vm14 = vmmov %vm15908_vm0 }
 0x2d6   : > { %11564 = vmatprep.mubr.msk.bf16.mxu0 %vm15890_vm9, %v3881_v6  ;;  %v12505_v6 = vld [vmem:[#allocation2 + $0x78] sm:$0xff]   ;;  %vm15915_vm9 = vmmov %vm15908_vm0 }
 0x2d7   : > { %vm15922_vm15 = vmmov %vm15908_vm0 }
 0x2d9   : > { %v14289_v42 = vpop.f32.mrb[156].mxu0 }
 0x2da   : > { %v3173_v11 = vpop.f32.mrb[157].mxu0 }
 0x2db   : > { %v14291_v60 = vpop.f32.mrb[158].mxu0  ;;  %v3894_v11 = vrot.slane %v12505_v6, 1 }
 0x2dc   : > { %v3175_v8 = vpop.f32.mrb[159].mxu0 }
 0x2dd   : > { %11565 = vmatmul.mubr.msk.bf16.gmra.mrb[148].mxu0 %vm15904_vm3, %v3883_v24  ;;  %v3895_v8 = vsel %vm15902_vm1, %v3892_v49, %v3894_v11  ;;  %v14306_v24 = vld [vmem:[#allocation2 + $0xc] sm:$0xf]  ;;  %v3897_v34 = vsel %vm15916_vm2, %v3894_v11, %v3896_v50  ;;  %vm15917_vm3 = vmmov %vm15908_vm0 }
 0x2de   : > { %11568 = vmatprep.mubr.msk.bf16.mxu0 %vm15906_vm13, %v3885_v0  ;;  %v14310_v0 = vld [vmem:[#allocation2 + $0x10] sm:$0xff]   ;;  %v10256_v25 = vcombine.low %v4156_v7, %v14306_v24  ;;  %vm15919_vm13 = vmmov %vm15908_vm0  ;;  %v4310_v7 = vshll.u32 %v13860_v56, 16 }
 0x2df   : > { %v4298_v54 = vshrl.u32 %v14310_v0, 16  ;;  %vm15926_vm1 = vmmov %vm15908_vm0 }
 0x2e0   : > { %v4290_v41 = vshrl.u32 %v10256_v25, 16  ;;  %v4293_v49 = vshll.u32 %v10256_v25, 16 }
 0x2e2   : > { %v4292_v11 = vrot.slane %v4290_v41, 1  ;;  %v4312_v41 = vrot.slane %v4310_v7, 2 }
 0x2e5   : > { %11569 = vmatmul.mubr.msk.bf16.gmra.mrb[208].mxu0 %vm15908_vm0, %v3887_v1  ;;  %v3898_v1 = vrot.slane %v12507_v52, 1 }
 0x2e6   : > { %11572 = vmatprep.mubr.msk.bf16.mxu0 %vm15910_vm5, %v3889_v51  ;;  %v4301_v51 = vshll.u32 %v14310_v0, 16  ;;  %vm15921_vm5 = vmmov %vm15908_vm0 }
 0x2e7   : > { %v3901_v6 = vsel %vm15920_vm10, %v3898_v1, %v3900_v58  ;;  %vm15932_vm10 = vmmov %vm15908_vm0 }
 0x2e8   : > { %v4303_v21 = vrot.slane %v4301_v51, 2 }
 0x2ed   : > { %11573 = vmatmul.mubr.msk.bf16.gmra.mrb[212].mxu0 %vm15912_vm8, %v3891_v61  ;;  %v3899_v61 = vsel %vm15918_vm11, %v3896_v50, %v3898_v1  ;;  %v4316_v50 = vshrl.u32 %v13862_v23, 16  ;;  %vm15923_vm8 = vcmask 1043456   ;;  %vm15930_vm11 = vmmov %vm15908_vm0 }
 0x2ee   : > { %11576 = vmatprep.mubr.msk.bf16.mxu0 %vm15914_vm14, %v3893_v48  ;;  %v4300_v48 = vrot.slane %v4298_v54, 1  ;;  %vm15925_vm14 = vmmov %vm15908_vm0 }
 0x2ef   : > { %vm15928_vm2 = vmmov %vm15923_vm8 }
 0x2f0   : > { %v4304_v25 = vor.u32 %v4303_v21, %v4300_v48 }
 0x2f5   : > { %11577 = vmatmul.mubr.msk.bf16.gmra.mrb[160].mxu0 %vm15915_vm9, %v3895_v8  ;;  %v4295_v8 = vrot.slane %v4293_v49, 2  ;;  %vm15927_vm9 = vmmov %vm15908_vm0 }
 0x2f6   : > { %11580 = vmatprep.mubr.msk.bf16.mxu0 %vm15917_vm3, %v3897_v34  ;;  %v4307_v34 = vshrl.u32 %v13860_v56, 16  ;;  %vm15929_vm3 = vmmov %vm15908_vm0 }
 0x2f7   : > { %v4296_v54 = vor.u32 %v4295_v8, %v4292_v11  ;;  %v4334_v11 = vshrl.u32 %v13866_v26, 16  ;;  %v4337_v8 = vshll.u32 %v13866_v26, 16 }
 0x2f8   : > { %v4309_v51 = vrot.slane %v4307_v34, 1 }
 0x2f9   : > { %v4305_v49 = vsel %vm15667_vm12, %v4296_v54, %v4304_v25  ;;  %v4336_v26 = vrot.slane %v4334_v11, 1 }
 0x2fa   : > { %v4313_v21 = vor.u32 %v4312_v41, %v4309_v51 }
 0x2fc   : > { %v4314_v54 = vsel %vm15667_vm12, %v4304_v25, %v4313_v21 }
 0x2fd   : > { %11581 = vmatmul.mubr.msk.bf16.gmra.mrb[164].mxu0 %vm15919_vm13, %v3899_v61  ;;  %v4319_v61 = vshll.u32 %v13862_v23, 16  ;;  %v4328_v23 = vshll.u32 %v13864_v30, 16  ;;  %v4327_v30 = vrot.slane %v4325_v22, 1  ;;  %v4355_v22 = vshll.u32 %v13870_v40, 16  ;;  %vm15931_vm13 = vmmov %vm15908_vm0 }
 0x2fe   : > { %11584 = vmatprep.mubr.msk.bf16.mxu0 %vm15908_vm0, %v3901_v6  ;;  %v4318_v6 = vrot.slane %v4316_v50, 1  ;;  %v4808_v50 = vsel %vm15923_vm8, %v14281_v35, 0  ;;  %v4346_v35 = vshll.u32 %v13868_v10, 16  ;;  %vm15938_vm8 = vmmov %vm15908_vm0 }
 0x2ff   : > { %v4330_v51 = vrot.slane %v4328_v23, 2  ;;  %v4357_v11 = vrot.slane %v4355_v22, 2 }
 0x300   : > { %v11472_v52 = vpop.f32.mrb[168].mxu0  ;;  %v4348_v23 = vrot.slane %v4346_v35, 2  ;;  %v4391_v35 = vshll.u32 %v13881_v27, 16 }
 0x301   : > { %v14322_v31 = vpop.f32.mrb[169].mxu0  ;;  %v4321_v52 = vrot.slane %v4319_v61, 2 }
 0x302   : > { %v11473_v38 = vpop.f32.mrb[170].mxu0 }
 0x303   : > { %v14326_v1 = vpop.f32.mrb[171].mxu0  ;;  %v4322_v47 = vor.u32 %v4321_v52, %v4318_v6  ;;  %v4343_v6 = vshrl.u32 %v13868_v10, 16  ;;  %v4352_v52 = vshrl.u32 %v13870_v40, 16  ;;  %v4370_v10 = vshrl.u32 %v13874_v46, 16 }
 0x304   : > { %v4361_v40 = vshrl.u32 %v13872_v29, 16 }
 0x305   : > { %11585 = vmatmul.mubr.msk.bf16.gmra.mrb[216].mxu0 %vm15921_vm5, %v3900_v58  ;;  %v4323_v41 = vsel %vm15667_vm12, %v4313_v21, %v4322_v47  ;;  %vm15934_vm5 = vmmov %vm15908_vm0 }
 0x306   : > { %11590 = vmatprep.mubr.msk.bf16.mxu0 %vm15922_vm15, %v4305_v49  ;;  %v4339_v49 = vrot.slane %v4337_v8, 2  ;;  %vm15937_vm15 = vmmov %vm15908_vm0 }
 0x308   : > { %v11478_v48 = vpop.f32.mrb[172].mxu0 }
 0x309   : > { %v3309_v38 = vpop.f32.mrb[173].mxu0  ;;  %v4345_v48 = vrot.slane %v4343_v6, 1  ;;  %v4388_v6 = vshrl.u32 %v13881_v27, 16 }
 0x30a   : > { %v14336_v58 = vadd.f32 %v3309_v38, %v14228_v20  ;;  %v11479_v34 = vpop.f32.mrb[174].mxu0  ;;  %v4331_v20 = vor.u32 %v4330_v51, %v4327_v30  ;;  %v4354_v38 = vrot.slane %v4352_v52, 1  ;;  %v4372_v51 = vrot.slane %v4370_v10, 1 }
 0x30b   : > { %v3312_v7 = vpop.f32.mrb[175].mxu0  ;;  %v4349_v8 = vor.u32 %v4348_v23, %v4345_v48  ;;  %v4390_v23 = vrot.slane %v4388_v6, 1 }
 0x30c   : > { %v14341_v61 = vadd.f32 %v3312_v7, %v14233_v14  ;;  %v4340_v14 = vor.u32 %v4339_v49, %v4336_v26  ;;  %v4332_v25 = vsel %vm15667_vm12, %v4322_v47, %v4331_v20  ;;  %v4358_v34 = vor.u32 %v4357_v11, %v4354_v38 }
 0x30d   : > { %11591 = vmatmul.mubr.msk.bf16.vlgmr.msra.gmra.mrb[220].mxu0 %vm15924_vm6, %v4314_v54  ;;  %v4373_v7 = vshll.u32 %v13874_v46, 16  ;;  %v4364_v47 = vshll.u32 %v13872_v29, 16  ;;  %v4379_v26 = vshrl.u32 %v13876_v2, 16  ;;  %v4382_v49 = vshll.u32 %v13876_v2, 16  ;;  %vm15941_vm6 = vmmov %vm15908_vm0 }
 0x30e   : > { %11594 = vmatprep.mubr.msk.bf16.mxu0 %vm15925_vm14, %v4323_v41  ;;  %11627 = vmatpush3.bf16.msra.mxu0 %v4808_v50  ;;  %v4341_v21 = vsel %vm15667_vm12, %v4331_v20, %v4340_v14  ;;  %v14362_v50 = vld [vmem:[%s15605_s3 + $0x18] sm:$0xf]  ;;  %v4350_v54 = vsel %vm15667_vm12, %v4340_v14, %v4349_v8  ;;  %v4359_v30 = vsel %vm15667_vm12, %v4349_v8, %v4358_v34  ;;  %v4363_v41 = vrot.slane %v4361_v40, 1  ;;  %vm15942_vm14 = vmmov %vm15908_vm0 }
 0x30f   : > { %12370 = vmatprep.subr.msk.bf16.mxu0 %vm15928_vm2, %v14362_v50  ;;  %v4375_v46 = vrot.slane %v4373_v7, 2  ;;  %v4366_v29 = vrot.slane %v4364_v47, 2  ;;  %v4381_v22 = vrot.slane %v4379_v26, 1  ;;  %v4397_v11 = vshrl.u32 %v13883_v28, 16  ;;  %v15933_v7 = vld [vmem:[#allocation14_spill] sm:$0xff]  ;;  %vm15946_vm2 = vmmov %vm15908_vm0 }
 0x310   : > { %v4400_v8 = vshll.u32 %v13883_v28, 16  ;;  %v4406_v40 = vshrl.u32 %v15933_v7, 16  ;;  %v4409_v47 = vshll.u32 %v15933_v7, 16 }
 0x311   : > { %v4376_v20 = vor.u32 %v4375_v46, %v4372_v51  ;;  %v4367_v14 = vor.u32 %v4366_v29, %v4363_v41  ;;  %v4399_v41 = vrot.slane %v4397_v11, 1 }
 0x312   : > { %v4402_v29 = vrot.slane %v4400_v8, 2  ;;  %v4411_v26 = vrot.slane %v4409_v47, 2 }
 0x313   : > { %v4368_v52 = vsel %vm15667_vm12, %v4358_v34, %v4367_v14  ;;  %v4377_v48 = vsel %vm15667_vm12, %v4367_v14, %v4376_v20 }
 0x314   : > { %v4403_v6 = vor.u32 %v4402_v29, %v4399_v41  ;;  %v15940_v41 = vld [vmem:[#allocation18_spill] sm:$0xff] }
 0x315   : > { %11595 = vmatmul.mubr.msk.bf16.gmra.mrb[140].mxu0 %vm15926_vm1, %v4332_v25  ;;  %v4384_v25 = vrot.slane %v4382_v49, 2  ;;  %v4442_v29 = vshrl.u32 %v15940_v41, 16  ;;  %vm15944_vm1 = vmmov %vm15908_vm0 }
 0x316   : > { %11598 = vmatprep.mubr.msk.bf16.mxu0 %vm15927_vm9, %v4341_v21  ;;  %v4393_v21 = vrot.slane %v4391_v35, 2  ;;  %v15935_v35 = vld [vmem:[#allocation9_spill] sm:$0xff]  ;;  %vm15945_vm9 = vmmov %vm15908_vm0 }
 0x317   : > { %v4385_v2 = vor.u32 %v4384_v25, %v4381_v22  ;;  %v4415_v14 = vshrl.u32 %v15935_v35, 16  ;;  %v15936_v25 = vld [vmem:[#allocation10_spill] sm:$0xff] }
 0x318   : > { %v4394_v10 = vor.u32 %v4393_v21, %v4390_v23  ;;  %v4427_v23 = vshll.u32 %v15936_v25, 16 }
 0x319   : > { %v4386_v46 = vsel %vm15667_vm12, %v4376_v20, %v4385_v2  ;;  %v4417_v8 = vrot.slane %v4415_v14, 1 }
 0x31a   : > { %v4395_v28 = vsel %vm15667_vm12, %v4385_v2, %v4394_v10  ;;  %v4404_v11 = vsel %vm15667_vm12, %v4394_v10, %v4403_v6  ;;  %v4445_v10 = vshll.u32 %v15940_v41, 16 }
 0x31d   : > { %11599 = vmatmul.mubr.msk.bf16.gmra.mrb[144].mxu0 %vm15929_vm3, %v4350_v54  ;;  %vm15947_vm3 = vcmask 1045504  }
 0x31e   : > { %11602 = vmatprep.mubr.msk.bf16.mxu0 %vm15930_vm11, %v4359_v30  ;;  %vm15948_vm11 = vmmov %vm15908_vm0 }
 0x325   : > { %11603 = vmatmul.mubr.msk.bf16.gmra.mrb[148].mxu0 %vm15931_vm13, %v4368_v52  ;;  %vm15949_vm13 = vcmask 1043456  }
 0x326   : > { %11606 = vmatprep.mubr.msk.bf16.mxu0 %vm15932_vm10, %v4377_v48  ;;  %v4424_v48 = vshrl.u32 %v15936_v25, 16  ;;  %v15943_v25 = vld [vmem:[#allocation15_spill] sm:$0xff]  ;;  %vm15951_vm10 = vmmov %vm15947_vm3 }
 0x328   : > { %v11494_v38 = vpop.f32.mrb[176].mxu0  ;;  %v4426_v7 = vrot.slane %v4424_v48, 1  ;;  %v4451_v48 = vshll.u32 %v15943_v25, 16 }
 0x329   : > { %v14381_v27 = vadd.f32 %v11494_v38, %v14270_v17  ;;  %v3371_v34 = vpop.f32.mrb[177].mxu0  ;;  %v4408_v17 = vrot.slane %v4406_v40, 1  ;;  %v4429_v40 = vrot.slane %v4427_v23, 2  ;;  %v4709_v23 = vld [vmem:[#allocation2 + $0x8] sm:$0xc] }
 0x32a   : > { %v11495_v54 = vpop.f32.mrb[178].mxu0 }
 0x32b   : > { %v14386_v30 = vadd.f32 %v11495_v54, %v14272_v53  ;;  %v3373_v51 = vpop.f32.mrb[179].mxu0  ;;  %v4418_v53 = vshll.u32 %v15935_v35, 16  ;;  %v4412_v22 = vor.u32 %v4411_v26, %v4408_v17  ;;  %v15939_v54 = vld [vmem:[#allocation13_spill] sm:$0xff]  ;;  %v4447_v35 = vrot.slane %v4445_v10, 2 }
 0x32c   : > { %v4433_v51 = vshrl.u32 %v15939_v54, 16 }
 0x32d   : > { %11607 = vmatmul.mubr.msk.bf16.gmra.mrb[224].mxu0 %vm15908_vm0, %v4386_v46  ;;  %v4420_v34 = vrot.slane %v4418_v53, 2  ;;  %v4436_v46 = vshll.u32 %v15939_v54, 16 }
 0x32e   : > { %11610 = vmatprep.mubr.msk.bf16.mxu0 %vm15934_vm5, %v4395_v28  ;;  %v4435_v17 = vrot.slane %v4433_v51, 1  ;;  %vm15953_vm5 = vmmov %vm15908_vm0 }
 0x32f   : > { %v4421_v47 = vor.u32 %v4420_v34, %v4417_v8  ;;  %v4438_v26 = vrot.slane %v4436_v46, 2  ;;  %v4717_v34 = vrot.slane %v14310_v0, 2 }
 0x330   : > { %v11498_v49 = vpop.f32.mrb[180].mxu0 }
 0x331   : > { %v14395_v52 = vadd.f32 %v11498_v49, %v14289_v42  ;;  %v3385_v20 = vpop.f32.mrb[181].mxu0  ;;  %v4413_v42 = vsel %vm15667_vm12, %v4403_v6, %v4412_v22  ;;  %v4422_v28 = vsel %vm15667_vm12, %v4412_v22, %v4421_v47  ;;  %v4444_v6 = vrot.slane %v4442_v29, 1 }
 0x332   : > { %v11499_v21 = vpop.f32.mrb[182].mxu0  ;;  %v4439_v14 = vor.u32 %v4438_v26, %v4435_v17  ;;  %v15952_v17 = vld [vmem:[#allocation11_spill] sm:$0xff]  ;;  %v15954_v26 = vld [vmem:[#allocation12_spill] sm:$0xff] }
 0x333   : > { %v14400_v38 = vadd.f32 %v11499_v21, %v14291_v60  ;;  %v3387_v2 = vpop.f32.mrb[183].mxu0  ;;  %v4430_v60 = vor.u32 %v4429_v40, %v4426_v7  ;;  %v4448_v53 = vor.u32 %v4447_v35, %v4444_v6  ;;  %v10294_v21 = vcombine.low %v4709_v23, %v14306_v24  ;;  %v15965_v6 = vld [vmem:[#allocation21_spill] sm:$0xff]  ;;  %v15969_v23 = vld [vmem:[#allocation23_spill] sm:$0xff] }
 0x335   : > { %11611 = vmatmul.mubr.msk.bf16.gmra.mrb[228].mxu0 %vm15937_vm15, %v4404_v11  ;;  %v4431_v49 = vsel %vm15667_vm12, %v4421_v47, %v4430_v60  ;;  %v4440_v20 = vsel %vm15667_vm12, %v4430_v60, %v4439_v14  ;;  %v4449_v22 = vsel %vm15667_vm12, %v4439_v14, %v4448_v53  ;;  %v4453_v11 = vrot.slane %v4451_v48, 2  ;;  %vm15955_vm15 = vmmov %vm15908_vm0 }
 0x336   : > { %11614 = vmatprep.mubr.msk.bf16.mxu0 %vm15938_vm8, %v4413_v42  ;;  %v4716_v47 = vrot.slane %v10294_v21, 2  ;;  %vm15957_vm8 = vmmov %vm15908_vm0 }
 0x337   : > { %v4454_v51 = vsel %vm15667_vm12, %v4448_v53, %v4453_v11  ;;  %vm16100_vm12 = vsmask.f32 3338 }
 0x338   : > { %v4718_v46 = vsel %vm15947_vm3, %v4716_v47, %v4717_v34  ;;  %vm15968_vm3 = vmmov %vm15908_vm0  ;;  %v15976_v47 = vld [vmem:[#allocation27_spill] sm:$0xff] }
 0x33d   : > { %11615 = vmatmul.mubr.msk.bf16.gmra.mrb[160].mxu0 %vm15941_vm6, %v4422_v28  ;;  %vm15958_vm6 = vmmov %vm15949_vm13 }
 0x33e   : > { %11618 = vmatprep.mubr.msk.bf16.mxu0 %vm15942_vm14, %v4431_v49  ;;  %vm15960_vm14 = vmmov %vm15908_vm0  ;;  %v15963_v49 = vld [vmem:[#allocation20_spill] sm:$0xff] }
 0x345   : > { %11619 = vmatmul.mubr.msk.bf16.gmra.mrb[164].mxu0 %vm15944_vm1, %v4440_v20  ;;  %vm15962_vm1 = vmmov %vm15908_vm0 }
 0x346   : > { %11622 = vmatprep.mubr.msk.bf16.mxu0 %vm15945_vm9, %v4449_v22  ;;  %vm15964_vm9 = vmmov %vm15908_vm0  ;;  %v15967_v22 = vld [vmem:[#allocation22_spill] sm:$0xff] }
 0x348   : > { %v11510_v2 = vpop.f32.mrb[184].mxu0 }
 0x349   : > { %v3431_v8 = vpop.f32.mrb[185].mxu0 }
 0x34a   : > { %v3432_v42 = vadd.f32 %v3431_v8, %v14322_v31  ;;  %v11511_v7 = vpop.f32.mrb[186].mxu0  ;;  %v5231_v31 = vsel %vm15949_vm13, %v14362_v50, 0  ;;  %v15961_v50 = vld [vmem:[#allocation19_spill] sm:$0xff]  ;;  %vm15972_vm13 = vmmov %vm15908_vm0 }
 0x34b   : > { %v3434_v40 = vpop.f32.mrb[187].mxu0  ;;  %v15971_v7 = vld [vmem:[#allocation24_spill] sm:$0xff] }
 0x34c   : > { %v3435_v54 = vadd.f32 %v3434_v40, %v14326_v1  ;;  %v15950_v1 = vrot.slane %v13860_v56, 2  ;;  %v15959_v56 = vld [vmem:[#allocation17_spill] sm:$0xff]  ;;  %v15975_v40 = vld [vmem:[#allocation26_spill] sm:$0xff] }
 0x34d   : > { %11623 = vmatmul.mubr.msk.bf16.gmra.mrb[232].mxu0 %vm15946_vm2, %v4454_v51  ;;  %vm15966_vm2 = vmmov %vm15908_vm0  ;;  %v15980_v51 = vld [vmem:[#allocation29_spill] sm:$0xff] }
 0x34e   : > { %11628 = vmatprep.mubr.msk.bf16.mxu0 %vm15948_vm11, %v4718_v46  ;;  %v4720_v28 = vsel %vm15951_vm10, %v4717_v34, %v15950_v1  ;;  %vm15970_vm11 = vmmov %vm15908_vm0  ;;  %v15982_v1 = vld [vmem:[#allocation31_spill] sm:$0xff] }
 0x34f   : > { %vm15974_vm10 = vmmov %vm15908_vm0 }
 0x350   : > { %v11516_v24 = vpop.f32.mrb[188].mxu0 }
 0x351   : > { %v3576_v60 = vpop.f32.mrb[189].mxu0  ;;  %v12665_v24 = vld [vmem:[#allocation2 + $0x18] sm:$0xff]  }
 0x352   : > { %v3711_v41 = vadd.f32 %v3576_v60, %v14336_v58  ;;  %v11517_v0 = vpop.f32.mrb[190].mxu0  ;;  %v15956_v58 = vld [vmem:[#allocation16_spill] sm:$0xff]  ;;  %v5140_v60 = vrot.slane %v12665_v24, 2 }
 0x353   : > { %v3579_v29 = vpop.f32.mrb[191].mxu0 }
 0x354   : > { %v3712_v10 = vadd.f32 %v3579_v29, %v14341_v61  ;;  %v10351_v61 = vld [vmem:[%s15605_s3 + $0x1c] sm:$0xf] }
 0x355   : > { %11629 = vmatmul.mubr.msk.bf16.vlgmr.msra.gmra.mrb[236].mxu0 %vm15908_vm0, %v4720_v28  ;;  %v5139_v28 = vrot.slane %v15982_v1, 2 }
 0x356   : > { %11632 = vmatprep.mubr.msk.bf16.mxu0 %vm15953_vm5, %v15952_v17  ;;  %11665 = vmatpush3.bf16.msra.mxu0 %v5231_v31  ;;  %vm15977_vm5 = vmmov %vm15908_vm0 }
 0x357   : > { %12371 = vmatprep.subr.msk.bf16.mxu0 %vm15958_vm6, %v10351_v61  ;;  %vm15984_vm6 = vmmov %vm15908_vm0 }
 0x35d   : > { %11633 = vmatmul.mubr.msk.bf16.gmra.mrb[140].mxu0 %vm15955_vm15, %v15954_v26  ;;  %vm15979_vm15 = vmmov %vm15908_vm0  ;;  %v15983_v26 = vld [vmem:[#allocation30_spill] sm:$0xff] }
 0x35e   : > { %11636 = vmatprep.mubr.msk.bf16.mxu0 %vm15957_vm8, %v15956_v58  ;;  %vm15981_vm8 = vmmov %vm15908_vm0 }
 0x365   : > { %11637 = vmatmul.mubr.msk.bf16.gmra.mrb[144].mxu0 %vm15960_vm14, %v15959_v56  ;;  %vm15985_vm14 = vcmask 1045504  }
 0x366   : > { %11640 = vmatprep.mubr.msk.bf16.mxu0 %vm15962_vm1, %v15961_v50  ;;  %v5141_v58 = vsel %vm15985_vm14, %v5139_v28, %v5140_v60  ;;  %vm15986_vm1 = vmmov %vm15908_vm0  ;;  %v12666_v50 = vld [vmem:[#allocation2 + $0x20] sm:$0xff]  }
 0x367   : > { %v12674_v28 = vld [vmem:[#allocation2 + $0x60] sm:$0xff]  }
 0x36d   : > { %11641 = vmatmul.mubr.msk.bf16.gmra.mrb[148].mxu0 %vm15964_vm9, %v15963_v49  ;;  %v5142_v49 = vrot.slane %v12666_v50, 2  ;;  %vm15987_vm9 = vcmask 1043456  }
 0x36e   : > { %11644 = vmatprep.mubr.msk.bf16.mxu0 %vm15966_vm2, %v15965_v6  ;;  %vm15988_vm2 = vmmov %vm15985_vm14 }
 0x36f   : > { %vm15997_vm14 = vmmov %vm15908_vm0 }
 0x370   : > { %v11532_v35 = vpop.f32.mrb[192].mxu0 }
 0x371   : > { %v14454_v14 = vadd.f32 %v11532_v35, %v14381_v27  ;;  %v3638_v53 = vpop.f32.mrb[193].mxu0  ;;  %v12667_v35 = vld [vmem:[#allocation2 + $0x28] sm:$0xff]  }
 0x372   : > { %v11533_v20 = vpop.f32.mrb[194].mxu0 }
 0x373   : > { %v14457_v25 = vadd.f32 %v11533_v20, %v14386_v30  ;;  %v3640_v48 = vpop.f32.mrb[195].mxu0  ;;  %v15973_v30 = vld [vmem:[#allocation25_spill] sm:$0xff] }
 0x375   : > { %11645 = vmatmul.mubr.msk.bf16.gmra.mrb[240].mxu0 %vm15968_vm3, %v15967_v22  ;;  %vm15989_vm3 = vmmov %vm15908_vm0 }
 0x376   : > { %11648 = vmatprep.mubr.msk.bf16.mxu0 %vm15970_vm11, %v15969_v23  ;;  %v5143_v23 = vsel %vm15988_vm2, %v5140_v60, %v5142_v49  ;;  %vm15990_vm11 = vmmov %vm15988_vm2  ;;  %v12673_v60 = vld [vmem:[#allocation2 + $0x58] sm:$0xff]  }
 0x378   : > { %v11536_v21 = vpop.f32.mrb[196].mxu0 }
 0x379   : > { %v14464_v2 = vadd.f32 %v11536_v21, %v14395_v52  ;;  %v3652_v11 = vpop.f32.mrb[197].mxu0  ;;  %v15978_v52 = vld [vmem:[#allocation28_spill] sm:$0xff] }
 0x37a   : > { %v11537_v8 = vpop.f32.mrb[198].mxu0  ;;  %v12668_v11 = vld [vmem:[#allocation2 + $0x30] sm:$0xff]  }
 0x37b   : > { %v14467_v27 = vadd.f32 %v11537_v8, %v14400_v38  ;;  %v3654_v34 = vpop.f32.mrb[199].mxu0  ;;  %v5146_v8 = vrot.slane %v12668_v11, 2 }
 0x37c   : > { %v12669_v34 = vld [vmem:[#allocation2 + $0x38] sm:$0xff]  }
 0x37d   : > { %11649 = vmatmul.mubr.msk.bf16.gmra.mrb[244].mxu0 %vm15972_vm13, %v15971_v7  ;;  %vm15991_vm13 = vmmov %vm15908_vm0 }
 0x37e   : > { %11652 = vmatprep.mubr.msk.bf16.mxu0 %vm15974_vm10, %v15973_v30  ;;  %vm15992_vm10 = vmmov %vm15988_vm2 }
 0x385   : > { %11653 = vmatmul.mubr.msk.bf16.gmra.mrb[160].mxu0 %vm15908_vm0, %v15975_v40  ;;  %v14506_v40 = vld [vmem:[%s15605_s3 + $0x20] sm:$0xf] }
 0x386   : > { %11656 = vmatprep.mubr.msk.bf16.mxu0 %vm15977_vm5, %v15976_v47  ;;  %vm15993_vm5 = vmmov %vm15988_vm2  ;;  %v12671_v47 = vld [vmem:[#allocation2 + $0x48] sm:$0xff]  }
 0x38d   : > { %11657 = vmatmul.mubr.msk.bf16.gmra.mrb[164].mxu0 %vm15979_vm15, %v15978_v52  ;;  %vm15994_vm15 = vmmov %vm15908_vm0  ;;  %v5152_v52 = vrot.slane %v12671_v47, 2  ;;  %v12678_v47 = vld [vmem:[#allocation2 + $0x80] sm:$0xff]  }
 0x38e   : > { %11660 = vmatprep.mubr.msk.bf16.mxu0 %vm15981_vm8, %v15980_v51  ;;  %vm15995_vm8 = vmmov %vm15987_vm9 }
 0x390   : > { %v11548_v38 = vpop.f32.mrb[200].mxu0 }
 0x391   : > { %v3698_v46 = vpop.f32.mrb[201].mxu0 }
 0x392   : > { %v14481_v0 = vadd.f32 %v3698_v46, %v3432_v42  ;;  %v11549_v29 = vpop.f32.mrb[202].mxu0  ;;  %v5144_v42 = vrot.slane %v12667_v35, 2  ;;  %v12672_v46 = vld [vmem:[#allocation2 + $0x50] sm:$0xff]  }
 0x393   : > { %v3701_v31 = vpop.f32.mrb[203].mxu0  ;;  %v5154_v24 = vrot.slane %v12672_v46, 2  ;;  %v5156_v29 = vrot.slane %v12673_v60, 2  ;;  %v12681_v60 = vld [vmem:[#allocation2 + $0x90] sm:$0xff]  }
 0x394   : > { %v14484_v17 = vadd.f32 %v3701_v31, %v3435_v54  ;;  %v5662_v54 = vsel %vm15987_vm9, %v10351_v61, 0  ;;  %v5145_v21 = vsel %vm15990_vm11, %v5142_v49, %v5144_v42  ;;  %v5147_v7 = vsel %vm15992_vm10, %v5144_v42, %v5146_v8  ;;  %v12670_v61 = vld [vmem:[#allocation2 + $0x40] sm:$0xff]   ;;  %vm15999_vm9 = vmmov %vm15908_vm0  ;;  %v12675_v49 = vld [vmem:[#allocation2 + $0x68] sm:$0xff]  }
 0x395   : > { %11661 = vmatmul.mubr.msk.bf16.gmra.mrb[248].mxu0 %vm15984_vm6, %v15983_v26  ;;  %v5150_v30 = vrot.slane %v12670_v61, 2  ;;  %vm15996_vm6 = vmmov %vm15988_vm2  ;;  %v5158_v26 = vrot.slane %v12674_v28, 2 }
 0x396   : > { %11666 = vmatprep.mubr.msk.bf16.mxu0 %vm15986_vm1, %v5141_v58  ;;  %vm15998_vm1 = vmmov %vm15988_vm2 }
 0x397   : > { %v5153_v38 = vsel %vm15998_vm1, %v5150_v30, %v5152_v52  ;;  %vm16000_vm2 = vmmov %vm15998_vm1 }
 0x398   : > { %v11554_v56 = vpop.f32.mrb[204].mxu0  ;;  %v5155_v31 = vsel %vm16000_vm2, %v5152_v52, %v5154_v24  ;;  %vm16002_vm11 = vmmov %vm15998_vm1  ;;  %v5166_v52 = vrot.slane %v12678_v47, 2 }
 0x399   : > { %v3993_v6 = vpop.f32.mrb[205].mxu0  ;;  %v5157_v1 = vsel %vm16002_vm11, %v5154_v24, %v5156_v29  ;;  %vm16004_vm10 = vmmov %vm15998_vm1 }
 0x39a   : > { %v14490_v53 = vadd.f32 %v3993_v6, %v3711_v41  ;;  %v11555_v20 = vpop.f32.mrb[206].mxu0  ;;  %v5148_v41 = vrot.slane %v12669_v34, 2  ;;  %v5160_v6 = vrot.slane %v12675_v49, 2  ;;  %v12677_v34 = vld [vmem:[#allocation2 + $0x78] sm:$0xff]   ;;  %vm16014_vm11 = vmmov %vm15908_vm0 }
 0x39b   : > { %v3996_v48 = vpop.f32.mrb[207].mxu0 }
 0x39c   : > { %v14493_v22 = vadd.f32 %v3996_v48, %v3712_v10  ;;  %v5149_v10 = vsel %vm15993_vm5, %v5146_v8, %v5148_v41  ;;  %v5151_v51 = vsel %vm15996_vm6, %v5148_v41, %v5150_v30  ;;  %v5159_v48 = vsel %vm16004_vm10, %v5156_v29, %v5158_v26  ;;  %vm16005_vm5 = vmmov %vm15998_vm1 }
 0x39d   : > { %11667 = vmatmul.mubr.msk.bf16.vlgmr.msra.gmra.mrb[252].mxu0 %vm15989_vm3, %v5143_v23  ;;  %vm16001_vm3 = vmmov %vm15908_vm0  ;;  %v12676_v23 = vld [vmem:[#allocation2 + $0x70] sm:$0xff]   ;;  %v5164_v41 = vrot.slane %v12677_v34, 2  ;;  %v5170_v29 = vrot.slane %v12681_v60, 2 }
 0x39e   : > { %11670 = vmatprep.mubr.msk.bf16.mxu0 %vm15991_vm13, %v5145_v21  ;;  %11703 = vmatpush3.bf16.msra.mxu0 %v5662_v54  ;;  %vm16003_vm13 = vmmov %vm15908_vm0  ;;  %v5161_v54 = vsel %vm16005_vm5, %v5158_v26, %v5160_v6  ;;  %v5162_v21 = vrot.slane %v12676_v23, 2 }
 0x39f   : > { %12372 = vmatprep.subr.msk.bf16.mxu0 %vm15995_vm8, %v14506_v40  ;;  %vm16007_vm8 = vmmov %vm15998_vm1 }
 0x3a0   : > { %v5163_v61 = vsel %vm16007_vm8, %v5160_v6, %v5162_v21  ;;  %vm16008_vm6 = vmmov %vm15908_vm0 }
 0x3a1   : > { %vm16016_vm10 = vmmov %vm15908_vm0 }
 0x3a5   : > { %11671 = vmatmul.mubr.msk.bf16.gmra.mrb[140].mxu0 %vm15908_vm0, %v5147_v7 }
 0x3a6   : > { %11674 = vmatprep.mubr.msk.bf16.mxu0 %vm15994_vm15, %v5149_v10  ;;  %vm16006_vm15 = vmmov %vm15908_vm0 }
 0x3ad   : > { %11675 = vmatmul.mubr.msk.bf16.gmra.mrb[144].mxu0 %vm15997_vm14, %v5151_v51  ;;  %vm16009_vm14 = vmmov %vm15998_vm1  ;;  %v12679_v51 = vld [vmem:[#allocation2 + $0x88] sm:$0xff]  }
 0x3ae   : > { %11678 = vmatprep.mubr.msk.bf16.mxu0 %vm15999_vm9, %v5153_v38  ;;  %v5165_v30 = vsel %vm16009_vm14, %v5162_v21, %v5164_v41  ;;  %vm16010_vm1 = vmmov %vm15908_vm0  ;;  %vm16023_vm14 = vcmask 1043456  }
 0x3af   : > { %vm16011_vm9 = vmmov %vm16000_vm2 }
 0x3b0   : > { %v5167_v38 = vsel %vm16011_vm9, %v5164_v41, %v5166_v52  ;;  %vm16012_vm2 = vmmov %vm15908_vm0 }
 0x3b1   : > { %vm16020_vm8 = vmmov %vm16010_vm1 }
 0x3b2   : > { %vm16026_vm9 = vmmov %vm16010_vm1 }
 0x3b5   : > { %11679 = vmatmul.mubr.msk.bf16.gmra.mrb[148].mxu0 %vm16001_vm3, %v5155_v31  ;;  %vm16013_vm3 = vmmov %vm16005_vm5 }
 0x3b6   : > { %11682 = vmatprep.mubr.msk.bf16.mxu0 %vm16003_vm13, %v5157_v1  ;;  %vm16015_vm13 = vmmov %vm16013_vm3  ;;  %v12547_v1 = vld [vmem:[#allocation2 + $0xa0] ss:$0 sps:$4 sm:$0x11]  }
 0x3b7   : > { %vm16018_vm5 = vmmov %vm16010_vm1  ;;  %v5174_v26 = vrot.slane %v12547_v1, 2 }
 0x3b8   : > { %v11570_v58 = vpop.f32.mrb[208].mxu0 }
 0x3b9   : > { %v14519_v56 = vadd.f32 %v11570_v58, %v14454_v14  ;;  %v4055_v50 = vpop.f32.mrb[209].mxu0 }
 0x3ba   : > { %v11571_v35 = vpop.f32.mrb[210].mxu0 }
 0x3bb   : > { %v14522_v42 = vadd.f32 %v11571_v35, %v14457_v25  ;;  %v4057_v20 = vpop.f32.mrb[211].mxu0 }
 0x3bd   : > { %11683 = vmatmul.mubr.msk.bf16.gmra.mrb[0].mxu0 %vm15908_vm0, %v5159_v48  ;;  %vm16017_vm0 = vmmov %vm16013_vm3 }
 0x3be   : > { %11686 = vmatprep.mubr.msk.bf16.mxu0 %vm16006_vm15, %v5161_v54  ;;  %vm16019_vm15 = vmmov %vm16017_vm0  ;;  %v16021_v54 = vld [vmem:[#allocation32_spill] sm:$0xff] }
 0x3c0   : > { %v11574_v14 = vpop.f32.mrb[212].mxu0 }
 0x3c1   : > { %v14529_v11 = vadd.f32 %v11574_v14, %v14464_v2  ;;  %v4069_v8 = vpop.f32.mrb[213].mxu0  ;;  %v5168_v2 = vrot.slane %v12679_v51, 2 }
 0x3c2   : > { %v11575_v25 = vpop.f32.mrb[214].mxu0 }
 0x3c3   : > { %v4145_v7 = vadd.f32 %v11575_v25, %v14467_v27  ;;  %v4071_v10 = vpop.f32.mrb[215].mxu0  ;;  %v5169_v46 = vsel %vm16013_vm3, %v5166_v52, %v5168_v2  ;;  %v12680_v27 = vld [vmem:[#allocation2 + $0x98] sm:$0xff]   ;;  %v5171_v31 = vsel %vm16015_vm13, %v5168_v2, %v5170_v29  ;;  %vm16030_vm3 = vmmov %vm16010_vm1 }
 0x3c4   : > { %v5172_v24 = vrot.slane %v12680_v27, 2  ;;  %v16024_v25 = vld [vmem:[#allocation33_spill] sm:$0xff]  ;;  %v16027_v10 = vld [vmem:[#allocation35_spill] sm:$0xff]  ;;  %vm16034_vm13 = vmmov %vm16010_vm1 }
 0x3c5   : > { %11687 = vmatmul.mubr.msk.bf16.gmra.mrb[4].mxu0 %vm16008_vm6, %v5163_v61  ;;  %vm16022_vm6 = vmmov %vm16010_vm1  ;;  %v16029_v61 = vld [vmem:[#allocation36_spill] sm:$0xff]  ;;  %v16039_v27 = vld [vmem:[#allocation41_spill] sm:$0xff] }
 0x3c6   : > { %11690 = vmatprep.mubr.msk.bf16.mxu0 %vm16010_vm1, %v5165_v30  ;;  %v5173_v28 = vsel %vm16017_vm0, %v5170_v29, %v5172_v24  ;;  %v5175_v20 = vsel %vm16019_vm15, %v5172_v24, %v5174_v26  ;;  %v16033_v30 = vld [vmem:[#allocation38_spill] sm:$0xff]  ;;  %vm16038_vm0 = vmmov %vm16010_vm1 }
 0x3c7   : > { %v16041_v24 = vld [vmem:[#allocation42_spill] sm:$0xff]  ;;  %vm16042_vm15 = vmmov %vm16038_vm0 }
 0x3cd   : > { %11691 = vmatmul.mubr.msk.bf16.gmra.mrb[160].mxu0 %vm16012_vm2, %v5167_v38  ;;  %vm16028_vm2 = vmmov %vm16010_vm1 }
 0x3ce   : > { %11694 = vmatprep.mubr.msk.bf16.mxu0 %vm16014_vm11, %v5169_v46  ;;  %vm16032_vm11 = vmmov %vm16010_vm1 }
 0x3d5   : > { %11695 = vmatmul.mubr.msk.bf16.gmra.mrb[164].mxu0 %vm16016_vm10, %v5171_v31  ;;  %vm16036_vm10 = vmmov %vm16010_vm1 }
 0x3d6   : > { %11698 = vmatprep.mubr.msk.bf16.mxu0 %vm16018_vm5, %v5173_v28  ;;  %vm16040_vm5 = vmmov %vm16038_vm0 }
 0x3d8   : > { %v11586_v58 = vpop.f32.mrb[216].mxu0 }
 0x3d9   : > { %v4115_v50 = vpop.f32.mrb[217].mxu0 }
 0x3da   : > { %v4154_v49 = vadd.f32 %v4115_v50, %v14481_v0  ;;  %v11587_v6 = vpop.f32.mrb[218].mxu0  ;;  %v5960_v0 = vsel %vm16023_vm14, %v14506_v40, 0  ;;  %v16037_v40 = vld [vmem:[#allocation40_spill] sm:$0xff]  ;;  %vm16046_vm14 = vmmov %vm16038_vm0 }
 0x3db   : > { %v4118_v35 = vpop.f32.mrb[219].mxu0 }
 0x3dc   : > { %v4155_v48 = vadd.f32 %v4118_v35, %v14484_v17  ;;  %v16025_v17 = vld [vmem:[#allocation34_spill] sm:$0xff] }
 0x3dd   : > { %11699 = vmatmul.mubr.msk.bf16.gmra.mrb[8].mxu0 %vm16020_vm8, %v5175_v20  ;;  %vm16043_vm8 = vmmov %vm16038_vm0 }
 0x3de   : > { %11704 = vmatprep.mubr.msk.bf16.mxu0 %vm16022_vm6, %v16021_v54  ;;  %vm16045_vm6 = vmmov %vm16038_vm0 }
 0x3e0   : > { %v11592_v23 = vpop.f32.mrb[220].mxu0 }
 0x3e1   : > { %v4546_v21 = vpop.f32.mrb[221].mxu0 }
 0x3e2   : > { %v4681_v14 = vadd.f32 %v4546_v21, %v14490_v53  ;;  %v11593_v8 = vpop.f32.mrb[222].mxu0  ;;  %v16031_v53 = vld [vmem:[#allocation37_spill] sm:$0xff] }
 0x3e3   : > { %v4549_v34 = vpop.f32.mrb[223].mxu0 }
 0x3e4   : > { %v4682_v41 = vadd.f32 %v4549_v34, %v14493_v22  ;;  %v16035_v22 = vld [vmem:[#allocation39_spill] sm:$0xff] }
 0x3e5   : > { %11705 = vmatmul.mubr.msk.bf16.vlgmr.msra.gmra.mrb[12].mxu0 %vm16010_vm1, %v16024_v25  ;;  %vm16047_vm1 = vmmov %vm16038_vm0 }
 0x3e6   : > { %11708 = vmatprep.mubr.msk.bf16.mxu0 %vm16026_vm9, %v16025_v17  ;;  %11741 = vmatpush3.bf16.msra.mxu0 %v5960_v0  ;;  %vm16048_vm9 = vmmov %vm16038_vm0 }
 0x3ed   : > { %11709 = vmatmul.mubr.msk.bf16.gmra.mrb[140].mxu0 %vm16028_vm2, %v16027_v10  ;;  %vm16049_vm2 = vmmov %vm16038_vm0 }
 0x3ee   : > { %11712 = vmatprep.mubr.msk.bf16.mxu0 %vm16030_vm3, %v16029_v61  ;;  %vm16050_vm3 = vmmov %vm16038_vm0 }
 0x3f5   : > { %11713 = vmatmul.mubr.msk.bf16.gmra.mrb[144].mxu0 %vm16032_vm11, %v16031_v53  ;;  %vm16052_vm11 = vmmov %vm16038_vm0 }
 0x3f6   : > { %11716 = vmatprep.mubr.msk.bf16.mxu0 %vm16034_vm13, %v16033_v30  ;;  %vm16053_vm13 = vmmov %vm16038_vm0 }
 0x3fd   : > { %11717 = vmatmul.mubr.msk.bf16.gmra.mrb[148].mxu0 %vm16036_vm10, %v16035_v22  ;;  %vm16054_vm10 = vmmov %vm16038_vm0  ;;  %v16068_v22 = vld [vmem:[#allocation45_spill] sm:$0xff] }
 0x3fe   : > { %11720 = vmatprep.mubr.msk.bf16.mxu0 %vm16038_vm0, %v16037_v40 }
 0x400   : > { %v11608_v47 = vpop.f32.mrb[224].mxu0 }
 0x401   : > { %v4695_v52 = vadd.f32 %v11608_v47, %v14519_v56  ;;  %v4608_v51 = vpop.f32.mrb[225].mxu0  ;;  %v16044_v56 = vld [vmem:[#allocation43_spill] sm:$0xff] }
 0x402   : > { %v11609_v2 = vpop.f32.mrb[226].mxu0 }
 0x403   : > { %v4696_v38 = vadd.f32 %v11609_v2, %v14522_v42  ;;  %v4610_v46 = vpop.f32.mrb[227].mxu0  ;;  %v5599_v42 = vshrl.u32 %v14150_v4, 16 }
 0x405   : > { %11721 = vmatmul.mubr.msk.bf16.gmra.mrb[16].mxu0 %vm16040_vm5, %v16039_v27  ;;  %v5601_v58 = vrot.slane %v5599_v42, 2  ;;  %vm16055_vm5 = vmmov %vm16038_vm0 }
 0x406   : > { %11724 = vmatprep.mubr.msk.bf16.mxu0 %vm16042_vm15, %v16041_v24  ;;  %vm16056_vm15 = vmmov %vm16038_vm0 }
 0x408   : > { %v11612_v60 = vpop.f32.mrb[228].mxu0 }
 0x409   : > { %v4697_v29 = vadd.f32 %v11612_v60, %v14529_v11  ;;  %v4622_v31 = vpop.f32.mrb[229].mxu0  ;;  %v5602_v11 = vshll.u32 %v14150_v4, 16 }
 0x40a   : > { %v11613_v1 = vpop.f32.mrb[230].mxu0 }
 0x40b   : > { %v4698_v28 = vadd.f32 %v11613_v1, %v4145_v7  ;;  %v4624_v26 = vpop.f32.mrb[231].mxu0  ;;  %v5604_v50 = vrot.slane %v5602_v11, 3  ;;  %v5861_v7 = vld [vmem:[#allocation2 + $0x10] sm:$0x8] }
 0x40d   : > { %11725 = vmatmul.mubr.msk.bf16.gmra.mrb[20].mxu0 %vm16043_vm8, %v14101_v43  ;;  %v12682_v43 = vld [vmem:[#allocation2 + $0x14] sm:$0xf]  ;;  %v5605_v35 = vor.u32 %v5604_v50, %v5601_v58  ;;  %vm16057_vm8 = vmmov %vm16038_vm0 }
 0x40e   : > { %11728 = vmatprep.mubr.msk.bf16.mxu0 %vm16045_vm6, %v16044_v56  ;;  %v10372_v6 = vcombine.low %v5861_v7, %v12682_v43  ;;  %vm16058_vm6 = vmmov %vm16038_vm0 }
 0x40f   : > { %v5606_v4 = vsel %vm15666_vm4, %v14121_v59, %v5605_v35 }
 0x410   : > { %v5868_v21 = vrot.slane %v10372_v6, 3 }
 0x415   : > { %11729 = vmatmul.mubr.msk.bf16.gmra.mrb[160].mxu0 %vm16046_vm14, %v14112_v19  ;;  %vm16059_vm14 = vmmov %vm16038_vm0 }
 0x416   : > { %11732 = vmatprep.mubr.msk.bf16.mxu0 %vm16047_vm1, %v14115_v12  ;;  %vm16060_vm1 = vmmov %vm16038_vm0 }
 0x41d   : > { %11733 = vmatmul.mubr.msk.bf16.gmra.mrb[164].mxu0 %vm16048_vm9, %v14119_v32  ;;  %v16051_v32 = vrot.slane %v13984_v18, 3  ;;  %vm16061_vm9 = vmmov %vm16038_vm0 }
 0x41e   : > { %11736 = vmatprep.mubr.msk.bf16.mxu0 %vm16049_vm2, %v14129_v55  ;;  %vm16062_vm2 = vmmov %vm16038_vm0 }
 0x41f   : > { %v5870_v34 = vsel %vm15668_vm7, %v5868_v21, %v16051_v32 }
 0x420   : > { %v11624_v19 = vpop.f32.mrb[232].mxu0 }
 0x421   : > { %v4668_v20 = vpop.f32.mrb[233].mxu0 }
 0x422   : > { %v4707_v54 = vadd.f32 %v4668_v20, %v4154_v49  ;;  %v11625_v12 = vpop.f32.mrb[234].mxu0 }
 0x423   : > { %v4671_v23 = vpop.f32.mrb[235].mxu0  ;;  %v12556_v12 = vld [vmem:[%s15607_s5] sm:$0xff]  }
 0x424   : > { %v4708_v8 = vadd.f32 %v4671_v23, %v4155_v48  ;;  %v16073_v23 = vmov 0  }
 0x425   : > { %11737 = vmatmul.mubr.msk.bf16.gmra.mrb[24].mxu0 %vm16050_vm3, %v5606_v4  ;;  %vm16063_vm3 = vmmov %vm16038_vm0 }
 0x426   : > { %11742 = vmatprep.mubr.msk.bf16.mxu0 %vm16052_vm11, %v5870_v34  ;;  %vm16064_vm11 = vmmov %vm16038_vm0 }
 0x428   : > { %v11630_v55 = vpop.f32.mrb[236].mxu0 }
 0x429   : > { %v4844_v0 = vpop.f32.mrb[237].mxu0 }
 0x42a   : > { %v4979_v25 = vadd.f32 %v4844_v0, %v4681_v14  ;;  %v11631_v17 = vpop.f32.mrb[238].mxu0 }
 0x42b   : > { %v4847_v49 = vpop.f32.mrb[239].mxu0 }
 0x42c   : > { %v4980_v10 = vadd.f32 %v4847_v49, %v4682_v41 }
 0x42d   : > { %11743 = vmatmul.mubr.msk.bf16.vlgmr.msra.gmra.mrb[28].mxu0 %vm16053_vm13, %v14134_v13  ;;  %vm16065_vm13 = vmmov %vm16038_vm0 }
 0x42e   : > { %11746 = vmatprep.mubr.msk.bf16.mxu0 %vm16054_vm10, %v14137_v62  ;;  %vm16066_vm10 = vmmov %vm16038_vm0 }
 0x435   : > { %11747 = vmatmul.mubr.msk.bf16.gmra.mrb[140].mxu0 %vm16038_vm0, %v14142_v63 }
 0x436   : > { %11750 = vmatprep.mubr.msk.bf16.mxu0 %vm16055_vm5, %v14145_v16  ;;  %vm16069_vm5 = vmmov %vm16038_vm0 }
 0x43d   : > { %11751 = vmatmul.mubr.msk.bf16.gmra.mrb[144].mxu0 %vm16056_vm15, %v14153_v9  ;;  %vm6238_vm15 = vcmask 123904  }
 0x43e   : > { %11754 = vmatprep.mubr.msk.bf16.mxu0 %vm16057_vm8, %v14161_v15  ;;  %vm6243_vm8 = vcmask 125953   ;;  %6246 = vst.msk [vmem:[#allocation3 + $0x30] sm:$0x3] %vm6238_vm15, %v16073_v23 }
 0x43f   : > { %6244 = vst.msk [vmem:[#allocation3 + $0x2c] sm:$0xe] %vm6243_vm8, %v16073_v23 }
 0x445   : > { %11755 = vmatmul.mubr.msk.bf16.gmra.mrb[148].mxu0 %vm16058_vm6, %v14167_v5  ;;  %vm16070_vm6 = vsmask.f32 1280 }
 0x446   : > { %11758 = vmatprep.mubr.msk.bf16.mxu0 %vm16059_vm14, %v14170_v57  ;;  %v16067_v57 = vld [vmem:[#allocation44_spill] sm:$0xff]  ;;  %vm14634_vm14 = vmand %vm6238_vm15, %vm16070_vm6  ;;  %vm6236_vm6 = vcmask 125952  }
 0x447   : > { %6237 = vst.msk [vmem:[#allocation3] sm:$0xf] %vm6236_vm6, %v16073_v23 }
 0x448   : > { %v11646_v18 = vpop.f32.mrb[240].mxu0 }
 0x449   : > { %v4993_v59 = vadd.f32 %v11646_v18, %v4695_v52  ;;  %v4906_v13 = vpop.f32.mrb[241].mxu0 }
 0x44a   : > { %v11647_v62 = vpop.f32.mrb[242].mxu0 }
 0x44b   : > { %v4994_v63 = vadd.f32 %v11647_v62, %v4696_v38  ;;  %v4908_v48 = vpop.f32.mrb[243].mxu0 }
 0x44d   : > { %11759 = vmatmul.mubr.msk.bf16.gmra.mrb[32].mxu0 %vm16060_vm1, %v14173_v37 }
 0x44e   : > { %11762 = vmatprep.mubr.msk.bf16.mxu0 %vm16061_vm9, %v14177_v33  ;;  %vm15669_vm9 = vcmask 130048  }
 0x450   : > { %v11650_v16 = vpop.f32.mrb[244].mxu0 }
 0x451   : > { %v4995_v9 = vadd.f32 %v11650_v16, %v4697_v29  ;;  %v4920_v15 = vpop.f32.mrb[245].mxu0 }
 0x452   : > { %v11651_v14 = vpop.f32.mrb[246].mxu0 }
 0x453   : > { %v4996_v5 = vadd.f32 %v11651_v14, %v4698_v28  ;;  %v4922_v41 = vpop.f32.mrb[247].mxu0 }
 0x455   : > { %11763 = vmatmul.mubr.msk.bf16.gmra.mrb[36].mxu0 %vm16062_vm2, %v14180_v44  ;;  %vm16075_vm2 = vmmov 0  }
 0x456   : > { %11766 = vmatprep.mubr.msk.bf16.mxu0 %vm16063_vm3, %v14183_v45  ;;  %vm16076_vm3 = vcmask 1045504  }
 0x45d   : > { %11767 = vmatmul.mubr.msk.bf16.gmra.mrb[160].mxu0 %vm16064_vm11, %v14187_v39  ;;  %vm16077_vm11 = vcmask 1043456  }
 0x45e   : > { %11770 = vmatprep.mubr.msk.bf16.mxu0 %vm16065_vm13, %v14193_v36  ;;  %vm16078_vm13 = vcmask 1041408  }
 0x465   : > { %11771 = vmatmul.mubr.msk.bf16.gmra.mrb[164].mxu0 %vm16066_vm10, %v14197_v3  ;;  %vm16079_vm10 = vmmov %vm16076_vm3 }
 0x466   : > { %11774 = vmatprep.mubr.msk.bf16.mxu0 %vm16038_vm0, %v16067_v57  ;;  %v14659_v57 = vld [vmem:[%s15606_s4] ss:$0 sm:$0xff]  ;;  %vm16080_vm0 = vmmov %vm16077_vm11 }
 0x468   : > { %v11662_v37 = vpop.f32.mrb[248].mxu0 }
 0x469   : > { %v4966_v33 = vpop.f32.mrb[249].mxu0 }
 0x46a   : > { %v5005_v61 = vadd.f32 %v4966_v33, %v4707_v54  ;;  %v11663_v53 = vpop.f32.mrb[250].mxu0  ;;  %v6240_v54 = vld [vmem:[#allocation3 + $0x4] sm:$0x3] }
 0x46b   : > { %v4969_v44 = vpop.f32.mrb[251].mxu0  ;;  %v6241_v21 = vsel %vm14634_vm14, 0, %v6240_v54 }
 0x46c   : > { %v5006_v30 = vadd.f32 %v4969_v44, %v4708_v8  ;;  %6242 = vst [vmem:[#allocation3 + $0x4] sm:$0x3] %v6241_v21 }
 0x46d   : > { %11775 = vmatmul.mubr.msk.bf16.gmra.mrb[40].mxu0 %vm16069_vm5, %v16068_v22  ;;  %vm16081_vm5 = vmmov %vm16078_vm13 }
 0x470   : > { %v11668_v45 = vpop.f32.mrb[252].mxu0 }
 0x471   : > { %v5267_v39 = vpop.f32.mrb[253].mxu0 }
 0x472   : > { %v5402_v40 = vadd.f32 %v5267_v39, %v4979_v25  ;;  %v11669_v47 = vpop.f32.mrb[254].mxu0 }
 0x473   : > { %v5270_v36 = vpop.f32.mrb[255].mxu0 }
 0x474   : > { %v5403_v52 = vadd.f32 %v5270_v36, %v4980_v10  ;;  %v16074_v36 = vmov 0.0  }
 0x490   : > { %v11684_v51 = vpop.f32.mrb[0].mxu0 }
 0x491   : > { %v5416_v3 = vadd.f32 %v11684_v51, %v4993_v59  ;;  %v5329_v2 = vpop.f32.mrb[1].mxu0 }
 0x492   : > { %v11685_v38 = vpop.f32.mrb[2].mxu0 }
 0x493   : > { %v5417_v46 = vadd.f32 %v11685_v38, %v4994_v63  ;;  %v5331_v27 = vpop.f32.mrb[3].mxu0  ;;  %v6247_v63 = vlaneseq }
 0x495   : > { %v6248_v14 = vshrl.u32 %v6247_v63, 7  ;;  %v6250_v37 = vand.u32 127, %v6247_v63 }
 0x497   : > { %v6251_v33 = vmul.u32 2, %v6248_v14 }
 0x498   : > { %v11688_v24 = vpop.f32.mrb[4].mxu0 }
 0x499   : > { %v5418_v60 = vadd.f32 %v11688_v24, %v4995_v9  ;;  %v5343_v29 = vpop.f32.mrb[5].mxu0  ;;  %vm6252_vm1 = vcmp.eq.s32.totalorder %v6250_v37, %v6251_v33 }
 0x49a   : > { %v11689_v31 = vpop.f32.mrb[6].mxu0 }
 0x49b   : > { %v5419_v1 = vadd.f32 %v11689_v31, %v4996_v5  ;;  %v5345_v28 = vpop.f32.mrb[7].mxu0 }
 0x4b0   : > { %v11700_v26 = vpop.f32.mrb[8].mxu0 }
 0x4b1   : > { %v5389_v56 = vpop.f32.mrb[9].mxu0 }
 0x4b2   : > { %v5428_v42 = vadd.f32 %v5389_v56, %v5005_v61  ;;  %v11701_v11 = vpop.f32.mrb[10].mxu0 }
 0x4b3   : > { %v5392_v58 = vpop.f32.mrb[11].mxu0 }
 0x4b4   : > { %v5429_v50 = vadd.f32 %v5392_v58, %v5006_v30 }
 0x4b8   : > { %v11706_v7 = vpop.f32.mrb[12].mxu0 }
 0x4b9   : > { %v5698_v43 = vpop.f32.mrb[13].mxu0 }
 0x4ba   : > { %v5833_v6 = vadd.f32 %v5698_v43, %v5402_v40  ;;  %v11707_v35 = vpop.f32.mrb[14].mxu0 }
 0x4bb   : > { %v5701_v19 = vpop.f32.mrb[15].mxu0 }
 0x4bc   : > { %v5834_v20 = vadd.f32 %v5701_v19, %v5403_v52  ;;  %v6253_v52 = vsel %vm6252_vm1, 1.0, %v16074_v36  ;;  %vm6477_vm1 = vcmask 122880  }
 0x4d8   : > { %v11722_v4 = vpop.f32.mrb[16].mxu0 }
 0x4d9   : > { %v14644_v8 = vadd.f32 %v11722_v4, %v5416_v3  ;;  %v5760_v32 = vpop.f32.mrb[17].mxu0 }
 0x4da   : > { %v11723_v34 = vpop.f32.mrb[18].mxu0 }
 0x4db   : > { %v14646_v55 = vadd.f32 %v11723_v34, %v5417_v46  ;;  %v5762_v0 = vpop.f32.mrb[19].mxu0 }
 0x4e0   : > { %v11726_v25 = vpop.f32.mrb[20].mxu0 }
 0x4e1   : > { %v14648_v17 = vadd.f32 %v11726_v25, %v5418_v60  ;;  %v5774_v49 = vpop.f32.mrb[21].mxu0  ;;  %v14667_v60 = vpack.c.bf16 %v6253_v52, %v6253_v52 }
 0x4e2   : > { %v11727_v10 = vpop.f32.mrb[22].mxu0 }
 0x4e3   : > { %v14650_v18 = vadd.f32 %v11727_v10, %v5419_v1  ;;  %v5776_v59 = vpop.f32.mrb[23].mxu0 }
 0x4f8   : > { %v11738_v13 = vpop.f32.mrb[24].mxu0 }
 0x4f9   : > { %v5820_v62 = vpop.f32.mrb[25].mxu0 }
 0x4fa   : > { %v14652_v48 = vadd.f32 %v5820_v62, %v5428_v42  ;;  %v11739_v16 = vpop.f32.mrb[26].mxu0 }
 0x4fb   : > { %v5823_v9 = vpop.f32.mrb[27].mxu0 }
 0x4fc   : > { %v14654_v15 = vadd.f32 %v5823_v9, %v5429_v50 }
 0x500   : > { %v11744_v5 = vpop.f32.mrb[28].mxu0 }
 0x501   : > { %v5996_v41 = vpop.f32.mrb[29].mxu0 }
 0x502   : > { %v6131_v61 = vadd.f32 %v5996_v41, %v5833_v6  ;;  %v11745_v53 = vpop.f32.mrb[30].mxu0 }
 0x503   : > { %v5999_v44 = vpop.f32.mrb[31].mxu0 }
 0x504   : > { %v6166_v30 = vadd.f32 %v14659_v57, %v6131_v61  ;;  %v6132_v22 = vadd.f32 %v5999_v44, %v5834_v20 }
 0x506   : > { %v6167_v45 = vadd.f32 %v14659_v57, %v6132_v22  ;;  %v6194_v39 = vmax.f32 %v6166_v30, 0.0 }
 0x508   : > { %v6195_v40 = vmax.f32 %v6167_v45, 0.0  ;;  %v11748_v47 = vpop.f32.mrb[140].mxu0 }
 0x509   : > { %v6170_v51 = vadd.f32 %v11748_v47, %v14659_v57  ;;  %v6010_v3 = vpop.f32.mrb[141].mxu0 }
 0x50a   : > { %v6222_v2 = vpack.c.bf16 %v6195_v40, %v6194_v39  ;;  %v6168_v38 = vadd.f32 %v14659_v57, %v6010_v3  ;;  %v11749_v46 = vpop.f32.mrb[142].mxu0 }
 0x50b   : > { %v6171_v27 = vadd.f32 %v11749_v46, %v14659_v57  ;;  %v6013_v24 = vpop.f32.mrb[143].mxu0  ;;  %v6198_v31 = vmax.f32 %v6170_v51, 0.0 }
 0x50c   : > { %v6169_v29 = vadd.f32 %v14659_v57, %v6013_v24  ;;  %11779 = vmatpush3.bf16.msra.mxu1 %v6222_v2  ;;  %v6196_v28 = vmax.f32 %v6168_v38, 0.0 }
 0x50d   : > { %v6199_v1 = vmax.f32 %v6171_v27, 0.0  ;;  %11784 = vmatprep.subr.bf16.mxu1 %v16074_v36 }
 0x50e   : > { %v6197_v26 = vmax.f32 %v6169_v29, 0.0 }
 0x50f   : > { %v6224_v56 = vpack.c.bf16 %v6199_v1, %v6198_v31  ;;  %11781 = vmatmul.mubr.msk.bf16.vlgmr.msra.gmra.mrb[136].mxu1 %vm15669_vm9, %v14667_v60 }
 0x510   : > { %v6223_v42 = vpack.c.bf16 %v6197_v26, %v6196_v28  ;;  %v11752_v11 = vpop.f32.mrb[144].mxu0  ;;  %11786 = vmatprep.mubr.msk.bf16.mxu1 %vm16075_vm2, %v16074_v36 }
 0x511   : > { %v6330_v58 = vrot.slane %v6224_v56, 2  ;;  %v6174_v50 = vadd.f32 %v11752_v11, %v14659_v57  ;;  %v6026_v7 = vpop.f32.mrb[145].mxu0 }
 0x512   : > { %v6329_v43 = vrot.slane %v6223_v42, 2  ;;  %v6172_v6 = vadd.f32 %v14659_v57, %v6026_v7  ;;  %v11753_v35 = vpop.f32.mrb[146].mxu0 }
 0x513   : > { %v6175_v19 = vadd.f32 %v11753_v35, %v14659_v57  ;;  %v6029_v20 = vpop.f32.mrb[147].mxu0  ;;  %v6202_v4 = vmax.f32 %v6174_v50, 0.0 }
 0x514   : > { %v6173_v54 = vadd.f32 %v14659_v57, %v6029_v20  ;;  %v6331_v21 = vsel %vm16076_vm3, %v6329_v43, %v6330_v58  ;;  %v6200_v34 = vmax.f32 %v6172_v6, 0.0  ;;  %vm16082_vm3 = vsmask.f32 256 }
 0x515   : > { %v6203_v32 = vmax.f32 %v6175_v19, 0.0  ;;  %11785 = vmatpush3.bf16.msra.mxu1 %v6331_v21 }
 0x516   : > { %v6201_v0 = vmax.f32 %v6173_v54, 0.0  ;;  %11790 = vmatprep.subr.bf16.mxu1 %v16074_v36 }
 0x517   : > { %v6226_v25 = vpack.c.bf16 %v6203_v32, %v6202_v4 }
 0x518   : > { %v6225_v49 = vpack.c.bf16 %v6201_v0, %v6200_v34  ;;  %v11756_v10 = vpop.f32.mrb[148].mxu0  ;;  %11787 = vmatmul.mubr.msk.bf16.vlgmr.msra.gmra.mrb[140].mxu1 %vm15669_vm9, %v14667_v60 }
 0x519   : > { %v6406_v59 = vrot.slane %v6226_v25, 4  ;;  %v6178_v13 = vadd.f32 %v11756_v10, %v14659_v57  ;;  %v6042_v62 = vpop.f32.mrb[149].mxu0  ;;  %11792 = vmatprep.mubr.msk.bf16.mxu1 %vm16075_vm2, %v16074_v36 }
 0x51a   : > { %v6405_v63 = vrot.slane %v6225_v49, 4  ;;  %v6176_v16 = vadd.f32 %v14659_v57, %v6042_v62  ;;  %v11757_v9 = vpop.f32.mrb[150].mxu0 }
 0x51b   : > { %v6179_v14 = vadd.f32 %v11757_v9, %v14659_v57  ;;  %v6045_v5 = vpop.f32.mrb[151].mxu0  ;;  %v6206_v33 = vmax.f32 %v6178_v13, 0.0 }
 0x51c   : > { %v6177_v41 = vadd.f32 %v14659_v57, %v6045_v5  ;;  %v6407_v37 = vsel %vm16077_vm11, %v6405_v63, %v6406_v59  ;;  %v6204_v53 = vmax.f32 %v6176_v16, 0.0  ;;  %vm14747_vm11 = vmand %vm6477_vm1, %vm16082_vm3  ;;  %vm16091_vm3 = vsmask.f32 2304 }
 0x51d   : > { %v6207_v61 = vmax.f32 %v6179_v14, 0.0  ;;  %11791 = vmatpush3.bf16.msra.mxu1 %v6407_v37 }
 0x51e   : > { %v6205_v44 = vmax.f32 %v6177_v41, 0.0  ;;  %11796 = vmatprep.subr.bf16.mxu1 %v16074_v36 }
 0x51f   : > { %v6228_v30 = vpack.c.bf16 %v6207_v61, %v6206_v33 }
 0x520   : > { %v6227_v22 = vpack.c.bf16 %v6205_v44, %v6204_v53  ;;  %v11760_v45 = vpop.f32.mrb[32].mxu0  ;;  %11793 = vmatmul.mubr.msk.bf16.vlgmr.msra.gmra.mrb[144].mxu1 %vm15669_vm9, %v14667_v60 }
 0x521   : > { %v6485_v39 = vrot.slane %v6228_v30, 6  ;;  %v6145_v40 = vadd.f32 %v11760_v45, %v14644_v8  ;;  %v6058_v47 = vpop.f32.mrb[33].mxu0  ;;  %11798 = vmatprep.mubr.msk.bf16.mxu1 %vm16075_vm2, %v16074_v36 }
 0x522   : > { %v6484_v52 = vrot.slane %v6227_v22, 6  ;;  %v11761_v51 = vpop.f32.mrb[34].mxu0 }
 0x523   : > { %v6180_v3 = vadd.f32 %v14659_v57, %v6145_v40  ;;  %v6146_v2 = vadd.f32 %v11761_v51, %v14646_v55  ;;  %v6060_v38 = vpop.f32.mrb[35].mxu0 }
 0x524   : > { %v6486_v46 = vsel %vm16078_vm13, %v6484_v52, %v6485_v39  ;;  %vm16085_vm13 = vsmask.f32 7942 }
 0x525   : > { %v6181_v27 = vadd.f32 %v14659_v57, %v6146_v2  ;;  %11797 = vmatpush3.bf16.msra.mxu1 %v6486_v46  ;;  %v6208_v24 = vmax.f32 %v6180_v3, 0.0 }
 0x526   : > { %11802 = vmatprep.subr.bf16.mxu1 %v16074_v36 }
 0x527   : > { %v6209_v8 = vmax.f32 %v6181_v27, 0.0 }
 0x528   : > { %v11764_v29 = vpop.f32.mrb[36].mxu0  ;;  %11799 = vmatmul.mubr.msk.bf16.vlgmr.msra.gmra.mrb[148].mxu1 %vm15669_vm9, %v14667_v60 }
 0x529   : > { %v6229_v31 = vpack.c.bf16 %v6209_v8, %v6208_v24  ;;  %v6147_v1 = vadd.f32 %v11764_v29, %v14648_v17  ;;  %v6072_v28 = vpop.f32.mrb[37].mxu0  ;;  %11804 = vmatprep.mubr.msk.bf16.mxu1 %vm16075_vm2, %v16074_v36 }
 0x52a   : > { %v11765_v55 = vpop.f32.mrb[38].mxu0 }
 0x52b   : > { %v6182_v26 = vadd.f32 %v14659_v57, %v6147_v1  ;;  %v6148_v56 = vadd.f32 %v11765_v55, %v14650_v18  ;;  %v6074_v42 = vpop.f32.mrb[39].mxu0  ;;  %11803 = vmatpush3.bf16.msra.mxu1 %v6229_v31 }
 0x52c   : > { %11808 = vmatprep.subr.bf16.mxu1 %v16074_v36 }
 0x52d   : > { %v6183_v11 = vadd.f32 %v14659_v57, %v6148_v56  ;;  %v6210_v58 = vmax.f32 %v6182_v26, 0.0 }
 0x52f   : > { %v6211_v50 = vmax.f32 %v6183_v11, 0.0 }
 0x530   : > { %v11768_v7 = vpop.f32.mrb[160].mxu0  ;;  %11805 = vmatmul.mubr.msk.bf16.vlgmr.msra.gmra.mrb[152].mxu1 %vm15669_vm9, %v14667_v60 }
 0x531   : > { %v6230_v17 = vpack.c.bf16 %v6211_v50, %v6210_v58  ;;  %v6186_v43 = vadd.f32 %v11768_v7, %v14659_v57  ;;  %v6086_v6 = vpop.f32.mrb[161].mxu0  ;;  %11810 = vmatprep.mubr.msk.bf16.mxu1 %vm16075_vm2, %v16074_v36 }
 0x532   : > { %v6184_v18 = vadd.f32 %v14659_v57, %v6086_v6  ;;  %v11769_v35 = vpop.f32.mrb[162].mxu0 }
 0x533   : > { %v6187_v19 = vadd.f32 %v11769_v35, %v14659_v57  ;;  %v6089_v20 = vpop.f32.mrb[163].mxu0  ;;  %v6214_v21 = vmax.f32 %v6186_v43, 0.0  ;;  %v6619_v13 = vrot.slane %v6230_v17, 2  ;;  %v6316_v43 = vld [vmem:[#allocation3 + $0x4] sm:$0xe] }
 0x534   : > { %v6185_v54 = vadd.f32 %v14659_v57, %v6089_v20  ;;  %v6212_v32 = vmax.f32 %v6184_v18, 0.0  ;;  %v6319_v18 = vld [vmem:[#allocation3 + $0x8] sm:$0x3] }
 0x535   : > { %v6215_v4 = vmax.f32 %v6187_v19, 0.0 }
 0x536   : > { %v6213_v34 = vmax.f32 %v6185_v54, 0.0 }
 0x537   : > { %v6232_v0 = vpack.c.bf16 %v6215_v4, %v6214_v21 }
 0x538   : > { %v6231_v25 = vpack.c.bf16 %v6213_v34, %v6212_v32  ;;  %v11772_v49 = vpop.f32.mrb[164].mxu0 }
 0x539   : > { %v6190_v10 = vadd.f32 %v11772_v49, %v14659_v57  ;;  %v6102_v59 = vpop.f32.mrb[165].mxu0  ;;  %v6689_v39 = vrot.slane %v6232_v0, 4 }
 0x53a   : > { %v6620_v62 = vrot.slane %v6231_v25, 2  ;;  %v6188_v63 = vadd.f32 %v14659_v57, %v6102_v59  ;;  %v11773_v16 = vpop.f32.mrb[166].mxu0 }
 0x53b   : > { %v6191_v9 = vadd.f32 %v11773_v16, %v14659_v57  ;;  %v6105_v14 = vpop.f32.mrb[167].mxu0  ;;  %v6218_v37 = vmax.f32 %v6190_v10, 0.0 }
 0x53c   : > { %v6189_v5 = vadd.f32 %v14659_v57, %v6105_v14  ;;  %v6621_v41 = vsel %vm16079_vm10, %v6619_v13, %v6620_v62  ;;  %v6216_v61 = vmax.f32 %v6188_v63, 0.0  ;;  %vm14759_vm10 = vmand %vm6243_vm8, %vm16085_vm13  ;;  %vm6322_vm8 = vcmask 124929   ;;  %v6395_v63 = vld [vmem:[#allocation3 + $0xc] sm:$0x7] }
 0x53d   : > { %v6219_v33 = vmax.f32 %v6191_v9, 0.0  ;;  %11809 = vmatpush3.bf16.msra.mxu1 %v6621_v41 }
 0x53e   : > { %v6217_v53 = vmax.f32 %v6189_v5, 0.0  ;;  %11814 = vmatprep.subr.bf16.mxu1 %v16074_v36 }
 0x53f   : > { %v6234_v44 = vpack.c.bf16 %v6219_v33, %v6218_v37 }
 0x540   : > { %v6233_v30 = vpack.c.bf16 %v6217_v53, %v6216_v61  ;;  %v11776_v22 = vpop.f32.mrb[40].mxu0  ;;  %11811 = vmatmul.mubr.msk.bf16.vlgmr.msra.gmra.mrb[156].mxu1 %vm15669_vm9, %v14667_v60 }
 0x541   : > { %v6118_v45 = vpop.f32.mrb[41].mxu0  ;;  %11816 = vmatprep.mubr.msk.bf16.mxu1 %vm16075_vm2, %v16074_v36  ;;  %v6762_v8 = vrot.slane %v6234_v44, 6 }
 0x542   : > { %v6690_v40 = vrot.slane %v6233_v30, 4  ;;  %v6157_v47 = vadd.f32 %v6118_v45, %v14652_v48  ;;  %v11777_v52 = vpop.f32.mrb[42].mxu0 }
 0x543   : > { %v6121_v51 = vpop.f32.mrb[43].mxu0  ;;  %v6471_v52 = vld [vmem:[#allocation3 + $0x10] sm:$0xf] }
 0x544   : > { %v6192_v3 = vadd.f32 %v14659_v57, %v6157_v47  ;;  %v6158_v2 = vadd.f32 %v6121_v51, %v14654_v15  ;;  %v6691_v38 = vsel %vm16080_vm0, %v6689_v39, %v6690_v40  ;;  %vm6393_vm0 = vcmask 124928  }
 0x545   : > { %11815 = vmatpush3.bf16.msra.mxu1 %v6691_v38  ;;  %vm14773_vm13 = vmand %vm6393_vm0, %vm16091_vm3  ;;  %vm16094_vm0 = vsmask.f32 7946  ;;  %vm16097_vm3 = vsmask.f32 3328 }
 0x546   : > { %v6193_v46 = vadd.f32 %v14659_v57, %v6158_v2  ;;  %11820 = vmatprep.subr.bf16.mxu1 %v16074_v36  ;;  %v6220_v27 = vmax.f32 %v6192_v3, 0.0  ;;  %v6479_v57 = vld [vmem:[#allocation3 + $0x14] sm:$0x1]  ;;  %vm14788_vm4 = vmand %vm6236_vm6, %vm16097_vm3  ;;  %vm16106_vm3 = vsmask.f32 7950 }
 0x547   : > { %v6480_v1 = vsel %vm14747_vm11, 0, %v6479_v57 }
 0x548   : > { %v6221_v24 = vmax.f32 %v6193_v46, 0.0  ;;  %11817 = vmatmul.mubr.msk.bf16.vlgmr.msra.gmra.mrb[160].mxu1 %vm15669_vm9, %v14667_v60  ;;  %6481 = vst [vmem:[#allocation3 + $0x14] sm:$0x1] %v6480_v1 }
 0x549   : > { %11822 = vmatprep.mubr.msk.bf16.mxu1 %vm16075_vm2, %v16074_v36 }
 0x54a   : > { %v6235_v48 = vpack.c.bf16 %v6221_v24, %v6220_v27 }
 0x54c   : > { %v6763_v29 = vrot.slane %v6235_v48, 6 }
 0x54e   : > { %v6764_v15 = vsel %vm16081_vm5, %v6762_v8, %v6763_v29  ;;  %vm16088_vm5 = vsmask.f32 2310 }
 0x54f   : > { %11821 = vmatpush3.bf16.msra.mxu1 %v6764_v15  ;;  %vm14768_vm1 = vmand %vm6322_vm8, %vm16088_vm5  ;;  %vm6388_vm8 = vcmask 125954  }
 0x550   : > { %11826 = vmatprep.subr.bf16.mxu1 %v16074_v36  ;;  %vm14782_vm5 = vmand %vm6388_vm8, %vm16094_vm0 }
 0x551   : > { %vm14793_vm7 = vmand %vm6388_vm8, %vm16100_vm12  ;;  %vm6464_vm12 = vcmask 125955   ;;  %vm16103_vm8 = vsmask.f32 7938 }
 0x552   : > { %11823 = vmatmul.mubr.msk.bf16.vlgmr.msra.gmra.mrb[164].mxu1 %vm15669_vm9, %v14667_v60  ;;  %v12550_v60 = vld [vmem:[%s15607_s5 + $0x8] sm:$0xff]   ;;  %vm14805_vm0 = vmand %vm6236_vm6, %vm16103_vm8  ;;  %vm16109_vm6 = vsmask.f32 1282  ;;  %vm16122_vm8 = vcmask 1044480  }
 0x553   : > { %11828 = vmatprep.mubr.msk.bf16.mxu1 %vm16075_vm2, %v16074_v36  ;;  %11827 = vmatpush3.bf16.msra.mxu1 %v12550_v60  ;;  %vm14812_vm9 = vmand %vm6464_vm12, %vm16106_vm3 }
 0x554   : > { %11848 = vmatprep.subr.bf16.mxu1 %v16074_v36  ;;  %vm14831_vm12 = vmand %vm6238_vm15, %vm16109_vm6  ;;  %vm16112_vm15 = vsmask.f32 7424 }
 0x555   : > { %vm16125_vm6 = vmmov %vm16122_vm8 }
 0x5e2   : > { %v6293_v28 = vpop.f32.mrb[136].mxu1 }
 0x5e3   : > { %v10748_v55 = vpack.c.bf16 %v6293_v28, %v6293_v28  ;;  %v11782_v26 = vpop.f32.mrb[137].mxu1 }
 0x5e4   : > { %v6296_v56 = vpop.f32.mrb[138].mxu1 }
 0x5e5   : > { %v6304_v42 = vshrl.u32 %v10748_v55, 16  ;;  %v6307_v11 = vshll.u32 %v10748_v55, 16  ;;  %v11783_v58 = vpop.f32.mrb[139].mxu1  ;;  %v6546_v55 = vld [vmem:[#allocation3 + $0x18] sm:$0x1] }
 0x5e6   : > { %v6543_v56 = vld [vmem:[#allocation3 + $0x14] sm:$0xf] }
 0x5e7   : > { %v6306_v50 = vrot.slane %v6304_v42, 6  ;;  %v6309_v7 = vrot.slane %v6307_v11, 7  ;;  %v6757_v42 = vld [vmem:[#allocation3 + $0x28] sm:$0x1] }
 0x5e9   : > { %v6310_v6 = vor.u32 %v6309_v7, %v6306_v50  ;;  %v6758_v50 = vsel %vm14747_vm11, 0, %v6757_v42 }
 0x5ea   : > { %6759 = vst [vmem:[#allocation3 + $0x28] sm:$0x1] %v6758_v50 }
 0x5eb   : > { %v6311_v35 = vrot.slane %v6310_v6, 4  ;;  %v6317_v19 = vsel %vm14759_vm10, %v6310_v6, %v6316_v43  ;;  %v6367_v20 = vpop.f32.mrb[140].mxu1 }
 0x5ec   : > { %6318 = vst [vmem:[#allocation3 + $0x4] sm:$0xe] %v6317_v19  ;;  %v10749_v54 = vpack.c.bf16 %v6367_v20, %v6367_v20  ;;  %v11788_v21 = vpop.f32.mrb[141].mxu1 }
 0x5ed   : > { %v6320_v4 = vsel %vm14634_vm14, %v6311_v35, %v6319_v18  ;;  %v6370_v32 = vpop.f32.mrb[142].mxu1 }
 0x5ee   : > { %6321 = vst [vmem:[#allocation3 + $0x8] sm:$0x3] %v6320_v4  ;;  %v6378_v34 = vshrl.u32 %v10749_v54, 16  ;;  %v6381_v0 = vshll.u32 %v10749_v54, 16  ;;  %v11789_v25 = vpop.f32.mrb[143].mxu1 }
 0x5ef   : > { %v6829_v54 = vld [vmem:[#allocation3] sm:$0xf] }
 0x5f0   : > { %v6380_v49 = vrot.slane %v6378_v34, 5  ;;  %v6383_v10 = vrot.slane %v6381_v0, 6 }
 0x5f1   : > { %v6820_v47 = vld [vmem:[#allocation3 + $0x28] sm:$0xf] }
 0x5f2   : > { %v6384_v13 = vor.u32 %v6383_v10, %v6380_v49 }
 0x5f3   : > { %v6443_v16 = vpop.f32.mrb[144].mxu1  ;;  %v14820_v21 = vld [vmem:[#allocation3 + $0x4] sm:$0xf] }
 0x5f4   : > { %v6385_v9 = vrot.slane %v6384_v13, 4  ;;  %v10750_v14 = vpack.c.bf16 %v6443_v16, %v6443_v16  ;;  %v11794_v5 = vpop.f32.mrb[145].mxu1  ;;  %v14827_v16 = vcombine.low %v6829_v54, %v14820_v21 }
 0x5f5   : > { %v6324_v41 = vld [vmem:[#allocation3 + $0x8] sm:$0x6]  ;;  %v6446_v37 = vpop.f32.mrb[146].mxu1  ;;  %v6611_v5 = vld [vmem:[#allocation3 + $0x1c] sm:$0x3] }
 0x5f6   : > { %v6325_v33 = vsel %vm14768_vm1, 0, %v6324_v41  ;;  %v6396_v61 = vsel %vm14773_vm13, %v6385_v9, %v6395_v63  ;;  %v6454_v53 = vshll.u32 %v10750_v14, 16  ;;  %v6457_v44 = vshrl.u32 %v10750_v14, 16  ;;  %v11795_v30 = vpop.f32.mrb[147].mxu1 }
 0x5f7   : > { %6326 = vst [vmem:[#allocation3 + $0x8] sm:$0x6] %v6325_v33  ;;  %6397 = vst [vmem:[#allocation3 + $0xc] sm:$0x7] %v6396_v61  ;;  %v6873_v33 = vshll.u32 %v14827_v16, 16 }
 0x5f8   : > { %v6456_v22 = vrot.slane %v6454_v53, 5  ;;  %v6459_v45 = vrot.slane %v6457_v44, 4  ;;  %v6871_v44 = vshrl.u32 %v14827_v16, 16 }
 0x5fa   : > { %v6460_v40 = vor.u32 %v6459_v45, %v6456_v22 }
 0x5fb   : > { %v6522_v51 = vpop.f32.mrb[148].mxu1 }
 0x5fc   : > { %v6461_v2 = vrot.slane %v6460_v40, 4  ;;  %v10751_v38 = vpack.c.bf16 %v6522_v51, %v6522_v51  ;;  %v11800_v46 = vpop.f32.mrb[149].mxu1 }
 0x5fd   : > { %v6525_v27 = vpop.f32.mrb[150].mxu1 }
 0x5fe   : > { %v6390_v24 = vld [vmem:[#allocation3 + $0x8] sm:$0xc]  ;;  %v6399_v48 = vld [vmem:[#allocation3 + $0xc] sm:$0xc]  ;;  %v6472_v8 = vsel %vm14788_vm4, %v6461_v2, %v6471_v52  ;;  %v6533_v29 = vshrl.u32 %v10751_v38, 16  ;;  %v6536_v15 = vshll.u32 %v10751_v38, 16 }
 0x5ff   : > { %v6391_v57 = vsel %vm14782_vm5, %v6384_v13, %v6390_v24  ;;  %v6400_v1 = vsel %vm14793_vm7, 0, %v6399_v48  ;;  %6473 = vst [vmem:[#allocation3 + $0x10] sm:$0xf] %v6472_v8  ;;  %v11801_v60 = vpop.f32.mrb[151].mxu1 }
 0x600   : > { %6392 = vst [vmem:[#allocation3 + $0x8] sm:$0xc] %v6391_v57  ;;  %6401 = vst [vmem:[#allocation3 + $0xc] sm:$0xc] %v6400_v1  ;;  %v6535_v28 = vrot.slane %v6533_v29, 7 }
 0x602   : > { %v6538_v11 = vor.u32 %v6536_v15, %v6535_v28  ;;  %v6539_v58 = vrot.slane %v6535_v28, 4 }
 0x603   : > { %v6587_v7 = vpop.f32.mrb[152].mxu1 }
 0x604   : > { %v6544_v6 = vsel %vm14805_vm0, %v6538_v11, %v6543_v56  ;;  %v6547_v18 = vsel %vm14747_vm11, %v6539_v58, %v6546_v55  ;;  %v10752_v35 = vpack.c.bf16 %v6587_v7, %v6587_v7  ;;  %v11806_v19 = vpop.f32.mrb[153].mxu1  ;;  %v6681_v58 = vld [vmem:[#allocation3 + $0x20] sm:$0x7] }
 0x605   : > { %6545 = vst [vmem:[#allocation3 + $0x14] sm:$0xf] %v6544_v6  ;;  %6548 = vst [vmem:[#allocation3 + $0x18] sm:$0x1] %v6547_v18  ;;  %v6590_v20 = vpop.f32.mrb[154].mxu1 }
 0x606   : > { %v6474_v4 = vld [vmem:[#allocation3 + $0x10] sm:$0x8]  ;;  %v6598_v32 = vshrl.u32 %v10752_v35, 16  ;;  %v6601_v34 = vshll.u32 %v10752_v35, 16  ;;  %v11807_v0 = vpop.f32.mrb[155].mxu1 }
 0x607   : > { %v6466_v25 = vld [vmem:[#allocation3 + $0xc] sm:$0x8]  ;;  %v6475_v49 = vsel %vm14812_vm9, 0, %v6474_v4 }
 0x608   : > { %v6467_v10 = vsel %vm14812_vm9, %v6456_v22, %v6466_v25  ;;  %6476 = vst [vmem:[#allocation3 + $0x10] sm:$0x8] %v6475_v49  ;;  %v6600_v13 = vrot.slane %v6598_v32, 6  ;;  %v6603_v63 = vrot.slane %v6601_v34, 7  ;;  %v6875_v22 = vrot.slane %v6873_v33, 1 }
 0x609   : > { %6468 = vst [vmem:[#allocation3 + $0xc] sm:$0x8] %v6467_v10  ;;  %v6751_v10 = vld [vmem:[#allocation3 + $0x24] sm:$0xf] }
 0x60a   : > { %v6604_v14 = vor.u32 %v6603_v63, %v6600_v13  ;;  %v6876_v2 = vor.u32 %v6875_v22, %v6871_v44 }
 0x60c   : > { %v6550_v41 = vld [vmem:[#allocation3 + $0x18] sm:$0x3]  ;;  %v6605_v37 = vrot.slane %v6604_v14, 4 }
 0x60d   : > { %v6551_v61 = vsel %vm14831_vm12, 0, %v6550_v41 }
 0x60e   : > { %6552 = vst [vmem:[#allocation3 + $0x18] sm:$0x3] %v6551_v61  ;;  %v6612_v53 = vsel %vm14634_vm14, %v6605_v37, %v6611_v5  ;;  %vm16113_vm14 = vcmask 130048  }
 0x60f   : > { %6613 = vst [vmem:[#allocation3 + $0x1c] sm:$0x3] %v6612_v53  ;;  %v14844_v46 = vld [vmem:[#allocation3 + $0x10] sm:$0xff]  }
 0x610   : > { %v14841_v30 = vld [vmem:[#allocation3 + $0x8] sm:$0xff]   ;;  %v6886_v56 = vshll.u32 %v14844_v46, 16 }
 0x611   : > { %v6878_v45 = vshll.u32 %v14841_v30, 16  ;;  %v6882_v17 = vshrl.u32 %v14841_v30, 16  ;;  %v14899_v9 = vld [vmem:[#allocation3 + $0xc] sm:$0xf] }
 0x612   : > { %v6888_v6 = vrot.slane %v6886_v56, 1 }
 0x613   : > { %v6657_v40 = vpop.f32.mrb[156].mxu1  ;;  %v6880_v38 = vrot.slane %v6878_v45, 1  ;;  %v6890_v45 = vshrl.u32 %v14844_v46, 16 }
 0x614   : > { %v10753_v52 = vpack.c.bf16 %v6657_v40, %v6657_v40  ;;  %v11812_v51 = vpop.f32.mrb[157].mxu1 }
 0x615   : > { %v6608_v27 = vld [vmem:[#allocation3 + $0x18] sm:$0xe]  ;;  %v6660_v24 = vpop.f32.mrb[158].mxu1  ;;  %v6881_v1 = vsel %vm16112_vm15, %v6876_v2, %v6880_v38  ;;  %v6884_v11 = vor.u32 %v6882_v17, %v6880_v38  ;;  %v6823_v51 = vld [vmem:[#allocation3 + $0x2c] sm:$0x1]  ;;  %v6892_v2 = vor.u32 %v6890_v45, %v6888_v6 }
 0x616   : > { %v6609_v48 = vsel %vm14759_vm10, %v6604_v14, %v6608_v27  ;;  %v6614_v8 = vld [vmem:[#allocation3 + $0x1c] sm:$0x6]  ;;  %v6668_v29 = vshrl.u32 %v10753_v52, 16  ;;  %v6671_v15 = vshll.u32 %v10753_v52, 16  ;;  %v11813_v57 = vpop.f32.mrb[159].mxu1  ;;  %11829 = vmatmul.mubr.msk.bf16.vlgmr.msra.gmra.mrb[168].mxu1 %vm16113_vm14, %v6881_v1  ;;  %vm16114_vm10 = vmmov %vm16112_vm15 }
 0x617   : > { %6610 = vst [vmem:[#allocation3 + $0x18] sm:$0xe] %v6609_v48  ;;  %v6615_v60 = vsel %vm14768_vm1, 0, %v6614_v8  ;;  %11832 = vmatprep.mubr.msk.bf16.mxu1 %vm16075_vm2, %v16074_v36  ;;  %11849 = vmatpush3.bf16.msra.mxu1 %v12556_v12  ;;  %v6889_v4 = vsel %vm16114_vm10, %v6884_v11, %v6888_v6  ;;  %vm16115_vm1 = vmmov %vm16113_vm14 }
 0x618   : > { %6616 = vst [vmem:[#allocation3 + $0x1c] sm:$0x6] %v6615_v60  ;;  %v6670_v28 = vrot.slane %v6668_v29, 5  ;;  %v6673_v55 = vrot.slane %v6671_v15, 6  ;;  %11870 = vmatprep.subr.bf16.mxu1 %v16074_v36  ;;  %vm16128_vm14 = vmmov %vm16125_vm6 }
 0x61a   : > { %v6674_v42 = vor.u32 %v6673_v55, %v6670_v28 }
 0x61b   : > { %v6727_v59 = vpop.f32.mrb[160].mxu1 }
 0x61c   : > { %v6675_v50 = vrot.slane %v6674_v42, 4  ;;  %v10754_v7 = vpack.c.bf16 %v6727_v59, %v6727_v59  ;;  %v11818_v18 = vpop.f32.mrb[161].mxu1 }
 0x61d   : > { %v6730_v35 = vpop.f32.mrb[162].mxu1 }
 0x61e   : > { %v6682_v19 = vsel %vm14773_vm13, %v6675_v50, %v6681_v58  ;;  %v6738_v20 = vshll.u32 %v10754_v7, 16  ;;  %v6741_v54 = vshrl.u32 %v10754_v7, 16  ;;  %v11819_v32 = vpop.f32.mrb[163].mxu1  ;;  %11833 = vmatmul.mubr.msk.bf16.gmra.mrb[172].mxu1 %vm16115_vm1, %v6889_v4  ;;  %vm16120_vm13 = vmmov %vm16115_vm1  ;;  %v8005_v50 = vld [vmem:[#allocation3 + $0x8] sm:$0x8]  ;;  %v14903_v7 = vld [vmem:[#allocation3 + $0x10] sm:$0xff]  }
 0x61f   : > { %v6678_v34 = vld [vmem:[#allocation3 + $0x1c] sm:$0xc]  ;;  %6683 = vst [vmem:[#allocation3 + $0x20] sm:$0x7] %v6682_v19  ;;  %11836 = vmatprep.mubr.msk.bf16.mxu1 %vm16075_vm2, %v16074_v36  ;;  %v10498_v6 = vcombine.low %v8005_v50, %v14899_v9  ;;  %v12558_v4 = vld [vmem:[%s15607_s5 + $0x10] sm:$0xff]   ;;  %v12574_v50 = vld [vmem:[%s15607_s5 + $0x28] sm:$0xff]  }
 0x620   : > { %v6679_v0 = vsel %vm14782_vm5, %v6674_v42, %v6678_v34  ;;  %v6740_v25 = vrot.slane %v6738_v20, 5  ;;  %v6743_v49 = vrot.slane %v6741_v54, 4  ;;  %v8013_v20 = vrot.slane %v14903_v7, 3  ;;  %vm16121_vm5 = vmmov %vm16115_vm1 }
 0x621   : > { %6680 = vst [vmem:[#allocation3 + $0x1c] sm:$0xc] %v6679_v0  ;;  %v8012_v35 = vrot.slane %v10498_v6, 3 }
 0x622   : > { %v6744_v62 = vor.u32 %v6743_v49, %v6740_v25 }
 0x623   : > { %v14910_v54 = vsel %vm16122_vm8, %v8012_v35, %v8013_v20 }
 0x624   : > { %v6745_v13 = vrot.slane %v6744_v62, 4 }
 0x625   : > { %v6800_v63 = vpop.f32.mrb[164].mxu1 }
 0x626   : > { %v6684_v14 = vld [vmem:[#allocation3 + $0x20] sm:$0xc]  ;;  %v6752_v5 = vsel %vm14788_vm4, %v6745_v13, %v6751_v10  ;;  %v10755_v41 = vpack.c.bf16 %v6800_v63, %v6800_v63  ;;  %v11824_v37 = vpop.f32.mrb[165].mxu1  ;;  %vm16116_vm4 = vmmov %vm16114_vm10 }
 0x627   : > { %v6685_v39 = vsel %vm14793_vm7, 0, %v6684_v14  ;;  %6753 = vst [vmem:[#allocation3 + $0x24] sm:$0xf] %v6752_v5  ;;  %v6803_v33 = vpop.f32.mrb[166].mxu1  ;;  %vm16117_vm7 = vmmov %vm16115_vm1  ;;  %v7096_v13 = vld [vmem:[#allocation3] sm:$0xe] }
 0x628   : > { %6686 = vst [vmem:[#allocation3 + $0x20] sm:$0xc] %v6685_v39  ;;  %v14872_v61 = vld [vmem:[#allocation3 + $0x18] sm:$0xff]   ;;  %v6811_v53 = vshrl.u32 %v10755_v41, 16  ;;  %v6814_v44 = vshll.u32 %v10755_v41, 16  ;;  %v11825_v22 = vpop.f32.mrb[167].mxu1  ;;  %v10430_v14 = vcombine.low %v7096_v13, %v14820_v21 }
 0x629   : > { %v6894_v40 = vshll.u32 %v14872_v61, 16  ;;  %v6898_v55 = vshrl.u32 %v14872_v61, 16  ;;  %v7108_v43 = vrot.slane %v14872_v61, 1  ;;  %v14924_v32 = vld [vmem:[#allocation3 + $0x18] sm:$0xff]   ;;  %v7104_v41 = vrot.slane %v14841_v30, 1 }
 0x62a   : > { %v6813_v52 = vrot.slane %v6811_v53, 7  ;;  %v8015_v34 = vrot.slane %v14924_v32, 3  ;;  %v7103_v39 = vrot.slane %v10430_v14, 1  ;;  %v12560_v33 = vld [vmem:[%s15607_s5 + $0x18] sm:$0xff]   ;;  %v7106_v21 = vrot.slane %v14844_v46, 1 }
 0x62b   : > { %v6896_v38 = vrot.slane %v6894_v40, 1  ;;  %v12566_v40 = vld [vmem:[%s15607_s5 + $0x20] sm:$0xff]  }
 0x62c   : > { %v6816_v12 = vor.u32 %v6814_v44, %v6813_v52  ;;  %v6817_v3 = vrot.slane %v6813_v52, 4  ;;  %v14930_v0 = vsel %vm16125_vm6, %v8013_v20, %v8015_v34  ;;  %v12561_v44 = vld [vmem:[#allocation3 + $0x4] sm:$0xfe]  }
 0x62d   : > { %v6897_v24 = vsel %vm16116_vm4, %v6892_v2, %v6896_v38  ;;  %v6900_v42 = vor.u32 %v6898_v55, %v6896_v38  ;;  %v7254_v45 = vrot.slane %v12561_v44, 1 }
 0x62e   : > { %v6754_v27 = vld [vmem:[#allocation3 + $0x24] sm:$0x8]  ;;  %v6821_v48 = vsel %vm14805_vm0, %v6816_v12, %v6820_v47  ;;  %v6824_v8 = vsel %vm14747_vm11, %v6817_v3, %v6823_v51  ;;  %11837 = vmatmul.mubr.msk.bf16.gmra.mrb[176].mxu1 %vm16117_vm7, %v6897_v24  ;;  %vm16119_vm11 = vmmov %vm16116_vm4  ;;  %v6838_v49 = vld [vmem:[#allocation3 + $0x24] sm:$0x7] }
 0x62f   : > { %v6748_v29 = vld [vmem:[#allocation3 + $0x20] sm:$0x8]  ;;  %v6755_v15 = vsel %vm14812_vm9, 0, %v6754_v27  ;;  %6822 = vst [vmem:[#allocation3 + $0x28] sm:$0xf] %v6821_v48  ;;  %11840 = vmatprep.mubr.msk.bf16.mxu1 %vm16075_vm2, %v16074_v36  ;;  %vm16123_vm0 = vmmov %vm16115_vm1  ;;  %v12563_v47 = vld [vmem:[#allocation3 + $0x14] sm:$0xff]  }
 0x630   : > { %6825 = vst [vmem:[#allocation3 + $0x2c] sm:$0x1] %v6824_v8  ;;  %v6749_v57 = vsel %vm14812_vm9, %v6740_v25, %v6748_v29  ;;  %6756 = vst [vmem:[#allocation3 + $0x24] sm:$0x8] %v6755_v15  ;;  %vm16118_vm9 = vcmask 1046528   ;;  %v7257_v51 = vrot.slane %v12563_v47, 1 }
 0x631   : > { %6750 = vst [vmem:[#allocation3 + $0x20] sm:$0x8] %v6749_v57  ;;  %vm16124_vm3 = vmmov %vm16123_vm0  ;;  %v14998_v48 = vld [vmem:[#allocation3 + $0x8] sm:$0xf]  ;;  %v15001_v29 = vld [vmem:[#allocation3 + $0xc] sm:$0xff]  }
 0x632   : > { %vm16127_vm15 = vmmov %vm16123_vm0  ;;  %v7367_v15 = vld [vmem:[#allocation3 + $0x4] sm:$0xe] }
 0x633   : > { %vm16129_vm10 = vmmov %vm16123_vm0  ;;  %v10452_v57 = vcombine.low %v7367_v15, %v14998_v48 }
 0x634   : > { %vm16130_vm1 = vmmov %vm16125_vm6 }
 0x635   : > { %vm16131_vm4 = vmmov %vm16118_vm9 }
 0x636   : > { %vm16132_vm7 = vmmov %vm16123_vm0 }
 0x637   : > { %v6826_v26 = vld [vmem:[#allocation3 + $0x2c] sm:$0x3]  ;;  %v6841_v1 = vld [vmem:[#allocation3 + $0x24] sm:$0xf]  ;;  %vm16137_vm8 = vmmov %vm16123_vm0 }
 0x638   : > { %v6827_v31 = vsel %vm14831_vm12, 0, %v6826_v26  ;;  %v6837_v60 = vld [vmem:[#allocation3 + $0x20] sm:$0xf]  ;;  %vm16126_vm12 = vmmov %vm16123_vm0  ;;  %v12565_v27 = vld [vmem:[#allocation3 + $0x24] sm:$0xff]   ;;  %v7418_v26 = vshrl.u32 %v15001_v29, 16 }
 0x639   : > { %6828 = vst [vmem:[#allocation3 + $0x2c] sm:$0x3] %v6827_v31  ;;  %v14890_v28 = vcombine.low %v6837_v60, %v6841_v1  ;;  %v10421_v10 = vcombine.low %v6837_v60, %v6838_v49  ;;  %vm16139_vm6 = vmmov %vm16123_vm0  ;;  %v12564_v38 = vld [vmem:[#allocation3 + $0x1c] sm:$0xff]   ;;  %v7261_v24 = vrot.slane %v12565_v27, 1  ;;  %v7421_v1 = vshll.u32 %v15001_v29, 16  ;;  %v12572_v13 = vld [vmem:[#allocation3 + $0x24] sm:$0xff]  }
 0x63a   : > { %v7259_v12 = vrot.slane %v12564_v38, 1  ;;  %v7410_v31 = vshrl.u32 %v10452_v57, 16  ;;  %v7413_v60 = vshll.u32 %v10452_v57, 16 }
 0x63b   : > { %v6902_v17 = vshll.u32 %v14890_v28, 16  ;;  %v7110_v56 = vrot.slane %v14890_v28, 1  ;;  %v6906_v18 = vshrl.u32 %v14890_v28, 16  ;;  %v7420_v28 = vrot.slane %v7418_v26, 1 }
 0x63c   : > { %v7423_v55 = vrot.slane %v7421_v1, 2 }
 0x63d   : > { %v6904_v11 = vrot.slane %v6902_v17, 1  ;;  %v7111_v58 = vsel %vm16118_vm9, %v7108_v43, %v7110_v56  ;;  %vm16133_vm9 = vmmov %vm16131_vm4  ;;  %v15009_v17 = vld [vmem:[#allocation3 + $0x14] sm:$0xff]  }
 0x63f   : > { %v6905_v59 = vsel %vm16119_vm11, %v6900_v42, %v6904_v11  ;;  %v6908_v19 = vor.u32 %v6906_v18, %v6904_v11  ;;  %vm16134_vm11 = vmmov %vm16123_vm0  ;;  %v7424_v42 = vor.u32 %v7423_v55, %v7420_v28  ;;  %v7427_v11 = vshrl.u32 %v15009_v17, 16  ;;  %v15020_v18 = vld [vmem:[#allocation3 + $0x1c] sm:$0xff]  }
 0x640   : > { %11841 = vmatmul.mubr.msk.bf16.gmra.mrb[180].mxu1 %vm16120_vm13, %v6905_v59  ;;  %v14946_v63 = vld [vmem:[#allocation3 + $0x28] sm:$0xff]   ;;  %vm16135_vm13 = vmmov %vm16131_vm4  ;;  %v7574_v1 = vrot.slane %v15020_v18, 2  ;;  %v7576_v28 = vrot.slane %v12572_v13, 2 }
 0x641   : > { %11844 = vmatprep.mubr.msk.bf16.mxu1 %vm16075_vm2, %v16074_v36  ;;  %v8019_v5 = vrot.slane %v14946_v63, 3  ;;  %v7109_v53 = vsel %vm16135_vm13, %v7106_v21, %v7108_v43  ;;  %v7412_v43 = vrot.slane %v7410_v31, 1  ;;  %v7429_v35 = vrot.slane %v7427_v11, 1  ;;  %v7684_v11 = vld [vmem:[#allocation3 + $0x8] sm:$0xc] }
 0x648   : > { %11845 = vmatmul.mubr.msk.bf16.gmra.mrb[184].mxu1 %vm16121_vm5, %v6908_v19  ;;  %vm16136_vm5 = vmmov %vm16123_vm0 }
 0x649   : > { %11850 = vmatprep.mubr.msk.bf16.mxu1 %vm16075_vm2, %v16074_v36 }
 0x650   : > { %11851 = vmatmul.mubr.msk.bf16.vlgmr.msra.gmra.mrb[188].mxu1 %vm16123_vm0, %v14827_v16  ;;  %v14938_v16 = vld [vmem:[#allocation3 + $0x20] sm:$0xff]  }
 0x651   : > { %11854 = vmatprep.mubr.msk.bf16.mxu1 %vm16075_vm2, %v16074_v36  ;;  %11871 = vmatpush3.bf16.msra.mxu1 %v12558_v4  ;;  %v8017_v25 = vrot.slane %v14938_v16, 3  ;;  %v7436_v4 = vshrl.u32 %v15020_v18, 16 }
 0x652   : > { %11892 = vmatprep.subr.bf16.mxu1 %v16074_v36 }
 0x653   : > { %v14944_v62 = vsel %vm16128_vm14, %v8015_v34, %v8017_v25  ;;  %v14957_v37 = vsel %vm16130_vm1, %v8017_v25, %v8019_v5  ;;  %v7439_v34 = vshll.u32 %v15020_v18, 16  ;;  %v7438_v49 = vrot.slane %v7436_v4, 1 }
 0x658   : > { %11855 = vmatmul.mubr.msk.bf16.gmra.mrb[192].mxu1 %vm16124_vm3, %v14841_v30  ;;  %v7107_v30 = vsel %vm16133_vm9, %v7104_v41, %v7106_v21  ;;  %vm16138_vm3 = vmmov %vm16131_vm4  ;;  %vm16147_vm9 = vsmask.f32 6400 }
 0x659   : > { %11858 = vmatprep.mubr.msk.bf16.mxu1 %vm16075_vm2, %v16074_v36  ;;  %vm16142_vm14 = vmmov %vm16138_vm3 }
 0x65a   : > { %v7260_v3 = vsel %vm16142_vm14, %v7257_v51, %v7259_v12  ;;  %vm16144_vm1 = vmmov %vm16138_vm3  ;;  %vm16156_vm14 = vcmask 1045504  }
 0x65b   : > { %v7262_v8 = vsel %vm16144_vm1, %v7259_v12, %v7261_v24  ;;  %vm16149_vm13 = vmmov %vm16147_vm9 }
 0x65c   : > { %vm16158_vm1 = vmmov %vm16156_vm14 }
 0x660   : > { %11859 = vmatmul.mubr.msk.bf16.gmra.mrb[196].mxu1 %vm16126_vm12, %v14844_v46  ;;  %v12562_v46 = vld [vmem:[#allocation3 + $0xc] sm:$0xff]   ;;  %vm16140_vm12 = vmmov %vm16138_vm3 }
 0x661   : > { %11862 = vmatprep.mubr.msk.bf16.mxu1 %vm16075_vm2, %v16074_v36  ;;  %v7255_v22 = vrot.slane %v12562_v46, 1 }
 0x663   : > { %v7256_v52 = vsel %vm16138_vm3, %v7254_v45, %v7255_v22  ;;  %v7258_v2 = vsel %vm16140_vm12, %v7255_v22, %v7257_v51  ;;  %v7570_v51 = vrot.slane %v15001_v29, 2 }
 0x668   : > { %11863 = vmatmul.mubr.msk.bf16.gmra.mrb[200].mxu1 %vm16127_vm15, %v14872_v61  ;;  %v7105_v61 = vsel %vm16131_vm4, %v7103_v39, %v7104_v41  ;;  %vm16141_vm15 = vmmov %vm16123_vm0  ;;  %v7445_v41 = vshrl.u32 %v12572_v13, 16  ;;  %v7448_v39 = vshll.u32 %v12572_v13, 16 }
 0x669   : > { %11866 = vmatprep.mubr.msk.bf16.mxu1 %vm16075_vm2, %v16074_v36  ;;  %vm16145_vm4 = vmmov %vm16123_vm0 }
 0x66a   : > { %v7450_v21 = vrot.slane %v7448_v39, 2 }
 0x670   : > { %11867 = vmatmul.mubr.msk.bf16.gmra.mrb[204].mxu1 %vm16129_vm10, %v10421_v10  ;;  %vm16143_vm10 = vmmov %vm16123_vm0  ;;  %v7441_v10 = vrot.slane %v7439_v34, 2 }
 0x671   : > { %11872 = vmatprep.mubr.msk.bf16.mxu1 %vm16075_vm2, %v16074_v36 }
 0x672   : > { %v7442_v14 = vor.u32 %v7441_v10, %v7438_v49 }
 0x678   : > { %11873 = vmatmul.mubr.msk.bf16.vlgmr.msra.gmra.mrb[208].mxu1 %vm16132_vm7, %v7105_v61  ;;  %vm16146_vm7 = vmmov %vm16123_vm0  ;;  %v7447_v61 = vrot.slane %v7445_v41, 1  ;;  %v7731_v41 = vrot.slane %v14938_v16, 2 }
 0x679   : > { %11876 = vmatprep.mubr.msk.bf16.mxu1 %vm16075_vm2, %v16074_v36  ;;  %11893 = vmatpush3.bf16.msra.mxu1 %v12560_v33 }
 0x67a   : > { %11914 = vmatprep.subr.bf16.mxu1 %v16074_v36 }
 0x680   : > { %11877 = vmatmul.mubr.msk.bf16.gmra.mrb[212].mxu1 %vm16134_vm11, %v7107_v30  ;;  %vm16148_vm11 = vmmov %vm16123_vm0  ;;  %v7451_v30 = vor.u32 %v7450_v21, %v7447_v61 }
 0x681   : > { %11880 = vmatprep.mubr.msk.bf16.mxu1 %vm16075_vm2, %v16074_v36 }
 0x688   : > { %11881 = vmatmul.mubr.msk.bf16.gmra.mrb[216].mxu1 %vm16136_vm5, %v7109_v53  ;;  %vm16150_vm5 = vmmov %vm16123_vm0  ;;  %v12573_v53 = vld [vmem:[#allocation3 + $0x2c] ss:$0 sps:$4 sm:$0x11]  }
 0x689   : > { %11884 = vmatprep.mubr.msk.bf16.mxu1 %vm16075_vm2, %v16074_v36  ;;  %v7454_v44 = vshll.u32 %v12573_v53, 16 }
 0x68b   : > { %v7456_v22 = vrot.slane %v7454_v44, 2 }
 0x690   : > { %11885 = vmatmul.mubr.msk.bf16.gmra.mrb[220].mxu1 %vm16137_vm8, %v7111_v58  ;;  %v7430_v58 = vshll.u32 %v15009_v17, 16  ;;  %vm16151_vm8 = vmmov %vm16147_vm9 }
 0x691   : > { %11888 = vmatprep.mubr.msk.bf16.mxu1 %vm16075_vm2, %v16074_v36  ;;  %vm16152_vm3 = vmmov %vm16151_vm8 }
 0x692   : > { %v7432_v19 = vrot.slane %v7430_v58, 2  ;;  %v7452_v46 = vsel %vm16152_vm3, %v7442_v14, %v7451_v30  ;;  %vm16154_vm12 = vmmov %vm16152_vm3 }
 0x693   : > { %v7457_v45 = vsel %vm16154_vm12, %v7451_v30, %v7456_v22 }
 0x694   : > { %v7433_v20 = vor.u32 %v7432_v19, %v7429_v35  ;;  %v7727_v35 = vrot.slane %v14903_v7, 2 }
 0x696   : > { %v7434_v25 = vsel %vm16149_vm13, %v7424_v42, %v7433_v20  ;;  %v7443_v33 = vsel %vm16151_vm8, %v7433_v20, %v7442_v14  ;;  %vm16163_vm13 = vmmov %vm16123_vm0  ;;  %v12582_v20 = vld [vmem:[%s15607_s5 + $0x38] sm:$0xff]  }
 0x697   : > { %vm16165_vm8 = vmmov %vm16123_vm0 }
 0x698   : > { %11889 = vmatmul.mubr.msk.bf16.gmra.mrb[224].mxu1 %vm16123_vm0, %v7110_v56  ;;  %v7415_v56 = vrot.slane %v7413_v60, 2 }
 0x699   : > { %11894 = vmatprep.mubr.msk.bf16.mxu1 %vm16075_vm2, %v16074_v36 }
 0x69a   : > { %v7416_v59 = vor.u32 %v7415_v56, %v7412_v43 }
 0x69c   : > { %v7425_v6 = vsel %vm16147_vm9, %v7416_v59, %v7424_v42  ;;  %vm16161_vm9 = vmmov %vm16123_vm0  ;;  %v7578_v42 = vrot.slane %v12573_v53, 2  ;;  %v10475_v59 = vcombine.low %v7684_v11, %v14899_v9  ;;  %v7729_v9 = vrot.slane %v14924_v32, 2 }
 0x6a0   : > { %11895 = vmatmul.mubr.msk.bf16.vlgmr.msra.gmra.mrb[228].mxu1 %vm16139_vm6, %v7256_v52  ;;  %vm16153_vm6 = vmmov %vm16123_vm0 }
 0x6a1   : > { %11898 = vmatprep.mubr.msk.bf16.mxu1 %vm16075_vm2, %v16074_v36  ;;  %11915 = vmatpush3.bf16.msra.mxu1 %v12566_v40  ;;  %v7562_v40 = vld [vmem:[#allocation3 + $0x4] sm:$0xc] }
 0x6a2   : > { %11936 = vmatprep.subr.bf16.mxu1 %v16074_v36  ;;  %v10466_v52 = vcombine.low %v7562_v40, %v14998_v48 }
 0x6a4   : > { %v7569_v12 = vrot.slane %v10466_v52, 2 }
 0x6a8   : > { %11899 = vmatmul.mubr.msk.bf16.gmra.mrb[232].mxu1 %vm16141_vm15, %v7258_v2  ;;  %vm16155_vm15 = vmmov %vm16123_vm0 }
 0x6a9   : > { %11902 = vmatprep.mubr.msk.bf16.mxu1 %vm16075_vm2, %v16074_v36 }
 0x6b0   : > { %11903 = vmatmul.mubr.msk.bf16.gmra.mrb[236].mxu1 %vm16143_vm10, %v7260_v3  ;;  %v12575_v3 = vld [vmem:[%s15607_s5 + $0x30] sm:$0xff]   ;;  %vm16157_vm10 = vmmov %vm16123_vm0 }
 0x6b1   : > { %11906 = vmatprep.mubr.msk.bf16.mxu1 %vm16075_vm2, %v16074_v36 }
 0x6b8   : > { %11907 = vmatmul.mubr.msk.bf16.gmra.mrb[240].mxu1 %vm16145_vm4, %v7262_v8  ;;  %v7572_v8 = vrot.slane %v15009_v17, 2  ;;  %vm16159_vm4 = vmmov %vm16123_vm0 }
 0x6b9   : > { %11910 = vmatprep.mubr.msk.bf16.mxu1 %vm16075_vm2, %v16074_v36  ;;  %vm16167_vm3 = vmmov %vm16159_vm4 }
 0x6ba   : > { %v7573_v26 = vsel %vm16158_vm1, %v7570_v51, %v7572_v8  ;;  %vm16169_vm12 = vmmov %vm16167_vm3 }
 0x6c0   : > { %11911 = vmatmul.mubr.msk.bf16.gmra.mrb[244].mxu1 %vm16146_vm7, %v7261_v24  ;;  %v7571_v24 = vsel %vm16156_vm14, %v7569_v12, %v7570_v51  ;;  %vm16160_vm7 = vmmov %vm16158_vm1  ;;  %v7849_v12 = vshrl.u32 %v10475_v59, 16 }
 0x6c1   : > { %11916 = vmatprep.mubr.msk.bf16.mxu1 %vm16075_vm2, %v16074_v36  ;;  %v7575_v31 = vsel %vm16160_vm7, %v7572_v8, %v7574_v1  ;;  %vm16171_vm14 = vmmov %vm16167_vm3  ;;  %v7860_v8 = vshll.u32 %v14903_v7, 16 }
 0x6c8   : > { %11917 = vmatmul.mubr.msk.bf16.vlgmr.msra.gmra.mrb[248].mxu1 %vm16148_vm11, %v7425_v6  ;;  %vm16162_vm11 = vmmov %vm16158_vm1 }
 0x6c9   : > { %11920 = vmatprep.mubr.msk.bf16.mxu1 %vm16075_vm2, %v16074_v36  ;;  %11937 = vmatpush3.bf16.msra.mxu1 %v12574_v50  ;;  %v7577_v56 = vsel %vm16162_vm11, %v7574_v1, %v7576_v28  ;;  %v7726_v50 = vrot.slane %v10475_v59, 2  ;;  %v7851_v1 = vrot.slane %v7849_v12, 2 }
 0x6ca   : > { %11958 = vmatprep.subr.bf16.mxu1 %v16074_v36 }
 0x6d0   : > { %11921 = vmatmul.mubr.msk.bf16.gmra.mrb[252].mxu1 %vm16150_vm5, %v7434_v25  ;;  %vm16164_vm5 = vmmov %vm16158_vm1 }
 0x6d1   : > { %11924 = vmatprep.mubr.msk.bf16.mxu1 %vm16075_vm2, %v16074_v36  ;;  %v7579_v58 = vsel %vm16164_vm5, %v7576_v28, %v7578_v42  ;;  %v7862_v28 = vrot.slane %v7860_v8, 3 }
 0x6d8   : > { %11925 = vmatmul.mubr.msk.bf16.gmra.mrb[0].mxu1 %vm16123_vm0, %v7443_v33  ;;  %vm16166_vm0 = vmmov %vm16158_vm1 }
 0x6d9   : > { %11928 = vmatprep.mubr.msk.bf16.mxu1 %vm16075_vm2, %v16074_v36  ;;  %v7728_v34 = vsel %vm16166_vm0, %v7726_v50, %v7727_v35  ;;  %vm16173_vm1 = vmmov %vm16167_vm3 }
 0x6da   : > { %vm16175_vm7 = vmmov %vm16173_vm1 }
 0x6db   : > { %vm16177_vm11 = vmmov %vm16173_vm1 }
 0x6dc   : > { %vm16179_vm5 = vmmov %vm16173_vm1 }
 0x6e0   : > { %11929 = vmatmul.mubr.msk.bf16.gmra.mrb[4].mxu1 %vm16153_vm6, %v7452_v46  ;;  %vm16168_vm6 = vmmov %vm16166_vm0  ;;  %v7733_v46 = vrot.slane %v14946_v63, 2 }
 0x6e1   : > { %11932 = vmatprep.mubr.msk.bf16.mxu1 %vm16075_vm2, %v16074_v36  ;;  %v7730_v14 = vsel %vm16168_vm6, %v7727_v35, %v7729_v9 }
 0x6e8   : > { %11933 = vmatmul.mubr.msk.bf16.gmra.mrb[8].mxu1 %vm16155_vm15, %v7457_v45  ;;  %vm16170_vm15 = vmmov %vm16166_vm0 }
 0x6e9   : > { %11938 = vmatprep.mubr.msk.bf16.mxu1 %vm16075_vm2, %v16074_v36  ;;  %v6964_v47 = vpop.f32.mrb[168].mxu1  ;;  %v7732_v53 = vsel %vm16170_vm15, %v7729_v9, %v7731_v41 }
 0x6ea   : > { %v11830_v2 = vpop.f32.mrb[169].mxu1 }
 0x6eb   : > { %v6967_v38 = vpop.f32.mrb[170].mxu1  ;;  %v12581_v2 = vld [vmem:[#allocation3 + $0x30] ss:$0 sps:$4 sm:$0x11]  }
 0x6ec   : > { %v11831_v27 = vpop.f32.mrb[171].mxu1  ;;  %v7735_v38 = vrot.slane %v12581_v2, 2 }
 0x6f0   : > { %11939 = vmatmul.mubr.msk.bf16.vlgmr.msra.gmra.mrb[12].mxu1 %vm16157_vm10, %v7571_v24  ;;  %vm16172_vm10 = vmmov %vm16166_vm0 }
 0x6f1   : > { %11942 = vmatprep.mubr.msk.bf16.mxu1 %vm16075_vm2, %v16074_v36  ;;  %11959 = vmatpush3.bf16.msra.mxu1 %v12575_v3  ;;  %v6972_v48 = vpop.f32.mrb[172].mxu1  ;;  %v7734_v51 = vsel %vm16172_vm10, %v7731_v41, %v7733_v46  ;;  %v7852_v3 = vshll.u32 %v10475_v59, 16 }
 0x6f2   : > { %11980 = vmatprep.subr.bf16.mxu1 %v16074_v36  ;;  %v11834_v29 = vpop.f32.mrb[173].mxu1 }
 0x6f3   : > { %v6975_v15 = vpop.f32.mrb[174].mxu1 }
 0x6f4   : > { %v11835_v57 = vpop.f32.mrb[175].mxu1 }
 0x6f8   : > { %11943 = vmatmul.mubr.msk.bf16.gmra.mrb[16].mxu1 %vm16159_vm4, %v7573_v26  ;;  %vm16174_vm4 = vmmov %vm16166_vm0 }
 0x6f9   : > { %11946 = vmatprep.mubr.msk.bf16.mxu1 %vm16075_vm2, %v16074_v36  ;;  %v7736_v26 = vsel %vm16174_vm4, %v7733_v46, %v7735_v38  ;;  %vm16181_vm0 = vmmov %vm16173_vm1 }
 0x6fa   : > { %vm16183_vm6 = vmmov %vm16181_vm0 }
 0x6fb   : > { %vm16185_vm15 = vmmov %vm16181_vm0 }
 0x6fc   : > { %vm16187_vm10 = vmmov %vm16181_vm0 }
 0x6fd   : > { %vm16189_vm4 = vmmov %vm16181_vm0 }
 0x700   : > { %11947 = vmatmul.mubr.msk.bf16.gmra.mrb[20].mxu1 %vm16161_vm9, %v7575_v31  ;;  %v7854_v31 = vrot.slane %v7852_v3, 3  ;;  %vm16176_vm9 = vsmask.f32 5376 }
 0x701   : > { %11950 = vmatprep.mubr.msk.bf16.mxu1 %vm16075_vm2, %v16074_v36  ;;  %v6980_v60 = vpop.f32.mrb[176].mxu1 }
 0x702   : > { %v11838_v55 = vpop.f32.mrb[177].mxu1 }
 0x703   : > { %v6983_v17 = vpop.f32.mrb[178].mxu1  ;;  %v7855_v55 = vor.u32 %v7854_v31, %v7851_v1 }
 0x704   : > { %v11839_v43 = vpop.f32.mrb[179].mxu1 }
 0x708   : > { %11951 = vmatmul.mubr.msk.bf16.gmra.mrb[24].mxu1 %vm16163_vm13, %v7577_v56  ;;  %v7866_v56 = vshrl.u32 %v14924_v32, 16  ;;  %vm16178_vm13 = vmmov %vm16176_vm9 }
 0x709   : > { %11954 = vmatprep.mubr.msk.bf16.mxu1 %vm16075_vm2, %v16074_v36 }
 0x710   : > { %11955 = vmatmul.mubr.msk.bf16.gmra.mrb[28].mxu1 %vm16165_vm8, %v7579_v58  ;;  %v12584_v58 = vld [vmem:[%s15607_s5 + $0x40] sm:$0xff]   ;;  %vm16180_vm8 = vmmov %vm16176_vm9 }
 0x711   : > { %11960 = vmatprep.mubr.msk.bf16.mxu1 %vm16075_vm2, %v16074_v36 }
 0x713   : > { %v6988_v6 = vpop.f32.mrb[180].mxu1 }
 0x714   : > { %v11842_v18 = vpop.f32.mrb[181].mxu1 }
 0x715   : > { %v6991_v19 = vpop.f32.mrb[182].mxu1  ;;  %v7868_v18 = vrot.slane %v7866_v56, 2 }
 0x716   : > { %v11843_v4 = vpop.f32.mrb[183].mxu1 }
 0x717   : > { %v7875_v4 = vshrl.u32 %v14938_v16, 16 }
 0x718   : > { %11961 = vmatmul.mubr.msk.bf16.vlgmr.msra.gmra.mrb[32].mxu1 %vm16167_vm3, %v7728_v34  ;;  %v7878_v34 = vshll.u32 %v14938_v16, 16  ;;  %v7887_v16 = vshll.u32 %v14946_v63, 16  ;;  %vm16182_vm3 = vmmov %vm16180_vm8 }
 0x719   : > { %11964 = vmatprep.mubr.msk.bf16.mxu1 %vm16075_vm2, %v16074_v36  ;;  %11981 = vmatpush3.bf16.msra.mxu1 %v12582_v20 }
 0x71a   : > { %12002 = vmatprep.subr.bf16.mxu1 %v16074_v36  ;;  %v7880_v41 = vrot.slane %v7878_v34, 3 }
 0x71b   : > { %v15083_v25 = vpop.f32.mrb[184].mxu1 }
 0x71c   : > { %v11846_v49 = vpop.f32.mrb[185].mxu1 }
 0x71d   : > { %v6999_v10 = vpop.f32.mrb[186].mxu1 }
 0x71e   : > { %v11847_v13 = vpop.f32.mrb[187].mxu1 }
 0x720   : > { %11965 = vmatmul.mubr.msk.bf16.gmra.mrb[36].mxu1 %vm16169_vm12, %v7730_v14  ;;  %v7877_v14 = vrot.slane %v7875_v4, 2  ;;  %vm16184_vm12 = vmmov %vm16182_vm3 }
 0x721   : > { %11968 = vmatprep.mubr.msk.bf16.mxu1 %vm16075_vm2, %v16074_v36 }
 0x723   : > { %v7057_v39 = vpop.f32.mrb[188].mxu1 }
 0x724   : > { %v15090_v33 = vadd.f32 %v7057_v39, %v6964_v47  ;;  %v11852_v61 = vpop.f32.mrb[189].mxu1 }
 0x725   : > { %v7060_v21 = vpop.f32.mrb[190].mxu1  ;;  %v7881_v61 = vor.u32 %v7880_v41, %v7877_v14 }
 0x726   : > { %v11853_v30 = vpop.f32.mrb[191].mxu1  ;;  %v7884_v21 = vshrl.u32 %v14946_v63, 16 }
 0x728   : > { %11969 = vmatmul.mubr.msk.bf16.gmra.mrb[40].mxu1 %vm16171_vm14, %v7732_v53  ;;  %vm16186_vm14 = vmmov %vm16181_vm0 }
 0x729   : > { %11972 = vmatprep.mubr.msk.bf16.mxu1 %vm16075_vm2, %v16074_v36 }
 0x72b   : > { %v7065_v44 = vpop.f32.mrb[192].mxu1 }
 0x72c   : > { %v15097_v22 = vadd.f32 %v7065_v44, %v6972_v48  ;;  %v11856_v45 = vpop.f32.mrb[193].mxu1  ;;  %v7857_v48 = vshrl.u32 %v14903_v7, 16  ;;  %v7869_v7 = vshll.u32 %v14924_v32, 16 }
 0x72d   : > { %v7068_v40 = vpop.f32.mrb[194].mxu1  ;;  %v7886_v45 = vrot.slane %v7884_v21, 2 }
 0x72e   : > { %v15099_v52 = vadd.f32 %v7068_v40, %v6975_v15  ;;  %v11857_v47 = vpop.f32.mrb[195].mxu1  ;;  %v7859_v60 = vrot.slane %v7857_v48, 2  ;;  %v7871_v35 = vrot.slane %v7869_v7, 3  ;;  %v7889_v40 = vrot.slane %v7887_v16, 3 }
 0x72f   : > { %v15133_v47 = vld [vmem:[#allocation3 + $0x30] ss:$0 sps:$4 sm:$0x33]  }
 0x730   : > { %11973 = vmatmul.mubr.msk.bf16.gmra.mrb[44].mxu1 %vm16173_vm1, %v7734_v51  ;;  %v7863_v42 = vor.u32 %v7862_v28, %v7859_v60  ;;  %v7872_v32 = vor.u32 %v7871_v35, %v7868_v18  ;;  %v7890_v2 = vor.u32 %v7889_v40, %v7886_v45  ;;  %v7893_v38 = vshrl.u32 %v15133_v47, 16  ;;  %vm16188_vm1 = vmmov %vm16181_vm0 }
 0x731   : > { %11976 = vmatprep.mubr.msk.bf16.mxu1 %vm16075_vm2, %v16074_v36 }
 0x732   : > { %v7864_v6 = vsel %vm16176_vm9, %v7855_v55, %v7863_v42  ;;  %v7873_v13 = vsel %vm16178_vm13, %v7863_v42, %v7872_v32  ;;  %v7882_v44 = vsel %vm16180_vm8, %v7872_v32, %v7881_v61  ;;  %v7891_v8 = vsel %vm16182_vm3, %v7881_v61, %v7890_v2  ;;  %vm16191_vm9 = vmmov %vm16181_vm0 }
 0x733   : > { %v7073_v27 = vpop.f32.mrb[196].mxu1  ;;  %vm16192_vm13 = vsmask.f32 256  ;;  %vm8159_vm8 = vcmask 257024   ;;  %vm8166_vm3 = vcmask 254976  }
 0x734   : > { %v11860_v24 = vpop.f32.mrb[197].mxu1  ;;  %8167 = vst.msk [vmem:[#allocation4 + $0x10] sm:$0x3] %vm8166_vm3, %v16073_v23 }
 0x735   : > { %v7076_v29 = vpop.f32.mrb[198].mxu1 }
 0x736   : > { %v15107_v15 = vadd.f32 %v7076_v29, %v6983_v17  ;;  %v11861_v57 = vpop.f32.mrb[199].mxu1  ;;  %v7895_v29 = vrot.slane %v7893_v38, 2 }
 0x738   : > { %11977 = vmatmul.mubr.msk.bf16.gmra.mrb[48].mxu1 %vm16175_vm7, %v7736_v26  ;;  %vm16190_vm7 = vcmask 1044480  }
 0x739   : > { %11982 = vmatprep.mubr.msk.bf16.mxu1 %vm16075_vm2, %v16074_v36 }
 0x73b   : > { %v7081_v43 = vpop.f32.mrb[200].mxu1 }
 0x73c   : > { %v11864_v17 = vpop.f32.mrb[201].mxu1 }
 0x73d   : > { %v7084_v11 = vpop.f32.mrb[202].mxu1 }
 0x73e   : > { %v7085_v59 = vadd.f32 %v7084_v11, %v6991_v19  ;;  %v11865_v50 = vpop.f32.mrb[203].mxu1 }
 0x740   : > { %11983 = vmatmul.mubr.msk.bf16.vlgmr.msra.gmra.mrb[52].mxu1 %vm16177_vm11, %v7864_v6  ;;  %vm8184_vm11 = vcmask 253952  }
 0x741   : > { %11986 = vmatprep.mubr.msk.bf16.mxu1 %vm16075_vm2, %v16074_v36  ;;  %12003 = vmatpush3.bf16.msra.mxu1 %v12584_v58 }
 0x743   : > { %v7089_v20 = vpop.f32.mrb[204].mxu1 }
 0x744   : > { %v7090_v9 = vadd.f32 %v7089_v20, %v15083_v25  ;;  %v11868_v19 = vpop.f32.mrb[205].mxu1 }
 0x745   : > { %v7092_v49 = vpop.f32.mrb[206].mxu1 }
 0x746   : > { %v11869_v10 = vpop.f32.mrb[207].mxu1  ;;  %v8021_v49 = vrot.slane %v15133_v47, 3 }
 0x748   : > { %11987 = vmatmul.mubr.msk.bf16.gmra.mrb[56].mxu1 %vm16179_vm5, %v7873_v13  ;;  %v8022_v41 = vsel %vm16190_vm7, %v8019_v5, %v8021_v49  ;;  %vm15174_vm5 = vmand %vm8184_vm11, %vm16192_vm13  ;;  %vm8204_vm7 = vcmask 256001  }
 0x749   : > { %11990 = vmatprep.mubr.msk.bf16.mxu1 %vm16075_vm2, %v16074_v36 }
 0x74b   : > { %v7167_v39 = vpop.f32.mrb[208].mxu1 }
 0x74c   : > { %v7206_v25 = vadd.f32 %v7167_v39, %v15090_v33  ;;  %v11874_v30 = vpop.f32.mrb[209].mxu1  ;;  %v7896_v33 = vshll.u32 %v15133_v47, 16 }
 0x74d   : > { %v7170_v53 = vpop.f32.mrb[210].mxu1 }
 0x74e   : > { %v11875_v46 = vpop.f32.mrb[211].mxu1  ;;  %v7898_v57 = vrot.slane %v7896_v33, 3 }
 0x750   : > { %11991 = vmatmul.mubr.msk.bf16.gmra.mrb[60].mxu1 %vm16181_vm0, %v7882_v44  ;;  %v7899_v1 = vor.u32 %v7898_v57, %v7895_v29  ;;  %vm8164_vm0 = vcmask 257027  }
 0x751   : > { %11994 = vmatprep.mubr.msk.bf16.mxu1 %vm16075_vm2, %v16074_v36  ;;  %8165 = vst.msk [vmem:[#allocation4 + $0xc] sm:$0x8] %vm8164_vm0, %v16073_v23 }
 0x752   : > { %v7900_v55 = vsel %vm16184_vm12, %v7890_v2, %v7899_v1 }
 0x753   : > { %v7175_v51 = vpop.f32.mrb[212].mxu1 }
 0x754   : > { %v7208_v12 = vadd.f32 %v7175_v51, %v15097_v22  ;;  %v11878_v3 = vpop.f32.mrb[213].mxu1 }
 0x755   : > { %v7178_v27 = vpop.f32.mrb[214].mxu1 }
 0x756   : > { %v7209_v24 = vadd.f32 %v7178_v27, %v15099_v52  ;;  %v11879_v48 = vpop.f32.mrb[215].mxu1 }
 0x758   : > { %11995 = vmatmul.mubr.msk.bf16.gmra.mrb[64].mxu1 %vm16183_vm6, %v7891_v8  ;;  %vm16195_vm6 = vsmask.f32 3328 }
 0x759   : > { %11998 = vmatprep.mubr.msk.bf16.mxu1 %vm16075_vm2, %v16074_v36  ;;  %vm8160_vm12 = vmand %vm8159_vm8, %vm16195_vm6  ;;  %vm16205_vm8 = vsmask.f32 7938 }
 0x75b   : > { %v7183_v26 = vpop.f32.mrb[216].mxu1 }
 0x75c   : > { %v11882_v31 = vpop.f32.mrb[217].mxu1 }
 0x75d   : > { %v7186_v60 = vpop.f32.mrb[218].mxu1 }
 0x75e   : > { %v7211_v22 = vadd.f32 %v7186_v60, %v15107_v15  ;;  %v11883_v28 = vpop.f32.mrb[219].mxu1 }
 0x760   : > { %11999 = vmatmul.mubr.msk.bf16.gmra.mrb[68].mxu1 %vm16185_vm15, %v7900_v55  ;;  %vm8199_vm15 = vcmask 254977  }
 0x761   : > { %12004 = vmatprep.mubr.msk.bf16.mxu1 %vm16075_vm2, %v16074_v36 }
 0x763   : > { %v7191_v52 = vpop.f32.mrb[220].mxu1 }
 0x764   : > { %v11886_v43 = vpop.f32.mrb[221].mxu1 }
 0x765   : > { %v7194_v56 = vpop.f32.mrb[222].mxu1 }
 0x766   : > { %v7213_v7 = vadd.f32 %v7194_v56, %v7085_v59  ;;  %v11887_v17 = vpop.f32.mrb[223].mxu1 }
 0x768   : > { %12005 = vmatmul.mubr.msk.bf16.vlgmr.msra.gmra.mrb[72].mxu1 %vm16186_vm14, %v14910_v54  ;;  %vm16196_vm14 = vsmask.f32 1280 }
 0x769   : > { %12008 = vmatprep.mubr.msk.bf16.mxu1 %vm16075_vm2, %v16074_v36 }
 0x76b   : > { %v7199_v15 = vpop.f32.mrb[224].mxu1 }
 0x76c   : > { %v7214_v42 = vadd.f32 %v7199_v15, %v7090_v9  ;;  %v11890_v11 = vpop.f32.mrb[225].mxu1 }
 0x76d   : > { %v7202_v58 = vpop.f32.mrb[226].mxu1 }
 0x76e   : > { %v11891_v50 = vpop.f32.mrb[227].mxu1  ;;  %v8275_v58 = vld [vmem:[#allocation4 + $0xc] sm:$0x1] }
 0x76f   : > { %v8276_v50 = vsel %vm15174_vm5, 0, %v8275_v58 }
 0x770   : > { %12009 = vmatmul.mubr.msk.bf16.gmra.mrb[76].mxu1 %vm16187_vm10, %v14930_v0  ;;  %8277 = vst [vmem:[#allocation4 + $0xc] sm:$0x1] %v8276_v50  ;;  %vm15209_vm10 = vmand %vm8199_vm15, %vm16196_vm14 }
 0x771   : > { %12012 = vmatprep.mubr.msk.bf16.mxu1 %vm16075_vm2, %v16074_v36 }
 0x773   : > { %v7318_v6 = vpop.f32.mrb[228].mxu1 }
 0x774   : > { %v7357_v59 = vadd.f32 %v7318_v6, %v7206_v25  ;;  %v11896_v18 = vpop.f32.mrb[229].mxu1 }
 0x775   : > { %v7321_v35 = vpop.f32.mrb[230].mxu1 }
 0x776   : > { %v11897_v32 = vpop.f32.mrb[231].mxu1 }
 0x778   : > { %12013 = vmatmul.mubr.msk.bf16.gmra.mrb[80].mxu1 %vm16188_vm1, %v14944_v62  ;;  %vm16199_vm1 = vsmask.f32 7950 }
 0x779   : > { %12016 = vmatprep.mubr.msk.bf16.mxu1 %vm16075_vm2, %v16074_v36 }
 0x77b   : > { %v7326_v54 = vpop.f32.mrb[232].mxu1 }
 0x77c   : > { %v7359_v20 = vadd.f32 %v7326_v54, %v7208_v12  ;;  %v11900_v4 = vpop.f32.mrb[233].mxu1 }
 0x77d   : > { %v7329_v34 = vpop.f32.mrb[234].mxu1 }
 0x77e   : > { %v7360_v9 = vadd.f32 %v7329_v34, %v7209_v24  ;;  %v11901_v0 = vpop.f32.mrb[235].mxu1 }
 0x780   : > { %12017 = vmatmul.mubr.msk.bf16.gmra.mrb[84].mxu1 %vm16189_vm4, %v14957_v37  ;;  %vm15215_vm4 = vmand %vm8164_vm0, %vm16199_vm1 }
 0x781   : > { %12020 = vmatprep.mubr.msk.bf16.mxu1 %vm16075_vm2, %v16074_v36 }
 0x783   : > { %v7334_v19 = vpop.f32.mrb[236].mxu1 }
 0x784   : > { %v11904_v10 = vpop.f32.mrb[237].mxu1  ;;  %v8161_v19 = vld [vmem:[#allocation4] sm:$0xf] }
 0x785   : > { %v7337_v62 = vpop.f32.mrb[238].mxu1 }
 0x786   : > { %v7362_v13 = vadd.f32 %v7337_v62, %v7211_v22  ;;  %v11905_v14 = vpop.f32.mrb[239].mxu1  ;;  %v8162_v62 = vsel %vm8160_vm12, 0, %v8161_v19  ;;  %vm16208_vm12 = vsmask.f32 2310 }
 0x787   : > { %8163 = vst [vmem:[#allocation4] sm:$0xf] %v8162_v62  ;;  %vm15240_vm14 = vmand %vm8204_vm7, %vm16208_vm12  ;;  %vm16214_vm7 = vsmask.f32 7946  ;;  %vm16222_vm12 = vsmask.f32 7424 }
 0x788   : > { %12021 = vmatmul.mubr.msk.bf16.gmra.mrb[88].mxu1 %vm16191_vm9, %v8022_v41  ;;  %vm16202_vm9 = vmmov %vm16195_vm6 }
 0x789   : > { %vm15229_vm13 = vmand %vm8164_vm0, %vm16202_vm9  ;;  %vm16211_vm0 = vsmask.f32 2304 }
 0x78a   : > { %vm15235_vm6 = vmand %vm8184_vm11, %vm16205_vm8  ;;  %vm8216_vm11 = vcmask 256002  }
 0x78b   : > { %v7342_v39 = vpop.f32.mrb[240].mxu1  ;;  %vm15254_vm1 = vmand %vm8216_vm11, %vm16211_vm0  ;;  %vm8663_vm0 = vsmask.f32 4352 }
 0x78c   : > { %v11908_v61 = vpop.f32.mrb[241].mxu1  ;;  %vm15259_vm9 = vmand %vm8216_vm11, %vm16214_vm7  ;;  %vm16224_vm11 = vcmask 1044480   ;;  %vm16226_vm7 = vsmask.f32 5376 }
 0x78d   : > { %v7345_v21 = vpop.f32.mrb[242].mxu1 }
 0x78e   : > { %v7364_v37 = vadd.f32 %v7345_v21, %v7213_v7  ;;  %v11909_v16 = vpop.f32.mrb[243].mxu1 }
 0x793   : > { %v7350_v25 = vpop.f32.mrb[244].mxu1 }
 0x794   : > { %v7365_v30 = vadd.f32 %v7350_v25, %v7214_v42  ;;  %v11912_v53 = vpop.f32.mrb[245].mxu1 }
 0x795   : > { %v7353_v46 = vpop.f32.mrb[246].mxu1 }
 0x796   : > { %v11913_v44 = vpop.f32.mrb[247].mxu1 }
 0x79b   : > { %v7513_v45 = vpop.f32.mrb[248].mxu1 }
 0x79c   : > { %v7552_v40 = vadd.f32 %v7513_v45, %v7357_v59  ;;  %v11918_v47 = vpop.f32.mrb[249].mxu1  ;;  %v12586_v45 = vld [vmem:[%s15609_s7 + $0x10] sm:$0xff]  }
 0x79d   : > { %v7516_v51 = vpop.f32.mrb[250].mxu1  ;;  %12024 = vmatprep.subr.bf16.mxu1 %v12586_v45 }
 0x79e   : > { %v11919_v2 = vpop.f32.mrb[251].mxu1  ;;  %12025 = vmatpush3.bf16.msra.mxu1 %v12586_v45 }
 0x7a3   : > { %v7521_v63 = vpop.f32.mrb[252].mxu1 }
 0x7a4   : > { %v7554_v38 = vadd.f32 %v7521_v63, %v7359_v20  ;;  %v11922_v5 = vpop.f32.mrb[253].mxu1  ;;  %v15194_v63 = vld [vmem:[%s15609_s7] sm:$0xff]  }
 0x7a5   : > { %v7524_v33 = vpop.f32.mrb[254].mxu1 }
 0x7a6   : > { %v7555_v12 = vadd.f32 %v7524_v33, %v7360_v9  ;;  %v11923_v3 = vpop.f32.mrb[255].mxu1 }
 0x7ab   : > { %v7529_v27 = vpop.f32.mrb[0].mxu1 }
 0x7ac   : > { %v11926_v24 = vpop.f32.mrb[1].mxu1 }
 0x7ad   : > { %v7532_v48 = vpop.f32.mrb[2].mxu1 }
 0x7ae   : > { %v7557_v8 = vadd.f32 %v7532_v48, %v7362_v13  ;;  %v11927_v29 = vpop.f32.mrb[3].mxu1 }
 0x7b3   : > { %v7537_v57 = vpop.f32.mrb[4].mxu1 }
 0x7b4   : > { %v11930_v26 = vpop.f32.mrb[5].mxu1 }
 0x7b5   : > { %v7540_v1 = vpop.f32.mrb[6].mxu1 }
 0x7b6   : > { %v7559_v31 = vadd.f32 %v7540_v1, %v7364_v37  ;;  %v11931_v60 = vpop.f32.mrb[7].mxu1 }
 0x7bb   : > { %v7545_v22 = vpop.f32.mrb[8].mxu1 }
 0x7bc   : > { %v7560_v28 = vadd.f32 %v7545_v22, %v7365_v30  ;;  %v11934_v55 = vpop.f32.mrb[9].mxu1 }
 0x7bd   : > { %v7548_v52 = vpop.f32.mrb[10].mxu1 }
 0x7be   : > { %v11935_v43 = vpop.f32.mrb[11].mxu1 }
 0x7c3   : > { %v7635_v56 = vpop.f32.mrb[12].mxu1 }
 0x7c4   : > { %v7674_v7 = vadd.f32 %v7635_v56, %v7552_v40  ;;  %v11940_v17 = vpop.f32.mrb[13].mxu1  ;;  %v12587_v40 = vld [vmem:[%s15609_s7 + $0x18] sm:$0xff]  }
 0x7c5   : > { %v7638_v15 = vpop.f32.mrb[14].mxu1  ;;  %12026 = vmatprep.subr.bf16.mxu1 %v12587_v40 }
 0x7c6   : > { %v11941_v42 = vpop.f32.mrb[15].mxu1  ;;  %12027 = vmatpush3.bf16.msra.mxu1 %v12587_v40 }
 0x7c7   : > { %12032 = vmatprep.subr.bf16.mxu1 %v15194_v63 }
 0x7cb   : > { %v7643_v6 = vpop.f32.mrb[16].mxu1 }
 0x7cc   : > { %v7676_v59 = vadd.f32 %v7643_v6, %v7554_v38  ;;  %v11944_v18 = vpop.f32.mrb[17].mxu1 }
 0x7cd   : > { %v7646_v35 = vpop.f32.mrb[18].mxu1 }
 0x7ce   : > { %v7677_v32 = vadd.f32 %v7646_v35, %v7555_v12  ;;  %v11945_v54 = vpop.f32.mrb[19].mxu1 }
 0x7d3   : > { %v7651_v20 = vpop.f32.mrb[20].mxu1 }
 0x7d4   : > { %v11948_v4 = vpop.f32.mrb[21].mxu1 }
 0x7d5   : > { %v7654_v34 = vpop.f32.mrb[22].mxu1 }
 0x7d6   : > { %v7679_v9 = vadd.f32 %v7654_v34, %v7557_v8  ;;  %v11949_v0 = vpop.f32.mrb[23].mxu1 }
 0x7db   : > { %v7659_v49 = vpop.f32.mrb[24].mxu1 }
 0x7dc   : > { %v11952_v10 = vpop.f32.mrb[25].mxu1 }
 0x7dd   : > { %v7662_v13 = vpop.f32.mrb[26].mxu1 }
 0x7de   : > { %v7681_v14 = vadd.f32 %v7662_v13, %v7559_v31  ;;  %v11953_v41 = vpop.f32.mrb[27].mxu1 }
 0x7e3   : > { %v7667_v39 = vpop.f32.mrb[28].mxu1 }
 0x7e4   : > { %v7682_v61 = vadd.f32 %v7667_v39, %v7560_v28  ;;  %v11956_v21 = vpop.f32.mrb[29].mxu1  ;;  %v15204_v39 = vld [vmem:[%s15608_s6] ss:$0 sm:$0xff] }
 0x7e5   : > { %v7670_v37 = vpop.f32.mrb[30].mxu1 }
 0x7e6   : > { %v11957_v16 = vpop.f32.mrb[31].mxu1 }
 0x7eb   : > { %v7792_v25 = vpop.f32.mrb[32].mxu1 }
 0x7ec   : > { %v7831_v30 = vadd.f32 %v7792_v25, %v7674_v7  ;;  %v11962_v53 = vpop.f32.mrb[33].mxu1 }
 0x7ed   : > { %v7795_v46 = vpop.f32.mrb[34].mxu1 }
 0x7ee   : > { %v11963_v44 = vpop.f32.mrb[35].mxu1  ;;  %v8186_v46 = vld [vmem:[#allocation4 + $0x4] sm:$0x1] }
 0x7f3   : > { %v7800_v47 = vpop.f32.mrb[36].mxu1 }
 0x7f4   : > { %v7833_v51 = vadd.f32 %v7800_v47, %v7676_v59  ;;  %v11966_v2 = vpop.f32.mrb[37].mxu1 }
 0x7f5   : > { %v7803_v38 = vpop.f32.mrb[38].mxu1 }
 0x7f6   : > { %v7834_v5 = vadd.f32 %v7803_v38, %v7677_v32  ;;  %v11967_v33 = vpop.f32.mrb[39].mxu1  ;;  %v8201_v38 = vld [vmem:[#allocation4 + $0x4] sm:$0x2] }
 0x7fb   : > { %v7808_v12 = vpop.f32.mrb[40].mxu1 }
 0x7fc   : > { %v11970_v3 = vpop.f32.mrb[41].mxu1 }
 0x7fd   : > { %v7811_v27 = vpop.f32.mrb[42].mxu1  ;;  %v8178_v3 = vld [vmem:[#allocation4] sm:$0x8] }
 0x7fe   : > { %v7836_v24 = vadd.f32 %v7811_v27, %v7679_v9  ;;  %v11971_v48 = vpop.f32.mrb[43].mxu1 }
 0x803   : > { %v7816_v8 = vpop.f32.mrb[44].mxu1 }
 0x804   : > { %v11974_v29 = vpop.f32.mrb[45].mxu1 }
 0x805   : > { %v7819_v57 = vpop.f32.mrb[46].mxu1 }
 0x806   : > { %v7838_v26 = vadd.f32 %v7819_v57, %v7681_v14  ;;  %v11975_v1 = vpop.f32.mrb[47].mxu1 }
 0x80b   : > { %v7824_v31 = vpop.f32.mrb[48].mxu1 }
 0x80c   : > { %v7839_v60 = vadd.f32 %v7824_v31, %v7682_v61  ;;  %v11978_v22 = vpop.f32.mrb[49].mxu1 }
 0x80d   : > { %v7827_v28 = vpop.f32.mrb[50].mxu1 }
 0x80e   : > { %v11979_v55 = vpop.f32.mrb[51].mxu1 }
 0x80f   : > { %v8222_v55 = vld [vmem:[#allocation4 + $0x4] sm:$0x8] }
 0x813   : > { %v7956_v52 = vpop.f32.mrb[52].mxu1 }
 0x814   : > { %v7995_v43 = vadd.f32 %v7956_v52, %v7831_v30  ;;  %v11984_v56 = vpop.f32.mrb[53].mxu1 }
 0x815   : > { %v7959_v7 = vpop.f32.mrb[54].mxu1 }
 0x816   : > { %v11985_v17 = vpop.f32.mrb[55].mxu1 }
 0x81b   : > { %v7964_v15 = vpop.f32.mrb[56].mxu1 }
 0x81c   : > { %v7997_v42 = vadd.f32 %v7964_v15, %v7833_v51  ;;  %v11988_v58 = vpop.f32.mrb[57].mxu1 }
 0x81d   : > { %v7967_v50 = vpop.f32.mrb[58].mxu1  ;;  %v8238_v58 = vld [vmem:[#allocation4 + $0x8] sm:$0x1] }
 0x81e   : > { %v7998_v6 = vadd.f32 %v7967_v50, %v7834_v5  ;;  %v11989_v59 = vpop.f32.mrb[59].mxu1 }
 0x823   : > { %v7972_v18 = vpop.f32.mrb[60].mxu1 }
 0x824   : > { %v11992_v35 = vpop.f32.mrb[61].mxu1 }
 0x825   : > { %v7975_v32 = vpop.f32.mrb[62].mxu1 }
 0x826   : > { %v8000_v54 = vadd.f32 %v7975_v32, %v7836_v24  ;;  %v11993_v20 = vpop.f32.mrb[63].mxu1 }
 0x82b   : > { %v7980_v4 = vpop.f32.mrb[64].mxu1 }
 0x82c   : > { %v11996_v34 = vpop.f32.mrb[65].mxu1 }
 0x82d   : > { %v7983_v9 = vpop.f32.mrb[66].mxu1 }
 0x82e   : > { %v15197_v0 = vadd.f32 %v7983_v9, %v7838_v26  ;;  %v11997_v19 = vpop.f32.mrb[67].mxu1 }
 0x833   : > { %v7988_v49 = vpop.f32.mrb[68].mxu1 }
 0x834   : > { %v15199_v10 = vadd.f32 %v7988_v49, %v7839_v60  ;;  %v12000_v62 = vpop.f32.mrb[69].mxu1 }
 0x835   : > { %v7991_v13 = vpop.f32.mrb[70].mxu1  ;;  %v8269_v62 = vld [vmem:[#allocation4 + $0x8] sm:$0x8] }
 0x836   : > { %v12001_v14 = vpop.f32.mrb[71].mxu1 }
 0x83b   : > { %v8078_v41 = vpop.f32.mrb[72].mxu1 }
 0x83c   : > { %v8117_v61 = vadd.f32 %v8078_v41, %v7995_v43  ;;  %v12006_v21 = vpop.f32.mrb[73].mxu1 }
 0x83d   : > { %v8081_v37 = vpop.f32.mrb[74].mxu1 }
 0x83e   : > { %v8134_v16 = vadd.f32 %v15204_v39, %v8117_v61  ;;  %v12007_v25 = vpop.f32.mrb[75].mxu1  ;;  %v8261_v37 = vld [vmem:[#allocation4 + $0x8] sm:$0x4] }
 0x840   : > { %v8144_v30 = vmax.f32 %v8134_v16, 0.0 }
 0x842   : > { %v10756_v53 = vpack.c.bf16 %v8144_v30, %v8144_v30 }
 0x843   : > { %v8086_v44 = vpop.f32.mrb[76].mxu1 }
 0x844   : > { %v8172_v45 = vshll.u32 %v10756_v53, 16  ;;  %v10507_v40 = vrot.slane %v10756_v53, 9  ;;  %v10509_v47 = vrot.slane %v10756_v53, 10  ;;  %v8119_v51 = vadd.f32 %v8086_v44, %v7997_v42  ;;  %v12010_v5 = vpop.f32.mrb[77].mxu1 }
 0x845   : > { %v8089_v33 = vpop.f32.mrb[78].mxu1 }
 0x846   : > { %v8174_v27 = vrot.slane %v8172_v45, 5  ;;  %v8187_v24 = vsel %vm15174_vm5, %v10507_v40, %v8186_v46  ;;  %v12011_v48 = vpop.f32.mrb[79].mxu1  ;;  %v8136_v8 = vadd.f32 %v15204_v39, %v8119_v51  ;;  %v8202_v29 = vsel %vm15209_vm10, %v10509_v47, %v8201_v38 }
 0x847   : > { %8188 = vst [vmem:[#allocation4 + $0x4] sm:$0x1] %v8187_v24  ;;  %v8120_v57 = vadd.f32 %v8089_v33, %v7998_v6  ;;  %8203 = vst [vmem:[#allocation4 + $0x4] sm:$0x2] %v8202_v29  ;;  %v10508_v56 = vrot.slane %v8172_v45, 10 }
 0x848   : > { %v8179_v26 = vsel %vm15215_vm4, %v8174_v27, %v8178_v3  ;;  %v8146_v31 = vmax.f32 %v8136_v8, 0.0 }
 0x849   : > { %v8137_v1 = vadd.f32 %v15204_v39, %v8120_v57  ;;  %8180 = vst [vmem:[#allocation4] sm:$0x8] %v8179_v26  ;;  %v8293_v57 = vld [vmem:[#allocation4 + $0xc] sm:$0x2] }
 0x84a   : > { %v10757_v49 = vpack.c.bf16 %v8146_v31, %v8146_v31 }
 0x84b   : > { %v8147_v60 = vmax.f32 %v8137_v1, 0.0  ;;  %v8094_v28 = vpop.f32.mrb[80].mxu1 }
 0x84c   : > { %v12014_v52 = vpop.f32.mrb[81].mxu1  ;;  %v8213_v44 = vshll.u32 %v10757_v49, 16 }
 0x84d   : > { %v8155_v17 = vpack.c.bf16 %v8147_v60, %v8146_v31  ;;  %v10758_v15 = vpack.c.bf16 %v8147_v60, %v8147_v60  ;;  %v8097_v42 = vpop.f32.mrb[82].mxu1  ;;  %v8287_v52 = vld [vmem:[#allocation4 + $0xc] sm:$0x1] }
 0x84e   : > { %v8122_v50 = vadd.f32 %v8097_v42, %v8000_v54  ;;  %v12015_v6 = vpop.f32.mrb[83].mxu1  ;;  %v8193_v59 = vld [vmem:[#allocation4 + $0x4] sm:$0x1]  ;;  %v8206_v18 = vld [vmem:[#allocation4 + $0x4] sm:$0x6] }
 0x84f   : > { %v8223_v35 = vsel %vm15229_vm13, %v8155_v17, %v8222_v55  ;;  %v10512_v32 = vrot.slane %v10758_v15, 9  ;;  %v8194_v20 = vsel %vm15235_vm6, %v10508_v56, %v8193_v59  ;;  %v8207_v4 = vsel %vm15240_vm14, 0, %v8206_v18 }
 0x850   : > { %8224 = vst [vmem:[#allocation4 + $0x4] sm:$0x8] %v8223_v35  ;;  %v8139_v34 = vadd.f32 %v15204_v39, %v8122_v50  ;;  %8195 = vst [vmem:[#allocation4 + $0x4] sm:$0x1] %v8194_v20  ;;  %v8228_v9 = vshll.u32 %v10758_v15, 16  ;;  %vm16223_vm14 = vcmask 1046528  }
 0x851   : > { %8208 = vst [vmem:[#allocation4 + $0x4] sm:$0x6] %v8207_v4  ;;  %v8239_v54 = vsel %vm15174_vm5, %v10512_v32, %v8238_v58  ;;  %vm16217_vm5 = vsmask.f32 1282  ;;  %v8317_v12 = vld [vmem:[#allocation4] sm:$0xf] }
 0x852   : > { %8240 = vst [vmem:[#allocation4 + $0x8] sm:$0x1] %v8239_v54  ;;  %v8149_v19 = vmax.f32 %v8139_v34, 0.0  ;;  %v8230_v16 = vrot.slane %v8228_v9, 5  ;;  %vm8242_vm8 = vmand %vm8166_vm3, %vm16217_vm5  ;;  %vm16218_vm3 = vsmask.f32 7942 }
 0x853   : > { %v8102_v13 = vpop.f32.mrb[84].mxu1  ;;  %v8309_v35 = vld [vmem:[#allocation4 + $0xc] sm:$0x4]  ;;  %vm9095_vm5 = vcmask 518144  }
 0x854   : > { %v10759_v14 = vpack.c.bf16 %v8149_v19, %v8149_v19  ;;  %v12018_v41 = vpop.f32.mrb[85].mxu1 }
 0x855   : > { %v8105_v61 = vpop.f32.mrb[86].mxu1 }
 0x856   : > { %v8258_v25 = vrot.slane %v10759_v14, 7  ;;  %v8270_v30 = vsel %vm15229_vm13, %v10759_v14, %v8269_v62  ;;  %v8124_v53 = vadd.f32 %v8105_v61, %v15197_v0  ;;  %v12019_v46 = vpop.f32.mrb[87].mxu1  ;;  %v8250_v29 = vshll.u32 %v10759_v14, 16  ;;  %vm15283_vm13 = vmand %vm8199_vm15, %vm16218_vm3 }
 0x857   : > { %v8232_v45 = vld [vmem:[#allocation4 + $0x4] sm:$0x8]  ;;  %8271 = vst [vmem:[#allocation4 + $0x8] sm:$0x8] %v8270_v30  ;;  %vm8312_vm15 = vcmask 257026  }
 0x858   : > { %v8218_v40 = vld [vmem:[#allocation4 + $0x4] sm:$0x4]  ;;  %v8233_v47 = vsel %vm15215_vm4, %v8230_v16, %v8232_v45  ;;  %v8141_v51 = vadd.f32 %v15204_v39, %v8124_v53  ;;  %v8262_v38 = vsel %vm15254_vm1, %v8258_v25, %v8261_v37  ;;  %v8252_v42 = vrot.slane %v8250_v29, 7  ;;  %v12591_v25 = vld [vmem:[%s15609_s7 + $0x8] sm:$0xff]   ;;  %v8486_v30 = vld [vmem:[#allocation4] sm:$0xe] }
 0x859   : > { %v8219_v5 = vsel %vm15259_vm9, %v8213_v44, %v8218_v40  ;;  %8234 = vst [vmem:[#allocation4 + $0x4] sm:$0x8] %v8233_v47  ;;  %v8243_v0 = vld [vmem:[#allocation4 + $0x8] sm:$0x3]  ;;  %8263 = vst [vmem:[#allocation4 + $0x8] sm:$0x4] %v8262_v38 }
 0x85a   : > { %8220 = vst [vmem:[#allocation4 + $0x4] sm:$0x4] %v8219_v5  ;;  %v8244_v33 = vsel %vm8242_vm8, 0, %v8243_v0  ;;  %v8151_v3 = vmax.f32 %v8141_v51, 0.0  ;;  %v12593_v53 = vld [vmem:[%s15609_s7 + $0x20] sm:$0xff]   ;;  %vm9100_vm8 = vcmask 523270  }
 0x85b   : > { %8245 = vst [vmem:[#allocation4 + $0x8] sm:$0x3] %v8244_v33  ;;  %v8110_v27 = vpop.f32.mrb[88].mxu1  ;;  %vm16228_vm3 = vsmask.f32 2304 }
 0x85c   : > { %v10760_v24 = vpack.c.bf16 %v8151_v3, %v8151_v3  ;;  %v8125_v48 = vadd.f32 %v8110_v27, %v15199_v10  ;;  %v12022_v8 = vpop.f32.mrb[89].mxu1  ;;  %v8565_v27 = vld [vmem:[#allocation4] sm:$0x8]  ;;  %9101 = vst.msk [vmem:[#allocation5] sm:$0xc0] %vm9100_vm8, %v16073_v23 }
 0x85d   : > { %v8113_v26 = vpop.f32.mrb[90].mxu1  ;;  %v12620_v23 = vld [vmem:[%s15611_s9 + $0x38] sm:$0xff]   ;;  %vm9142_vm8 = vsmask.f32 6422 }
 0x85e   : > { %v8272_v1 = vld [vmem:[#allocation4 + $0x8] sm:$0x8]  ;;  %v8282_v31 = vshll.u32 %v10760_v24, 16  ;;  %v10516_v60 = vrot.slane %v10760_v24, 10  ;;  %v8142_v22 = vadd.f32 %v15204_v39, %v8125_v48  ;;  %v12023_v28 = vpop.f32.mrb[91].mxu1  ;;  %v12596_v24 = vld [vmem:[%s15609_s7 + $0x30] sm:$0xff]  }
 0x85f   : > { %v8273_v55 = vsel %vm15215_vm4, 0, %v8272_v1  ;;  %v12599_v1 = vld [vmem:[%s15609_s7 + $0x38] sm:$0xff]  }
 0x860   : > { %8274 = vst [vmem:[#allocation4 + $0x8] sm:$0x8] %v8273_v55  ;;  %v10515_v56 = vrot.slane %v8282_v31, 10  ;;  %v8294_v7 = vsel %vm15209_vm10, %v10516_v60, %v8293_v57  ;;  %v8152_v10 = vmax.f32 %v8142_v22, 0.0  ;;  %v8265_v15 = vld [vmem:[#allocation4 + $0x8] sm:$0x4] }
 0x861   : > { %8295 = vst [vmem:[#allocation4 + $0xc] sm:$0x2] %v8294_v7  ;;  %v8266_v39 = vsel %vm15259_vm9, %v8250_v29, %v8265_v15  ;;  %v8318_v58 = vld [vmem:[#allocation4 + $0x4] sm:$0xf]  ;;  %vm16221_vm10 = vsmask.f32 3338  ;;  %vm16227_vm9 = vmmov %vm16224_vm11 }
 0x862   : > { %v8288_v50 = vsel %vm15235_vm6, %v10515_v56, %v8287_v52  ;;  %v8255_v2 = vld [vmem:[#allocation4 + $0x8] sm:$0x2]  ;;  %v10761_v6 = vpack.c.bf16 %v8152_v10, %v8152_v10  ;;  %8267 = vst [vmem:[#allocation4 + $0x8] sm:$0x4] %v8266_v39  ;;  %v10522_v59 = vcombine.low %v8317_v12, %v8318_v58  ;;  %v12589_v49 = vld [vmem:[#allocation4 + $0x8] ss:$0 sps:$4 sm:$0xff]   ;;  %vm8313_vm4 = vmand %vm8312_vm15, %vm16221_vm10  ;;  %v10537_v46 = vcombine.low %v8486_v30, %v8318_v58 }
 0x863   : > { %8289 = vst [vmem:[#allocation4 + $0xc] sm:$0x1] %v8288_v50  ;;  %v8256_v18 = vsel %vm15283_vm13, %v8252_v42, %v8255_v2  ;;  %v8346_v13 = vshll.u32 %v12589_v49, 16  ;;  %vm8365_vm6 = vcmask 261120   ;;  %v8350_v37 = vshrl.u32 %v12589_v49, 16  ;;  %v12600_v52 = vld [vmem:[%s15609_s7 + $0x40] sm:$0xff]  }
 0x864   : > { %8257 = vst [vmem:[#allocation4 + $0x8] sm:$0x2] %v8256_v18  ;;  %v8300_v32 = vshll.u32 %v10761_v6, 16  ;;  %v8307_v20 = vrot.slane %v10761_v6, 7  ;;  %v8341_v54 = vshll.u32 %v10522_v59, 16  ;;  %v8339_v62 = vshrl.u32 %v10522_v59, 16 }
 0x865   : > { %v8348_v21 = vrot.slane %v8346_v13, 1  ;;  %v8496_v44 = vrot.slane %v12589_v49, 1  ;;  %v12592_v47 = vld [vmem:[#allocation4 + $0x8] ss:$0 sps:$4 sm:$0x77]   ;;  %v8495_v51 = vrot.slane %v10537_v46, 1 }
 0x866   : > { %v8302_v4 = vrot.slane %v8300_v32, 7  ;;  %v8310_v34 = vsel %vm15254_vm1, %v8307_v20, %v8309_v35  ;;  %v8343_v19 = vrot.slane %v8341_v54, 1  ;;  %v8566_v38 = vld [vmem:[#allocation4 + $0x4] sm:$0xf]  ;;  %v12603_v15 = vld [vmem:[%s15609_s7 + $0x48] sm:$0xff]   ;;  %v12604_v39 = vld [vmem:[%s15609_s7 + $0x50] sm:$0xff]  }
 0x867   : > { %8311 = vst [vmem:[#allocation4 + $0xc] sm:$0x4] %v8310_v34  ;;  %v8352_v16 = vor.u32 %v8350_v37, %v8348_v21  ;;  %v8497_v0 = vsel %vm16223_vm14, %v8495_v51, %v8496_v44  ;;  %v10546_v48 = vcombine.low %v8565_v27, %v8566_v38  ;;  %v8825_v58 = vld [vmem:[#allocation4 + $0x10] sm:$0x1]  ;;  %v12606_v2 = vld [vmem:[%s15609_s7 + $0x58] sm:$0xff]   ;;  %v12607_v20 = vld [vmem:[%s15609_s7 + $0x60] sm:$0xff]  }
 0x868   : > { %v8304_v43 = vld [vmem:[#allocation4 + $0xc] sm:$0x2]  ;;  %v8344_v61 = vor.u32 %v8343_v19, %v8339_v62  ;;  %v8911_v50 = vld [vmem:[#allocation4 + $0x10] sm:$0x3]  ;;  %v8822_v32 = vld [vmem:[#allocation4 + $0x4] sm:$0xc] }
 0x869   : > { %v8305_v9 = vsel %vm15283_vm13, %v8302_v4, %v8304_v43  ;;  %v8584_v26 = vrot.slane %v10546_v48, 3  ;;  %v8665_v31 = vshrl.u32 %v10546_v48, 16  ;;  %v8668_v60 = vshll.u32 %v10546_v48, 16  ;;  %v12611_v49 = vld [vmem:[%s15609_s7 + $0x68] sm:$0xff]   ;;  %v12613_v30 = vld [vmem:[%s15609_s7 + $0x78] sm:$0xff]   ;;  %vm9096_vm13 = vmand %vm9095_vm5, %vm16228_vm3 }
 0x86a   : > { %8306 = vst [vmem:[#allocation4 + $0xc] sm:$0x2] %v8305_v9  ;;  %v8349_v11 = vsel %vm16222_vm12, %v8344_v61, %v8348_v21  ;;  %vm16225_vm1 = vcmask 1045504   ;;  %v12612_v21 = vld [vmem:[%s15609_s7 + $0x70] sm:$0xff]   ;;  %v9004_v46 = vld [vmem:[#allocation4 + $0x4] sm:$0x8]  ;;  %vm16230_vm14 = vmmov %vm16226_vm7 }
 0x86b   : > { %12028 = vmatprep.mubr.msk.bf16.mxu1 %vm8365_vm6, %v8349_v11  ;;  %v8567_v5 = vld [vmem:[#allocation4 + $0x8] sm:$0xf]  ;;  %v8667_v56 = vrot.slane %v8665_v31, 3  ;;  %v8670_v7 = vrot.slane %v8668_v60, 4  ;;  %v12616_v51 = vld [vmem:[%s15609_s7 + $0x88] sm:$0xff]   ;;  %vm9115_vm15 = vcmask 519171  }
 0x86c   : > { %12029 = vmatmul.mubr.msk.bf16.vlgmr.msra.gmra.mrb[92].mxu1 %vm8365_vm6, %v8352_v16  ;;  %v10565_v6 = vcombine.low %v8566_v38, %v8567_v5  ;;  %v9097_v38 = vld [vmem:[#allocation5] sm:$0x7]  ;;  %vm9136_vm10 = vcmask 521221   ;;  %vm9141_vm5 = vcmask 522245  }
 0x86d   : > { %12033 = vmatpush3.bf16.msra.mxu1 %v15194_v63  ;;  %12036 = vmatprep.mubr.msk.bf16.mxu1 %vm8365_vm6, %v10522_v59  ;;  %v12595_v63 = vld [vmem:[%s15609_s7 + $0x28] sm:$0xff]   ;;  %v8671_v17 = vor.u32 %v8670_v7, %v8667_v56  ;;  %v8823_v59 = vld [vmem:[#allocation4 + $0x8] sm:$0xf] }
 0x86e   : > { %v8314_v14 = vld [vmem:[#allocation4 + $0xc] sm:$0xc]  ;;  %12034 = vmatprep.subr.bf16.mxu1 %v12591_v25  ;;  %v10575_v4 = vcombine.low %v8822_v32, %v8823_v59 }
 0x86f   : > { %v8315_v41 = vsel %vm8313_vm4, 0, %v8314_v14  ;;  %vm9107_vm4 = vcmask 518146  }
 0x870   : > { %8316 = vst [vmem:[#allocation4 + $0xc] sm:$0xc] %v8315_v41  ;;  %v8841_v19 = vrot.slane %v10575_v4, 2  ;;  %v8921_v62 = vshrl.u32 %v10575_v4, 16  ;;  %v8924_v13 = vshll.u32 %v10575_v4, 16 }
 0x871   : > { %12035 = vmatpush3.bf16.msra.mxu1 %v12591_v25  ;;  %v8568_v45 = vld [vmem:[#allocation4 + $0xc] sm:$0x3] }
 0x872   : > { %12040 = vmatprep.subr.bf16.mxu1 %v12593_v53  ;;  %v10547_v33 = vcombine.low %v8567_v5, %v8568_v45  ;;  %v8923_v37 = vrot.slane %v8921_v62, 2  ;;  %v8926_v11 = vrot.slane %v8924_v13, 3  ;;  %v10594_v45 = vcombine.low %v9004_v46, %v8823_v59 }
 0x874   : > { %12037 = vmatmul.mubr.msk.bf16.vlgmr.msra.gmra.mrb[96].mxu1 %vm8365_vm6, %v12592_v47  ;;  %v8585_v8 = vrot.slane %v10547_v33, 3  ;;  %v8927_v25 = vor.u32 %v8926_v11, %v8923_v37  ;;  %v9013_v47 = vrot.slane %v10594_v45, 3  ;;  %v12618_v33 = vld [vmem:[%s15611_s9 + $0x28] sm:$0xff]  }
 0x875   : > { %12041 = vmatpush3.bf16.msra.mxu1 %v12593_v53  ;;  %12044 = vmatprep.mubr.msk.bf16.mxu1 %vm8365_vm6, %v8497_v0  ;;  %v12617_v0 = vld [vmem:[%s15611_s9 + $0x20] sm:$0xff]  }
 0x876   : > { %12042 = vmatprep.subr.bf16.mxu1 %v12595_v63  ;;  %v8586_v22 = vsel %vm16224_vm11, %v8584_v26, %v8585_v8  ;;  %vm9137_vm11 = vmand %vm9136_vm10, %vm16230_vm14  ;;  %vm9129_vm10 = vsmask.f32 7954 }
 0x877   : > { %v15309_v40 = vld [vmem:[#allocation4 + $0xc] sm:$0x7] }
 0x878   : > { %v10556_v3 = vcombine.low %v8567_v5, %v15309_v40  ;;  %v8824_v12 = vld [vmem:[#allocation4 + $0xc] sm:$0xf]  ;;  %v10566_v9 = vcombine.low %v15309_v40, %v15309_v40  ;;  %v9098_v5 = vsel %vm9096_vm13, 0, %v9097_v38  ;;  %vm9143_vm13 = vmand %vm9141_vm5, %vm9142_vm8 }
 0x879   : > { %12043 = vmatpush3.bf16.msra.mxu1 %v12595_v63  ;;  %v10576_v18 = vcombine.low %v8824_v12, %v8825_v58  ;;  %v10585_v35 = vcombine.low %v8824_v12, %v8911_v50  ;;  %9099 = vst [vmem:[#allocation5] sm:$0x7] %v9098_v5  ;;  %v9117_v5 = vld [vmem:[#allocation5] sm:$0x8] }
 0x87a   : > { %v8673_v29 = vshrl.u32 %v10556_v3, 16  ;;  %v8676_v57 = vshll.u32 %v10556_v3, 16  ;;  %12048 = vmatprep.subr.bf16.mxu1 %v12596_v24  ;;  %v12619_v3 = vld [vmem:[%s15611_s9 + $0x30] sm:$0xff]  }
 0x87b   : > { %v8842_v34 = vrot.slane %v10576_v18, 2  ;;  %v8929_v54 = vshrl.u32 %v10585_v35, 16  ;;  %v8932_v43 = vshll.u32 %v10585_v35, 16  ;;  %v9014_v40 = vrot.slane %v10585_v35, 3 }
 0x87c   : > { %12045 = vmatmul.mubr.msk.bf16.vlgmr.msra.gmra.mrb[100].mxu1 %vm8365_vm6, %v8496_v44  ;;  %v8675_v28 = vrot.slane %v8673_v29, 3  ;;  %v8678_v55 = vrot.slane %v8676_v57, 4  ;;  %v12614_v44 = vld [vmem:[%s15609_s7 + $0x80] sm:$0xff]  }
 0x87d   : > { %12049 = vmatpush3.bf16.msra.mxu1 %v12596_v24  ;;  %12052 = vmatprep.mubr.msk.bf16.mxu1 %vm8365_vm6, %v8586_v22  ;;  %v8843_v14 = vsel %vm16225_vm1, %v8841_v19, %v8842_v34  ;;  %v8931_v41 = vrot.slane %v8929_v54, 2  ;;  %v8934_v61 = vrot.slane %v8932_v43, 3  ;;  %v9015_v63 = vsel %vm16227_vm9, %v9013_v47, %v9014_v40 }
 0x87e   : > { %12050 = vmatprep.subr.bf16.mxu1 %v12599_v1  ;;  %v8679_v10 = vor.u32 %v8678_v55, %v8675_v28  ;;  %vm9121_vm9 = vsmask.f32 4366 }
 0x87f   : > { %v8935_v16 = vor.u32 %v8934_v61, %v8931_v41 }
 0x880   : > { %v8680_v42 = vsel %vm8663_vm0, %v8671_v17, %v8679_v10  ;;  %vm16231_vm0 = vsmask.f32 7946 }
 0x881   : > { %12051 = vmatpush3.bf16.msra.mxu1 %v12599_v1  ;;  %v8936_v53 = vsel %vm16226_vm7, %v8927_v25, %v8935_v16  ;;  %vm9108_vm1 = vmand %vm9107_vm4, %vm16231_vm0  ;;  %vm9120_vm7 = vcmask 520195  }
 0x882   : > { %12056 = vmatprep.subr.bf16.mxu1 %v12600_v52  ;;  %vm9122_vm3 = vmand %vm9120_vm7, %vm9121_vm9 }
 0x884   : > { %12053 = vmatmul.mubr.msk.bf16.vlgmr.msra.gmra.mrb[104].mxu1 %vm8365_vm6, %v8585_v8 }
 0x885   : > { %12057 = vmatpush3.bf16.msra.mxu1 %v12600_v52  ;;  %12060 = vmatprep.mubr.msk.bf16.mxu1 %vm8365_vm6, %v8680_v42 }
 0x886   : > { %12058 = vmatprep.subr.bf16.mxu1 %v12603_v15 }
 0x889   : > { %12059 = vmatpush3.bf16.msra.mxu1 %v12603_v15 }
 0x88a   : > { %12064 = vmatprep.subr.bf16.mxu1 %v12604_v39 }
 0x88c   : > { %12061 = vmatmul.mubr.msk.bf16.vlgmr.msra.gmra.mrb[108].mxu1 %vm8365_vm6, %v8679_v10 }
 0x88d   : > { %12065 = vmatpush3.bf16.msra.mxu1 %v12604_v39  ;;  %12068 = vmatprep.mubr.msk.bf16.mxu1 %vm8365_vm6, %v10565_v6 }
 0x88e   : > { %12066 = vmatprep.subr.bf16.mxu1 %v12606_v2 }
 0x891   : > { %12067 = vmatpush3.bf16.msra.mxu1 %v12606_v2 }
 0x892   : > { %12072 = vmatprep.subr.bf16.mxu1 %v12607_v20 }
 0x894   : > { %12069 = vmatmul.mubr.msk.bf16.vlgmr.msra.gmra.mrb[112].mxu1 %vm8365_vm6, %v10566_v9 }
 0x895   : > { %12073 = vmatpush3.bf16.msra.mxu1 %v12607_v20  ;;  %12076 = vmatprep.mubr.msk.bf16.mxu1 %vm8365_vm6, %v8843_v14 }
 0x896   : > { %12074 = vmatprep.subr.bf16.mxu1 %v12611_v49 }
 0x899   : > { %12075 = vmatpush3.bf16.msra.mxu1 %v12611_v49 }
 0x89a   : > { %12080 = vmatprep.subr.bf16.mxu1 %v12612_v21 }
 0x89c   : > { %12077 = vmatmul.mubr.msk.bf16.vlgmr.msra.gmra.mrb[116].mxu1 %vm8365_vm6, %v8842_v34 }
 0x89d   : > { %12081 = vmatpush3.bf16.msra.mxu1 %v12612_v21  ;;  %12084 = vmatprep.mubr.msk.bf16.mxu1 %vm8365_vm6, %v8936_v53 }
 0x89e   : > { %12082 = vmatprep.subr.bf16.mxu1 %v12613_v30 }
 0x8a1   : > { %12083 = vmatpush3.bf16.msra.mxu1 %v12613_v30  ;;  %v10599_v30 = vld [vmem:[%s15610_s8] ss:$0 sm:$0xff] }
 0x8a2   : > { %12088 = vmatprep.subr.bf16.mxu1 %v12614_v44 }
 0x8a4   : > { %12085 = vmatmul.mubr.msk.bf16.vlgmr.msra.gmra.mrb[120].mxu1 %vm8365_vm6, %v8935_v16 }
 0x8a5   : > { %12089 = vmatpush3.bf16.msra.mxu1 %v12614_v44  ;;  %12092 = vmatprep.mubr.msk.bf16.mxu1 %vm8365_vm6, %v9015_v63 }
 0x8a6   : > { %12090 = vmatprep.subr.bf16.mxu1 %v12616_v51 }
 0x8a9   : > { %12091 = vmatpush3.bf16.msra.mxu1 %v12616_v51 }
 0x8aa   : > { %12096 = vmatprep.subr.bf16.mxu1 %v16074_v36 }
 0x8ac   : > { %12093 = vmatmul.mubr.msk.bf16.vlgmr.msra.gmra.mrb[124].mxu1 %vm8365_vm6, %v9014_v40  ;;  %vm16229_vm6 = vsmask.f32 3328 }
 0x8ad   : > { %12104 = vmatprep.mubr.msk.bf16.mxu1 %vm16075_vm2, %v16074_v36  ;;  %12097 = vmatpush3.bf16.msra.mxu1 %v12617_v0  ;;  %vm9116_vm12 = vmand %vm9115_vm15, %vm16229_vm6  ;;  %v9138_v0 = vld [vmem:[#allocation5] sm:$0x20]  ;;  %vm9128_vm15 = vcmask 520196   ;;  %vm9197_vm6 = vcmask 523264  }
 0x8ae   : > { %12098 = vmatprep.subr.bf16.mxu1 %v16074_v36  ;;  %vm9130_vm4 = vmand %vm9128_vm15, %vm9129_vm10 }
 0x8b1   : > { %12099 = vmatpush3.bf16.msra.mxu1 %v12618_v33 }
 0x8b2   : > { %12100 = vmatprep.subr.bf16.mxu1 %v16074_v36 }
 0x8b5   : > { %12101 = vmatpush3.bf16.msra.mxu1 %v12619_v3 }
 0x8b6   : > { %12102 = vmatprep.subr.bf16.mxu1 %v16074_v36 }
 0x8b9   : > { %12103 = vmatpush3.bf16.msra.mxu1 %v12620_v23 }
 0x8ba   : > { %12108 = vmatprep.subr.bf16.mxu1 %v16074_v36 }
 0x93f   : > { %v12030_v27 = vpop.f32.mrb[92].mxu1 }
 0x940   : > { %v8406_v24 = vpop.f32.mrb[93].mxu1  ;;  %v9109_v27 = vld [vmem:[#allocation5] sm:$0x4] }
 0x941   : > { %v12031_v48 = vpop.f32.mrb[94].mxu1 }
 0x942   : > { %v8409_v8 = vpop.f32.mrb[95].mxu1 }
 0x947   : > { %v12038_v29 = vpop.f32.mrb[96].mxu1 }
 0x948   : > { %v8473_v57 = vpop.f32.mrb[97].mxu1 }
 0x949   : > { %v8474_v26 = vadd.f32 %v8473_v57, %v8406_v24  ;;  %v12039_v1 = vpop.f32.mrb[98].mxu1 }
 0x94a   : > { %v8476_v31 = vpop.f32.mrb[99].mxu1 }
 0x94b   : > { %v8477_v60 = vadd.f32 %v8476_v31, %v8409_v8 }
 0x94f   : > { %v12046_v22 = vpop.f32.mrb[100].mxu1 }
 0x950   : > { %v8550_v28 = vpop.f32.mrb[101].mxu1 }
 0x951   : > { %v8563_v55 = vadd.f32 %v8550_v28, %v8474_v26  ;;  %v12047_v52 = vpop.f32.mrb[102].mxu1 }
 0x952   : > { %v8553_v56 = vpop.f32.mrb[103].mxu1 }
 0x953   : > { %v8564_v7 = vadd.f32 %v8553_v56, %v8477_v60 }
 0x957   : > { %v12054_v10 = vpop.f32.mrb[104].mxu1 }
 0x958   : > { %v8639_v17 = vpop.f32.mrb[105].mxu1  ;;  %v12621_v10 = vld [vmem:[%s15611_s9] sm:$0xff]  }
 0x959   : > { %v8652_v15 = vadd.f32 %v8639_v17, %v8563_v55  ;;  %v12055_v42 = vpop.f32.mrb[106].mxu1 }
 0x95a   : > { %v8642_v39 = vpop.f32.mrb[107].mxu1  ;;  %v12623_v42 = vld [vmem:[%s15611_s9 + $0x10] sm:$0xff]  }
 0x95b   : > { %v8653_v12 = vadd.f32 %v8642_v39, %v8564_v7  ;;  %v12624_v39 = vld [vmem:[%s15611_s9 + $0x18] sm:$0xff]  }
 0x95f   : > { %v12062_v58 = vpop.f32.mrb[108].mxu1 }
 0x960   : > { %v8733_v50 = vpop.f32.mrb[109].mxu1 }
 0x961   : > { %v8746_v2 = vadd.f32 %v8733_v50, %v8652_v15  ;;  %v12063_v6 = vpop.f32.mrb[110].mxu1  ;;  %v12622_v15 = vld [vmem:[%s15611_s9 + $0x8] sm:$0xff]  }
 0x962   : > { %v8736_v59 = vpop.f32.mrb[111].mxu1  ;;  %v12626_v50 = vld [vmem:[%s15611_s9 + $0x48] sm:$0xff]   ;;  %v12628_v6 = vld [vmem:[%s15611_s9 + $0x58] sm:$0xff]  }
 0x963   : > { %v8747_v18 = vadd.f32 %v8736_v59, %v8653_v12  ;;  %v12625_v12 = vld [vmem:[%s15611_s9 + $0x40] sm:$0xff]  }
 0x967   : > { %v12070_v35 = vpop.f32.mrb[112].mxu1 }
 0x968   : > { %v8807_v32 = vpop.f32.mrb[113].mxu1 }
 0x969   : > { %v8820_v20 = vadd.f32 %v8807_v32, %v8746_v2  ;;  %v12071_v4 = vpop.f32.mrb[114].mxu1  ;;  %v12627_v2 = vld [vmem:[%s15611_s9 + $0x50] sm:$0xff]   ;;  %v12630_v32 = vld [vmem:[%s15611_s9 + $0x68] sm:$0xff]  }
 0x96a   : > { %v8810_v34 = vpop.f32.mrb[115].mxu1  ;;  %v12632_v4 = vld [vmem:[%s15611_s9 + $0x78] sm:$0xff]  }
 0x96b   : > { %v8821_v54 = vadd.f32 %v8810_v34, %v8747_v18  ;;  %v12629_v18 = vld [vmem:[%s15611_s9 + $0x60] sm:$0xff]  }
 0x96f   : > { %v12078_v43 = vpop.f32.mrb[116].mxu1 }
 0x970   : > { %v8896_v9 = vpop.f32.mrb[117].mxu1 }
 0x971   : > { %v8909_v19 = vadd.f32 %v8896_v9, %v8820_v20  ;;  %v12079_v49 = vpop.f32.mrb[118].mxu1  ;;  %v12631_v20 = vld [vmem:[%s15611_s9 + $0x70] sm:$0xff]   ;;  %v12634_v9 = vld [vmem:[%s15611_s9 + $0x88] sm:$0xff]  }
 0x972   : > { %v8899_v62 = vpop.f32.mrb[119].mxu1  ;;  %v12635_v49 = vld [vmem:[%s15611_s9 + $0x90] sm:$0xff]  }
 0x973   : > { %v8910_v13 = vadd.f32 %v8899_v62, %v8821_v54  ;;  %v12633_v54 = vld [vmem:[%s15611_s9 + $0x80] sm:$0xff]  }
 0x977   : > { %v12086_v14 = vpop.f32.mrb[120].mxu1 }
 0x978   : > { %v8989_v41 = vpop.f32.mrb[121].mxu1  ;;  %v12636_v14 = vld [vmem:[%s15611_s9 + $0x98] sm:$0xff]  }
 0x979   : > { %v9002_v61 = vadd.f32 %v8989_v41, %v8909_v19  ;;  %v12087_v21 = vpop.f32.mrb[122].mxu1 }
 0x97a   : > { %v8992_v37 = vpop.f32.mrb[123].mxu1  ;;  %v12637_v21 = vld [vmem:[%s15611_s9 + $0xa0] sm:$0xff]  }
 0x97b   : > { %v9003_v11 = vadd.f32 %v8992_v37, %v8910_v13 }
 0x97f   : > { %v12094_v16 = vpop.f32.mrb[124].mxu1 }
 0x980   : > { %v9068_v25 = vpop.f32.mrb[125].mxu1  ;;  %v12639_v16 = vld [vmem:[%s15611_s9 + $0xb0] sm:$0xff]  }
 0x981   : > { %v9081_v53 = vadd.f32 %v9068_v25, %v9002_v61  ;;  %v12095_v46 = vpop.f32.mrb[126].mxu1  ;;  %v12640_v25 = vld [vmem:[%s15611_s9 + $0xb8] sm:$0xff]  }
 0x982   : > { %v9071_v44 = vpop.f32.mrb[127].mxu1 }
 0x983   : > { %v9090_v45 = vadd.f32 %v10599_v30, %v9081_v53  ;;  %v9082_v40 = vadd.f32 %v9071_v44, %v9003_v11  ;;  %v12638_v11 = vld [vmem:[%s15611_s9 + $0xa8] sm:$0xff]   ;;  %v12641_v53 = vld [vmem:[%s15611_s9 + $0xc0] sm:$0xff]  }
 0x984   : > { %v12642_v44 = vld [vmem:[%s15611_s9 + $0xc8] sm:$0xff]  }
 0x985   : > { %v9091_v47 = vadd.f32 %v10599_v30, %v9082_v40  ;;  %v9092_v51 = vmax.f32 %v9090_v45, 0.0  ;;  %v12643_v45 = vld [vmem:[%s15611_s9 + $0xd0] sm:$0xff]   ;;  %v12644_v40 = vld [vmem:[%s15611_s9 + $0xd8] sm:$0xff]  }
 0x987   : > { %v9093_v63 = vmax.f32 %v9091_v47, 0.0 }
 0x989   : > { %v9094_v38 = vpack.c.bf16 %v9093_v63, %v9092_v51  ;;  %v12645_v51 = vld [vmem:[%s15611_s9 + $0xe0] sm:$0xff]  }
 0x98b   : > { %v9103_v33 = vshll.u32 %v9094_v38, 16  ;;  %v9113_v3 = vrot.slane %v9094_v38, 6  ;;  %v9134_v23 = vrot.slane %v9094_v38, 2  ;;  %v12646_v38 = vld [vmem:[%s15611_s9 + $0xe8] sm:$0xff]  }
 0x98d   : > { %v9105_v24 = vrot.slane %v9103_v33, 6  ;;  %v9118_v48 = vsel %vm9116_vm12, %v9113_v3, %v9117_v5  ;;  %v9139_v8 = vsel %vm9137_vm11, %v9134_v23, %v9138_v0  ;;  %v9126_v60 = vrot.slane %v9103_v33, 2  ;;  %v12647_v0 = vld [vmem:[%s15611_s9 + $0xf0] sm:$0xff]   ;;  %v12648_v23 = vld [vmem:[%s15611_s9 + $0xf8] sm:$0xff]  }
 0x98e   : > { %9119 = vst [vmem:[#allocation5] sm:$0x8] %v9118_v48  ;;  %9140 = vst [vmem:[#allocation5] sm:$0x20] %v9139_v8  ;;  %v12649_v48 = vld [vmem:[%s15611_s9 + $0x100] sm:$0xff]   ;;  %vm9890_vm12 = vcmask 521220  }
 0x98f   : > { %v9110_v29 = vsel %vm9108_vm1, %v9105_v24, %v9109_v27 }
 0x990   : > { %9111 = vst [vmem:[#allocation5] sm:$0x4] %v9110_v29  ;;  %v12650_v29 = vld [vmem:[%s15611_s9 + $0x108] sm:$0xff]  }
 0x995   : > { %v9123_v57 = vld [vmem:[#allocation5] sm:$0x18]  ;;  %v9144_v26 = vld [vmem:[#allocation5] sm:$0x60] }
 0x996   : > { %v9124_v1 = vsel %vm9122_vm3, 0, %v9123_v57  ;;  %v9145_v31 = vsel %vm9143_vm13, 0, %v9144_v26  ;;  %v12651_v57 = vld [vmem:[%s15611_s9 + $0x110] sm:$0xff]   ;;  %v12652_v26 = vld [vmem:[%s15611_s9 + $0x118] sm:$0xff]  }
 0x997   : > { %9125 = vst [vmem:[#allocation5] sm:$0x18] %v9124_v1  ;;  %9146 = vst [vmem:[#allocation5] sm:$0x60] %v9145_v31  ;;  %v9147_v58 = vld [vmem:[#allocation5] sm:$0x7] }
 0x99e   : > { %v9131_v22 = vld [vmem:[#allocation5] sm:$0x10]  ;;  %v9156_v28 = vld [vmem:[#allocation5] sm:$0xf]  ;;  %v9800_v1 = vld [vmem:[#allocation5] sm:$0xe0] }
 0x99f   : > { %v9132_v55 = vsel %vm9130_vm4, %v9126_v60, %v9131_v22  ;;  %v9169_v52 = vshll.u32 %v9156_v28, 16  ;;  %v9167_v56 = vshrl.u32 %v9156_v28, 16  ;;  %v9308_v59 = vld [vmem:[#allocation5] sm:$0xe]  ;;  %v9811_v31 = vrot.slane %v9800_v1, 5 }
 0x9a0   : > { %9133 = vst [vmem:[#allocation5] sm:$0x10] %v9132_v55  ;;  %v9319_v35 = vrot.slane %v9308_v59, 1 }
 0x9a1   : > { %v9171_v7 = vrot.slane %v9169_v52, 1 }
 0x9a3   : > { %v9172_v17 = vor.u32 %v9171_v7, %v9167_v56 }
 0x9a5   : > { %12105 = vmatmul.mubr.msk.bf16.vlgmr.msra.gmra.mrb[128].mxu1 %vm9197_vm6, %v9172_v17 }
 0x9a6   : > { %12109 = vmatpush3.bf16.msra.mxu1 %v12621_v10  ;;  %12116 = vmatprep.mubr.msk.bf16.mxu1 %vm16075_vm2, %v16074_v36 }
 0x9a7   : > { %12110 = vmatprep.subr.bf16.mxu1 %v16074_v36  ;;  %v9388_v34 = vld [vmem:[#allocation5] sm:$0x1c] }
 0x9a8   : > { %v9399_v43 = vrot.slane %v9388_v34, 2  ;;  %v9468_v19 = vld [vmem:[#allocation5] sm:$0x3c] }
 0x9a9   : > { %v9479_v62 = vshrl.u32 %v9468_v19, 16  ;;  %v9482_v13 = vshll.u32 %v9468_v19, 16  ;;  %v9554_v30 = vld [vmem:[#allocation5] sm:$0x38] }
 0x9aa   : > { %12111 = vmatpush3.bf16.msra.mxu1 %v12622_v15  ;;  %v9565_v46 = vrot.slane %v9554_v30, 3  ;;  %v9634_v47 = vld [vmem:[#allocation5] sm:$0x70]  ;;  %v10709_v30 = vld [vmem:[%s15612_s10] ss:$0 sm:$0xff] }
 0x9ab   : > { %12112 = vmatprep.subr.bf16.mxu1 %v16074_v36  ;;  %v9481_v41 = vrot.slane %v9479_v62, 2  ;;  %v9484_v61 = vrot.slane %v9482_v13, 3  ;;  %v9645_v63 = vrot.slane %v9634_v47, 4  ;;  %v9714_v5 = vld [vmem:[#allocation5] sm:$0xf0] }
 0x9ac   : > { %v9725_v33 = vshrl.u32 %v9714_v5, 16  ;;  %v9728_v3 = vshll.u32 %v9714_v5, 16 }
 0x9ad   : > { %v9485_v37 = vor.u32 %v9484_v61, %v9481_v41 }
 0x9ae   : > { %12113 = vmatpush3.bf16.msra.mxu1 %v12623_v42  ;;  %v9727_v27 = vrot.slane %v9725_v33, 4  ;;  %v9730_v24 = vrot.slane %v9728_v3, 5 }
 0x9af   : > { %12114 = vmatprep.subr.bf16.mxu1 %v16074_v36 }
 0x9b0   : > { %v9731_v8 = vor.u32 %v9730_v24, %v9727_v27 }
 0x9b2   : > { %12115 = vmatpush3.bf16.msra.mxu1 %v12624_v39 }
 0x9b3   : > { %12120 = vmatprep.subr.bf16.mxu1 %v16074_v36 }
 0x9b5   : > { %12117 = vmatmul.mubr.msk.bf16.vlgmr.msra.gmra.mrb[132].mxu1 %vm9197_vm6, %v9147_v58 }
 0x9b6   : > { %12121 = vmatpush3.bf16.msra.mxu1 %v12625_v12  ;;  %12128 = vmatprep.mubr.msk.bf16.mxu1 %vm16075_vm2, %v16074_v36 }
 0x9b7   : > { %12122 = vmatprep.subr.bf16.mxu1 %v16074_v36 }
 0x9ba   : > { %12123 = vmatpush3.bf16.msra.mxu1 %v12626_v50 }
 0x9bb   : > { %12124 = vmatprep.subr.bf16.mxu1 %v16074_v36 }
 0x9be   : > { %12125 = vmatpush3.bf16.msra.mxu1 %v12627_v2 }
 0x9bf   : > { %12126 = vmatprep.subr.bf16.mxu1 %v16074_v36 }
 0x9c2   : > { %12127 = vmatpush3.bf16.msra.mxu1 %v12628_v6 }
 0x9c3   : > { %12132 = vmatprep.subr.bf16.mxu1 %v16074_v36 }
 0x9c5   : > { %12129 = vmatmul.mubr.msk.bf16.vlgmr.msra.gmra.mrb[136].mxu1 %vm9197_vm6, %v9319_v35 }
 0x9c6   : > { %12133 = vmatpush3.bf16.msra.mxu1 %v12629_v18  ;;  %12140 = vmatprep.mubr.msk.bf16.mxu1 %vm16075_vm2, %v16074_v36 }
 0x9c7   : > { %12134 = vmatprep.subr.bf16.mxu1 %v16074_v36 }
 0x9ca   : > { %12135 = vmatpush3.bf16.msra.mxu1 %v12630_v32 }
 0x9cb   : > { %12136 = vmatprep.subr.bf16.mxu1 %v16074_v36 }
 0x9ce   : > { %12137 = vmatpush3.bf16.msra.mxu1 %v12631_v20 }
 0x9cf   : > { %12138 = vmatprep.subr.bf16.mxu1 %v16074_v36 }
 0x9d2   : > { %12139 = vmatpush3.bf16.msra.mxu1 %v12632_v4 }
 0x9d3   : > { %12144 = vmatprep.subr.bf16.mxu1 %v16074_v36 }
 0x9d5   : > { %12141 = vmatmul.mubr.msk.bf16.vlgmr.msra.gmra.mrb[140].mxu1 %vm9197_vm6, %v9399_v43 }
 0x9d6   : > { %12145 = vmatpush3.bf16.msra.mxu1 %v12633_v54  ;;  %12152 = vmatprep.mubr.msk.bf16.mxu1 %vm16075_vm2, %v16074_v36 }
 0x9d7   : > { %12146 = vmatprep.subr.bf16.mxu1 %v16074_v36 }
 0x9da   : > { %12147 = vmatpush3.bf16.msra.mxu1 %v12634_v9 }
 0x9db   : > { %12148 = vmatprep.subr.bf16.mxu1 %v16074_v36 }
 0x9de   : > { %12149 = vmatpush3.bf16.msra.mxu1 %v12635_v49 }
 0x9df   : > { %12150 = vmatprep.subr.bf16.mxu1 %v16074_v36 }
 0x9e2   : > { %12151 = vmatpush3.bf16.msra.mxu1 %v12636_v14 }
 0x9e3   : > { %12156 = vmatprep.subr.bf16.mxu1 %v16074_v36 }
 0x9e5   : > { %12153 = vmatmul.mubr.msk.bf16.vlgmr.msra.gmra.mrb[144].mxu1 %vm9197_vm6, %v9485_v37 }
 0x9e6   : > { %12157 = vmatpush3.bf16.msra.mxu1 %v12637_v21  ;;  %12164 = vmatprep.mubr.msk.bf16.mxu1 %vm16075_vm2, %v16074_v36 }
 0x9e7   : > { %12158 = vmatprep.subr.bf16.mxu1 %v16074_v36 }
 0x9ea   : > { %12159 = vmatpush3.bf16.msra.mxu1 %v12638_v11 }
 0x9eb   : > { %12160 = vmatprep.subr.bf16.mxu1 %v16074_v36 }
 0x9ee   : > { %12161 = vmatpush3.bf16.msra.mxu1 %v12639_v16 }
 0x9ef   : > { %12162 = vmatprep.subr.bf16.mxu1 %v16074_v36 }
 0x9f2   : > { %12163 = vmatpush3.bf16.msra.mxu1 %v12640_v25 }
 0x9f3   : > { %12168 = vmatprep.subr.bf16.mxu1 %v16074_v36 }
 0x9f5   : > { %12165 = vmatmul.mubr.msk.bf16.vlgmr.msra.gmra.mrb[148].mxu1 %vm9197_vm6, %v9565_v46 }
 0x9f6   : > { %12169 = vmatpush3.bf16.msra.mxu1 %v12641_v53  ;;  %12176 = vmatprep.mubr.msk.bf16.mxu1 %vm16075_vm2, %v16074_v36 }
 0x9f7   : > { %12170 = vmatprep.subr.bf16.mxu1 %v16074_v36 }
 0x9fa   : > { %12171 = vmatpush3.bf16.msra.mxu1 %v12642_v44 }
 0x9fb   : > { %12172 = vmatprep.subr.bf16.mxu1 %v16074_v36 }
 0x9fe   : > { %12173 = vmatpush3.bf16.msra.mxu1 %v12643_v45 }
 0x9ff   : > { %12174 = vmatprep.subr.bf16.mxu1 %v16074_v36 }
 0xa02   : > { %12175 = vmatpush3.bf16.msra.mxu1 %v12644_v40 }
 0xa03   : > { %12180 = vmatprep.subr.bf16.mxu1 %v16074_v36 }
 0xa05   : > { %12177 = vmatmul.mubr.msk.bf16.vlgmr.msra.gmra.mrb[152].mxu1 %vm9197_vm6, %v9645_v63 }
 0xa06   : > { %12181 = vmatpush3.bf16.msra.mxu1 %v12645_v51  ;;  %12188 = vmatprep.mubr.msk.bf16.mxu1 %vm16075_vm2, %v16074_v36 }
 0xa07   : > { %12182 = vmatprep.subr.bf16.mxu1 %v16074_v36 }
 0xa0a   : > { %12183 = vmatpush3.bf16.msra.mxu1 %v12646_v38 }
 0xa0b   : > { %12184 = vmatprep.subr.bf16.mxu1 %v16074_v36 }
 0xa0e   : > { %12185 = vmatpush3.bf16.msra.mxu1 %v12647_v0 }
 0xa0f   : > { %12186 = vmatprep.subr.bf16.mxu1 %v16074_v36 }
 0xa12   : > { %12187 = vmatpush3.bf16.msra.mxu1 %v12648_v23 }
 0xa13   : > { %12192 = vmatprep.subr.bf16.mxu1 %v16074_v36 }
 0xa15   : > { %12189 = vmatmul.mubr.msk.bf16.vlgmr.msra.gmra.mrb[156].mxu1 %vm9197_vm6, %v9731_v8 }
 0xa16   : > { %12193 = vmatpush3.bf16.msra.mxu1 %v12649_v48  ;;  %12200 = vmatprep.mubr.msk.bf16.mxu1 %vm16075_vm2, %v16074_v36  ;;  %vm9888_vm2 = vcmask 517120  }
 0xa17   : > { %12194 = vmatprep.subr.bf16.mxu1 %v16074_v36 }
 0xa1a   : > { %12195 = vmatpush3.bf16.msra.mxu1 %v12650_v29 }
 0xa1b   : > { %12196 = vmatprep.subr.bf16.mxu1 %v16074_v36 }
 0xa1e   : > { %12197 = vmatpush3.bf16.msra.mxu1 %v12651_v57 }
 0xa1f   : > { %12198 = vmatprep.subr.bf16.mxu1 %v16074_v36 }
 0xa22   : > { %12199 = vmatpush3.bf16.msra.mxu1 %v12652_v26 }
 0xa25   : > { %12201 = vmatmul.mubr.msk.bf16.vlgmr.msra.gmra.mrb[160].mxu1 %vm9197_vm6, %v9811_v31 }
 0xa78   : > { %v9235_v60 = vpop.f32.mrb[128].mxu1 }
 0xa79   : > { %v12106_v22 = vpop.f32.mrb[129].mxu1 }
 0xa7a   : > { %v9238_v28 = vpop.f32.mrb[130].mxu1 }
 0xa7b   : > { %v12107_v55 = vpop.f32.mrb[131].mxu1 }
 0xa88   : > { %v9302_v52 = vpop.f32.mrb[132].mxu1 }
 0xa89   : > { %v9303_v56 = vadd.f32 %v9302_v52, %v9235_v60  ;;  %v12118_v7 = vpop.f32.mrb[133].mxu1 }
 0xa8a   : > { %v9305_v10 = vpop.f32.mrb[134].mxu1 }
 0xa8b   : > { %v12119_v17 = vpop.f32.mrb[135].mxu1 }
 0xa98   : > { %v9381_v15 = vpop.f32.mrb[136].mxu1 }
 0xa99   : > { %v9387_v42 = vadd.f32 %v9381_v15, %v9303_v56  ;;  %v12130_v39 = vpop.f32.mrb[137].mxu1 }
 0xa9a   : > { %v9384_v12 = vpop.f32.mrb[138].mxu1 }
 0xa9b   : > { %v12131_v58 = vpop.f32.mrb[139].mxu1 }
 0xaa8   : > { %v9461_v36 = vpop.f32.mrb[140].mxu1 }
 0xaa9   : > { %v9467_v50 = vadd.f32 %v9461_v36, %v9387_v42  ;;  %v12142_v2 = vpop.f32.mrb[141].mxu1 }
 0xaaa   : > { %v9464_v6 = vpop.f32.mrb[142].mxu1 }
 0xaab   : > { %v12143_v59 = vpop.f32.mrb[143].mxu1 }
 0xab8   : > { %v9547_v18 = vpop.f32.mrb[144].mxu1 }
 0xab9   : > { %v9553_v35 = vadd.f32 %v9547_v18, %v9467_v50  ;;  %v12154_v32 = vpop.f32.mrb[145].mxu1 }
 0xaba   : > { %v9550_v20 = vpop.f32.mrb[146].mxu1 }
 0xabb   : > { %v12155_v4 = vpop.f32.mrb[147].mxu1 }
 0xac8   : > { %v9627_v34 = vpop.f32.mrb[148].mxu1 }
 0xac9   : > { %v9633_v54 = vadd.f32 %v9627_v34, %v9553_v35  ;;  %v12166_v43 = vpop.f32.mrb[149].mxu1 }
 0xaca   : > { %v9630_v9 = vpop.f32.mrb[150].mxu1 }
 0xacb   : > { %v12167_v19 = vpop.f32.mrb[151].mxu1 }
 0xad8   : > { %v9707_v49 = vpop.f32.mrb[152].mxu1 }
 0xad9   : > { %v9713_v62 = vadd.f32 %v9707_v49, %v9633_v54  ;;  %v12178_v13 = vpop.f32.mrb[153].mxu1 }
 0xada   : > { %v9710_v14 = vpop.f32.mrb[154].mxu1 }
 0xadb   : > { %v12179_v41 = vpop.f32.mrb[155].mxu1 }
 0xae8   : > { %v9793_v61 = vpop.f32.mrb[156].mxu1 }
 0xae9   : > { %v9799_v21 = vadd.f32 %v9793_v61, %v9713_v62  ;;  %v12190_v37 = vpop.f32.mrb[157].mxu1 }
 0xaea   : > { %v9796_v11 = vpop.f32.mrb[158].mxu1 }
 0xaeb   : > { %v12191_v16 = vpop.f32.mrb[159].mxu1 }
 0xaf8   : > { %v9873_v25 = vpop.f32.mrb[160].mxu1 }
 0xaf9   : > { %v9879_v53 = vadd.f32 %v9873_v25, %v9799_v21  ;;  %v12202_v46 = vpop.f32.mrb[161].mxu1 }
 0xafa   : > { %v9876_v44 = vpop.f32.mrb[162].mxu1 }
 0xafb   : > { %v9887_v45 = vadd.f32 %v10709_v30, %v9879_v53  ;;  %v12203_v40 = vpop.f32.mrb[163].mxu1 }
 0xafd   : > { %9889 = vst.msk [vmem:[%s379_s12] sm:$0x3] %vm9888_vm2, %v9887_v45 }
 0xafe   : > { %9891 = vst.msk [vmem:[%s379_s12 - $0x2] sm:$0x30] %vm9890_vm12, %v9887_v45 }
 0xaff   : > { %12696 = shalt.err (!%p12693_p3)
}
 0xb00   : > { %s12697_s22 = scalar_lea.hbm %s15560_s16, 64  ;;  %s12701_s14 = scalar_lea.hbm %s15613_s11, 128 }
 0xb01   : > { %p12698_p4 = scmp.ne.s32.totalorder %s15560_s16, %s12697_s22  ;;  %p12702_p9 = scmp.lt.u32.totalorder %s15560_s16, %s15613_s11 }
 0xb02   : > { %p12703_p10 = scmp.lt.u32.totalorder %s12701_s14, %s12697_s22  ;;  %p12705_p12 = scmp.lt.u32.totalorder %s12697_s22, %s15560_s16 }
 0xb03   : > { %p12699_p7 = pnand %p12698_p4, %p12849_p5 }
 0xb04   : > { %p12704_p11 = por %p12703_p10, %p12702_p9 }
 0xb05   : > { %p12700_p8 = pneg %p12699_p7 }
 0xb06   : > { %p12706_p13 = por %p12705_p12, %p12704_p11 }
 0xb08   : > { %p12707_p0 = pnand %p12706_p13, %p12700_p8 }
 0xb0a   : > { %12710 = shalt.err (!%p12707_p0)
}
 0xb0b   : > { %12374 = dma.vmem_to_hbm [thread:$0]  (%p12849_p5), %s15562_s13, 64, %s15560_s16, %s9893_s21  }
 0xb0c PF: > { %p12380_p1 = scmp.ge.s32.totalorder %s12745_s20, 2  ;;  %s9918_s0 = sand.u32 1, %s12733_s17  }
 0xb0d   : > { %s9919_s24 = scalar_lea.sflag [#allocation7], %s9918_s0 }
 0xb0e   : > { %p12377_p2 = pnand %p12380_p1, %p12853_p6 }
 0xb10   : > { %12728 = dma.done.wait (!%p12377_p2), %s9919_s24, 64  }
 0xb11   : > { %12730 = vsyncadd (!%p12377_p2), %s9919_s24, 4294967232  ;;  %p21_p3 = scmp.ge.s32.totalorder %s12836_s23, 4   ;;  %s16232_s17 = smov %s12737_s18 }
 0xb12   : > { %s16233_s18 = smov %s12741_s19  ;;  %s16234_s19 = smov %s12847_s26 }
 0xb13   : > { %s16235_s20 = smov %s12836_s23  ;;  %23 = sbr.rel (!%p21_p3) target bundleno = 5 (0x5), region = 134 }
 0xb1a   :  { %9924 = vsyncpa [#allocation7], 1 }
 0xb1b   :  { %9926 = vsyncpa [#allocation7 + $0x1], 1 }

</bundles_post_ra>
